<compile_context>
chip_gen: v7x
topology: tpu7x:2x2x1
jax: 0.10.0
libtpu: 0.0.40
codegen_flags: <defaults>
</compile_context>

<pallas_src>
import functools

import jax
import jax.numpy as jnp
from jax.experimental import pallas as pl
from jax.experimental.pallas import tpu as pltpu

LANE = 128


def _round_up(x, m):
    return (x + m - 1) // m * m


# ----------------------------------------------------------------------------
# Pallas kernel: fused chain of (h @ W_i + b_i [+ SiLU]) matmuls.
# ----------------------------------------------------------------------------
def _chain_kernel(*refs, n_layers, emit, silu, sig_dtype):
    """refs = (patches, w_0, b_0, ..., w_{L-1}, b_{L-1}, out_0, ..., out_{E-1})."""
    out_refs = refs[1 + 2 * n_layers:]
    h = refs[0][...]                                   # (tm, K) bf16 patch tile
    oi = 0
    for i in range(n_layers):
        w = refs[1 + 2 * i][...]                       # (K_i, N_i) bf16, VMEM-resident
        b = refs[2 + 2 * i][...]                       # (1,  N_i) f32 bias row
        acc = jnp.dot(h, w, preferred_element_type=jnp.float32) + b
        if silu[i]:
            # SiLU on the EUP; bf16 sigmoid on v6e/v7x, f32 on <=v5.
            acc = acc * jax.nn.sigmoid(acc.astype(sig_dtype)).astype(jnp.float32)
        if i in emit:
            out_refs[oi][...] = acc.astype(out_refs[oi].dtype)
            oi += 1
        if i + 1 < n_layers:
            h = acc.astype(jnp.bfloat16)               # next MXU input in bf16


# ----------------------------------------------------------------------------
# Hardware-aware knobs
# ----------------------------------------------------------------------------
def _vmem_config():
    try:
        cap = int(pltpu.get_tpu_info().vmem_capacity_bytes)
    except Exception:
        cap = 64 << 20                                  # conservative (v7x physical)
    budget = min(cap * 3 // 8, 48 << 20)                # per-step footprint target
    vmem_limit = min(cap * 3 // 4, 96 << 20)
    return budget, vmem_limit


def _sigmoid_dtype():
    try:
        kind = jax.devices()[0].device_kind.lower()
    except Exception:
        return jnp.float32
    if any(v in kind for v in ("v2", "v3", "v4", "v5")):
        return jnp.float32                              # no bf16 EUP on <= v5
    return jnp.bfloat16


def _choose_tm(M, footprint, budget):
    mp16 = _round_up(M, 16)                             # bf16: 16 rows per packed vreg
    # >= 2 M tiles whenever possible so v7x's second TensorCore gets work.
    cap = mp16 if mp16 < 32 else _round_up((mp16 + 1) // 2, 16)
    for cand in (1024, 512, 256, 128, 64, 32, 16):
        if cand <= cap and footprint(cand) <= budget:
            return cand
    return 16


# ----------------------------------------------------------------------------
# im2col patch extraction (true channels only — K is not padded)
# ----------------------------------------------------------------------------
def _im2col(x_nhwc, k, stride, pad):
    """(B,H,W,C_true) -> patches (B*Ho*Wo, k*k*C_true), plus output dims.

    # TODO(synk): patch taps are still materialized by XLA; shifted strided
    # windows are not expressible in BlockSpec index maps, so fully in-kernel
    # im2col would need manual strided DMA (pl.ANY + make_async_copy).
    """
    x = x_nhwc
    if pad:
        x = jnp.pad(x, ((0, 0), (pad, pad), (pad, pad), (0, 0)))
    B, H, W, C = x.shape
    Ho = (H - k) // stride + 1
    Wo = (W - k) // stride + 1
    if k == 1 and stride == 1:
        return x.reshape(B * Ho * Wo, C), (B, Ho, Wo)
    cols = []
    for i in range(k):
        for j in range(k):
            cols.append(x[:, i:i + Ho * stride:stride, j:j + Wo * stride:stride, :])
    patches = jnp.concatenate(cols, axis=-1)            # (B, Ho, Wo, k*k*C)
    return patches.reshape(B * Ho * Wo, k * k * C), (B, Ho, Wo)


# ----------------------------------------------------------------------------
# One fused chain = one pallas_call
# ----------------------------------------------------------------------------
def run_chain(chain, h_nhwc, *, budget, vmem_limit, sig_dtype):
    layers, emit = chain["layers"], chain["emit"]
    head = layers[0]
    patches, (B, Ho, Wo) = _im2col(
        h_nhwc[..., :head["cin_true"]].astype(jnp.bfloat16),
        head["k"], head["stride"], head["pad"])
    M, K = patches.shape

    w_bytes = sum(l["w"].size * 2 + l["b"].size * 4 for l in layers)
    out_row_bytes = sum(layers[i]["w"].shape[1] * jnp.dtype(dt).itemsize
                        for i, dt in emit)
    max_n = max(l["w"].shape[1] for l in layers)

    def footprint(tm):                                  # per-step VMEM (double-buffered)
        return 2 * (tm * K * 2 + tm * out_row_bytes + tm * max_n * 4) + 2 * w_bytes

    tm = _choose_tm(M, footprint, budget)
    Mp = _round_up(M, tm)
    if Mp != M:
        patches = jnp.pad(patches, ((0, Mp - M), (0, 0)))

    in_specs = [pl.BlockSpec((tm, K), lambda i: (i, 0))]
    args = [patches]
    for l in layers:
        Kl, Nl = l["w"].shape
        in_specs.append(pl.BlockSpec((Kl, Nl), lambda i: (0, 0)))   # resident weights
        in_specs.append(pl.BlockSpec((1, Nl), lambda i: (0, 0)))    # resident bias
        args += [l["w"], l["b"]]

    out_shapes, out_specs = [], []
    for idx, dt in emit:
        Nl = layers[idx]["w"].shape[1]
        out_shapes.append(jax.ShapeDtypeStruct((Mp, Nl), dt))
        out_specs.append(pl.BlockSpec((tm, Nl), lambda i: (i, 0)))

    flops = sum(2 * Mp * l["w"].shape[0] * l["w"].shape[1] for l in layers)
    trans = sum(Mp * l["w"].shape[1] for l in layers if l["silu"])
    bytes_accessed = patches.size * 2 + w_bytes + Mp * out_row_bytes

    kernel = functools.partial(
        _chain_kernel,
        n_layers=len(layers),
        emit=tuple(i for i, _ in emit),
        silu=tuple(bool(l["silu"]) for l in layers),
        sig_dtype=sig_dtype)

    outs = pl.pallas_call(
        kernel,
        out_shape=tuple(out_shapes),
        grid=(Mp // tm,),
        in_specs=in_specs,
        out_specs=tuple(out_specs),
        compiler_params=pltpu.CompilerParams(
            dimension_semantics=("parallel",),
            vmem_limit_bytes=vmem_limit),
        cost_estimate=pl.CostEstimate(flops=flops, transcendentals=trans,
                                      bytes_accessed=bytes_accessed),
    )(*args)
    if not isinstance(outs, (list, tuple)):
        outs = (outs,)
    # M-pad rows are garbage (SiLU(bias) != 0); always slice them off.
    return [o[:M].reshape(B, Ho, Wo, -1) for o in outs]


# ----------------------------------------------------------------------------
# Parameters (deterministic synthetic init — no checkpoint loading).
# Weight transforms (OIHW -> (K, Np) bf16 matmul form) are done ONCE here.
# ----------------------------------------------------------------------------
def _prep_conv(key, cout, cin_true, cin_rows, k, *, stride, pad, silu):
    """Only OUTPUT channels are padded (to 128 lanes).  cin_rows > cin_true is
    used only for layers fused behind a channel-padded in-kernel activation;
    those extra rows are zero, so padded channels contribute exactly 0."""
    k_w, k_b = jax.random.split(key)
    fan_in = cin_true * k * k
    w = jax.random.normal(k_w, (cout, cin_true, k, k), jnp.float32) \
        * (2.0 / fan_in) ** 0.5
    b = jax.random.normal(k_b, (cout,), jnp.float32) * 0.01

    cout_p = _round_up(cout, LANE)
    w_hwio = jnp.transpose(w, (2, 3, 1, 0))              # OIHW -> HWIO
    w_hwio = jnp.pad(w_hwio, ((0, 0), (0, 0),
                              (0, cin_rows - cin_true), (0, cout_p - cout)))
    w_mat = w_hwio.reshape(k * k * cin_rows, cout_p).astype(jnp.bfloat16)
    b_row = jnp.pad(b, (0, cout_p - cout)).reshape(1, cout_p).astype(jnp.float32)
    return {"w": w_mat, "b": b_row, "k": k, "stride": stride, "pad": pad,
            "silu": silu, "cin_true": cin_true, "cout": cout, "cout_p": cout_p}


def build_params(key):
    # TODO(synk): pretrained EfficientNet-B0 MBConv stacks (depthwise convs,
    # squeeze-excite, batchnorm, ImageNet weights) are approximated by one
    # strided conv+SiLU per torchvision sub-block; P3/P4/P5 channels and
    # strides (40@/8, 112@/16, 1280@/32) and the 1x1 adapters match the spec.
    keys = iter(jax.random.split(key, 16))

    def conv(cout, cin_true, cin_rows, k, s, silu):
        return _prep_conv(next(keys), cout, cin_true, cin_rows, k,
                          stride=s, pad=(k - 1) // 2, silu=silu)

    c1 = conv(32, 3, 3, 3, 2, True)                      # stem
    c2 = conv(24, 32, 32, 3, 2, True)
    c3 = conv(40, 24, 24, 3, 2, True)                    # -> P3 (40 ch, /8)
    a3 = conv(256, 40, c3["cout_p"], 1, 1, False)        # P3 adapter (fused)
    c4 = conv(80, 40, 40, 3, 2, True)
    c5 = conv(112, 80, 80, 3, 1, True)                   # -> P4 (112 ch, /16)
    a4 = conv(512, 112, c5["cout_p"], 1, 1, False)       # P4 adapter (fused)
    c6 = conv(192, 112, 112, 3, 2, True)
    c7 = conv(320, 192, 192, 3, 1, True)
    c8 = conv(1280, 320, c7["cout_p"], 1, 1, True)       # -> P5 (1280 ch, /32)
    a5 = conv(1024, 1280, c8["cout_p"], 1, 1, False)     # P5 adapter (fused)

    bf16, f32 = jnp.bfloat16, jnp.float32
    return {
        "c1": {"layers": [c1], "emit": [(0, bf16)]},
        "c2": {"layers": [c2], "emit": [(0, bf16)]},
        "c3": {"layers": [c3, a3], "emit": [(0, bf16), (1, f32)]},
        "c4": {"layers": [c4], "emit": [(0, bf16)]},
        "c5": {"layers": [c5, a4], "emit": [(0, bf16), (1, f32)]},
        "c6": {"layers": [c6], "emit": [(0, bf16)]},
        "c7": {"layers": [c7, c8, a5], "emit": [(2, f32)]},
    }


# ----------------------------------------------------------------------------
# Forward pass (mirrors CustomBackbone.forward)
# ----------------------------------------------------------------------------
def custom_backbone_forward(params, x_nchw):
    budget, vmem_limit = _vmem_config()
    sig_dtype = _sigmoid_dtype()
    run = functools.partial(run_chain, budget=budget, vmem_limit=vmem_limit,
                            sig_dtype=sig_dtype)

    x = jnp.transpose(x_nchw, (0, 2, 3, 1))              # NCHW -> NHWC
    (h,) = run(params["c1"], x)                          # (B, H/2,  W/2,  128)
    (h,) = run(params["c2"], h)                          # (B, H/4,  W/4,  128)
    p3, p3_out = run(params["c3"], h)                    # P3 act + 256-ch adapter
    (h,) = run(params["c4"], p3)                         # (B, H/16, W/16, 128)
    p4, p4_out = run(params["c5"], h)                    # P4 act + 512-ch adapter
    (h,) = run(params["c6"], p4)                         # (B, H/32, W/32, 256)
    (p5_out,) = run(params["c7"], h)                     # conv7+conv8+1024 adapter

    return [jnp.transpose(o.astype(jnp.float32), (0, 3, 1, 2))
            for o in (p3_out, p4_out, p5_out)]           # [P3_out, P4_out, P5_out]


# ----------------------------------------------------------------------------
if __name__ == "__main__":
    root = jax.random.PRNGKey(0)
    k_params, k_x = jax.random.split(root)

    params = build_params(k_params)
    x = jax.random.normal(k_x, (2, 3, 64, 64), jnp.float32)   # small NCHW input

    fwd = jax.jit(functools.partial(custom_backbone_forward, params))
    outs = fwd(x)
    outs = [jax.block_until_ready(o) for o in outs]

    assert outs[0].shape == (2, 256, 8, 8), outs[0].shape      # P3 adapter out
    assert outs[1].shape == (2, 512, 4, 4), outs[1].shape      # P4 adapter out
    assert outs[2].shape == (2, 1024, 2, 2), outs[2].shape     # P5 adapter out
    assert all(o.dtype == jnp.float32 for o in outs)
    assert all(bool(jnp.all(jnp.isfinite(o))) for o in outs)

    print("KERNEL_OK")
</pallas_src>

<mosaic_0001>
module attributes {stable_mosaic.version = 11 : i64} {
  func.func @_chain_kernel(%arg0: i32, %arg1: memref<1024x27xbf16, #tpu.memory_space<vmem>>, %arg2: memref<27x128xbf16, #tpu.memory_space<vmem>>, %arg3: memref<1x128xf32, #tpu.memory_space<vmem>>, %arg4: memref<1024x128xbf16, #tpu.memory_space<vmem>>) attributes {dimension_semantics = [#tpu.dimension_semantics<parallel>], iteration_bounds = array<i64: 2>, scalar_prefetch = 0 : i64, scratch_operands = 0 : i64, tpu.core_type = #tpu.core_type<tc>, window_params = [{transform_indices = @transform_0, window_bounds = array<i64: 1024, 27>}, {pipeline_mode = #tpu.pipeline_mode<synchronous>, transform_indices = @transform_1, window_bounds = array<i64: 27, 128>}, {pipeline_mode = #tpu.pipeline_mode<synchronous>, transform_indices = @transform_2, window_bounds = array<i64: 1, 128>}, {transform_indices = @transform_3, window_bounds = array<i64: 1024, 128>}]} {
    %c0 = arith.constant 0 : index
    %c0_0 = arith.constant 0 : index
    %0 = vector.load %arg1[%c0, %c0_0] : memref<1024x27xbf16, #tpu.memory_space<vmem>>, vector<1024x27xbf16>
    %c0_1 = arith.constant 0 : index
    %c0_2 = arith.constant 0 : index
    %1 = vector.load %arg2[%c0_1, %c0_2] : memref<27x128xbf16, #tpu.memory_space<vmem>>, vector<27x128xbf16>
    %c0_3 = arith.constant 0 : index
    %c0_4 = arith.constant 0 : index
    %2 = vector.load %arg3[%c0_3, %c0_4] : memref<1x128xf32, #tpu.memory_space<vmem>>, vector<1x128xf32>
    %cst = arith.constant dense<0.000000e+00> : vector<1024x128xf32>
    %3 = tpu.matmul %0, %1, %cst {dimension_numbers = #tpu.dot_dimension_numbers<[1], [0], [0], [1], [0, 0, 1, 1], [], []>} : vector<1024x27xbf16>, vector<27x128xbf16>, vector<1024x128xf32> -> vector<1024x128xf32>
    %4 = vector.broadcast %2 : vector<1x128xf32> to vector<1024x128xf32>
    %5 = arith.addf %3, %4 : vector<1024x128xf32>
    %6 = arith.truncf %5 : vector<1024x128xf32> to vector<1024x128xbf16>
    %7 = arith.negf %6 : vector<1024x128xbf16>
    %8 = math.exp %7 : vector<1024x128xbf16>
    %cst_5 = arith.constant 1.000000e+00 : bf16
    %9 = vector.broadcast %cst_5 : bf16 to vector<1024x128xbf16>
    %10 = arith.addf %9, %8 : vector<1024x128xbf16>
    %11 = arith.divf %9, %10 : vector<1024x128xbf16>
    %12 = arith.extf %11 : vector<1024x128xbf16> to vector<1024x128xf32>
    %13 = arith.mulf %5, %12 : vector<1024x128xf32>
    %14 = arith.truncf %13 : vector<1024x128xf32> to vector<1024x128xbf16>
    %c0_6 = arith.constant 0 : index
    %c0_7 = arith.constant 0 : index
    %15 = vector.load %arg4[%c0_6, %c0_7] : memref<1024x128xbf16, #tpu.memory_space<vmem>>, vector<1024x128xbf16>
    tpu.vector_store %arg4[%c0_6, %c0_7], %14 {strides = array<i32>} : memref<1024x128xbf16, #tpu.memory_space<vmem>>, vector<1024x128xbf16>,
    return
  }
  func.func @transform_0(%arg0: i32) -> (i32, i32) {
    %c0_i32 = arith.constant 0 : i32
    %c0_i32_0 = arith.constant 0 : i32
    return %arg0, %c0_i32 : i32, i32
  }
  func.func @transform_1(%arg0: i32) -> (i32, i32) {
    %c0_i32 = arith.constant 0 : i32
    %c0_i32_0 = arith.constant 0 : i32
    %c0_i32_1 = arith.constant 0 : i32
    return %c0_i32, %c0_i32_0 : i32, i32
  }
  func.func @transform_2(%arg0: i32) -> (i32, i32) {
    %c0_i32 = arith.constant 0 : i32
    %c0_i32_0 = arith.constant 0 : i32
    %c0_i32_1 = arith.constant 0 : i32
    return %c0_i32, %c0_i32_0 : i32, i32
  }
  func.func @transform_3(%arg0: i32) -> (i32, i32) {
    %c0_i32 = arith.constant 0 : i32
    %c0_i32_0 = arith.constant 0 : i32
    return %arg0, %c0_i32 : i32, i32
  }
}

module attributes {stable_mosaic.version = 11 : i64} {
  func.func @_chain_kernel(%arg0: i32, %arg1: memref<256x288xbf16, #tpu.memory_space<vmem>>, %arg2: memref<288x128xbf16, #tpu.memory_space<vmem>>, %arg3: memref<1x128xf32, #tpu.memory_space<vmem>>, %arg4: memref<256x128xbf16, #tpu.memory_space<vmem>>) attributes {dimension_semantics = [#tpu.dimension_semantics<parallel>], iteration_bounds = array<i64: 2>, scalar_prefetch = 0 : i64, scratch_operands = 0 : i64, tpu.core_type = #tpu.core_type<tc>, window_params = [{transform_indices = @transform_0, window_bounds = array<i64: 256, 288>}, {pipeline_mode = #tpu.pipeline_mode<synchronous>, transform_indices = @transform_1, window_bounds = array<i64: 288, 128>}, {pipeline_mode = #tpu.pipeline_mode<synchronous>, transform_indices = @transform_2, window_bounds = array<i64: 1, 128>}, {transform_indices = @transform_3, window_bounds = array<i64: 256, 128>}]} {
    %c0 = arith.constant 0 : index
    %c0_0 = arith.constant 0 : index
    %0 = vector.load %arg1[%c0, %c0_0] : memref<256x288xbf16, #tpu.memory_space<vmem>>, vector<256x288xbf16>
    %c0_1 = arith.constant 0 : index
    %c0_2 = arith.constant 0 : index
    %1 = vector.load %arg2[%c0_1, %c0_2] : memref<288x128xbf16, #tpu.memory_space<vmem>>, vector<288x128xbf16>
    %c0_3 = arith.constant 0 : index
    %c0_4 = arith.constant 0 : index
    %2 = vector.load %arg3[%c0_3, %c0_4] : memref<1x128xf32, #tpu.memory_space<vmem>>, vector<1x128xf32>
    %cst = arith.constant dense<0.000000e+00> : vector<256x128xf32>
    %3 = tpu.matmul %0, %1, %cst {dimension_numbers = #tpu.dot_dimension_numbers<[1], [0], [0], [1], [0, 0, 1, 1], [], []>} : vector<256x288xbf16>, vector<288x128xbf16>, vector<256x128xf32> -> vector<256x128xf32>
    %4 = vector.broadcast %2 : vector<1x128xf32> to vector<256x128xf32>
    %5 = arith.addf %3, %4 : vector<256x128xf32>
    %6 = arith.truncf %5 : vector<256x128xf32> to vector<256x128xbf16>
    %7 = arith.negf %6 : vector<256x128xbf16>
    %8 = math.exp %7 : vector<256x128xbf16>
    %cst_5 = arith.constant 1.000000e+00 : bf16
    %9 = vector.broadcast %cst_5 : bf16 to vector<256x128xbf16>
    %10 = arith.addf %9, %8 : vector<256x128xbf16>
    %11 = arith.divf %9, %10 : vector<256x128xbf16>
    %12 = arith.extf %11 : vector<256x128xbf16> to vector<256x128xf32>
    %13 = arith.mulf %5, %12 : vector<256x128xf32>
    %14 = arith.truncf %13 : vector<256x128xf32> to vector<256x128xbf16>
    %c0_6 = arith.constant 0 : index
    %c0_7 = arith.constant 0 : index
    %15 = vector.load %arg4[%c0_6, %c0_7] : memref<256x128xbf16, #tpu.memory_space<vmem>>, vector<256x128xbf16>
    tpu.vector_store %arg4[%c0_6, %c0_7], %14 {strides = array<i32>} : memref<256x128xbf16, #tpu.memory_space<vmem>>, vector<256x128xbf16>,
    return
  }
  func.func @transform_0(%arg0: i32) -> (i32, i32) {
    %c0_i32 = arith.constant 0 : i32
    %c0_i32_0 = arith.constant 0 : i32
    return %arg0, %c0_i32 : i32, i32
  }
  func.func @transform_1(%arg0: i32) -> (i32, i32) {
    %c0_i32 = arith.constant 0 : i32
    %c0_i32_0 = arith.constant 0 : i32
    %c0_i32_1 = arith.constant 0 : i32
    return %c0_i32, %c0_i32_0 : i32, i32
  }
  func.func @transform_2(%arg0: i32) -> (i32, i32) {
    %c0_i32 = arith.constant 0 : i32
    %c0_i32_0 = arith.constant 0 : i32
    %c0_i32_1 = arith.constant 0 : i32
    return %c0_i32, %c0_i32_0 : i32, i32
  }
  func.func @transform_3(%arg0: i32) -> (i32, i32) {
    %c0_i32 = arith.constant 0 : i32
    %c0_i32_0 = arith.constant 0 : i32
    return %arg0, %c0_i32 : i32, i32
  }
}

module attributes {stable_mosaic.version = 11 : i64} {
  func.func @_chain_kernel(%arg0: i32, %arg1: memref<64x216xbf16, #tpu.memory_space<vmem>>, %arg2: memref<216x128xbf16, #tpu.memory_space<vmem>>, %arg3: memref<1x128xf32, #tpu.memory_space<vmem>>, %arg4: memref<128x256xbf16, #tpu.memory_space<vmem>>, %arg5: memref<1x256xf32, #tpu.memory_space<vmem>>, %arg6: memref<64x128xbf16, #tpu.memory_space<vmem>>, %arg7: memref<64x256xf32, #tpu.memory_space<vmem>>) attributes {dimension_semantics = [#tpu.dimension_semantics<parallel>], iteration_bounds = array<i64: 2>, scalar_prefetch = 0 : i64, scratch_operands = 0 : i64, tpu.core_type = #tpu.core_type<tc>, window_params = [{transform_indices = @transform_0, window_bounds = array<i64: 64, 216>}, {pipeline_mode = #tpu.pipeline_mode<synchronous>, transform_indices = @transform_1, window_bounds = array<i64: 216, 128>}, {pipeline_mode = #tpu.pipeline_mode<synchronous>, transform_indices = @transform_2, window_bounds = array<i64: 1, 128>}, {pipeline_mode = #tpu.pipeline_mode<synchronous>, transform_indices = @transform_3, window_bounds = array<i64: 128, 256>}, {pipeline_mode = #tpu.pipeline_mode<synchronous>, transform_indices = @transform_4, window_bounds = array<i64: 1, 256>}, {transform_indices = @transform_5, window_bounds = array<i64: 64, 128>}, {transform_indices = @transform_6, window_bounds = array<i64: 64, 256>}]} {
    %c0 = arith.constant 0 : index
    %c0_0 = arith.constant 0 : index
    %0 = vector.load %arg1[%c0, %c0_0] : memref<64x216xbf16, #tpu.memory_space<vmem>>, vector<64x216xbf16>
    %c0_1 = arith.constant 0 : index
    %c0_2 = arith.constant 0 : index
    %1 = vector.load %arg2[%c0_1, %c0_2] : memref<216x128xbf16, #tpu.memory_space<vmem>>, vector<216x128xbf16>
    %c0_3 = arith.constant 0 : index
    %c0_4 = arith.constant 0 : index
    %2 = vector.load %arg3[%c0_3, %c0_4] : memref<1x128xf32, #tpu.memory_space<vmem>>, vector<1x128xf32>
    %cst = arith.constant dense<0.000000e+00> : vector<64x128xf32>
    %3 = tpu.matmul %0, %1, %cst {dimension_numbers = #tpu.dot_dimension_numbers<[1], [0], [0], [1], [0, 0, 1, 1], [], []>} : vector<64x216xbf16>, vector<216x128xbf16>, vector<64x128xf32> -> vector<64x128xf32>
    %4 = vector.broadcast %2 : vector<1x128xf32> to vector<64x128xf32>
    %5 = arith.addf %3, %4 : vector<64x128xf32>
    %6 = arith.truncf %5 : vector<64x128xf32> to vector<64x128xbf16>
    %7 = arith.negf %6 : vector<64x128xbf16>
    %8 = math.exp %7 : vector<64x128xbf16>
    %cst_5 = arith.constant 1.000000e+00 : bf16
    %9 = vector.broadcast %cst_5 : bf16 to vector<64x128xbf16>
    %10 = arith.addf %9, %8 : vector<64x128xbf16>
    %11 = arith.divf %9, %10 : vector<64x128xbf16>
    %12 = arith.extf %11 : vector<64x128xbf16> to vector<64x128xf32>
    %13 = arith.mulf %5, %12 : vector<64x128xf32>
    %14 = arith.truncf %13 : vector<64x128xf32> to vector<64x128xbf16>
    %c0_6 = arith.constant 0 : index
    %c0_7 = arith.constant 0 : index
    %15 = vector.load %arg6[%c0_6, %c0_7] : memref<64x128xbf16, #tpu.memory_space<vmem>>, vector<64x128xbf16>
    tpu.vector_store %arg6[%c0_6, %c0_7], %14 {strides = array<i32>} : memref<64x128xbf16, #tpu.memory_space<vmem>>, vector<64x128xbf16>,
    %16 = arith.truncf %13 : vector<64x128xf32> to vector<64x128xbf16>
    %c0_8 = arith.constant 0 : index
    %c0_9 = arith.constant 0 : index
    %17 = vector.load %arg4[%c0_8, %c0_9] : memref<128x256xbf16, #tpu.memory_space<vmem>>, vector<128x256xbf16>
    %c0_10 = arith.constant 0 : index
    %c0_11 = arith.constant 0 : index
    %18 = vector.load %arg5[%c0_10, %c0_11] : memref<1x256xf32, #tpu.memory_space<vmem>>, vector<1x256xf32>
    %cst_12 = arith.constant dense<0.000000e+00> : vector<64x256xf32>
    %19 = tpu.matmul %16, %17, %cst_12 {dimension_numbers = #tpu.dot_dimension_numbers<[1], [0], [0], [1], [0, 0, 1, 1], [], []>} : vector<64x128xbf16>, vector<128x256xbf16>, vector<64x256xf32> -> vector<64x256xf32>
    %20 = vector.broadcast %18 : vector<1x256xf32> to vector<64x256xf32>
    %21 = arith.addf %19, %20 : vector<64x256xf32>
    %c0_13 = arith.constant 0 : index
    %c0_14 = arith.constant 0 : index
    %22 = vector.load %arg7[%c0_13, %c0_14] : memref<64x256xf32, #tpu.memory_space<vmem>>, vector<64x256xf32>
    tpu.vector_store %arg7[%c0_13, %c0_14], %21 {strides = array<i32>} : memref<64x256xf32, #tpu.memory_space<vmem>>, vector<64x256xf32>,
    return
  }
  func.func @transform_0(%arg0: i32) -> (i32, i32) {
    %c0_i32 = arith.constant 0 : i32
    %c0_i32_0 = arith.constant 0 : i32
    return %arg0, %c0_i32 : i32, i32
  }
  func.func @transform_1(%arg0: i32) -> (i32, i32) {
    %c0_i32 = arith.constant 0 : i32
    %c0_i32_0 = arith.constant 0 : i32
    %c0_i32_1 = arith.constant 0 : i32
    return %c0_i32, %c0_i32_0 : i32, i32
  }
  func.func @transform_2(%arg0: i32) -> (i32, i32) {
    %c0_i32 = arith.constant 0 : i32
    %c0_i32_0 = arith.constant 0 : i32
    %c0_i32_1 = arith.constant 0 : i32
    return %c0_i32, %c0_i32_0 : i32, i32
  }
  func.func @transform_3(%arg0: i32) -> (i32, i32) {
    %c0_i32 = arith.constant 0 : i32
    %c0_i32_0 = arith.constant 0 : i32
    %c0_i32_1 = arith.constant 0 : i32
    return %c0_i32, %c0_i32_0 : i32, i32
  }
  func.func @transform_4(%arg0: i32) -> (i32, i32) {
    %c0_i32 = arith.constant 0 : i32
    %c0_i32_0 = arith.constant 0 : i32
    %c0_i32_1 = arith.constant 0 : i32
    return %c0_i32, %c0_i32_0 : i32, i32
  }
  func.func @transform_5(%arg0: i32) -> (i32, i32) {
    %c0_i32 = arith.constant 0 : i32
    %c0_i32_0 = arith.constant 0 : i32
    return %arg0, %c0_i32 : i32, i32
  }
  func.func @transform_6(%arg0: i32) -> (i32, i32) {
    %c0_i32 = arith.constant 0 : i32
    %c0_i32_0 = arith.constant 0 : i32
    return %arg0, %c0_i32 : i32, i32
  }
}

module attributes {stable_mosaic.version = 11 : i64} {
  func.func @_chain_kernel(%arg0: i32, %arg1: memref<16x360xbf16, #tpu.memory_space<vmem>>, %arg2: memref<360x128xbf16, #tpu.memory_space<vmem>>, %arg3: memref<1x128xf32, #tpu.memory_space<vmem>>, %arg4: memref<16x128xbf16, #tpu.memory_space<vmem>>) attributes {dimension_semantics = [#tpu.dimension_semantics<parallel>], iteration_bounds = array<i64: 2>, scalar_prefetch = 0 : i64, scratch_operands = 0 : i64, tpu.core_type = #tpu.core_type<tc>, window_params = [{transform_indices = @transform_0, window_bounds = array<i64: 16, 360>}, {pipeline_mode = #tpu.pipeline_mode<synchronous>, transform_indices = @transform_1, window_bounds = array<i64: 360, 128>}, {pipeline_mode = #tpu.pipeline_mode<synchronous>, transform_indices = @transform_2, window_bounds = array<i64: 1, 128>}, {transform_indices = @transform_3, window_bounds = array<i64: 16, 128>}]} {
    %c0 = arith.constant 0 : index
    %c0_0 = arith.constant 0 : index
    %0 = vector.load %arg1[%c0, %c0_0] : memref<16x360xbf16, #tpu.memory_space<vmem>>, vector<16x360xbf16>
    %c0_1 = arith.constant 0 : index
    %c0_2 = arith.constant 0 : index
    %1 = vector.load %arg2[%c0_1, %c0_2] : memref<360x128xbf16, #tpu.memory_space<vmem>>, vector<360x128xbf16>
    %c0_3 = arith.constant 0 : index
    %c0_4 = arith.constant 0 : index
    %2 = vector.load %arg3[%c0_3, %c0_4] : memref<1x128xf32, #tpu.memory_space<vmem>>, vector<1x128xf32>
    %cst = arith.constant dense<0.000000e+00> : vector<16x128xf32>
    %3 = tpu.matmul %0, %1, %cst {dimension_numbers = #tpu.dot_dimension_numbers<[1], [0], [0], [1], [0, 0, 1, 1], [], []>} : vector<16x360xbf16>, vector<360x128xbf16>, vector<16x128xf32> -> vector<16x128xf32>
    %4 = vector.broadcast %2 : vector<1x128xf32> to vector<16x128xf32>
    %5 = arith.addf %3, %4 : vector<16x128xf32>
    %6 = arith.truncf %5 : vector<16x128xf32> to vector<16x128xbf16>
    %7 = arith.negf %6 : vector<16x128xbf16>
    %8 = math.exp %7 : vector<16x128xbf16>
    %cst_5 = arith.constant 1.000000e+00 : bf16
    %9 = vector.broadcast %cst_5 : bf16 to vector<16x128xbf16>
    %10 = arith.addf %9, %8 : vector<16x128xbf16>
    %11 = arith.divf %9, %10 : vector<16x128xbf16>
    %12 = arith.extf %11 : vector<16x128xbf16> to vector<16x128xf32>
    %13 = arith.mulf %5, %12 : vector<16x128xf32>
    %14 = arith.truncf %13 : vector<16x128xf32> to vector<16x128xbf16>
    %c0_6 = arith.constant 0 : index
    %c0_7 = arith.constant 0 : index
    %15 = vector.load %arg4[%c0_6, %c0_7] : memref<16x128xbf16, #tpu.memory_space<vmem>>, vector<16x128xbf16>
    tpu.vector_store %arg4[%c0_6, %c0_7], %14 {strides = array<i32>} : memref<16x128xbf16, #tpu.memory_space<vmem>>, vector<16x128xbf16>,
    return
  }
  func.func @transform_0(%arg0: i32) -> (i32, i32) {
    %c0_i32 = arith.constant 0 : i32
    %c0_i32_0 = arith.constant 0 : i32
    return %arg0, %c0_i32 : i32, i32
  }
  func.func @transform_1(%arg0: i32) -> (i32, i32) {
    %c0_i32 = arith.constant 0 : i32
    %c0_i32_0 = arith.constant 0 : i32
    %c0_i32_1 = arith.constant 0 : i32
    return %c0_i32, %c0_i32_0 : i32, i32
  }
  func.func @transform_2(%arg0: i32) -> (i32, i32) {
    %c0_i32 = arith.constant 0 : i32
    %c0_i32_0 = arith.constant 0 : i32
    %c0_i32_1 = arith.constant 0 : i32
    return %c0_i32, %c0_i32_0 : i32, i32
  }
  func.func @transform_3(%arg0: i32) -> (i32, i32) {
    %c0_i32 = arith.constant 0 : i32
    %c0_i32_0 = arith.constant 0 : i32
    return %arg0, %c0_i32 : i32, i32
  }
}

module attributes {stable_mosaic.version = 11 : i64} {
  func.func @_chain_kernel(%arg0: i32, %arg1: memref<16x720xbf16, #tpu.memory_space<vmem>>, %arg2: memref<720x128xbf16, #tpu.memory_space<vmem>>, %arg3: memref<1x128xf32, #tpu.memory_space<vmem>>, %arg4: memref<128x512xbf16, #tpu.memory_space<vmem>>, %arg5: memref<1x512xf32, #tpu.memory_space<vmem>>, %arg6: memref<16x128xbf16, #tpu.memory_space<vmem>>, %arg7: memref<16x512xf32, #tpu.memory_space<vmem>>) attributes {dimension_semantics = [#tpu.dimension_semantics<parallel>], iteration_bounds = array<i64: 2>, scalar_prefetch = 0 : i64, scratch_operands = 0 : i64, tpu.core_type = #tpu.core_type<tc>, window_params = [{transform_indices = @transform_0, window_bounds = array<i64: 16, 720>}, {pipeline_mode = #tpu.pipeline_mode<synchronous>, transform_indices = @transform_1, window_bounds = array<i64: 720, 128>}, {pipeline_mode = #tpu.pipeline_mode<synchronous>, transform_indices = @transform_2, window_bounds = array<i64: 1, 128>}, {pipeline_mode = #tpu.pipeline_mode<synchronous>, transform_indices = @transform_3, window_bounds = array<i64: 128, 512>}, {pipeline_mode = #tpu.pipeline_mode<synchronous>, transform_indices = @transform_4, window_bounds = array<i64: 1, 512>}, {transform_indices = @transform_5, window_bounds = array<i64: 16, 128>}, {transform_indices = @transform_6, window_bounds = array<i64: 16, 512>}]} {
    %c0 = arith.constant 0 : index
    %c0_0 = arith.constant 0 : index
    %0 = vector.load %arg1[%c0, %c0_0] : memref<16x720xbf16, #tpu.memory_space<vmem>>, vector<16x720xbf16>
    %c0_1 = arith.constant 0 : index
    %c0_2 = arith.constant 0 : index
    %1 = vector.load %arg2[%c0_1, %c0_2] : memref<720x128xbf16, #tpu.memory_space<vmem>>, vector<720x128xbf16>
    %c0_3 = arith.constant 0 : index
    %c0_4 = arith.constant 0 : index
    %2 = vector.load %arg3[%c0_3, %c0_4] : memref<1x128xf32, #tpu.memory_space<vmem>>, vector<1x128xf32>
    %cst = arith.constant dense<0.000000e+00> : vector<16x128xf32>
    %3 = tpu.matmul %0, %1, %cst {dimension_numbers = #tpu.dot_dimension_numbers<[1], [0], [0], [1], [0, 0, 1, 1], [], []>} : vector<16x720xbf16>, vector<720x128xbf16>, vector<16x128xf32> -> vector<16x128xf32>
    %4 = vector.broadcast %2 : vector<1x128xf32> to vector<16x128xf32>
    %5 = arith.addf %3, %4 : vector<16x128xf32>
    %6 = arith.truncf %5 : vector<16x128xf32> to vector<16x128xbf16>
    %7 = arith.negf %6 : vector<16x128xbf16>
    %8 = math.exp %7 : vector<16x128xbf16>
    %cst_5 = arith.constant 1.000000e+00 : bf16
    %9 = vector.broadcast %cst_5 : bf16 to vector<16x128xbf16>
    %10 = arith.addf %9, %8 : vector<16x128xbf16>
    %11 = arith.divf %9, %10 : vector<16x128xbf16>
    %12 = arith.extf %11 : vector<16x128xbf16> to vector<16x128xf32>
    %13 = arith.mulf %5, %12 : vector<16x128xf32>
    %14 = arith.truncf %13 : vector<16x128xf32> to vector<16x128xbf16>
    %c0_6 = arith.constant 0 : index
    %c0_7 = arith.constant 0 : index
    %15 = vector.load %arg6[%c0_6, %c0_7] : memref<16x128xbf16, #tpu.memory_space<vmem>>, vector<16x128xbf16>
    tpu.vector_store %arg6[%c0_6, %c0_7], %14 {strides = array<i32>} : memref<16x128xbf16, #tpu.memory_space<vmem>>, vector<16x128xbf16>,
    %16 = arith.truncf %13 : vector<16x128xf32> to vector<16x128xbf16>
    %c0_8 = arith.constant 0 : index
    %c0_9 = arith.constant 0 : index
    %17 = vector.load %arg4[%c0_8, %c0_9] : memref<128x512xbf16, #tpu.memory_space<vmem>>, vector<128x512xbf16>
    %c0_10 = arith.constant 0 : index
    %c0_11 = arith.constant 0 : index
    %18 = vector.load %arg5[%c0_10, %c0_11] : memref<1x512xf32, #tpu.memory_space<vmem>>, vector<1x512xf32>
    %cst_12 = arith.constant dense<0.000000e+00> : vector<16x512xf32>
    %19 = tpu.matmul %16, %17, %cst_12 {dimension_numbers = #tpu.dot_dimension_numbers<[1], [0], [0], [1], [0, 0, 1, 1], [], []>} : vector<16x128xbf16>, vector<128x512xbf16>, vector<16x512xf32> -> vector<16x512xf32>
    %20 = vector.broadcast %18 : vector<1x512xf32> to vector<16x512xf32>
    %21 = arith.addf %19, %20 : vector<16x512xf32>
    %c0_13 = arith.constant 0 : index
    %c0_14 = arith.constant 0 : index
    %22 = vector.load %arg7[%c0_13, %c0_14] : memref<16x512xf32, #tpu.memory_space<vmem>>, vector<16x512xf32>
    tpu.vector_store %arg7[%c0_13, %c0_14], %21 {strides = array<i32>} : memref<16x512xf32, #tpu.memory_space<vmem>>, vector<16x512xf32>,
    return
  }
  func.func @transform_0(%arg0: i32) -> (i32, i32) {
    %c0_i32 = arith.constant 0 : i32
    %c0_i32_0 = arith.constant 0 : i32
    return %arg0, %c0_i32 : i32, i32
  }
  func.func @transform_1(%arg0: i32) -> (i32, i32) {
    %c0_i32 = arith.constant 0 : i32
    %c0_i32_0 = arith.constant 0 : i32
    %c0_i32_1 = arith.constant 0 : i32
    return %c0_i32, %c0_i32_0 : i32, i32
  }
  func.func @transform_2(%arg0: i32) -> (i32, i32) {
    %c0_i32 = arith.constant 0 : i32
    %c0_i32_0 = arith.constant 0 : i32
    %c0_i32_1 = arith.constant 0 : i32
    return %c0_i32, %c0_i32_0 : i32, i32
  }
  func.func @transform_3(%arg0: i32) -> (i32, i32) {
    %c0_i32 = arith.constant 0 : i32
    %c0_i32_0 = arith.constant 0 : i32
    %c0_i32_1 = arith.constant 0 : i32
    return %c0_i32, %c0_i32_0 : i32, i32
  }
  func.func @transform_4(%arg0: i32) -> (i32, i32) {
    %c0_i32 = arith.constant 0 : i32
    %c0_i32_0 = arith.constant 0 : i32
    %c0_i32_1 = arith.constant 0 : i32
    return %c0_i32, %c0_i32_0 : i32, i32
  }
  func.func @transform_5(%arg0: i32) -> (i32, i32) {
    %c0_i32 = arith.constant 0 : i32
    %c0_i32_0 = arith.constant 0 : i32
    return %arg0, %c0_i32 : i32, i32
  }
  func.func @transform_6(%arg0: i32) -> (i32, i32) {
    %c0_i32 = arith.constant 0 : i32
    %c0_i32_0 = arith.constant 0 : i32
    return %arg0, %c0_i32 : i32, i32
  }
}

module attributes {stable_mosaic.version = 11 : i64} {
  func.func @_chain_kernel(%arg0: i32, %arg1: memref<16x1008xbf16, #tpu.memory_space<vmem>>, %arg2: memref<1008x256xbf16, #tpu.memory_space<vmem>>, %arg3: memref<1x256xf32, #tpu.memory_space<vmem>>, %arg4: memref<16x256xbf16, #tpu.memory_space<vmem>>) attributes {dimension_semantics = [#tpu.dimension_semantics<parallel>], iteration_bounds = array<i64: 1>, scalar_prefetch = 0 : i64, scratch_operands = 0 : i64, tpu.core_type = #tpu.core_type<tc>, window_params = [{transform_indices = @transform_0, window_bounds = array<i64: 16, 1008>}, {pipeline_mode = #tpu.pipeline_mode<synchronous>, transform_indices = @transform_1, window_bounds = array<i64: 1008, 256>}, {pipeline_mode = #tpu.pipeline_mode<synchronous>, transform_indices = @transform_2, window_bounds = array<i64: 1, 256>}, {transform_indices = @transform_3, window_bounds = array<i64: 16, 256>}]} {
    %c0 = arith.constant 0 : index
    %c0_0 = arith.constant 0 : index
    %0 = vector.load %arg1[%c0, %c0_0] : memref<16x1008xbf16, #tpu.memory_space<vmem>>, vector<16x1008xbf16>
    %c0_1 = arith.constant 0 : index
    %c0_2 = arith.constant 0 : index
    %1 = vector.load %arg2[%c0_1, %c0_2] : memref<1008x256xbf16, #tpu.memory_space<vmem>>, vector<1008x256xbf16>
    %c0_3 = arith.constant 0 : index
    %c0_4 = arith.constant 0 : index
    %2 = vector.load %arg3[%c0_3, %c0_4] : memref<1x256xf32, #tpu.memory_space<vmem>>, vector<1x256xf32>
    %cst = arith.constant dense<0.000000e+00> : vector<16x256xf32>
    %3 = tpu.matmul %0, %1, %cst {dimension_numbers = #tpu.dot_dimension_numbers<[1], [0], [0], [1], [0, 0, 1, 1], [], []>} : vector<16x1008xbf16>, vector<1008x256xbf16>, vector<16x256xf32> -> vector<16x256xf32>
    %4 = vector.broadcast %2 : vector<1x256xf32> to vector<16x256xf32>
    %5 = arith.addf %3, %4 : vector<16x256xf32>
    %6 = arith.truncf %5 : vector<16x256xf32> to vector<16x256xbf16>
    %7 = arith.negf %6 : vector<16x256xbf16>
    %8 = math.exp %7 : vector<16x256xbf16>
    %cst_5 = arith.constant 1.000000e+00 : bf16
    %9 = vector.broadcast %cst_5 : bf16 to vector<16x256xbf16>
    %10 = arith.addf %9, %8 : vector<16x256xbf16>
    %11 = arith.divf %9, %10 : vector<16x256xbf16>
    %12 = arith.extf %11 : vector<16x256xbf16> to vector<16x256xf32>
    %13 = arith.mulf %5, %12 : vector<16x256xf32>
    %14 = arith.truncf %13 : vector<16x256xf32> to vector<16x256xbf16>
    %c0_6 = arith.constant 0 : index
    %c0_7 = arith.constant 0 : index
    %15 = vector.load %arg4[%c0_6, %c0_7] : memref<16x256xbf16, #tpu.memory_space<vmem>>, vector<16x256xbf16>
    tpu.vector_store %arg4[%c0_6, %c0_7], %14 {strides = array<i32>} : memref<16x256xbf16, #tpu.memory_space<vmem>>, vector<16x256xbf16>,
    return
  }
  func.func @transform_0(%arg0: i32) -> (i32, i32) {
    %c0_i32 = arith.constant 0 : i32
    %c0_i32_0 = arith.constant 0 : i32
    return %arg0, %c0_i32 : i32, i32
  }
  func.func @transform_1(%arg0: i32) -> (i32, i32) {
    %c0_i32 = arith.constant 0 : i32
    %c0_i32_0 = arith.constant 0 : i32
    %c0_i32_1 = arith.constant 0 : i32
    return %c0_i32, %c0_i32_0 : i32, i32
  }
  func.func @transform_2(%arg0: i32) -> (i32, i32) {
    %c0_i32 = arith.constant 0 : i32
    %c0_i32_0 = arith.constant 0 : i32
    %c0_i32_1 = arith.constant 0 : i32
    return %c0_i32, %c0_i32_0 : i32, i32
  }
  func.func @transform_3(%arg0: i32) -> (i32, i32) {
    %c0_i32 = arith.constant 0 : i32
    %c0_i32_0 = arith.constant 0 : i32
    return %arg0, %c0_i32 : i32, i32
  }
}

module attributes {stable_mosaic.version = 11 : i64} {
  func.func @_chain_kernel(%arg0: i32, %arg1: memref<16x1728xbf16, #tpu.memory_space<vmem>>, %arg2: memref<1728x384xbf16, #tpu.memory_space<vmem>>, %arg3: memref<1x384xf32, #tpu.memory_space<vmem>>, %arg4: memref<384x1280xbf16, #tpu.memory_space<vmem>>, %arg5: memref<1x1280xf32, #tpu.memory_space<vmem>>, %arg6: memref<1280x1024xbf16, #tpu.memory_space<vmem>>, %arg7: memref<1x1024xf32, #tpu.memory_space<vmem>>, %arg8: memref<16x1024xf32, #tpu.memory_space<vmem>>) attributes {dimension_semantics = [#tpu.dimension_semantics<parallel>], iteration_bounds = array<i64: 1>, scalar_prefetch = 0 : i64, scratch_operands = 0 : i64, tpu.core_type = #tpu.core_type<tc>, window_params = [{transform_indices = @transform_0, window_bounds = array<i64: 16, 1728>}, {pipeline_mode = #tpu.pipeline_mode<synchronous>, transform_indices = @transform_1, window_bounds = array<i64: 1728, 384>}, {pipeline_mode = #tpu.pipeline_mode<synchronous>, transform_indices = @transform_2, window_bounds = array<i64: 1, 384>}, {pipeline_mode = #tpu.pipeline_mode<synchronous>, transform_indices = @transform_3, window_bounds = array<i64: 384, 1280>}, {pipeline_mode = #tpu.pipeline_mode<synchronous>, transform_indices = @transform_4, window_bounds = array<i64: 1, 1280>}, {pipeline_mode = #tpu.pipeline_mode<synchronous>, transform_indices = @transform_5, window_bounds = array<i64: 1280, 1024>}, {pipeline_mode = #tpu.pipeline_mode<synchronous>, transform_indices = @transform_6, window_bounds = array<i64: 1, 1024>}, {transform_indices = @transform_7, window_bounds = array<i64: 16, 1024>}]} {
    %c0 = arith.constant 0 : index
    %c0_0 = arith.constant 0 : index
    %0 = vector.load %arg1[%c0, %c0_0] : memref<16x1728xbf16, #tpu.memory_space<vmem>>, vector<16x1728xbf16>
    %c0_1 = arith.constant 0 : index
    %c0_2 = arith.constant 0 : index
    %1 = vector.load %arg2[%c0_1, %c0_2] : memref<1728x384xbf16, #tpu.memory_space<vmem>>, vector<1728x384xbf16>
    %c0_3 = arith.constant 0 : index
    %c0_4 = arith.constant 0 : index
    %2 = vector.load %arg3[%c0_3, %c0_4] : memref<1x384xf32, #tpu.memory_space<vmem>>, vector<1x384xf32>
    %cst = arith.constant dense<0.000000e+00> : vector<16x384xf32>
    %3 = tpu.matmul %0, %1, %cst {dimension_numbers = #tpu.dot_dimension_numbers<[1], [0], [0], [1], [0, 0, 1, 1], [], []>} : vector<16x1728xbf16>, vector<1728x384xbf16>, vector<16x384xf32> -> vector<16x384xf32>
    %4 = vector.broadcast %2 : vector<1x384xf32> to vector<16x384xf32>
    %5 = arith.addf %3, %4 : vector<16x384xf32>
    %6 = arith.truncf %5 : vector<16x384xf32> to vector<16x384xbf16>
    %7 = arith.negf %6 : vector<16x384xbf16>
    %8 = math.exp %7 : vector<16x384xbf16>
    %cst_5 = arith.constant 1.000000e+00 : bf16
    %9 = vector.broadcast %cst_5 : bf16 to vector<16x384xbf16>
    %10 = arith.addf %9, %8 : vector<16x384xbf16>
    %11 = arith.divf %9, %10 : vector<16x384xbf16>
    %12 = arith.extf %11 : vector<16x384xbf16> to vector<16x384xf32>
    %13 = arith.mulf %5, %12 : vector<16x384xf32>
    %14 = arith.truncf %13 : vector<16x384xf32> to vector<16x384xbf16>
    %c0_6 = arith.constant 0 : index
    %c0_7 = arith.constant 0 : index
    %15 = vector.load %arg4[%c0_6, %c0_7] : memref<384x1280xbf16, #tpu.memory_space<vmem>>, vector<384x1280xbf16>
    %c0_8 = arith.constant 0 : index
    %c0_9 = arith.constant 0 : index
    %16 = vector.load %arg5[%c0_8, %c0_9] : memref<1x1280xf32, #tpu.memory_space<vmem>>, vector<1x1280xf32>
    %cst_10 = arith.constant dense<0.000000e+00> : vector<16x1280xf32>
    %17 = tpu.matmul %14, %15, %cst_10 {dimension_numbers = #tpu.dot_dimension_numbers<[1], [0], [0], [1], [0, 0, 1, 1], [], []>} : vector<16x384xbf16>, vector<384x1280xbf16>, vector<16x1280xf32> -> vector<16x1280xf32>
    %18 = vector.broadcast %16 : vector<1x1280xf32> to vector<16x1280xf32>
    %19 = arith.addf %17, %18 : vector<16x1280xf32>
    %20 = arith.truncf %19 : vector<16x1280xf32> to vector<16x1280xbf16>
    %21 = arith.negf %20 : vector<16x1280xbf16>
    %22 = math.exp %21 : vector<16x1280xbf16>
    %cst_11 = arith.constant 1.000000e+00 : bf16
    %23 = vector.broadcast %cst_11 : bf16 to vector<16x1280xbf16>
    %24 = arith.addf %23, %22 : vector<16x1280xbf16>
    %25 = arith.divf %23, %24 : vector<16x1280xbf16>
    %26 = arith.extf %25 : vector<16x1280xbf16> to vector<16x1280xf32>
    %27 = arith.mulf %19, %26 : vector<16x1280xf32>
    %28 = arith.truncf %27 : vector<16x1280xf32> to vector<16x1280xbf16>
    %c0_12 = arith.constant 0 : index
    %c0_13 = arith.constant 0 : index
    %29 = vector.load %arg6[%c0_12, %c0_13] : memref<1280x1024xbf16, #tpu.memory_space<vmem>>, vector<1280x1024xbf16>
    %c0_14 = arith.constant 0 : index
    %c0_15 = arith.constant 0 : index
    %30 = vector.load %arg7[%c0_14, %c0_15] : memref<1x1024xf32, #tpu.memory_space<vmem>>, vector<1x1024xf32>
    %cst_16 = arith.constant dense<0.000000e+00> : vector<16x1024xf32>
    %31 = tpu.matmul %28, %29, %cst_16 {dimension_numbers = #tpu.dot_dimension_numbers<[1], [0], [0], [1], [0, 0, 1, 1], [], []>} : vector<16x1280xbf16>, vector<1280x1024xbf16>, vector<16x1024xf32> -> vector<16x1024xf32>
    %32 = vector.broadcast %30 : vector<1x1024xf32> to vector<16x1024xf32>
    %33 = arith.addf %31, %32 : vector<16x1024xf32>
    %c0_17 = arith.constant 0 : index
    %c0_18 = arith.constant 0 : index
    %34 = vector.load %arg8[%c0_17, %c0_18] : memref<16x1024xf32, #tpu.memory_space<vmem>>, vector<16x1024xf32>
    tpu.vector_store %arg8[%c0_17, %c0_18], %33 {strides = array<i32>} : memref<16x1024xf32, #tpu.memory_space<vmem>>, vector<16x1024xf32>,
    return
  }
  func.func @transform_0(%arg0: i32) -> (i32, i32) {
    %c0_i32 = arith.constant 0 : i32
    %c0_i32_0 = arith.constant 0 : i32
    return %arg0, %c0_i32 : i32, i32
  }
  func.func @transform_1(%arg0: i32) -> (i32, i32) {
    %c0_i32 = arith.constant 0 : i32
    %c0_i32_0 = arith.constant 0 : i32
    %c0_i32_1 = arith.constant 0 : i32
    return %c0_i32, %c0_i32_0 : i32, i32
  }
  func.func @transform_2(%arg0: i32) -> (i32, i32) {
    %c0_i32 = arith.constant 0 : i32
    %c0_i32_0 = arith.constant 0 : i32
    %c0_i32_1 = arith.constant 0 : i32
    return %c0_i32, %c0_i32_0 : i32, i32
  }
  func.func @transform_3(%arg0: i32) -> (i32, i32) {
    %c0_i32 = arith.constant 0 : i32
    %c0_i32_0 = arith.constant 0 : i32
    %c0_i32_1 = arith.constant 0 : i32
    return %c0_i32, %c0_i32_0 : i32, i32
  }
  func.func @transform_4(%arg0: i32) -> (i32, i32) {
    %c0_i32 = arith.constant 0 : i32
    %c0_i32_0 = arith.constant 0 : i32
    %c0_i32_1 = arith.constant 0 : i32
    return %c0_i32, %c0_i32_0 : i32, i32
  }
  func.func @transform_5(%arg0: i32) -> (i32, i32) {
    %c0_i32 = arith.constant 0 : i32
    %c0_i32_0 = arith.constant 0 : i32
    %c0_i32_1 = arith.constant 0 : i32
    return %c0_i32, %c0_i32_0 : i32, i32
  }
  func.func @transform_6(%arg0: i32) -> (i32, i32) {
    %c0_i32 = arith.constant 0 : i32
    %c0_i32_0 = arith.constant 0 : i32
    %c0_i32_1 = arith.constant 0 : i32
    return %c0_i32, %c0_i32_0 : i32, i32
  }
  func.func @transform_7(%arg0: i32) -> (i32, i32) {
    %c0_i32 = arith.constant 0 : i32
    %c0_i32_0 = arith.constant 0 : i32
    return %arg0, %c0_i32 : i32, i32
  }
}

</mosaic_0001>

<bundles_post_ra>
// kernel: custom_backbone_forward.7
= control target key start
LH: loop header
LB: loop body
LE: loop exit
PB: predicated region body
PF: predicated region fallthrough
CT: control target
= control target key end

     0   :  { %s4263_s12 = smov 0   ;;  %s5421_s0 = inlined_call_operand.vmem [shape: bf16[2048,27], index: 0, kind: input, shape index: {}]   ;;  %s5422_s1 = inlined_call_operand.vmem [shape: bf16[27,128], index: 1, kind: input, shape index: {}]   ;;  %s5423_s2 = inlined_call_operand.vmem [shape: f32[1,128], index: 2, kind: input, shape index: {}]   ;;  %s5424_s3 = inlined_call_operand.vmem [shape: bf16[2048,128], index: 3, kind: output, shape index: {}]  }
   0x1 LB: > { %s2855_s13 = sadd.s32 4294967295, %s4240_s12   ;;  %p2859_p0 = scmp.ge.s32.totalorder %s4240_s12, 1  ;;  %s4240_s12 = sphi %s4263_s12, %s13_s12  }
   0x2   : > { %p138_p1 = scmp.lt.s32.totalorder %s4240_s12, 3 }
   0x4   : > { %p139_p2 = pnand %p2859_p0, %p138_p1 }
   0x6   : > { %142 = sbr.rel (%p139_p2) target bundleno = 479 (0x1df), region = 32 }
   0xd   : > { %v3911_v0 = vld [vmem:[%s5422_s1] sm:$0xff]   ;;  %vm839_vm0 = vcmask 1044480   ;;  %v3912_v1 = vld [vmem:[%s5422_s1 + $0x8] sm:$0x3f]   ;;  %vm840_vm1 = vcmask 1045504   ;;  %s2860_s18 = sshll.u32 %s2855_s13, 7 }
   0xe   : > { %3766 = vmatprep.subr.bf16.mxu0 %v3911_v0  ;;  %3898 = vmatprep.subr.bf16.mxu1 %v3911_v0  ;;  %v4242_v2 = vmov 65535   ;;  %p163_p3 = scmp.lt.s32.totalorder %s2860_s18, 255  ;;  %vm646_vm2 = vcmask 220160  }
   0xf   : > { %3767 = vmatpush3.bf16.msra.mxu0 %v3911_v0  ;;  %3900 = vmatpush3.bf16.msra.mxu1 %v3911_v0  ;;  %v841_v3 = vsel %vm839_vm0, 4294967295, %v4242_v2 }
  0x10   : > { %v842_v4 = vsel %vm840_vm1, %v841_v3, 0  ;;  %s5531_s18 = smov (!%p163_p3, %s2860_s18), 255 }
  0x11   : > { %v844_v5 = vand.u32 %v3912_v1, %v842_v4  ;;  %s2861_s19 = sshll.u32 %s5531_s18, 2 }
  0x12   : > { %s4285_s22 = scalar_lea.vmem %s5421_s0, %s2861_s19  ;;  %s4577_s27 = scalar_lea.vmem %s5424_s3, %s2861_s19 }
  0x13   : > { %3768 = vmatprep.subr.bf16.mxu0 %v844_v5  ;;  %3899 = vmatprep.subr.bf16.mxu1 %v844_v5  ;;  %v3913_v6 = vld [vmem:[%s4285_s22] sm:$0xff]   ;;  %v3915_v8 = vld [vmem:[%s4285_s22 + $0x8] sm:$0xff]   ;;  %v3917_v10 = vld [vmem:[%s4285_s22 + $0x10] sm:$0xff]  }
  0x14   : > { %3769 = vmatpush3.bf16.msra.mxu0 %v844_v5  ;;  %3901 = vmatpush3.bf16.msra.mxu1 %v844_v5  ;;  %v3914_v7 = vld [vmem:[%s4285_s22 + $0x100] sm:$0xff]   ;;  %v3916_v9 = vld [vmem:[%s4285_s22 + $0x108] sm:$0xff]   ;;  %v3918_v11 = vld [vmem:[%s4285_s22 + $0x110] sm:$0xff]  }
  0x15   : > { %3770 = vmatprep.mubr.msk.bf16.mxu0 %vm646_vm2, %v3913_v6  ;;  %3834 = vmatprep.mubr.msk.bf16.mxu1 %vm646_vm2, %v3914_v7  ;;  %v3919_v12 = vld [vmem:[%s4285_s22 + $0x18] sm:$0xff]   ;;  %v3921_v14 = vld [vmem:[%s4285_s22 + $0x20] sm:$0xff]   ;;  %v3923_v16 = vld [vmem:[%s4285_s22 + $0x28] sm:$0xff]  }
  0x16   : > { %v3920_v13 = vld [vmem:[%s4285_s22 + $0x118] sm:$0xff]   ;;  %v3922_v15 = vld [vmem:[%s4285_s22 + $0x120] sm:$0xff]   ;;  %v3924_v17 = vld [vmem:[%s4285_s22 + $0x128] sm:$0xff]  }
  0x17   : > { %3771 = vmatmul.mubr.msk.bf16.vlgmr.msra.gmra.mrb[0].mxu0 %vm646_vm2, %v3915_v8  ;;  %3835 = vmatmul.mubr.msk.bf16.vlgmr.msra.gmra.mrb[0].mxu1 %vm646_vm2, %v3916_v9  ;;  %v3925_v18 = vld [vmem:[%s4285_s22 + $0x30] sm:$0xff]   ;;  %v3927_v20 = vld [vmem:[%s4285_s22 + $0x38] sm:$0xff]   ;;  %v3929_v22 = vld [vmem:[%s4285_s22 + $0x40] sm:$0xff]  }
  0x18   : > { %3774 = vmatprep.mubr.msk.bf16.mxu0 %vm646_vm2, %v3917_v10  ;;  %3838 = vmatprep.mubr.msk.bf16.mxu1 %vm646_vm2, %v3918_v11  ;;  %v3926_v19 = vld [vmem:[%s4285_s22 + $0x130] sm:$0xff]   ;;  %v3928_v21 = vld [vmem:[%s4285_s22 + $0x138] sm:$0xff]   ;;  %v3930_v23 = vld [vmem:[%s4285_s22 + $0x140] sm:$0xff]  }
  0x19   : > { %v3931_v24 = vld [vmem:[%s4285_s22 + $0x48] sm:$0xff]   ;;  %v3933_v26 = vld [vmem:[%s4285_s22 + $0x50] sm:$0xff]   ;;  %v3935_v28 = vld [vmem:[%s4285_s22 + $0x58] sm:$0xff]  }
  0x1a   : > { %v3932_v25 = vld [vmem:[%s4285_s22 + $0x148] sm:$0xff]   ;;  %v3934_v27 = vld [vmem:[%s4285_s22 + $0x150] sm:$0xff]   ;;  %v3936_v29 = vld [vmem:[%s4285_s22 + $0x158] sm:$0xff]  }
  0x1b   : > { %v3937_v30 = vld [vmem:[%s4285_s22 + $0x60] sm:$0xff]   ;;  %v3939_v32 = vld [vmem:[%s4285_s22 + $0x68] sm:$0xff]   ;;  %v3941_v34 = vld [vmem:[%s4285_s22 + $0x70] sm:$0xff]  }
  0x1c   : > { %v3938_v31 = vld [vmem:[%s4285_s22 + $0x160] sm:$0xff]   ;;  %v3940_v33 = vld [vmem:[%s4285_s22 + $0x168] sm:$0xff]   ;;  %v3942_v35 = vld [vmem:[%s4285_s22 + $0x170] sm:$0xff]  }
  0x1d   : > { %v3943_v36 = vld [vmem:[%s4285_s22 + $0x78] sm:$0xff]   ;;  %v3945_v38 = vld [vmem:[%s4285_s22 + $0x80] sm:$0xff]   ;;  %v3947_v40 = vld [vmem:[%s4285_s22 + $0x88] sm:$0xff]  }
  0x1e   : > { %v3944_v37 = vld [vmem:[%s4285_s22 + $0x178] sm:$0xff]   ;;  %v3946_v39 = vld [vmem:[%s4285_s22 + $0x180] sm:$0xff]   ;;  %v3948_v41 = vld [vmem:[%s4285_s22 + $0x188] sm:$0xff]  }
  0x1f   : > { %3775 = vmatmul.mubr.msk.bf16.gmra.mrb[4].mxu0 %vm646_vm2, %v3919_v12  ;;  %3839 = vmatmul.mubr.msk.bf16.gmra.mrb[4].mxu1 %vm646_vm2, %v3920_v13  ;;  %v3949_v42 = vld [vmem:[%s4285_s22 + $0x90] sm:$0xff]   ;;  %v3951_v44 = vld [vmem:[%s4285_s22 + $0x98] sm:$0xff]   ;;  %v3953_v46 = vld [vmem:[%s4285_s22 + $0xa0] sm:$0xff]  }
  0x20   : > { %3778 = vmatprep.mubr.msk.bf16.mxu0 %vm646_vm2, %v3921_v14  ;;  %3842 = vmatprep.mubr.msk.bf16.mxu1 %vm646_vm2, %v3922_v15  ;;  %v3950_v43 = vld [vmem:[%s4285_s22 + $0x190] sm:$0xff]   ;;  %v3952_v45 = vld [vmem:[%s4285_s22 + $0x198] sm:$0xff]   ;;  %v3954_v47 = vld [vmem:[%s4285_s22 + $0x1a0] sm:$0xff]  }
  0x21   : > { %v3955_v48 = vld [vmem:[%s4285_s22 + $0xa8] sm:$0xff]   ;;  %v3957_v50 = vld [vmem:[%s4285_s22 + $0xb0] sm:$0xff]   ;;  %v3959_v52 = vld [vmem:[%s4285_s22 + $0xb8] sm:$0xff]  }
  0x22   : > { %v3956_v49 = vld [vmem:[%s4285_s22 + $0x1a8] sm:$0xff]   ;;  %v3958_v51 = vld [vmem:[%s4285_s22 + $0x1b0] sm:$0xff]   ;;  %v3960_v53 = vld [vmem:[%s4285_s22 + $0x1b8] sm:$0xff]  }
  0x23   : > { %v3961_v54 = vld [vmem:[%s4285_s22 + $0xc0] sm:$0xff]   ;;  %v3963_v56 = vld [vmem:[%s4285_s22 + $0xc8] sm:$0xff]   ;;  %v3965_v58 = vld [vmem:[%s4285_s22 + $0xd0] sm:$0xff]  }
  0x24   : > { %v3962_v55 = vld [vmem:[%s4285_s22 + $0x1c0] sm:$0xff]   ;;  %v3964_v57 = vld [vmem:[%s4285_s22 + $0x1c8] sm:$0xff]   ;;  %v3966_v59 = vld [vmem:[%s4285_s22 + $0x1d0] sm:$0xff]  }
  0x25   : > { %v3967_v60 = vld [vmem:[%s4285_s22 + $0xd8] sm:$0xff]   ;;  %v3969_v62 = vld [vmem:[%s4285_s22 + $0xe0] sm:$0xff]   ;;  %v3971_v0 = vld [vmem:[%s4285_s22 + $0xe8] sm:$0xff]  }
  0x26   : > { %v3968_v61 = vld [vmem:[%s4285_s22 + $0x1d8] sm:$0xff]   ;;  %v3970_v63 = vld [vmem:[%s4285_s22 + $0x1e0] sm:$0xff]   ;;  %v3972_v1 = vld [vmem:[%s4285_s22 + $0x1e8] sm:$0xff]  }
  0x27   : > { %3779 = vmatmul.mubr.msk.bf16.gmra.mrb[8].mxu0 %vm646_vm2, %v3923_v16  ;;  %3843 = vmatmul.mubr.msk.bf16.gmra.mrb[8].mxu1 %vm646_vm2, %v3924_v17  ;;  %v3973_v2 = vld [vmem:[%s4285_s22 + $0xf0] sm:$0xff]   ;;  %v3975_v4 = vld [vmem:[%s4285_s22 + $0xf8] sm:$0xff]   ;;  %v4418_v7 = vld [vmem:[%s5423_s2] ss:$0 sm:$0xff] }
  0x28   : > { %3782 = vmatprep.mubr.msk.bf16.mxu0 %vm646_vm2, %v3925_v18  ;;  %3846 = vmatprep.mubr.msk.bf16.mxu1 %vm646_vm2, %v3926_v19  ;;  %v3974_v3 = vld [vmem:[%s4285_s22 + $0x1f0] sm:$0xff]   ;;  %v3976_v5 = vld [vmem:[%s4285_s22 + $0x1f8] sm:$0xff]  }
  0x2f   : > { %3783 = vmatmul.mubr.msk.bf16.gmra.mrb[12].mxu0 %vm646_vm2, %v3927_v20  ;;  %3847 = vmatmul.mubr.msk.bf16.gmra.mrb[12].mxu1 %vm646_vm2, %v3928_v21 }
  0x30   : > { %3786 = vmatprep.mubr.msk.bf16.mxu0 %vm646_vm2, %v3929_v22  ;;  %3850 = vmatprep.mubr.msk.bf16.mxu1 %vm646_vm2, %v3930_v23 }
  0x37   : > { %3787 = vmatmul.mubr.msk.bf16.gmra.mrb[16].mxu0 %vm646_vm2, %v3931_v24  ;;  %3851 = vmatmul.mubr.msk.bf16.gmra.mrb[16].mxu1 %vm646_vm2, %v3932_v25 }
  0x38   : > { %3790 = vmatprep.mubr.msk.bf16.mxu0 %vm646_vm2, %v3933_v26  ;;  %3854 = vmatprep.mubr.msk.bf16.mxu1 %vm646_vm2, %v3934_v27 }
  0x3f   : > { %3791 = vmatmul.mubr.msk.bf16.gmra.mrb[20].mxu0 %vm646_vm2, %v3935_v28  ;;  %3855 = vmatmul.mubr.msk.bf16.gmra.mrb[20].mxu1 %vm646_vm2, %v3936_v29 }
  0x40   : > { %3794 = vmatprep.mubr.msk.bf16.mxu0 %vm646_vm2, %v3937_v30  ;;  %3858 = vmatprep.mubr.msk.bf16.mxu1 %vm646_vm2, %v3938_v31 }
  0x47   : > { %3795 = vmatmul.mubr.msk.bf16.gmra.mrb[24].mxu0 %vm646_vm2, %v3939_v32  ;;  %3859 = vmatmul.mubr.msk.bf16.gmra.mrb[24].mxu1 %vm646_vm2, %v3940_v33 }
  0x48   : > { %3798 = vmatprep.mubr.msk.bf16.mxu0 %vm646_vm2, %v3941_v34  ;;  %3862 = vmatprep.mubr.msk.bf16.mxu1 %vm646_vm2, %v3942_v35 }
  0x4f   : > { %3799 = vmatmul.mubr.msk.bf16.gmra.mrb[28].mxu0 %vm646_vm2, %v3943_v36  ;;  %3863 = vmatmul.mubr.msk.bf16.gmra.mrb[28].mxu1 %vm646_vm2, %v3944_v37 }
  0x50   : > { %3802 = vmatprep.mubr.msk.bf16.mxu0 %vm646_vm2, %v3945_v38  ;;  %3866 = vmatprep.mubr.msk.bf16.mxu1 %vm646_vm2, %v3946_v39 }
  0x57   : > { %3803 = vmatmul.mubr.msk.bf16.gmra.mrb[32].mxu0 %vm646_vm2, %v3947_v40  ;;  %3867 = vmatmul.mubr.msk.bf16.gmra.mrb[32].mxu1 %vm646_vm2, %v3948_v41 }
  0x58   : > { %3806 = vmatprep.mubr.msk.bf16.mxu0 %vm646_vm2, %v3949_v42  ;;  %3870 = vmatprep.mubr.msk.bf16.mxu1 %vm646_vm2, %v3950_v43 }
  0x5f   : > { %3807 = vmatmul.mubr.msk.bf16.gmra.mrb[36].mxu0 %vm646_vm2, %v3951_v44  ;;  %3871 = vmatmul.mubr.msk.bf16.gmra.mrb[36].mxu1 %vm646_vm2, %v3952_v45 }
  0x60   : > { %3810 = vmatprep.mubr.msk.bf16.mxu0 %vm646_vm2, %v3953_v46  ;;  %3874 = vmatprep.mubr.msk.bf16.mxu1 %vm646_vm2, %v3954_v47 }
  0x67   : > { %3811 = vmatmul.mubr.msk.bf16.gmra.mrb[40].mxu0 %vm646_vm2, %v3955_v48  ;;  %3875 = vmatmul.mubr.msk.bf16.gmra.mrb[40].mxu1 %vm646_vm2, %v3956_v49 }
  0x68   : > { %3814 = vmatprep.mubr.msk.bf16.mxu0 %vm646_vm2, %v3957_v50  ;;  %3878 = vmatprep.mubr.msk.bf16.mxu1 %vm646_vm2, %v3958_v51 }
  0x6f   : > { %3815 = vmatmul.mubr.msk.bf16.gmra.mrb[44].mxu0 %vm646_vm2, %v3959_v52  ;;  %3879 = vmatmul.mubr.msk.bf16.gmra.mrb[44].mxu1 %vm646_vm2, %v3960_v53 }
  0x70   : > { %3818 = vmatprep.mubr.msk.bf16.mxu0 %vm646_vm2, %v3961_v54  ;;  %3882 = vmatprep.mubr.msk.bf16.mxu1 %vm646_vm2, %v3962_v55 }
  0x77   : > { %3819 = vmatmul.mubr.msk.bf16.gmra.mrb[48].mxu0 %vm646_vm2, %v3963_v56  ;;  %3883 = vmatmul.mubr.msk.bf16.gmra.mrb[48].mxu1 %vm646_vm2, %v3964_v57 }
  0x78   : > { %3822 = vmatprep.mubr.msk.bf16.mxu0 %vm646_vm2, %v3965_v58  ;;  %3886 = vmatprep.mubr.msk.bf16.mxu1 %vm646_vm2, %v3966_v59 }
  0x7f   : > { %3823 = vmatmul.mubr.msk.bf16.gmra.mrb[52].mxu0 %vm646_vm2, %v3967_v60  ;;  %3887 = vmatmul.mubr.msk.bf16.gmra.mrb[52].mxu1 %vm646_vm2, %v3968_v61 }
  0x80   : > { %3826 = vmatprep.mubr.msk.bf16.mxu0 %vm646_vm2, %v3969_v62  ;;  %3890 = vmatprep.mubr.msk.bf16.mxu1 %vm646_vm2, %v3970_v63 }
  0x87   : > { %3827 = vmatmul.mubr.msk.bf16.gmra.mrb[56].mxu0 %vm646_vm2, %v3971_v0  ;;  %3891 = vmatmul.mubr.msk.bf16.gmra.mrb[56].mxu1 %vm646_vm2, %v3972_v1 }
  0x88   : > { %3830 = vmatprep.mubr.msk.bf16.mxu0 %vm646_vm2, %v3973_v2  ;;  %3894 = vmatprep.mubr.msk.bf16.mxu1 %vm646_vm2, %v3974_v3 }
  0x8f   : > { %3831 = vmatmul.mubr.msk.bf16.gmra.mrb[60].mxu0 %vm646_vm2, %v3975_v4  ;;  %3895 = vmatmul.mubr.msk.bf16.gmra.mrb[60].mxu1 %vm646_vm2, %v3976_v5 }
  0xea   : > { %v3772_v6 = vpop.f32.mrb[0].mxu0  ;;  %v3836_v8 = vpop.f32.mrb[0].mxu1 }
  0xeb   : > { %v880_v9 = vpop.f32.mrb[1].mxu0  ;;  %v1136_v10 = vpop.f32.mrb[1].mxu1  ;;  %v4421_v12 = vadd.f32 %v3772_v6, %v4418_v7  ;;  %v4427_v16 = vadd.f32 %v3836_v8, %v4418_v7 }
  0xec   : > { %v3773_v11 = vpop.f32.mrb[2].mxu0  ;;  %v3837_v14 = vpop.f32.mrb[2].mxu1  ;;  %v4430_v17 = vadd.f32 %v4418_v7, %v880_v9  ;;  %v4439_v21 = vadd.f32 %v4418_v7, %v1136_v10 }
  0xed   : > { %v4424_v13 = vadd.f32 %v3773_v11, %v4418_v7  ;;  %v883_v15 = vpop.f32.mrb[3].mxu0  ;;  %v4433_v18 = vadd.f32 %v3837_v14, %v4418_v7  ;;  %v1139_v20 = vpop.f32.mrb[3].mxu1 }
  0xee   : > { %v4436_v19 = vadd.f32 %v4418_v7, %v883_v15  ;;  %v4444_v23 = vadd.f32 %v4418_v7, %v1139_v20 }
  0xef   : > { %v1392_v22 = vpack.c.bf16 %v4424_v13, %v4421_v12  ;;  %v1424_v24 = vpack.c.bf16 %v4433_v18, %v4427_v16 }
  0xf0   : > { %v1391_v25 = vpack.c.bf16 %v4436_v19, %v4430_v17  ;;  %v1423_v27 = vpack.c.bf16 %v4444_v23, %v4439_v21 }
  0xf1   : > { %v2996_v26 = vmul.bf16 3216621497, %v1392_v22  ;;  %v3028_v28 = vmul.bf16 3216621497, %v1424_v24 }
  0xf2   : > { %v2995_v29 = vmul.bf16 3216621497, %v1391_v25  ;;  %v3776_v30 = vpop.f32.mrb[4].mxu0  ;;  %v3027_v31 = vmul.bf16 3216621497, %v1423_v27  ;;  %v3840_v32 = vpop.f32.mrb[4].mxu1 }
  0xf3   : > { %3977 = vpow.bf16 %v2996_v26  ;;  %v896_v33 = vpop.f32.mrb[5].mxu0  ;;  %v1152_v34 = vpop.f32.mrb[5].mxu1  ;;  %v4453_v36 = vadd.f32 %v3776_v30, %v4418_v7  ;;  %v4456_v37 = vadd.f32 %v3840_v32, %v4418_v7 }
  0xf4   : > { %3979 = vpow.bf16 %v3028_v28  ;;  %v3777_v35 = vpop.f32.mrb[6].mxu0  ;;  %v3841_v39 = vpop.f32.mrb[6].mxu1  ;;  %v4462_v41 = vadd.f32 %v4418_v7, %v896_v33  ;;  %v4471_v45 = vadd.f32 %v4418_v7, %v1152_v34 }
  0xf5   : > { %3981 = vpow.bf16 %v2995_v29  ;;  %v4459_v38 = vadd.f32 %v3777_v35, %v4418_v7  ;;  %v899_v40 = vpop.f32.mrb[7].mxu0  ;;  %v4465_v42 = vadd.f32 %v3841_v39, %v4418_v7  ;;  %v1155_v44 = vpop.f32.mrb[7].mxu1 }
  0xf6   : > { %3983 = vpow.bf16 %v3027_v31  ;;  %v4468_v43 = vadd.f32 %v4418_v7, %v899_v40  ;;  %v4476_v47 = vadd.f32 %v4418_v7, %v1155_v44 }
  0xf7   : > { %v1394_v46 = vpack.c.bf16 %v4459_v38, %v4453_v36  ;;  %v1426_v48 = vpack.c.bf16 %v4465_v42, %v4456_v37 }
  0xf8   : > { %v1393_v49 = vpack.c.bf16 %v4468_v43, %v4462_v41  ;;  %v1425_v51 = vpack.c.bf16 %v4476_v47, %v4471_v45 }
  0xf9   : > { %v2998_v50 = vmul.bf16 3216621497, %v1394_v46  ;;  %v3030_v52 = vmul.bf16 3216621497, %v1426_v48 }
  0xfa   : > { %v2997_v53 = vmul.bf16 3216621497, %v1393_v49  ;;  %v3780_v54 = vpop.f32.mrb[8].mxu0  ;;  %v3029_v55 = vmul.bf16 3216621497, %v1425_v51  ;;  %v3844_v56 = vpop.f32.mrb[8].mxu1 }
  0xfb   : > { %3985 = vpow.bf16 %v2998_v50  ;;  %v912_v57 = vpop.f32.mrb[9].mxu0  ;;  %v1168_v58 = vpop.f32.mrb[9].mxu1  ;;  %v4485_v60 = vadd.f32 %v3780_v54, %v4418_v7  ;;  %v4488_v61 = vadd.f32 %v3844_v56, %v4418_v7 }
  0xfc   : > { %3987 = vpow.bf16 %v3030_v52  ;;  %v3781_v59 = vpop.f32.mrb[10].mxu0  ;;  %v3845_v63 = vpop.f32.mrb[10].mxu1  ;;  %v4494_v2 = vadd.f32 %v4418_v7, %v912_v57  ;;  %v4503_v9 = vadd.f32 %v4418_v7, %v1168_v58 }
  0xfd   : > { %3989 = vpow.bf16 %v2997_v53  ;;  %v4491_v62 = vadd.f32 %v3781_v59, %v4418_v7  ;;  %v915_v0 = vpop.f32.mrb[11].mxu0  ;;  %v4497_v3 = vadd.f32 %v3845_v63, %v4418_v7  ;;  %v1171_v5 = vpop.f32.mrb[11].mxu1 }
  0xfe   : > { %v3978_v1 = vpop.eup %3977  ;;  %3991 = vpow.bf16 %v3029_v55  ;;  %v4500_v4 = vadd.f32 %v4418_v7, %v915_v0  ;;  %v4508_v11 = vadd.f32 %v4418_v7, %v1171_v5 }
  0xff   : > { %v3980_v6 = vpop.eup %3979  ;;  %v1712_v8 = vadd.bf16 1065369472, %v3978_v1  ;;  %v1396_v10 = vpack.c.bf16 %v4491_v62, %v4485_v60  ;;  %v1428_v20 = vpack.c.bf16 %v4497_v3, %v4488_v61 }
 0x100   : > { %v3982_v14 = vpop.eup %3981  ;;  %v1744_v15 = vadd.bf16 1065369472, %v3980_v6  ;;  %v1395_v22 = vpack.c.bf16 %v4500_v4, %v4494_v2  ;;  %v1427_v27 = vpack.c.bf16 %v4508_v11, %v4503_v9 }
 0x101   : > { %v3984_v24 = vpop.eup %3983  ;;  %3993 = vrcp.bf16 %v1712_v8  ;;  %v1711_v25 = vadd.bf16 1065369472, %v3982_v14  ;;  %v3000_v26 = vmul.bf16 3216621497, %v1396_v10  ;;  %v3032_v29 = vmul.bf16 3216621497, %v1428_v20 }
 0x102   : > { %3995 = vrcp.bf16 %v1744_v15  ;;  %v1743_v28 = vadd.bf16 1065369472, %v3984_v24  ;;  %v2999_v30 = vmul.bf16 3216621497, %v1395_v22  ;;  %v3784_v31 = vpop.f32.mrb[12].mxu0  ;;  %v3848_v32 = vpop.f32.mrb[12].mxu1 }
 0x103   : > { %3997 = vrcp.bf16 %v1711_v25  ;;  %v3031_v33 = vmul.bf16 3216621497, %v1427_v27  ;;  %v928_v34 = vpop.f32.mrb[13].mxu0  ;;  %v1184_v35 = vpop.f32.mrb[13].mxu1  ;;  %v4517_v39 = vadd.f32 %v3784_v31, %v4418_v7  ;;  %v4520_v40 = vadd.f32 %v3848_v32, %v4418_v7 }
 0x104   : > { %3999 = vrcp.bf16 %v1743_v28  ;;  %v4523_v44 = vadd.f32 %v4418_v7, %v928_v34  ;;  %v3785_v46 = vpop.f32.mrb[14].mxu0  ;;  %v3849_v48 = vpop.f32.mrb[14].mxu1  ;;  %v4526_v50 = vadd.f32 %v4418_v7, %v1184_v35 }
 0x105   : > { %4001 = vpow.bf16 %v3000_v26  ;;  %v4529_v51 = vadd.f32 %v3785_v46, %v4418_v7  ;;  %v4532_v52 = vadd.f32 %v3849_v48, %v4418_v7  ;;  %v931_v53 = vpop.f32.mrb[15].mxu0  ;;  %v1187_v54 = vpop.f32.mrb[15].mxu1 }
 0x106   : > { %v3986_v49 = vpop.eup %3985  ;;  %4003 = vpow.bf16 %v3032_v29  ;;  %v4535_v57 = vadd.f32 %v4418_v7, %v931_v53  ;;  %v4538_v58 = vadd.f32 %v4418_v7, %v1187_v54 }
 0x107   : > { %v3988_v55 = vpop.eup %3987  ;;  %v1714_v56 = vadd.bf16 1065369472, %v3986_v49  ;;  %4005 = vpow.bf16 %v2999_v30  ;;  %v1398_v0 = vpack.c.bf16 %v4529_v51, %v4517_v39  ;;  %v1430_v1 = vpack.c.bf16 %v4532_v52, %v4520_v40 }
 0x108   : > { %v3990_v59 = vpop.eup %3989  ;;  %v1746_v63 = vadd.bf16 1065369472, %v3988_v55  ;;  %4007 = vpow.bf16 %v3031_v33  ;;  %v1397_v8 = vpack.c.bf16 %v4535_v57, %v4523_v44  ;;  %v1429_v10 = vpack.c.bf16 %v4538_v58, %v4526_v50 }
 0x109   : > { %v3992_v5 = vpop.eup %3991  ;;  %4009 = vrcp.bf16 %v1714_v56  ;;  %v1713_v6 = vadd.bf16 1065369472, %v3990_v59  ;;  %v3002_v15 = vmul.bf16 3216621497, %v1398_v0  ;;  %v3034_v20 = vmul.bf16 3216621497, %v1430_v1 }
 0x10a   : > { %4011 = vrcp.bf16 %v1746_v63  ;;  %v1745_v14 = vadd.bf16 1065369472, %v3992_v5  ;;  %v3001_v22 = vmul.bf16 3216621497, %v1397_v8  ;;  %v3788_v24 = vpop.f32.mrb[16].mxu0  ;;  %v3852_v25 = vpop.f32.mrb[16].mxu1 }
 0x10b   : > { %4013 = vrcp.bf16 %v1713_v6  ;;  %v3033_v27 = vmul.bf16 3216621497, %v1429_v10  ;;  %v4549_v28 = vadd.f32 %v3788_v24, %v4418_v7  ;;  %v4552_v29 = vadd.f32 %v3852_v25, %v4418_v7  ;;  %v944_v30 = vpop.f32.mrb[17].mxu0  ;;  %v1200_v31 = vpop.f32.mrb[17].mxu1 }
 0x10c   : > { %v3994_v26 = vpop.eup %3993  ;;  %4015 = vrcp.bf16 %v1745_v14  ;;  %v4555_v34 = vadd.f32 %v4418_v7, %v944_v30  ;;  %v4558_v35 = vadd.f32 %v4418_v7, %v1200_v31  ;;  %v3789_v46 = vpop.f32.mrb[18].mxu0 }
 0x10d   : > { %v3996_v32 = vpop.eup %3995  ;;  %v1778_v33 = vmul.bf16 1065369472, %v3994_v26  ;;  %4017 = vpow.bf16 %v3002_v15  ;;  %v3853_v48 = vpop.f32.mrb[18].mxu1  ;;  %v4561_v54 = vadd.f32 %v3789_v46, %v4418_v7 }
 0x10e   : > { %5440 = vst [vmem:[#allocation2_spill] sm:$0xff] %v4558_v35  ;;  %v3998_v49 = vpop.eup %3997  ;;  %v1842_v53 = vmul.bf16 1065369472, %v3996_v32  ;;  %4019 = vpow.bf16 %v3034_v20  ;;  %v4564_v55 = vadd.f32 %v3853_v48, %v4418_v7  ;;  %v4566_v56 = vpop.f32.mrb[19].mxu0 }
 0x10f   : > { %v4568_v59 = vpop.f32.mrb[19].mxu1  ;;  %v4000_v63 = vpop.eup %3999  ;;  %v1905_v0 = vunpack.c.l.bf16 %v1778_v33  ;;  %v1906_v1 = vunpack.c.h.bf16 %v1778_v33  ;;  %v1776_v5 = vmul.bf16 1065369472, %v3998_v49  ;;  %4021 = vpow.bf16 %v3001_v22 }
 0x110   : > { %v4002_v6 = vpop.eup %4001  ;;  %v1969_v8 = vunpack.c.l.bf16 %v1842_v53  ;;  %v1970_v10 = vunpack.c.h.bf16 %v1842_v53  ;;  %v1840_v14 = vmul.bf16 1065369472, %v4000_v63  ;;  %4023 = vpow.bf16 %v3033_v27 }
 0x111   : > { %v4004_v15 = vpop.eup %4003  ;;  %v2033_v20 = vmul.f32 %v1905_v0, %v4421_v12  ;;  %v2034_v24 = vmul.f32 %v1906_v1, %v4424_v13  ;;  %v1903_v25 = vunpack.c.l.bf16 %v1776_v5  ;;  %v1904_v26 = vunpack.c.h.bf16 %v1776_v5 }
 0x112   : > { %v4006_v30 = vpop.eup %4005  ;;  %v2097_v22 = vmul.f32 %v1969_v8, %v4427_v16  ;;  %v2098_v31 = vmul.f32 %v1970_v10, %v4433_v18  ;;  %v1967_v32 = vunpack.c.l.bf16 %v1840_v14  ;;  %v1968_v27 = vunpack.c.h.bf16 %v1840_v14  ;;  %v4581_v33 = vpop.f32.mrb[20].mxu0 }
 0x113   : > { %v4008_v12 = vpop.eup %4007  ;;  %v3325_v13 = vpack.c.bf16 %v2034_v24, %v2033_v20  ;;  %v2031_v46 = vmul.f32 %v1903_v25, %v4430_v17  ;;  %v2032_v48 = vmul.f32 %v1904_v26, %v4436_v19  ;;  %v1716_v49 = vadd.bf16 1065369472, %v4002_v6  ;;  %v4585_v53 = vpop.f32.mrb[20].mxu1 }
 0x114   : > { %v4587_v63 = vpop.f32.mrb[21].mxu0  ;;  %v4010_v0 = vpop.eup %4009  ;;  %v3485_v16 = vpack.c.bf16 %v2098_v31, %v2097_v22  ;;  %v2095_v18 = vmul.f32 %v1967_v32, %v4439_v21  ;;  %v2096_v1 = vmul.f32 %v1968_v27, %v4444_v23  ;;  %v1748_v5 = vadd.bf16 1065369472, %v4004_v15 }
 0x115   : > { %v4591_v8 = vpop.f32.mrb[21].mxu1  ;;  %v4593_v10 = vpop.f32.mrb[22].mxu0  ;;  %3637 = vst [vmem:[%s4577_s27 + $0x8] sm:$0xff] %v3325_v13   ;;  %v3320_v19 = vpack.c.bf16 %v2032_v48, %v2031_v46  ;;  %v1782_v6 = vmul.bf16 1065369472, %v4010_v0  ;;  %4025 = vrcp.bf16 %v1716_v49 }
 0x116   : > { %v4012_v17 = vpop.eup %4011  ;;  %v1715_v14 = vadd.bf16 1065369472, %v4006_v30  ;;  %v4596_v20 = vpop.f32.mrb[22].mxu1  ;;  %3669 = vst [vmem:[%s4577_s27 + $0x108] sm:$0xff] %v3485_v16   ;;  %v3480_v23 = vpack.c.bf16 %v2096_v1, %v2095_v18  ;;  %4027 = vrcp.bf16 %v1748_v5  ;;  %v1747_v25 = vadd.bf16 1065369472, %v4008_v12 }
 0x117   : > { %v4598_v24 = vpop.f32.mrb[23].mxu0  ;;  %v4014_v21 = vpop.eup %4013  ;;  %v1846_v15 = vmul.bf16 1065369472, %v4012_v17  ;;  %3321 = vst [vmem:[%s4577_s27] sm:$0xff] %v3320_v19   ;;  %v1909_v31 = vunpack.c.l.bf16 %v1782_v6  ;;  %v1910_v32 = vunpack.c.h.bf16 %v1782_v6 }
 0x118   : > { %v4601_v26 = vpop.f32.mrb[23].mxu1  ;;  %v4016_v22 = vpop.eup %4015  ;;  %v1780_v27 = vmul.bf16 1065369472, %v4014_v21  ;;  %4029 = vrcp.bf16 %v1715_v14  ;;  %3668 = vst [vmem:[%s4577_s27 + $0x100] sm:$0xff] %v3480_v23  }
 0x119   : > { %v4018_v30 = vpop.eup %4017  ;;  %v1973_v13 = vunpack.c.l.bf16 %v1846_v15  ;;  %v1974_v46 = vunpack.c.h.bf16 %v1846_v15  ;;  %v1844_v48 = vmul.bf16 1065369472, %v4016_v22  ;;  %4031 = vrcp.bf16 %v1747_v25 }
 0x11a   : > { %v4020_v49 = vpop.eup %4019  ;;  %v2037_v0 = vmul.f32 %v1909_v31, %v4453_v36  ;;  %v2038_v16 = vmul.f32 %v1910_v32, %v4459_v38  ;;  %v1907_v12 = vunpack.c.l.bf16 %v1780_v27  ;;  %v1908_v18 = vunpack.c.h.bf16 %v1780_v27  ;;  %v4609_v14 = vpop.f32.mrb[24].mxu0 }
 0x11b   : > { %v4022_v1 = vpop.eup %4021  ;;  %v2101_v5 = vmul.f32 %v1973_v13, %v4456_v37  ;;  %v2102_v17 = vmul.f32 %v1974_v46, %v4465_v42  ;;  %v1971_v19 = vunpack.c.l.bf16 %v1844_v48  ;;  %v1972_v6 = vunpack.c.h.bf16 %v1844_v48  ;;  %v4613_v38 = vpop.f32.mrb[24].mxu1 }
 0x11c   : > { %v4024_v21 = vpop.eup %4023  ;;  %v3335_v23 = vpack.c.bf16 %v2038_v16, %v2037_v0  ;;  %v2035_v15 = vmul.f32 %v1907_v12, %v4462_v41  ;;  %v2036_v36 = vmul.f32 %v1908_v18, %v4468_v43  ;;  %v1718_v25 = vadd.bf16 1065369472, %v4018_v30  ;;  %v4615_v22 = vpop.f32.mrb[25].mxu0 }
 0x11d   : > { %v3495_v37 = vpack.c.bf16 %v2102_v17, %v2101_v5  ;;  %v2099_v42 = vmul.f32 %v1971_v19, %v4471_v45  ;;  %v2100_v31 = vmul.f32 %v1972_v6, %v4476_v47  ;;  %v1750_v32 = vadd.bf16 1065369472, %v4020_v49  ;;  %v4619_v27 = vpop.f32.mrb[25].mxu1  ;;  %v4621_v13 = vpop.f32.mrb[26].mxu0 }
 0x11e   : > { %3639 = vst [vmem:[%s4577_s27 + $0x18] sm:$0xff] %v3335_v23   ;;  %v3330_v41 = vpack.c.bf16 %v2036_v36, %v2035_v15  ;;  %4033 = vrcp.bf16 %v1718_v25  ;;  %v1717_v43 = vadd.bf16 1065369472, %v4022_v1  ;;  %v1749_v30 = vadd.bf16 1065369472, %v4024_v21  ;;  %v4624_v46 = vpop.f32.mrb[26].mxu1 }
 0x11f   : > { %v4626_v48 = vpop.f32.mrb[27].mxu0  ;;  %3671 = vst [vmem:[%s4577_s27 + $0x118] sm:$0xff] %v3495_v37   ;;  %v3490_v45 = vpack.c.bf16 %v2100_v31, %v2099_v42  ;;  %4035 = vrcp.bf16 %v1750_v32  ;;  %v1400_v47 = vpack.c.bf16 %v4561_v54, %v4549_v28  ;;  %v1432_v49 = vpack.c.bf16 %v4564_v55, %v4552_v29  ;;  %v4633_v0 = vpop.f32.mrb[27].mxu1 }
 0x120   : > { %3638 = vst [vmem:[%s4577_s27 + $0x10] sm:$0xff] %v3330_v41   ;;  %4037 = vrcp.bf16 %v1717_v43  ;;  %v4638_v16 = vadd.f32 %v4418_v7, %v4566_v56  ;;  %v4642_v12 = vadd.f32 %v4418_v7, %v4568_v59  ;;  %v4646_v18 = vadd.f32 %v4581_v33, %v4418_v7  ;;  %v4026_v1 = vpop.eup %4025 }
 0x121   : > { %3670 = vst [vmem:[%s4577_s27 + $0x110] sm:$0xff] %v3490_v45   ;;  %4039 = vrcp.bf16 %v1749_v30  ;;  %v3004_v5 = vmul.bf16 3216621497, %v1400_v47  ;;  %v3036_v17 = vmul.bf16 3216621497, %v1432_v49  ;;  %v4651_v19 = vadd.f32 %v4585_v53, %v4418_v7  ;;  %v4028_v6 = vpop.eup %4027 }
 0x122   : > { %5441 = vst [vmem:[#allocation3_spill] sm:$0xff] %v4638_v16  ;;  %5442 = vst [vmem:[#allocation4_spill] sm:$0xff] %v4642_v12  ;;  %v1786_v56 = vmul.bf16 1065369472, %v4026_v1  ;;  %v1399_v21 = vpack.c.bf16 %v4638_v16, %v4555_v34  ;;  %v1431_v59 = vpack.c.bf16 %v4642_v12, %v4558_v35  ;;  %v4659_v33 = vadd.f32 %v4418_v7, %v4587_v63  ;;  %v4669_v25 = vpop.f32.mrb[28].mxu0  ;;  %v4671_v63 = vpop.f32.mrb[28].mxu1 }
 0x123   : > { %5443 = vst [vmem:[#allocation5_spill] sm:$0xff] %v4651_v19  ;;  %v4030_v23 = vpop.eup %4029  ;;  %v1850_v15 = vmul.bf16 1065369472, %v4028_v6  ;;  %4041 = vpow.bf16 %v3004_v5  ;;  %v4663_v36 = vadd.f32 %v4418_v7, %v4591_v8  ;;  %v4667_v53 = vadd.f32 %v4593_v10, %v4418_v7  ;;  %v4673_v41 = vpop.f32.mrb[29].mxu0 }
 0x124   : > { %v4032_v37 = vpop.eup %4031  ;;  %v1913_v42 = vunpack.c.l.bf16 %v1786_v56  ;;  %v1914_v31 = vunpack.c.h.bf16 %v1786_v56  ;;  %v1784_v32 = vmul.bf16 1065369472, %v4030_v23  ;;  %4043 = vpow.bf16 %v3036_v17  ;;  %v4675_v47 = vpop.f32.mrb[29].mxu1 }
 0x125   : > { %v1977_v43 = vunpack.c.l.bf16 %v1850_v15  ;;  %v1978_v30 = vunpack.c.h.bf16 %v1850_v15  ;;  %v1848_v45 = vmul.bf16 1065369472, %v4032_v37  ;;  %v3003_v8 = vmul.bf16 3216621497, %v1399_v21  ;;  %v4677_v49 = vpop.f32.mrb[30].mxu0  ;;  %v4681_v56 = vpop.f32.mrb[30].mxu1 }
 0x126   : > { %v2041_v10 = vmul.f32 %v1913_v42, %v4485_v60  ;;  %v2042_v1 = vmul.f32 %v1914_v31, %v4491_v62  ;;  %v1911_v5 = vunpack.c.l.bf16 %v1784_v32  ;;  %v1912_v6 = vunpack.c.h.bf16 %v1784_v32  ;;  %v4683_v17 = vpop.f32.mrb[31].mxu0  ;;  %v4687_v12 = vpop.f32.mrb[31].mxu1 }
 0x127   : > { %v2105_v23 = vmul.f32 %v1977_v43, %v4488_v61  ;;  %v2106_v15 = vmul.f32 %v1978_v30, %v4497_v3  ;;  %v1975_v21 = vunpack.c.l.bf16 %v1848_v45  ;;  %v1976_v37 = vunpack.c.h.bf16 %v1848_v45 }
 0x128   : > { %v3345_v35 = vpack.c.bf16 %v2042_v1, %v2041_v10  ;;  %v2039_v60 = vmul.f32 %v1911_v5, %v4494_v2  ;;  %v2040_v62 = vmul.f32 %v1912_v6, %v4500_v4  ;;  %4045 = vpow.bf16 %v3003_v8 }
 0x129   : > { %v4034_v42 = vpop.eup %4033  ;;  %v3505_v31 = vpack.c.bf16 %v2106_v15, %v2105_v23  ;;  %v2103_v32 = vmul.f32 %v1975_v21, %v4503_v9  ;;  %v2104_v16 = vmul.f32 %v1976_v37, %v4508_v11  ;;  %v3035_v61 = vmul.bf16 3216621497, %v1431_v59 }
 0x12a   : > { %v4036_v3 = vpop.eup %4035  ;;  %3641 = vst [vmem:[%s4577_s27 + $0x28] sm:$0xff] %v3345_v35   ;;  %v3340_v43 = vpack.c.bf16 %v2040_v62, %v2039_v60  ;;  %v1790_v30 = vmul.bf16 1065369472, %v4034_v42  ;;  %v1402_v45 = vpack.c.bf16 %v4667_v53, %v4646_v18  ;;  %v4698_v2 = vadd.f32 %v4596_v20, %v4418_v7  ;;  %v4705_v35 = vpop.f32.mrb[32].mxu0 }
 0x12b   : > { %v4038_v4 = vpop.eup %4037  ;;  %3673 = vst [vmem:[%s4577_s27 + $0x128] sm:$0xff] %v3505_v31   ;;  %v3500_v8 = vpack.c.bf16 %v2104_v16, %v2103_v32  ;;  %v1854_v9 = vmul.bf16 1065369472, %v4036_v3  ;;  %4047 = vpow.bf16 %v3035_v61  ;;  %v4703_v11 = vadd.f32 %v4418_v7, %v4598_v24  ;;  %v4708_v20 = vpop.f32.mrb[32].mxu1 }
 0x12c   : > { %5444 = vst [vmem:[#allocation6_spill] sm:$0xff] %v4698_v2  ;;  %v4040_v59 = vpop.eup %4039  ;;  %3640 = vst [vmem:[%s4577_s27 + $0x20] sm:$0xff] %v3340_v43   ;;  %v1917_v10 = vunpack.c.l.bf16 %v1790_v30  ;;  %v1918_v1 = vunpack.c.h.bf16 %v1790_v30  ;;  %v1788_v5 = vmul.bf16 1065369472, %v4038_v4  ;;  %v3006_v6 = vmul.bf16 3216621497, %v1402_v45 }
 0x12d   : > { %v4710_v23 = vpop.f32.mrb[33].mxu0  ;;  %3672 = vst [vmem:[%s4577_s27 + $0x120] sm:$0xff] %v3500_v8   ;;  %v1981_v16 = vunpack.c.l.bf16 %v1854_v9  ;;  %v1982_v15 = vunpack.c.h.bf16 %v1854_v9  ;;  %v1852_v21 = vmul.bf16 1065369472, %v4040_v59  ;;  %v1434_v24 = vpack.c.bf16 %v4698_v2, %v4651_v19  ;;  %v4715_v37 = vpop.f32.mrb[33].mxu1 }
 0x12e   : > { %v4717_v60 = vpop.f32.mrb[34].mxu0  ;;  %v4042_v62 = vpop.eup %4041  ;;  %v2045_v42 = vmul.f32 %v1917_v10, %v4517_v39  ;;  %v2046_v31 = vmul.f32 %v1918_v1, %v4529_v51  ;;  %v1915_v32 = vunpack.c.l.bf16 %v1788_v5  ;;  %v1916_v61 = vunpack.c.h.bf16 %v1788_v5 }
 0x12f   : > { %v4721_v3 = vpop.f32.mrb[34].mxu1  ;;  %v4723_v43 = vpop.f32.mrb[35].mxu0  ;;  %v2109_v45 = vmul.f32 %v1981_v16, %v4520_v40  ;;  %v2110_v4 = vmul.f32 %v1982_v15, %v4532_v52  ;;  %v1979_v8 = vunpack.c.l.bf16 %v1852_v21  ;;  %v1980_v9 = vunpack.c.h.bf16 %v1852_v21 }
 0x130   : > { %v4044_v30 = vpop.eup %4043  ;;  %v4727_v59 = vpop.f32.mrb[35].mxu1  ;;  %v3355_v39 = vpack.c.bf16 %v2046_v31, %v2045_v42  ;;  %v2043_v51 = vmul.f32 %v1915_v32, %v4523_v44  ;;  %v2044_v10 = vmul.f32 %v1916_v61, %v4535_v57  ;;  %v1720_v1 = vadd.bf16 1065369472, %v4042_v62 }
 0x131   : > { %v3515_v5 = vpack.c.bf16 %v2110_v4, %v2109_v45  ;;  %v2107_v2 = vmul.f32 %v1979_v8, %v4526_v50  ;;  %v2108_v19 = vmul.f32 %v1980_v9, %v4538_v58  ;;  %v1752_v40 = vadd.bf16 1065369472, %v4044_v30 }
 0x132   : > { %3643 = vst [vmem:[%s4577_s27 + $0x38] sm:$0xff] %v3355_v39   ;;  %v3350_v52 = vpack.c.bf16 %v2044_v10, %v2043_v51  ;;  %4049 = vrcp.bf16 %v1720_v1  ;;  %v3038_v16 = vmul.bf16 3216621497, %v1434_v24  ;;  %v1401_v15 = vpack.c.bf16 %v4703_v11, %v4659_v33  ;;  %v4745_v58 = vpop.f32.mrb[36].mxu0 }
 0x133   : > { %v4046_v21 = vpop.eup %4045  ;;  %3675 = vst [vmem:[%s4577_s27 + $0x138] sm:$0xff] %v3515_v5   ;;  %v3510_v44 = vpack.c.bf16 %v2108_v19, %v2107_v2  ;;  %4051 = vrcp.bf16 %v1752_v40  ;;  %v4739_v57 = vadd.f32 %v4418_v7, %v4601_v26  ;;  %v4743_v50 = vadd.f32 %v4609_v14, %v4418_v7  ;;  %v4752_v19 = vpop.f32.mrb[36].mxu1 }
 0x134   : > { %3642 = vst [vmem:[%s4577_s27 + $0x30] sm:$0xff] %v3350_v52   ;;  %v1719_v24 = vadd.bf16 1065369472, %v4046_v21  ;;  %4053 = vpow.bf16 %v3006_v6  ;;  %v3005_v62 = vmul.bf16 3216621497, %v1401_v15  ;;  %v4750_v42 = vadd.f32 %v4613_v38, %v4418_v7  ;;  %v4754_v2 = vpop.f32.mrb[37].mxu0 }
 0x135   : > { %3674 = vst [vmem:[%s4577_s27 + $0x130] sm:$0xff] %v3510_v44   ;;  %4055 = vpow.bf16 %v3038_v16  ;;  %v1433_v26 = vpack.c.bf16 %v4739_v57, %v4663_v36  ;;  %v4761_v14 = vadd.f32 %v4418_v7, %v4615_v22  ;;  %v4765_v6 = vadd.f32 %v4418_v7, %v4619_v27  ;;  %v4767_v31 = vpop.f32.mrb[37].mxu1  ;;  %v4769_v38 = vpop.f32.mrb[38].mxu0 }
 0x136   : > { %v4048_v32 = vpop.eup %4047  ;;  %4057 = vrcp.bf16 %v1719_v24  ;;  %v4773_v61 = vadd.f32 %v4621_v13, %v4418_v7  ;;  %v4777_v30 = vadd.f32 %v4624_v46, %v4418_v7  ;;  %v4781_v22 = vadd.f32 %v4418_v7, %v4626_v48  ;;  %v4783_v27 = vpop.f32.mrb[38].mxu1 }
 0x137   : > { %v4785_v45 = vpop.f32.mrb[39].mxu0  ;;  %v1751_v4 = vadd.bf16 1065369472, %v4048_v32  ;;  %4059 = vpow.bf16 %v3005_v62  ;;  %v3037_v8 = vmul.bf16 3216621497, %v1433_v26  ;;  %v4789_v9 = vadd.f32 %v4418_v7, %v4633_v0  ;;  %v4791_v13 = vpop.f32.mrb[39].mxu1 }
 0x138   : > { %5445 = vst [vmem:[#allocation7_spill] sm:$0xff] %v4785_v45  ;;  %5446 = vst [vmem:[#allocation8_spill] sm:$0xff] %v4791_v13  ;;  %v1404_v46 = vpack.c.bf16 %v4773_v61, %v4743_v50  ;;  %v1436_v48 = vpack.c.bf16 %v4777_v30, %v4750_v42  ;;  %v1403_v39 = vpack.c.bf16 %v4781_v22, %v4761_v14 }
 0x139   : > { %v4801_v51 = vadd.f32 %v4669_v25, %v4418_v7  ;;  %4061 = vrcp.bf16 %v1751_v4  ;;  %v1435_v0 = vpack.c.bf16 %v4789_v9, %v4765_v6  ;;  %v4807_v10 = vadd.f32 %v4671_v63, %v4418_v7 }
 0x13a   : > { %v4811_v1 = vadd.f32 %v4418_v7, %v4673_v41  ;;  %4063 = vpow.bf16 %v3037_v8  ;;  %v3008_v5 = vmul.bf16 3216621497, %v1404_v46  ;;  %v3040_v40 = vmul.bf16 3216621497, %v1436_v48  ;;  %v4825_v21 = vpop.f32.mrb[40].mxu0 }
 0x13b   : > { %v3007_v52 = vmul.bf16 3216621497, %v1403_v39  ;;  %v3039_v16 = vmul.bf16 3216621497, %v1435_v0  ;;  %v4815_v25 = vadd.f32 %v4418_v7, %v4675_v47  ;;  %v4819_v15 = vadd.f32 %v4677_v49, %v4418_v7  ;;  %5447 = vst [vmem:[#allocation9_spill] sm:$0xff] %v4825_v21  ;;  %v4839_v49 = vpop.f32.mrb[40].mxu1 }
 0x13c   : > { %v4823_v63 = vadd.f32 %v4681_v56, %v4418_v7  ;;  %4065 = vpow.bf16 %v3008_v5  ;;  %v4829_v41 = vadd.f32 %v4418_v7, %v4683_v17  ;;  %v4833_v44 = vadd.f32 %v4418_v7, %v4687_v12  ;;  %5449 = vst [vmem:[#allocation11_spill] sm:$0xff] %v4839_v49  ;;  %v4841_v24 = vpop.f32.mrb[41].mxu0  ;;  %v4851_v26 = vpop.f32.mrb[41].mxu1 }
 0x13d   : > { %v4837_v47 = vadd.f32 %v4705_v35, %v4418_v7  ;;  %5450 = vst [vmem:[#allocation12_spill] sm:$0xff] %v4841_v24  ;;  %v4050_v56 = vpop.eup %4049  ;;  %4067 = vpow.bf16 %v3040_v40  ;;  %v1406_v62 = vpack.c.bf16 %v4819_v15, %v4801_v51  ;;  %v4849_v12 = vadd.f32 %v4708_v20, %v4418_v7  ;;  %5451 = vst [vmem:[#allocation13_spill] sm:$0xff] %v4851_v26  ;;  %v4853_v35 = vpop.f32.mrb[42].mxu0 }
 0x13e   : > { %5448 = vst [vmem:[#allocation10_spill] sm:$0xff] %v4833_v44  ;;  %v1438_v17 = vpack.c.bf16 %v4823_v63, %v4807_v10  ;;  %5452 = vst [vmem:[#allocation14_spill] sm:$0xff] %v4853_v35  ;;  %v4052_v32 = vpop.eup %4051  ;;  %v1794_v4 = vmul.bf16 1065369472, %v4050_v56  ;;  %4069 = vpow.bf16 %v3007_v52  ;;  %v1405_v8 = vpack.c.bf16 %v4829_v41, %v4811_v1  ;;  %v4859_v48 = vpop.f32.mrb[42].mxu1 }
 0x13f   : > { %v1437_v46 = vpack.c.bf16 %v4833_v44, %v4815_v25  ;;  %5453 = vst [vmem:[#allocation15_spill] sm:$0xff] %v4859_v48  ;;  %v4861_v39 = vpop.f32.mrb[43].mxu0  ;;  %v4054_v0 = vpop.eup %4053  ;;  %v1858_v20 = vmul.bf16 1065369472, %v4052_v32  ;;  %4071 = vpow.bf16 %v3039_v16  ;;  %v3010_v5 = vmul.bf16 3216621497, %v1406_v62 }
 0x140   : > { %5454 = vst [vmem:[#allocation16_spill] sm:$0xff] %v4861_v39  ;;  %v3042_v40 = vmul.bf16 3216621497, %v1438_v17  ;;  %v4056_v26 = vpop.eup %4055  ;;  %v1921_v35 = vunpack.c.l.bf16 %v1794_v4  ;;  %v1922_v24 = vunpack.c.h.bf16 %v1794_v4  ;;  %v1722_v56 = vadd.bf16 1065369472, %v4054_v0  ;;  %v4863_v49 = vpop.f32.mrb[43].mxu1 }
 0x141   : > { %v3009_v52 = vmul.bf16 3216621497, %v1405_v8  ;;  %5455 = vst [vmem:[#allocation17_spill] sm:$0xff] %v4863_v49  ;;  %v4058_v21 = vpop.eup %4057  ;;  %v1985_v13 = vunpack.c.l.bf16 %v1858_v20  ;;  %v1986_v45 = vunpack.c.h.bf16 %v1858_v20  ;;  %v1754_v44 = vadd.bf16 1065369472, %v4056_v26 }
 0x142   : > { %4073 = vpow.bf16 %v3010_v5  ;;  %v4060_v48 = vpop.eup %4059  ;;  %v2049_v39 = vmul.f32 %v1921_v35, %v4549_v28  ;;  %v2050_v32 = vmul.f32 %v1922_v24, %v4561_v54  ;;  %v1792_v16 = vmul.bf16 1065369472, %v4058_v21  ;;  %v4869_v8 = vpop.f32.mrb[44].mxu0  ;;  %v5456_v24 = vld [vmem:[#allocation3_spill] sm:$0xff] }
 0x143   : > { %4075 = vrcp.bf16 %v1722_v56  ;;  %v2113_v62 = vmul.f32 %v1985_v13, %v4552_v29  ;;  %v2114_v17 = vmul.f32 %v1986_v45, %v4564_v55  ;;  %v1721_v4 = vadd.bf16 1065369472, %v4060_v48  ;;  %v4871_v49 = vpop.f32.mrb[44].mxu1  ;;  %v4873_v28 = vpop.f32.mrb[45].mxu0 }
 0x144   : > { %4077 = vrcp.bf16 %v1754_v44  ;;  %v4062_v0 = vpop.eup %4061  ;;  %v3365_v20 = vpack.c.bf16 %v2050_v32, %v2049_v39  ;;  %v1919_v26 = vunpack.c.l.bf16 %v1792_v16  ;;  %v1920_v5 = vunpack.c.h.bf16 %v1792_v16  ;;  %v4875_v45 = vpop.f32.mrb[45].mxu1 }
 0x145   : > { %4079 = vpow.bf16 %v3042_v40  ;;  %v4064_v54 = vpop.eup %4063  ;;  %v3525_v21 = vpack.c.bf16 %v2114_v17, %v2113_v62  ;;  %v1856_v29 = vmul.bf16 1065369472, %v4062_v0  ;;  %v3041_v55 = vmul.bf16 3216621497, %v1437_v46  ;;  %v4877_v13 = vpop.f32.mrb[46].mxu0 }
 0x146   : > { %4081 = vrcp.bf16 %v1721_v4  ;;  %3645 = vst [vmem:[%s4577_s27 + $0x48] sm:$0xff] %v3365_v20   ;;  %v2047_v44 = vmul.f32 %v1919_v26, %v4555_v34  ;;  %v2048_v35 = vmul.f32 %v1920_v5, %v5456_v24  ;;  %v1753_v48 = vadd.bf16 1065369472, %v4064_v54  ;;  %v4882_v39 = vpop.f32.mrb[46].mxu1  ;;  %v4884_v40 = vpop.f32.mrb[47].mxu0  ;;  %v5461_v20 = vld [vmem:[#allocation2_spill] sm:$0xff] }
 0x147   : > { %4083 = vpow.bf16 %v3009_v52  ;;  %5457 = vst [vmem:[#allocation3_spill] sm:$0xff] %v4882_v39  ;;  %5458 = vst [vmem:[#allocation18_spill] sm:$0xff] %v4884_v40  ;;  %v4066_v56 = vpop.eup %4065  ;;  %v1983_v32 = vunpack.c.l.bf16 %v1856_v29  ;;  %v1984_v46 = vunpack.c.h.bf16 %v1856_v29  ;;  %v4889_v16 = vadd.f32 %v4418_v7, %v4710_v23  ;;  %v4891_v62 = vpop.f32.mrb[47].mxu1  ;;  %v5462_v5 = vld [vmem:[#allocation4_spill] sm:$0xff] }
 0x148   : > { %3677 = vst [vmem:[%s4577_s27 + $0x148] sm:$0xff] %v3525_v21   ;;  %4085 = vpow.bf16 %v3041_v55  ;;  %5459 = vst [vmem:[#allocation19_spill] sm:$0xff] %v4891_v62  ;;  %v4068_v34 = vpop.eup %4067  ;;  %v3360_v17 = vpack.c.bf16 %v2048_v35, %v2047_v44  ;;  %v1724_v52 = vadd.bf16 1065369472, %v4066_v56  ;;  %v4895_v4 = vadd.f32 %v4418_v7, %v4715_v37 }
 0x149   : > { %4087 = vrcp.bf16 %v1753_v48  ;;  %v4070_v0 = vpop.eup %4069  ;;  %v2111_v26 = vmul.f32 %v1983_v32, %v5461_v20  ;;  %v2112_v54 = vmul.f32 %v1984_v46, %v5462_v5  ;;  %v1756_v21 = vadd.bf16 1065369472, %v4068_v34  ;;  %v4932_v20 = vld [vmem:[%s5423_s2] ss:$0 sm:$0xff] }
 0x14a   : > { %5460 = vst [vmem:[#allocation20_spill] sm:$0xff] %v4895_v4  ;;  %v4901_v23 = vadd.f32 %v4717_v60, %v4418_v7  ;;  %v4072_v29 = vpop.eup %4071  ;;  %3644 = vst [vmem:[%s4577_s27 + $0x40] sm:$0xff] %v3360_v17   ;;  %4089 = vrcp.bf16 %v1724_v52  ;;  %v1723_v55 = vadd.bf16 1065369472, %v4070_v0  ;;  %v4906_v44 = vadd.f32 %v4721_v3, %v4418_v7  ;;  %v4914_v48 = vpop.f32.mrb[48].mxu0 }
 0x14b   : > { %v4910_v37 = vadd.f32 %v4418_v7, %v4723_v43  ;;  %v3520_v24 = vpack.c.bf16 %v2112_v54, %v2111_v26  ;;  %4091 = vrcp.bf16 %v1756_v21  ;;  %v1755_v35 = vadd.bf16 1065369472, %v4072_v29  ;;  %5463 = vst [vmem:[#allocation2_spill] sm:$0xff] %v4914_v48  ;;  %v4924_v46 = vpop.f32.mrb[48].mxu1  ;;  %v4926_v34 = vpop.f32.mrb[49].mxu0 }
 0x14c   : > { %v1408_v60 = vpack.c.bf16 %v4901_v23, %v4837_v47  ;;  %4093 = vrcp.bf16 %v1723_v55  ;;  %v1440_v32 = vpack.c.bf16 %v4906_v44, %v4849_v12  ;;  %v4922_v43 = vadd.f32 %v4418_v7, %v4727_v59  ;;  %5465 = vst [vmem:[#allocation21_spill] sm:$0xff] %v4924_v46  ;;  %5466 = vst [vmem:[#allocation22_spill] sm:$0xff] %v4926_v34  ;;  %v4938_v7 = vpop.f32.mrb[49].mxu1  ;;  %v4940_v59 = vpop.f32.mrb[50].mxu0 }
 0x14d   : > { %v4074_v56 = vpop.eup %4073  ;;  %v1407_v3 = vpack.c.bf16 %v4910_v37, %v4889_v16  ;;  %3676 = vst [vmem:[%s4577_s27 + $0x140] sm:$0xff] %v3520_v24   ;;  %4095 = vrcp.bf16 %v1755_v35  ;;  %v4936_v26 = vadd.f32 %v4932_v20, %v4745_v58  ;;  %5467 = vst [vmem:[#allocation23_spill] sm:$0xff] %v4938_v7  ;;  %v4950_v58 = vadd.f32 %v4932_v20, %v4754_v2 }
 0x14e   : > { %5464 = vst [vmem:[#allocation4_spill] sm:$0xff] %v4922_v43  ;;  %v4076_v17 = vpop.eup %4075  ;;  %v1726_v52 = vadd.bf16 1065369472, %v4074_v56  ;;  %v3012_v0 = vmul.bf16 3216621497, %v1408_v60  ;;  %5468 = vst [vmem:[#allocation24_spill] sm:$0xff] %v4940_v59  ;;  %v1439_v55 = vpack.c.bf16 %v4922_v43, %v4895_v4  ;;  %v4946_v60 = vadd.f32 %v4932_v20, %v4752_v19 }
 0x14f   : > { %v4078_v5 = vpop.eup %4077  ;;  %v1798_v54 = vmul.bf16 1065369472, %v4076_v17  ;;  %v3044_v21 = vmul.bf16 3216621497, %v1440_v32  ;;  %v3011_v29 = vmul.bf16 3216621497, %v1407_v3 }
 0x150   : > { %v4080_v24 = vpop.eup %4079  ;;  %v1862_v35 = vmul.bf16 1065369472, %v4078_v5  ;;  %4097 = vrcp.bf16 %v1726_v52  ;;  %v4952_v56 = vpop.f32.mrb[50].mxu1  ;;  %v5472_v4 = vld [vmem:[#allocation5_spill] sm:$0xff] }
 0x151   : > { %5469 = vst [vmem:[#allocation25_spill] sm:$0xff] %v4952_v56  ;;  %v4954_v59 = vpop.f32.mrb[51].mxu0  ;;  %v4082_v32 = vpop.eup %4081  ;;  %v1925_v3 = vunpack.c.l.bf16 %v1798_v54  ;;  %v1926_v17 = vunpack.c.h.bf16 %v1798_v54  ;;  %v1758_v7 = vadd.bf16 1065369472, %v4080_v24  ;;  %4099 = vpow.bf16 %v3012_v0  ;;  %v5473_v54 = vld [vmem:[#allocation6_spill] sm:$0xff] }
 0x152   : > { %5470 = vst [vmem:[#allocation26_spill] sm:$0xff] %v4954_v59  ;;  %v4956_v34 = vpop.f32.mrb[51].mxu1  ;;  %v4084_v52 = vpop.eup %4083  ;;  %v1989_v5 = vunpack.c.l.bf16 %v1862_v35  ;;  %v1990_v46 = vunpack.c.h.bf16 %v1862_v35  ;;  %v1796_v19 = vmul.bf16 1065369472, %v4082_v32  ;;  %4101 = vpow.bf16 %v3044_v21 }
 0x153   : > { %5471 = vst [vmem:[#allocation27_spill] sm:$0xff] %v4956_v34  ;;  %v4086_v48 = vpop.eup %4085  ;;  %v2053_v2 = vmul.f32 %v1925_v3, %v4646_v18  ;;  %v2054_v43 = vmul.f32 %v1926_v17, %v4667_v53  ;;  %4103 = vrcp.bf16 %v1758_v7  ;;  %v1725_v56 = vadd.bf16 1065369472, %v4084_v52  ;;  %v4962_v34 = vpop.f32.mrb[52].mxu0 }
 0x154   : > { %v4088_v59 = vpop.eup %4087  ;;  %v2117_v62 = vmul.f32 %v1989_v5, %v5472_v4  ;;  %v2118_v24 = vmul.f32 %v1990_v46, %v5473_v54  ;;  %v1923_v0 = vunpack.c.l.bf16 %v1796_v19  ;;  %v1924_v40 = vunpack.c.h.bf16 %v1796_v19  ;;  %v4964_v39 = vpop.f32.mrb[52].mxu1 }
 0x155   : > { %v3375_v35 = vpack.c.bf16 %v2054_v43, %v2053_v2  ;;  %v1860_v32 = vmul.bf16 1065369472, %v4088_v59  ;;  %4105 = vrcp.bf16 %v1725_v56  ;;  %v1757_v21 = vadd.bf16 1065369472, %v4086_v48  ;;  %v4966_v18 = vpop.f32.mrb[53].mxu0  ;;  %v4090_v53 = vpop.eup %4089 }
 0x156   : > { %v3535_v7 = vpack.c.bf16 %v2118_v24, %v2117_v62  ;;  %v2051_v4 = vmul.f32 %v1923_v0, %v4659_v33  ;;  %v2052_v46 = vmul.f32 %v1924_v40, %v4703_v11  ;;  %4107 = vpow.bf16 %v3011_v29  ;;  %v4970_v3 = vpop.f32.mrb[53].mxu1  ;;  %v4972_v17 = vpop.f32.mrb[54].mxu0 }
 0x157   : > { %v4092_v43 = vpop.eup %4091  ;;  %3647 = vst [vmem:[%s4577_s27 + $0x58] sm:$0xff] %v3375_v35   ;;  %v1987_v59 = vunpack.c.l.bf16 %v1860_v32  ;;  %v1988_v48 = vunpack.c.h.bf16 %v1860_v32  ;;  %v1802_v56 = vmul.bf16 1065369472, %v4090_v53  ;;  %4109 = vrcp.bf16 %v1757_v21  ;;  %v4975_v52 = vpop.f32.mrb[54].mxu1 }
 0x158   : > { %v4977_v5 = vpop.f32.mrb[55].mxu0  ;;  %v4094_v62 = vpop.eup %4093  ;;  %3679 = vst [vmem:[%s4577_s27 + $0x158] sm:$0xff] %v3535_v7   ;;  %v3370_v33 = vpack.c.bf16 %v2052_v46, %v2051_v4  ;;  %v1866_v11 = vmul.bf16 1065369472, %v4092_v43  ;;  %v3043_v40 = vmul.bf16 3216621497, %v1439_v55  ;;  %v4982_v29 = vadd.f32 %v4932_v20, %v4767_v31 }
 0x159   : > { %v4984_v19 = vpop.f32.mrb[55].mxu1  ;;  %v4096_v2 = vpop.eup %4095  ;;  %v2115_v54 = vmul.f32 %v1987_v59, %v4663_v36  ;;  %v2116_v24 = vmul.f32 %v1988_v48, %v4739_v57  ;;  %v1929_v0 = vunpack.c.l.bf16 %v1802_v56  ;;  %v1930_v35 = vunpack.c.h.bf16 %v1802_v56 }
 0x15a   : > { %3646 = vst [vmem:[%s4577_s27 + $0x50] sm:$0xff] %v3370_v33   ;;  %v1993_v32 = vunpack.c.l.bf16 %v1866_v11  ;;  %v1994_v21 = vunpack.c.h.bf16 %v1866_v11  ;;  %v1800_v53 = vmul.bf16 1065369472, %v4094_v62  ;;  %v1864_v7 = vmul.bf16 1065369472, %v4096_v2  ;;  %v4993_v56 = vpop.f32.mrb[56].mxu0 }
 0x15b   : > { %v4098_v55 = vpop.eup %4097  ;;  %v3530_v4 = vpack.c.bf16 %v2116_v24, %v2115_v54  ;;  %v2057_v31 = vmul.f32 %v1929_v0, %v4743_v50  ;;  %v2058_v46 = vmul.f32 %v1930_v35, %v4773_v61  ;;  %4111 = vpow.bf16 %v3043_v40  ;;  %v4996_v50 = vpop.f32.mrb[56].mxu1 }
 0x15c   : > { %v4100_v43 = vpop.eup %4099  ;;  %v2121_v36 = vmul.f32 %v1993_v32, %v4750_v42  ;;  %v2122_v57 = vmul.f32 %v1994_v21, %v4777_v30  ;;  %v1927_v59 = vunpack.c.l.bf16 %v1800_v53  ;;  %v1928_v48 = vunpack.c.h.bf16 %v1800_v53  ;;  %v4998_v61 = vpop.f32.mrb[57].mxu0 }
 0x15d   : > { %v4102_v33 = vpop.eup %4101  ;;  %3678 = vst [vmem:[%s4577_s27 + $0x150] sm:$0xff] %v3530_v4   ;;  %v3385_v62 = vpack.c.bf16 %v2058_v46, %v2057_v31  ;;  %v1991_v11 = vunpack.c.l.bf16 %v1864_v7  ;;  %v1992_v2 = vunpack.c.h.bf16 %v1864_v7  ;;  %v1806_v54 = vmul.bf16 1065369472, %v4098_v55  ;;  %v5002_v35 = vpop.f32.mrb[57].mxu1 }
 0x15e   : > { %v4104_v40 = vpop.eup %4103  ;;  %v3545_v42 = vpack.c.bf16 %v2122_v57, %v2121_v36  ;;  %v2055_v30 = vmul.f32 %v1927_v59, %v4761_v14  ;;  %v2056_v24 = vmul.f32 %v1928_v48, %v4781_v22  ;;  %v1728_v0 = vadd.bf16 1065369472, %v4100_v43  ;;  %v5004_v32 = vpop.f32.mrb[58].mxu0 }
 0x15f   : > { %3649 = vst [vmem:[%s4577_s27 + $0x68] sm:$0xff] %v3385_v62   ;;  %v2119_v21 = vmul.f32 %v1991_v11, %v4765_v6  ;;  %v2120_v53 = vmul.f32 %v1992_v2, %v4789_v9  ;;  %v1933_v7 = vunpack.c.l.bf16 %v1806_v54  ;;  %v1934_v55 = vunpack.c.h.bf16 %v1806_v54  ;;  %v5009_v4 = vpop.f32.mrb[58].mxu1  ;;  %v5011_v31 = vpop.f32.mrb[59].mxu0 }
 0x160   : > { %v4106_v14 = vpop.eup %4105  ;;  %3681 = vst [vmem:[%s4577_s27 + $0x168] sm:$0xff] %v3545_v42   ;;  %v3380_v22 = vpack.c.bf16 %v2056_v24, %v2055_v30  ;;  %v1870_v46 = vmul.bf16 1065369472, %v4104_v40  ;;  %4113 = vrcp.bf16 %v1728_v0  ;;  %v1760_v43 = vadd.bf16 1065369472, %v4102_v33  ;;  %v5014_v36 = vpop.f32.mrb[59].mxu1 }
 0x161   : > { %v4108_v57 = vpop.eup %4107  ;;  %v3540_v6 = vpack.c.bf16 %v2120_v53, %v2119_v21  ;;  %v2061_v9 = vmul.f32 %v1933_v7, %v4801_v51  ;;  %v2062_v59 = vmul.f32 %v1934_v55, %v4819_v15  ;;  %v1804_v48 = vmul.bf16 1065369472, %v4106_v14 }
 0x162   : > { %v4110_v62 = vpop.eup %4109  ;;  %3648 = vst [vmem:[%s4577_s27 + $0x60] sm:$0xff] %v3380_v22   ;;  %v1997_v11 = vunpack.c.l.bf16 %v1870_v46  ;;  %v1998_v2 = vunpack.c.h.bf16 %v1870_v46  ;;  %4115 = vrcp.bf16 %v1760_v43  ;;  %v1727_v54 = vadd.bf16 1065369472, %v4108_v57  ;;  %v5026_v15 = vpop.f32.mrb[60].mxu0  ;;  %v5477_v43 = vld [vmem:[#allocation7_spill] sm:$0xff] }
 0x163   : > { %3680 = vst [vmem:[%s4577_s27 + $0x160] sm:$0xff] %v3540_v6   ;;  %v3395_v40 = vpack.c.bf16 %v2062_v59, %v2061_v9  ;;  %v1931_v42 = vunpack.c.l.bf16 %v1804_v48  ;;  %v1932_v33 = vunpack.c.h.bf16 %v1804_v48  ;;  %v1868_v30 = vmul.bf16 1065369472, %v4110_v62  ;;  %5474 = vst [vmem:[#allocation5_spill] sm:$0xff] %v5026_v15  ;;  %v5031_v14 = vpop.f32.mrb[60].mxu1  ;;  %v5480_v59 = vld [vmem:[#allocation10_spill] sm:$0xff] }
 0x164   : > { %v2125_v24 = vmul.f32 %v1997_v11, %v4807_v10  ;;  %v2126_v0 = vmul.f32 %v1998_v2, %v4823_v63  ;;  %4117 = vrcp.bf16 %v1727_v54  ;;  %v5024_v51 = vadd.f32 %v4932_v20, %v4769_v38  ;;  %5475 = vst [vmem:[#allocation6_spill] sm:$0xff] %v5031_v14  ;;  %v5033_v10 = vpop.f32.mrb[61].mxu0 }
 0x165   : > { %3651 = vst [vmem:[%s4577_s27 + $0x78] sm:$0xff] %v3395_v40   ;;  %v2059_v21 = vmul.f32 %v1931_v42, %v4811_v1  ;;  %v2060_v53 = vmul.f32 %v1932_v33, %v4829_v41  ;;  %v1995_v7 = vunpack.c.l.bf16 %v1868_v30  ;;  %v1996_v55 = vunpack.c.h.bf16 %v1868_v30  ;;  %5476 = vst [vmem:[#allocation28_spill] sm:$0xff] %v5033_v10  ;;  %v5045_v41 = vpop.f32.mrb[61].mxu1  ;;  %v5047_v57 = vpop.f32.mrb[62].mxu0  ;;  %v5483_v42 = vld [vmem:[#allocation8_spill] sm:$0xff] }
 0x166   : > { %v4112_v63 = vpop.eup %4111  ;;  %v3555_v22 = vpack.c.bf16 %v2126_v0, %v2125_v24  ;;  %v1410_v38 = vpack.c.bf16 %v5024_v51, %v4936_v26  ;;  %v5039_v46 = vadd.f32 %v4932_v20, %v4783_v27  ;;  %v5043_v1 = vadd.f32 %v4932_v20, %v5477_v43  ;;  %5478 = vst [vmem:[#allocation7_spill] sm:$0xff] %v5045_v41  ;;  %v5051_v11 = vpop.f32.mrb[62].mxu1  ;;  %v5485_v24 = vld [vmem:[#allocation9_spill] sm:$0xff] }
 0x167   : > { %5479 = vst [vmem:[#allocation29_spill] sm:$0xff] %v5047_v57  ;;  %v3390_v6 = vpack.c.bf16 %v2060_v53, %v2059_v21  ;;  %v2123_v9 = vmul.f32 %v1995_v7, %v4815_v25  ;;  %v2124_v48 = vmul.f32 %v1996_v55, %v5480_v59  ;;  %v1759_v62 = vadd.bf16 1065369472, %v4112_v63  ;;  %5481 = vst [vmem:[#allocation10_spill] sm:$0xff] %v5051_v11  ;;  %v5053_v2 = vpop.f32.mrb[63].mxu0  ;;  %v5064_v25 = vpop.f32.mrb[63].mxu1 }
 0x168   : > { %5482 = vst [vmem:[#allocation30_spill] sm:$0xff] %v5053_v2  ;;  %3683 = vst [vmem:[%s4577_s27 + $0x178] sm:$0xff] %v3555_v22   ;;  %v3014_v27 = vmul.bf16 3216621497, %v1410_v38  ;;  %v1442_v54 = vpack.c.bf16 %v5039_v46, %v4946_v60  ;;  %v1409_v40 = vpack.c.bf16 %v5043_v1, %v4950_v58  ;;  %v5062_v33 = vadd.f32 %v4932_v20, %v5483_v42  ;;  %v5486_v21 = vld [vmem:[#allocation11_spill] sm:$0xff]  ;;  %v5487_v38 = vld [vmem:[#allocation12_spill] sm:$0xff] }
 0x169   : > { %5484 = vst [vmem:[#allocation8_spill] sm:$0xff] %v5064_v25  ;;  %3650 = vst [vmem:[%s4577_s27 + $0x70] sm:$0xff] %v3390_v6   ;;  %v3550_v30 = vpack.c.bf16 %v2124_v48, %v2123_v9  ;;  %4119 = vrcp.bf16 %v1759_v62  ;;  %v5069_v0 = vadd.f32 %v4932_v20, %v5485_v24  ;;  %v5073_v53 = vadd.f32 %v4932_v20, %v5486_v21  ;;  %v5488_v6 = vld [vmem:[#allocation13_spill] sm:$0xff]  ;;  %v5489_v59 = vld [vmem:[#allocation14_spill] sm:$0xff] }
 0x16a   : > { %4121 = vpow.bf16 %v3014_v27  ;;  %v3046_v7 = vmul.bf16 3216621497, %v1442_v54  ;;  %v3013_v55 = vmul.bf16 3216621497, %v1409_v40  ;;  %v1441_v63 = vpack.c.bf16 %v5062_v33, %v4982_v29  ;;  %v5490_v62 = vld [vmem:[#allocation15_spill] sm:$0xff]  ;;  %v5491_v42 = vld [vmem:[#allocation16_spill] sm:$0xff] }
 0x16b   : > { %v4114_v22 = vpop.eup %4113  ;;  %3682 = vst [vmem:[%s4577_s27 + $0x170] sm:$0xff] %v3550_v30   ;;  %v5080_v43 = vadd.f32 %v4932_v20, %v5487_v38  ;;  %v5084_v9 = vadd.f32 %v4932_v20, %v5488_v6  ;;  %v5088_v48 = vadd.f32 %v4932_v20, %v5489_v59  ;;  %v5092_v27 = vadd.f32 %v4932_v20, %v5490_v62  ;;  %v5492_v6 = vld [vmem:[#allocation17_spill] sm:$0xff] }
 0x16c   : > { %v1810_v54 = vmul.bf16 1065369472, %v4114_v22  ;;  %4123 = vpow.bf16 %v3046_v7  ;;  %v3045_v40 = vmul.bf16 3216621497, %v1441_v63  ;;  %v5096_v30 = vadd.f32 %v4932_v20, %v5491_v42 }
 0x16d   : > { %v4116_v24 = vpop.eup %4115  ;;  %4125 = vpow.bf16 %v3013_v55  ;;  %v1412_v21 = vpack.c.bf16 %v5088_v48, %v5069_v0  ;;  %v1444_v38 = vpack.c.bf16 %v5092_v27, %v5073_v53  ;;  %v5104_v59 = vadd.f32 %v4932_v20, %v5492_v6 }
 0x16e   : > { %v1937_v62 = vunpack.c.l.bf16 %v1810_v54  ;;  %v1938_v22 = vunpack.c.h.bf16 %v1810_v54  ;;  %v1874_v7 = vmul.bf16 1065369472, %v4116_v24  ;;  %4127 = vpow.bf16 %v3045_v40 }
 0x16f   : > { %v4118_v63 = vpop.eup %4117  ;;  %v3016_v25 = vmul.bf16 3216621497, %v1412_v21  ;;  %v3048_v42 = vmul.bf16 3216621497, %v1444_v38  ;;  %v1411_v55 = vpack.c.bf16 %v5096_v30, %v5080_v43  ;;  %v1443_v41 = vpack.c.bf16 %v5104_v59, %v5084_v9 }
 0x170   : > { %v2065_v2 = vmul.f32 %v1937_v62, %v4837_v47  ;;  %v2066_v11 = vmul.f32 %v1938_v22, %v4901_v23  ;;  %v2001_v6 = vunpack.c.l.bf16 %v1874_v7  ;;  %v2002_v57 = vunpack.c.h.bf16 %v1874_v7  ;;  %v5494_v22 = vld [vmem:[#allocation18_spill] sm:$0xff]  ;;  %v5495_v7 = vld [vmem:[#allocation19_spill] sm:$0xff] }
 0x171   : > { %v1808_v10 = vmul.bf16 1065369472, %v4118_v63  ;;  %4129 = vpow.bf16 %v3016_v25  ;;  %v3015_v54 = vmul.bf16 3216621497, %v1411_v55  ;;  %v3047_v40 = vmul.bf16 3216621497, %v1443_v41 }
 0x172   : > { %v3405_v24 = vpack.c.bf16 %v2066_v11, %v2065_v2  ;;  %v2129_v21 = vmul.f32 %v2001_v6, %v4849_v12  ;;  %v2130_v38 = vmul.f32 %v2002_v57, %v4906_v44  ;;  %4131 = vpow.bf16 %v3048_v42  ;;  %v5493_v25 = vld [vmem:[#allocation3_spill] sm:$0xff] }
 0x173   : > { %v1935_v14 = vunpack.c.l.bf16 %v1808_v10  ;;  %v1936_v15 = vunpack.c.h.bf16 %v1808_v10  ;;  %4133 = vpow.bf16 %v3015_v54  ;;  %v5116_v47 = vadd.f32 %v4932_v20, %v4869_v8 }
 0x174   : > { %v4120_v23 = vpop.eup %4119  ;;  %3653 = vst [vmem:[%s4577_s27 + $0x88] sm:$0xff] %v3405_v24   ;;  %v3565_v62 = vpack.c.bf16 %v2130_v38, %v2129_v21  ;;  %4135 = vpow.bf16 %v3047_v40  ;;  %v5121_v41 = vadd.f32 %v4932_v20, %v4871_v49  ;;  %v5125_v12 = vadd.f32 %v4932_v20, %v4873_v28  ;;  %v5496_v40 = vld [vmem:[#allocation20_spill] sm:$0xff] }
 0x175   : > { %v4122_v44 = vpop.eup %4121  ;;  %v2063_v10 = vmul.f32 %v1935_v14, %v4889_v16  ;;  %v2064_v57 = vmul.f32 %v1936_v15, %v4910_v37  ;;  %v1872_v11 = vmul.bf16 1065369472, %v4120_v23  ;;  %v5131_v8 = vadd.f32 %v4932_v20, %v4875_v45  ;;  %v5497_v21 = vld [vmem:[#allocation4_spill] sm:$0xff] }
 0x176   : > { %3685 = vst [vmem:[%s4577_s27 + $0x188] sm:$0xff] %v3565_v62   ;;  %v1730_v2 = vadd.bf16 1065369472, %v4122_v44  ;;  %v5136_v49 = vadd.f32 %v4932_v20, %v4877_v13  ;;  %v5140_v28 = vadd.f32 %v4932_v20, %v5493_v25  ;;  %v5144_v16 = vadd.f32 %v4932_v20, %v5494_v22 }
 0x177   : > { %v4124_v37 = vpop.eup %4123  ;;  %v3400_v15 = vpack.c.bf16 %v2064_v57, %v2063_v10  ;;  %v1999_v14 = vunpack.c.l.bf16 %v1872_v11  ;;  %v2000_v45 = vunpack.c.h.bf16 %v1872_v11  ;;  %v5148_v63 = vadd.f32 %v4932_v20, %v5495_v7  ;;  %v5501_v7 = vld [vmem:[#allocation22_spill] sm:$0xff] }
 0x178   : > { %v4126_v42 = vpop.eup %4125  ;;  %4137 = vrcp.bf16 %v1730_v2  ;;  %v1762_v13 = vadd.bf16 1065369472, %v4124_v37  ;;  %v1414_v55 = vpack.c.bf16 %v5136_v49, %v5116_v47  ;;  %v1446_v6 = vpack.c.bf16 %v5140_v28, %v5121_v41  ;;  %v5498_v37 = vld [vmem:[#allocation2_spill] sm:$0xff] }
 0x179   : > { %v4128_v54 = vpop.eup %4127  ;;  %3652 = vst [vmem:[%s4577_s27 + $0x80] sm:$0xff] %v3400_v15   ;;  %v2127_v24 = vmul.f32 %v1999_v14, %v5496_v40  ;;  %v2128_v38 = vmul.f32 %v2000_v45, %v5497_v21  ;;  %v1729_v23 = vadd.bf16 1065369472, %v4126_v42  ;;  %v1413_v62 = vpack.c.bf16 %v5144_v16, %v5125_v12  ;;  %v5499_v14 = vld [vmem:[#allocation21_spill] sm:$0xff] }
 0x17a   : > { %4139 = vrcp.bf16 %v1762_v13  ;;  %v1761_v44 = vadd.bf16 1065369472, %v4128_v54  ;;  %v3018_v10 = vmul.bf16 3216621497, %v1414_v55  ;;  %v3050_v57 = vmul.bf16 3216621497, %v1446_v6 }
 0x17b   : > { %v3560_v11 = vpack.c.bf16 %v2128_v38, %v2127_v24  ;;  %4141 = vrcp.bf16 %v1729_v23  ;;  %v3017_v2 = vmul.bf16 3216621497, %v1413_v62  ;;  %v1445_v25 = vpack.c.bf16 %v5148_v63, %v5131_v8  ;;  %v5503_v54 = vld [vmem:[#allocation23_spill] sm:$0xff]  ;;  %v5505_v38 = vld [vmem:[#allocation24_spill] sm:$0xff]  ;;  %v5507_v62 = vld [vmem:[#allocation25_spill] sm:$0xff] }
 0x17c   : > { %v4130_v22 = vpop.eup %4129  ;;  %4143 = vrcp.bf16 %v1761_v44  ;;  %v5163_v15 = vadd.f32 %v4932_v20, %v5498_v37  ;;  %v5167_v45 = vadd.f32 %v4932_v20, %v5499_v14  ;;  %v5171_v42 = vadd.f32 %v4932_v20, %v5501_v7 }
 0x17d   : > { %v4132_v13 = vpop.eup %4131  ;;  %3684 = vst [vmem:[%s4577_s27 + $0x180] sm:$0xff] %v3560_v11   ;;  %v1732_v55 = vadd.bf16 1065369472, %v4130_v22  ;;  %4145 = vpow.bf16 %v3018_v10  ;;  %v3049_v6 = vmul.bf16 3216621497, %v1445_v25  ;;  %v5176_v40 = vadd.f32 %v4932_v20, %v5503_v54  ;;  %v5509_v10 = vld [vmem:[#allocation26_spill] sm:$0xff] }
 0x17e   : > { %5500 = vst [vmem:[#allocation9_spill] sm:$0xff] %v5167_v45  ;;  %5502 = vst [vmem:[#allocation11_spill] sm:$0xff] %v5171_v42  ;;  %v4134_v24 = vpop.eup %4133  ;;  %v1764_v21 = vadd.bf16 1065369472, %v4132_v13  ;;  %4147 = vpow.bf16 %v3050_v57  ;;  %v5180_v23 = vadd.f32 %v4932_v20, %v5505_v38  ;;  %v5184_v44 = vadd.f32 %v4932_v20, %v5507_v62  ;;  %v5511_v22 = vld [vmem:[#allocation27_spill] sm:$0xff] }
 0x17f   : > { %5504 = vst [vmem:[#allocation12_spill] sm:$0xff] %v5176_v40  ;;  %v4136_v37 = vpop.eup %4135  ;;  %4149 = vrcp.bf16 %v1732_v55  ;;  %v1731_v11 = vadd.bf16 1065369472, %v4134_v24  ;;  %v5188_v25 = vadd.f32 %v4932_v20, %v5509_v10  ;;  %v5192_v14 = vadd.f32 %v4932_v20, %v5511_v22 }
 0x180   : > { %5506 = vst [vmem:[#allocation13_spill] sm:$0xff] %v5180_v23  ;;  %5508 = vst [vmem:[#allocation14_spill] sm:$0xff] %v5184_v44  ;;  %4151 = vrcp.bf16 %v1764_v21  ;;  %v1763_v57 = vadd.bf16 1065369472, %v4136_v37  ;;  %v1416_v7 = vpack.c.bf16 %v5180_v23, %v5163_v15  ;;  %v1448_v13 = vpack.c.bf16 %v5184_v44, %v5167_v45 }
 0x181   : > { %5510 = vst [vmem:[#allocation15_spill] sm:$0xff] %v5188_v25  ;;  %5512 = vst [vmem:[#allocation16_spill] sm:$0xff] %v5192_v14  ;;  %4153 = vrcp.bf16 %v1731_v11  ;;  %v1415_v55 = vpack.c.bf16 %v5188_v25, %v5171_v42  ;;  %v1447_v54 = vpack.c.bf16 %v5192_v14, %v5176_v40  ;;  %v5204_v24 = vadd.f32 %v4932_v20, %v4962_v34 }
 0x182   : > { %4155 = vrcp.bf16 %v1763_v57  ;;  %v3020_v21 = vmul.bf16 3216621497, %v1416_v7  ;;  %v3052_v38 = vmul.bf16 3216621497, %v1448_v13  ;;  %v5208_v62 = vadd.f32 %v4932_v20, %v4964_v39 }
 0x183   : > { %v4138_v37 = vpop.eup %4137  ;;  %4157 = vpow.bf16 %v3017_v2  ;;  %v3019_v11 = vmul.bf16 3216621497, %v1415_v55  ;;  %v5210_v10 = vmul.bf16 3216621497, %v1447_v54  ;;  %v5214_v22 = vadd.f32 %v4932_v20, %v4966_v18 }
 0x184   : > { %v1814_v14 = vmul.bf16 1065369472, %v4138_v37  ;;  %4159 = vpow.bf16 %v3049_v6  ;;  %v5218_v34 = vadd.f32 %v4932_v20, %v4970_v3  ;;  %v5222_v57 = vadd.f32 %v4932_v20, %v4972_v17 }
 0x185   : > { %v4140_v39 = vpop.eup %4139  ;;  %4161 = vpow.bf16 %v3020_v21  ;;  %v5226_v2 = vadd.f32 %v4932_v20, %v4975_v52  ;;  %v5230_v18 = vadd.f32 %v4932_v20, %v4977_v5  ;;  %v5234_v6 = vadd.f32 %v4932_v20, %v4984_v19 }
 0x186   : > { %v4142_v3 = vpop.eup %4141  ;;  %v1941_v7 = vunpack.c.l.bf16 %v1814_v14  ;;  %v1942_v13 = vunpack.c.h.bf16 %v1814_v14  ;;  %v1878_v55 = vmul.bf16 1065369472, %v4140_v39  ;;  %4163 = vpow.bf16 %v3052_v38 }
 0x187   : > { %v4144_v17 = vpop.eup %4143  ;;  %v1812_v54 = vmul.bf16 1065369472, %v4142_v3  ;;  %4165 = vpow.bf16 %v3019_v11 }
 0x188   : > { %v4146_v5 = vpop.eup %4145  ;;  %v2069_v37 = vmul.f32 %v1941_v7, %v4936_v26  ;;  %v2070_v19 = vmul.f32 %v1942_v13, %v5024_v51  ;;  %v2005_v40 = vunpack.c.l.bf16 %v1878_v55  ;;  %v2006_v25 = vunpack.c.h.bf16 %v1878_v55 }
 0x189   : > { %v4148_v42 = vpop.eup %4147  ;;  %v1939_v14 = vunpack.c.l.bf16 %v1812_v54  ;;  %v1940_v38 = vunpack.c.h.bf16 %v1812_v54  ;;  %v1876_v39 = vmul.bf16 1065369472, %v4144_v17  ;;  %v1734_v3 = vadd.bf16 1065369472, %v4146_v5 }
 0x18a   : > { %v4150_v11 = vpop.eup %4149  ;;  %v3415_v44 = vpack.c.bf16 %v2070_v19, %v2069_v37  ;;  %v2133_v52 = vmul.f32 %v2005_v40, %v4946_v60  ;;  %v2134_v45 = vmul.f32 %v2006_v25, %v5039_v46  ;;  %v1766_v21 = vadd.bf16 1065369472, %v4148_v42 }
 0x18b   : > { %v4152_v23 = vpop.eup %4151  ;;  %v2067_v26 = vmul.f32 %v1939_v14, %v4950_v58  ;;  %v2068_v51 = vmul.f32 %v1940_v38, %v5043_v1  ;;  %v2003_v7 = vunpack.c.l.bf16 %v1876_v39  ;;  %v2004_v13 = vunpack.c.h.bf16 %v1876_v39 }
 0x18c   : > { %v4154_v55 = vpop.eup %4153  ;;  %3655 = vst [vmem:[%s4577_s27 + $0x98] sm:$0xff] %v3415_v44   ;;  %v3575_v54 = vpack.c.bf16 %v2134_v45, %v2133_v52  ;;  %v1818_v17 = vmul.bf16 1065369472, %v4150_v11  ;;  %v1882_v5 = vmul.bf16 1065369472, %v4152_v23  ;;  %4167 = vrcp.bf16 %v1734_v3 }
 0x18d   : > { %v4156_v37 = vpop.eup %4155  ;;  %v3410_v60 = vpack.c.bf16 %v2068_v51, %v2067_v26  ;;  %v2131_v46 = vmul.f32 %v2003_v7, %v4982_v29  ;;  %v2132_v42 = vmul.f32 %v2004_v13, %v5062_v33  ;;  %v1816_v40 = vmul.bf16 1065369472, %v4154_v55 }
 0x18e   : > { %v4158_v58 = vpop.eup %4157  ;;  %3687 = vst [vmem:[%s4577_s27 + $0x198] sm:$0xff] %v3575_v54   ;;  %v1945_v25 = vunpack.c.l.bf16 %v1818_v17  ;;  %v1946_v1 = vunpack.c.h.bf16 %v1818_v17  ;;  %v2009_v19 = vunpack.c.l.bf16 %v1882_v5  ;;  %v2010_v14 = vunpack.c.h.bf16 %v1882_v5 }
 0x18f   : > { %v4160_v44 = vpop.eup %4159  ;;  %3654 = vst [vmem:[%s4577_s27 + $0x90] sm:$0xff] %v3410_v60   ;;  %v3570_v45 = vpack.c.bf16 %v2132_v42, %v2131_v46  ;;  %v1943_v52 = vunpack.c.l.bf16 %v1816_v40  ;;  %v1944_v23 = vunpack.c.h.bf16 %v1816_v40  ;;  %v1880_v38 = vmul.bf16 1065369472, %v4156_v37 }
 0x190   : > { %v4162_v39 = vpop.eup %4161  ;;  %v2073_v3 = vmul.f32 %v1945_v25, %v5069_v0  ;;  %v2074_v29 = vmul.f32 %v1946_v1, %v5088_v48  ;;  %v2137_v33 = vmul.f32 %v2009_v19, %v5073_v53  ;;  %v2138_v11 = vmul.f32 %v2010_v14, %v5092_v27 }
 0x191   : > { %v4164_v26 = vpop.eup %4163  ;;  %3686 = vst [vmem:[%s4577_s27 + $0x190] sm:$0xff] %v3570_v45   ;;  %v2071_v51 = vmul.f32 %v1943_v52, %v5080_v43  ;;  %v2072_v7 = vmul.f32 %v1944_v23, %v5096_v30  ;;  %v2007_v13 = vunpack.c.l.bf16 %v1880_v38  ;;  %v2008_v55 = vunpack.c.h.bf16 %v1880_v38 }
 0x192   : > { %v4166_v54 = vpop.eup %4165  ;;  %v3425_v17 = vpack.c.bf16 %v2074_v29, %v2073_v3  ;;  %v3585_v0 = vpack.c.bf16 %v2138_v11, %v2137_v33  ;;  %4169 = vrcp.bf16 %v1766_v21  ;;  %v1733_v48 = vadd.bf16 1065369472, %v4158_v58 }
 0x193   : > { %v3420_v5 = vpack.c.bf16 %v2072_v7, %v2071_v51  ;;  %v2135_v53 = vmul.f32 %v2007_v13, %v5084_v9  ;;  %v2136_v27 = vmul.f32 %v2008_v55, %v5104_v59  ;;  %v1765_v37 = vadd.bf16 1065369472, %v4160_v44  ;;  %v5515_v55 = vld [vmem:[#allocation5_spill] sm:$0xff] }
 0x194   : > { %3657 = vst [vmem:[%s4577_s27 + $0xa8] sm:$0xff] %v3425_v17   ;;  %3689 = vst [vmem:[%s4577_s27 + $0x1a8] sm:$0xff] %v3585_v0   ;;  %4171 = vrcp.bf16 %v1733_v48  ;;  %v1736_v43 = vadd.bf16 1065369472, %v4162_v39  ;;  %v1768_v30 = vadd.bf16 1065369472, %v4164_v26  ;;  %v5513_v21 = vpack.c.bf16 %v5222_v57, %v5204_v24 }
 0x195   : > { %v1735_v60 = vadd.bf16 1065369472, %v4166_v54  ;;  %3656 = vst [vmem:[%s4577_s27 + $0xa0] sm:$0xff] %v3420_v5   ;;  %v3580_v46 = vpack.c.bf16 %v2136_v27, %v2135_v53  ;;  %4173 = vrcp.bf16 %v1765_v37  ;;  %v5514_v9 = vpack.c.bf16 %v5226_v2, %v5208_v62  ;;  %v5517_v17 = vld [vmem:[#allocation28_spill] sm:$0xff] }
 0x196   : > { %v3022_v42 = vmul.bf16 3216621497, %v5513_v21  ;;  %4175 = vrcp.bf16 %v1736_v43  ;;  %v1417_v59 = vpack.c.bf16 %v5230_v18, %v5214_v22  ;;  %v1449_v58 = vpack.c.bf16 %v5234_v6, %v5218_v34 }
 0x197   : > { %v3054_v40 = vmul.bf16 3216621497, %v5514_v9  ;;  %v5275_v25 = vadd.f32 %v4932_v20, %v4993_v56  ;;  %v4168_v1 = vpop.eup %4167  ;;  %3688 = vst [vmem:[%s4577_s27 + $0x1a0] sm:$0xff] %v3580_v46   ;;  %4177 = vrcp.bf16 %v1768_v30  ;;  %v5280_v19 = vadd.f32 %v4932_v20, %v4996_v50  ;;  %v5518_v30 = vld [vmem:[#allocation29_spill] sm:$0xff]  ;;  %v5519_v46 = vld [vmem:[#allocation10_spill] sm:$0xff] }
 0x198   : > { %v5284_v14 = vadd.f32 %v4932_v20, %v4998_v61  ;;  %v5288_v44 = vadd.f32 %v4932_v20, %v5002_v35  ;;  %v1822_v45 = vmul.bf16 1065369472, %v4168_v1  ;;  %4179 = vrcp.bf16 %v1735_v60 }
 0x199   : > { %v3021_v52 = vmul.bf16 3216621497, %v1417_v59  ;;  %v3053_v56 = vmul.bf16 3216621497, %v1449_v58  ;;  %4181 = vpow.bf16 %v5210_v10  ;;  %v5293_v23 = vadd.f32 %v4932_v20, %v5004_v32 }
 0x19a   : > { %v5297_v50 = vadd.f32 %v4932_v20, %v5009_v4  ;;  %v5301_v61 = vadd.f32 %v4932_v20, %v5011_v31  ;;  %v1949_v35 = vunpack.c.l.bf16 %v1822_v45  ;;  %v1950_v38 = vunpack.c.h.bf16 %v1822_v45 }
 0x19b   : > { %4183 = vpow.bf16 %v3022_v42  ;;  %v5305_v39 = vadd.f32 %v4932_v20, %v5014_v36  ;;  %v1420_v32 = vpack.c.bf16 %v5293_v23, %v5275_v25  ;;  %v5319_v54 = vadd.f32 %v4932_v20, %v5515_v55 }
 0x19c   : > { %4185 = vpow.bf16 %v3054_v40  ;;  %v1452_v10 = vpack.c.bf16 %v5297_v50, %v5280_v19  ;;  %v1419_v4 = vpack.c.bf16 %v5301_v61, %v5284_v14  ;;  %v2077_v31 = vmul.f32 %v1949_v35, %v5116_v47  ;;  %v5516_v47 = vld [vmem:[#allocation6_spill] sm:$0xff] }
 0x19d   : > { %v2078_v3 = vmul.f32 %v1950_v38, %v5136_v49  ;;  %4187 = vpow.bf16 %v3021_v52  ;;  %v1451_v36 = vpack.c.bf16 %v5305_v39, %v5288_v44  ;;  %v4170_v29 = vpop.eup %4169  ;;  %v3024_v33 = vmul.bf16 3216621497, %v1420_v32 }
 0x19e   : > { %4189 = vpow.bf16 %v3053_v56  ;;  %v3056_v11 = vmul.bf16 3216621497, %v1452_v10  ;;  %v3023_v26 = vmul.bf16 3216621497, %v1419_v4  ;;  %v1886_v7 = vmul.bf16 1065369472, %v4170_v29 }
 0x19f   : > { %v3435_v51 = vpack.c.bf16 %v2078_v3, %v2077_v31  ;;  %v4172_v13 = vpop.eup %4171  ;;  %4191 = vpow.bf16 %v3024_v33  ;;  %v5323_v49 = vadd.f32 %v4932_v20, %v5516_v47  ;;  %v5327_v0 = vadd.f32 %v4932_v20, %v5517_v17  ;;  %v5520_v47 = vld [vmem:[#allocation13_spill] sm:$0xff] }
 0x1a0   : > { %v4174_v48 = vpop.eup %4173  ;;  %v2013_v5 = vunpack.c.l.bf16 %v1886_v7  ;;  %v2014_v53 = vunpack.c.h.bf16 %v1886_v7  ;;  %v1820_v27 = vmul.bf16 1065369472, %v4172_v13  ;;  %4193 = vpow.bf16 %v3056_v11 }
 0x1a1   : > { %3659 = vst [vmem:[%s4577_s27 + $0xb8] sm:$0xff] %v3435_v51   ;;  %v4176_v37 = vpop.eup %4175  ;;  %v1884_v43 = vmul.bf16 1065369472, %v4174_v48  ;;  %4195 = vpow.bf16 %v3023_v26  ;;  %v5332_v60 = vadd.f32 %v4932_v20, %v5518_v30  ;;  %v5336_v21 = vadd.f32 %v4932_v20, %v5519_v46 }
 0x1a2   : > { %v4178_v42 = vpop.eup %4177  ;;  %v2141_v9 = vmul.f32 %v2013_v5, %v5121_v41  ;;  %v2142_v40 = vmul.f32 %v2014_v53, %v5140_v28  ;;  %v1947_v59 = vunpack.c.l.bf16 %v1820_v27  ;;  %v1948_v58 = vunpack.c.h.bf16 %v1820_v27  ;;  %v5521_v5 = vld [vmem:[#allocation9_spill] sm:$0xff]  ;;  %v5522_v53 = vld [vmem:[#allocation14_spill] sm:$0xff] }
 0x1a3   : > { %v4180_v1 = vpop.eup %4179  ;;  %v2011_v45 = vunpack.c.l.bf16 %v1884_v43  ;;  %v2012_v52 = vunpack.c.h.bf16 %v1884_v43  ;;  %v1826_v56 = vmul.bf16 1065369472, %v4176_v37  ;;  %v1890_v35 = vmul.bf16 1065369472, %v4178_v42  ;;  %v5523_v37 = vld [vmem:[#allocation11_spill] sm:$0xff] }
 0x1a4   : > { %v4182_v38 = vpop.eup %4181  ;;  %v3595_v32 = vpack.c.bf16 %v2142_v40, %v2141_v9  ;;  %v2075_v10 = vmul.f32 %v1947_v59, %v5125_v12  ;;  %v2076_v4 = vmul.f32 %v1948_v58, %v5144_v16  ;;  %v1824_v31 = vmul.bf16 1065369472, %v4180_v1  ;;  %v5524_v42 = vld [vmem:[#allocation15_spill] sm:$0xff] }
 0x1a5   : > { %v2139_v41 = vmul.f32 %v2011_v45, %v5131_v8  ;;  %v2140_v28 = vmul.f32 %v2012_v52, %v5148_v63  ;;  %v1953_v29 = vunpack.c.l.bf16 %v1826_v56  ;;  %v1954_v33 = vunpack.c.h.bf16 %v1826_v56 }
 0x1a6   : > { %v4184_v3 = vpop.eup %4183  ;;  %3691 = vst [vmem:[%s4577_s27 + $0x1b8] sm:$0xff] %v3595_v32   ;;  %v3430_v26 = vpack.c.bf16 %v2076_v4, %v2075_v10  ;;  %v2017_v51 = vunpack.c.l.bf16 %v1890_v35  ;;  %v2018_v7 = vunpack.c.h.bf16 %v1890_v35  ;;  %v1951_v13 = vunpack.c.l.bf16 %v1824_v31 }
 0x1a7   : > { %v4186_v11 = vpop.eup %4185  ;;  %v3590_v12 = vpack.c.bf16 %v2140_v28, %v2139_v41  ;;  %v2081_v16 = vmul.f32 %v1953_v29, %v5163_v15  ;;  %v2082_v17 = vmul.f32 %v1954_v33, %v5520_v47  ;;  %v1952_v48 = vunpack.c.h.bf16 %v1824_v31  ;;  %v5525_v31 = vld [vmem:[#allocation30_spill] sm:$0xff]  ;;  %v5526_v28 = vld [vmem:[#allocation7_spill] sm:$0xff]  ;;  %v5527_v33 = vld [vmem:[#allocation8_spill] sm:$0xff] }
 0x1a8   : > { %v4188_v55 = vpop.eup %4187  ;;  %3658 = vst [vmem:[%s4577_s27 + $0xb0] sm:$0xff] %v3430_v26   ;;  %v2145_v63 = vmul.f32 %v2017_v51, %v5521_v5  ;;  %v2146_v27 = vmul.f32 %v2018_v7, %v5522_v53  ;;  %v2079_v43 = vmul.f32 %v1951_v13, %v5523_v37  ;;  %v1767_v30 = vadd.bf16 1065369472, %v4182_v38 }
 0x1a9   : > { %v4190_v8 = vpop.eup %4189  ;;  %3690 = vst [vmem:[%s4577_s27 + $0x1b0] sm:$0xff] %v3590_v12   ;;  %v3445_v46 = vpack.c.bf16 %v2082_v17, %v2081_v16  ;;  %v2080_v9 = vmul.f32 %v1952_v48, %v5524_v42  ;;  %v1738_v40 = vadd.bf16 1065369472, %v4184_v3  ;;  %v1770_v15 = vadd.bf16 1065369472, %v4186_v11  ;;  %v5528_v42 = vld [vmem:[#allocation12_spill] sm:$0xff] }
 0x1aa   : > { %v4192_v59 = vpop.eup %4191  ;;  %v3605_v58 = vpack.c.bf16 %v2146_v27, %v2145_v63  ;;  %4197 = vrcp.bf16 %v1767_v30  ;;  %v1737_v1 = vadd.bf16 1065369472, %v4188_v55  ;;  %v1769_v45 = vadd.bf16 1065369472, %v4190_v8 }
 0x1ab   : > { %v4194_v52 = vpop.eup %4193  ;;  %3661 = vst [vmem:[%s4577_s27 + $0xc8] sm:$0xff] %v3445_v46   ;;  %v3440_v56 = vpack.c.bf16 %v2080_v9, %v2079_v43  ;;  %4199 = vrcp.bf16 %v1738_v40  ;;  %v1740_v35 = vadd.bf16 1065369472, %v4192_v59  ;;  %v1422_v38 = vpack.c.bf16 %v5332_v60, %v5319_v54  ;;  %v5529_v40 = vld [vmem:[#allocation16_spill] sm:$0xff] }
 0x1ac   : > { %v4196_v32 = vpop.eup %4195  ;;  %3693 = vst [vmem:[%s4577_s27 + $0x1c8] sm:$0xff] %v3605_v58   ;;  %4201 = vrcp.bf16 %v1770_v15  ;;  %v1772_v10 = vadd.bf16 1065369472, %v4194_v52  ;;  %v1454_v4 = vpack.c.bf16 %v5336_v21, %v5323_v49  ;;  %v5361_v3 = vadd.f32 %v4932_v20, %v5525_v31 }
 0x1ad   : > { %3660 = vst [vmem:[%s4577_s27 + $0xc0] sm:$0xff] %v3440_v56   ;;  %4203 = vrcp.bf16 %v1737_v1  ;;  %v1739_v41 = vadd.bf16 1065369472, %v4196_v32  ;;  %v5366_v29 = vadd.f32 %v4932_v20, %v5526_v28  ;;  %v5370_v11 = vadd.f32 %v4932_v20, %v5527_v33 }
 0x1ae   : > { %4205 = vrcp.bf16 %v1769_v45  ;;  %v1421_v26 = vpack.c.bf16 %v5361_v3, %v5327_v0  ;;  %v3055_v51 = vmul.bf16 3216621497, %v1451_v36  ;;  %v3026_v13 = vmul.bf16 3216621497, %v1422_v38 }
 0x1af   : > { %4207 = vrcp.bf16 %v1740_v35  ;;  %v1453_v7 = vpack.c.bf16 %v5370_v11, %v5366_v29  ;;  %v3058_v55 = vmul.bf16 3216621497, %v1454_v4 }
 0x1b0   : > { %4209 = vrcp.bf16 %v1772_v10  ;;  %v3025_v12 = vmul.bf16 3216621497, %v1421_v26 }
 0x1b1   : > { %4211 = vrcp.bf16 %v1739_v41  ;;  %v3057_v20 = vmul.bf16 3216621497, %v1453_v7 }
 0x1b2   : > { %4213 = vpow.bf16 %v3055_v51 }
 0x1b3   : > { %4215 = vpow.bf16 %v3026_v13 }
 0x1b4   : > { %4217 = vpow.bf16 %v3058_v55 }
 0x1b5   : > { %v4198_v16 = vpop.eup %4197  ;;  %4219 = vpow.bf16 %v3025_v12 }
 0x1b6   : > { %v4200_v47 = vpop.eup %4199  ;;  %v1888_v17 = vmul.bf16 1065369472, %v4198_v16  ;;  %4221 = vpow.bf16 %v3057_v20 }
 0x1b7   : > { %v4202_v48 = vpop.eup %4201  ;;  %v1830_v8 = vmul.bf16 1065369472, %v4200_v47 }
 0x1b8   : > { %v4204_v36 = vpop.eup %4203  ;;  %v2015_v5 = vunpack.c.l.bf16 %v1888_v17  ;;  %v2016_v63 = vunpack.c.h.bf16 %v1888_v17  ;;  %v1894_v53 = vmul.bf16 1065369472, %v4202_v48 }
 0x1b9   : > { %v4206_v27 = vpop.eup %4205  ;;  %v1957_v37 = vunpack.c.l.bf16 %v1830_v8  ;;  %v1958_v43 = vunpack.c.h.bf16 %v1830_v8  ;;  %v1828_v30 = vmul.bf16 1065369472, %v4204_v36 }
 0x1ba   : > { %v4208_v46 = vpop.eup %4207  ;;  %v2143_v9 = vmul.f32 %v2015_v5, %v5528_v42  ;;  %v2144_v15 = vmul.f32 %v2016_v63, %v5529_v40  ;;  %v2021_v59 = vunpack.c.l.bf16 %v1894_v53  ;;  %v2022_v58 = vunpack.c.h.bf16 %v1894_v53 }
 0x1bb   : > { %v4210_v1 = vpop.eup %4209  ;;  %v2085_v45 = vmul.f32 %v1957_v37, %v5204_v24  ;;  %v2086_v52 = vmul.f32 %v1958_v43, %v5222_v57  ;;  %v1955_v56 = vunpack.c.l.bf16 %v1828_v30  ;;  %v1956_v35 = vunpack.c.h.bf16 %v1828_v30 }
 0x1bc   : > { %v4212_v38 = vpop.eup %4211  ;;  %v3600_v32 = vpack.c.bf16 %v2144_v15, %v2143_v9  ;;  %v2149_v10 = vmul.f32 %v2021_v59, %v5208_v62  ;;  %v2150_v4 = vmul.f32 %v2022_v58, %v5226_v2  ;;  %v1892_v31 = vmul.bf16 1065369472, %v4206_v27 }
 0x1bd   : > { %v3455_v41 = vpack.c.bf16 %v2086_v52, %v2085_v45  ;;  %v2083_v28 = vmul.f32 %v1955_v56, %v5214_v22  ;;  %v2084_v33 = vmul.f32 %v1956_v35, %v5230_v18  ;;  %v1834_v26 = vmul.bf16 1065369472, %v4208_v46  ;;  %v4214_v24 = vpop.eup %4213 }
 0x1be   : > { %3692 = vst [vmem:[%s4577_s27 + $0x1c0] sm:$0xff] %v3600_v32   ;;  %v3615_v57 = vpack.c.bf16 %v2150_v4, %v2149_v10  ;;  %v2019_v51 = vunpack.c.l.bf16 %v1892_v31  ;;  %v2020_v7 = vunpack.c.h.bf16 %v1892_v31  ;;  %v1898_v13 = vmul.bf16 1065369472, %v4210_v1  ;;  %v4216_v55 = vpop.eup %4215 }
 0x1bf   : > { %3663 = vst [vmem:[%s4577_s27 + $0xd8] sm:$0xff] %v3455_v41   ;;  %v3450_v62 = vpack.c.bf16 %v2084_v33, %v2083_v28  ;;  %v1961_v12 = vunpack.c.l.bf16 %v1834_v26  ;;  %v1962_v2 = vunpack.c.h.bf16 %v1834_v26  ;;  %v1832_v20 = vmul.bf16 1065369472, %v4212_v38  ;;  %v4218_v16 = vpop.eup %4217 }
 0x1c0   : > { %3695 = vst [vmem:[%s4577_s27 + $0x1d8] sm:$0xff] %v3615_v57   ;;  %v2147_v22 = vmul.f32 %v2019_v51, %v5218_v34  ;;  %v2148_v18 = vmul.f32 %v2020_v7, %v5234_v6  ;;  %v2025_v47 = vunpack.c.l.bf16 %v1898_v13  ;;  %v2026_v17 = vunpack.c.h.bf16 %v1898_v13  ;;  %v4220_v48 = vpop.eup %4219 }
 0x1c1   : > { %3662 = vst [vmem:[%s4577_s27 + $0xd0] sm:$0xff] %v3450_v62   ;;  %v2089_v8 = vmul.f32 %v1961_v12, %v5275_v25  ;;  %v2090_v36 = vmul.f32 %v1962_v2, %v5293_v23  ;;  %v1959_v5 = vunpack.c.l.bf16 %v1832_v20  ;;  %v1960_v63 = vunpack.c.h.bf16 %v1832_v20  ;;  %v4222_v53 = vpop.eup %4221 }
 0x1c2   : > { %v3610_v27 = vpack.c.bf16 %v2148_v18, %v2147_v22  ;;  %v2153_v37 = vmul.f32 %v2025_v47, %v5280_v19  ;;  %v2154_v34 = vmul.f32 %v2026_v17, %v5297_v50  ;;  %v1771_v6 = vadd.bf16 1065369472, %v4214_v24 }
 0x1c3   : > { %v3465_v43 = vpack.c.bf16 %v2090_v36, %v2089_v8  ;;  %v2087_v30 = vmul.f32 %v1959_v5, %v5284_v14  ;;  %v2088_v46 = vmul.f32 %v1960_v63, %v5301_v61  ;;  %v1742_v25 = vadd.bf16 1065369472, %v4216_v55 }
 0x1c4   : > { %3694 = vst [vmem:[%s4577_s27 + $0x1d0] sm:$0xff] %v3610_v27   ;;  %v3625_v23 = vpack.c.bf16 %v2154_v34, %v2153_v37  ;;  %4223 = vrcp.bf16 %v1771_v6  ;;  %v1774_v42 = vadd.bf16 1065369472, %v4218_v16  ;;  %v1741_v9 = vadd.bf16 1065369472, %v4220_v48 }
 0x1c5   : > { %3665 = vst [vmem:[%s4577_s27 + $0xe8] sm:$0xff] %v3465_v43   ;;  %v3460_v40 = vpack.c.bf16 %v2088_v46, %v2087_v30  ;;  %4225 = vrcp.bf16 %v1742_v25  ;;  %v1773_v19 = vadd.bf16 1065369472, %v4222_v53 }
 0x1c6   : > { %3697 = vst [vmem:[%s4577_s27 + $0x1e8] sm:$0xff] %v3625_v23   ;;  %4227 = vrcp.bf16 %v1774_v42 }
 0x1c7   : > { %3664 = vst [vmem:[%s4577_s27 + $0xe0] sm:$0xff] %v3460_v40   ;;  %4229 = vrcp.bf16 %v1741_v9 }
 0x1c8   : > { %4231 = vrcp.bf16 %v1773_v19 }
 0x1cf   : > { %v4224_v50 = vpop.eup %4223 }
 0x1d0   : > { %v4226_v15 = vpop.eup %4225  ;;  %v1896_v14 = vmul.bf16 1065369472, %v4224_v50 }
 0x1d1   : > { %v4228_v59 = vpop.eup %4227  ;;  %v1838_v61 = vmul.bf16 1065369472, %v4226_v15 }
 0x1d2   : > { %v4230_v58 = vpop.eup %4229  ;;  %v2023_v1 = vunpack.c.l.bf16 %v1896_v14  ;;  %v2024_v45 = vunpack.c.h.bf16 %v1896_v14  ;;  %v1902_v52 = vmul.bf16 1065369472, %v4228_v59 }
 0x1d3   : > { %v4232_v56 = vpop.eup %4231  ;;  %v1965_v35 = vunpack.c.l.bf16 %v1838_v61  ;;  %v1966_v38 = vunpack.c.h.bf16 %v1838_v61  ;;  %v1836_v32 = vmul.bf16 1065369472, %v4230_v58 }
 0x1d4   : > { %v2151_v10 = vmul.f32 %v2023_v1, %v5288_v44  ;;  %v2152_v4 = vmul.f32 %v2024_v45, %v5305_v39  ;;  %v2029_v31 = vunpack.c.l.bf16 %v1902_v52  ;;  %v2030_v41 = vunpack.c.h.bf16 %v1902_v52 }
 0x1d5   : > { %v2093_v28 = vmul.f32 %v1965_v35, %v5319_v54  ;;  %v2094_v33 = vmul.f32 %v1966_v38, %v5332_v60  ;;  %v1963_v26 = vunpack.c.l.bf16 %v1836_v32  ;;  %v1964_v24 = vunpack.c.h.bf16 %v1836_v32 }
 0x1d6   : > { %v3620_v57 = vpack.c.bf16 %v2152_v4, %v2151_v10  ;;  %v2157_v51 = vmul.f32 %v2029_v31, %v5323_v49  ;;  %v2158_v7 = vmul.f32 %v2030_v41, %v5336_v21  ;;  %v1900_v44 = vmul.bf16 1065369472, %v4232_v56 }
 0x1d7   : > { %v3475_v13 = vpack.c.bf16 %v2094_v33, %v2093_v28  ;;  %v2091_v39 = vmul.f32 %v1963_v26, %v5327_v0  ;;  %v2092_v55 = vmul.f32 %v1964_v24, %v5361_v3 }
 0x1d8   : > { %3696 = vst [vmem:[%s4577_s27 + $0x1e0] sm:$0xff] %v3620_v57   ;;  %v3635_v54 = vpack.c.bf16 %v2158_v7, %v2157_v51  ;;  %v2027_v62 = vunpack.c.l.bf16 %v1900_v44  ;;  %v2028_v60 = vunpack.c.h.bf16 %v1900_v44 }
 0x1d9   : > { %3667 = vst [vmem:[%s4577_s27 + $0xf8] sm:$0xff] %v3475_v13   ;;  %v3470_v12 = vpack.c.bf16 %v2092_v55, %v2091_v39 }
 0x1da   : > { %3699 = vst [vmem:[%s4577_s27 + $0x1f8] sm:$0xff] %v3635_v54   ;;  %v2155_v2 = vmul.f32 %v2027_v62, %v5366_v29  ;;  %v2156_v49 = vmul.f32 %v2028_v60, %v5370_v11 }
 0x1db   : > { %3666 = vst [vmem:[%s4577_s27 + $0xf0] sm:$0xff] %v3470_v12  }
 0x1dc   : > { %v3630_v21 = vpack.c.bf16 %v2156_v49, %v2155_v2 }
 0x1de   : > { %3698 = vst [vmem:[%s4577_s27 + $0x1f0] sm:$0xff] %v3630_v21  }
 0x1df PF: > { %s13_s12 = sadd.s32 1, %s4240_s12  }
 0x1e0   : > { %p10_p4 = scmp.ge.s32.totalorder %s13_s12, 4  }
 0x1e2   :  { %12 = sbr.rel (!%p10_p4) target bundleno = 1 (0x1), region = 62 }

// kernel: custom_backbone_forward.8
= control target key start
LH: loop header
LB: loop body
LE: loop exit
PB: predicated region body
PF: predicated region fallthrough
CT: control target
= control target key end

     0   :  { %s2047_s12 = smov 0   ;;  %s2416_s0 = inlined_call_operand.vmem [shape: bf16[512,288], index: 0, kind: input, shape index: {}]   ;;  %s2417_s1 = inlined_call_operand.vmem [shape: bf16[288,128], index: 1, kind: input, shape index: {}]   ;;  %s2418_s2 = inlined_call_operand.vmem [shape: f32[1,128], index: 2, kind: input, shape index: {}]   ;;  %s2419_s3 = inlined_call_operand.vmem [shape: bf16[512,128], index: 3, kind: output, shape index: {}]  }
   0x1 LB: > { %s1413_s13 = sadd.s32 4294967295, %s2025_s12   ;;  %p1417_p0 = scmp.ge.s32.totalorder %s2025_s12, 1  ;;  %s2025_s12 = sphi %s2047_s12, %s13_s12  }
   0x2   : > { %p139_p1 = scmp.lt.s32.totalorder %s2025_s12, 3 }
   0x4   : > { %p140_p2 = pnand %p1417_p0, %p139_p1 }
   0x5   : > { %v1873_v0 = vld [vmem:[%s2417_s1 + $0x40] sm:$0xff] (!%p140_p2)   ;;  %s1418_s16 = sshll.u32 (!%p140_p2), %s1413_s13, 5  ;;  %v1875_v2 = vld [vmem:[%s2417_s1 + $0x48] sm:$0xff] (!%p140_p2)   ;;  %v1877_v4 = vld [vmem:[%s2417_s1 + $0x50] sm:$0xff] (!%p140_p2)   ;;  %vm634_vm0 = vcmask (!%p140_p2), 261120  }
   0x6   : > { %143 = sbr.rel (%p140_p2) target bundleno = 389 (0x185), region = 32  ;;  %v1874_v1 = vld [vmem:[%s2417_s1] sm:$0xff] (!%p140_p2)   ;;  %1682 = vmatprep.subr.bf16.mxu0 (!%p140_p2), %v1873_v0  ;;  %1848 = vmatprep.subr.bf16.mxu1 (!%p140_p2), %v1873_v0  ;;  %p165_p3 = scmp.lt.s32.totalorder (!%p140_p2), %s1418_s16, 63  ;;  %v1876_v3 = vld [vmem:[%s2417_s1 + $0x8] sm:$0xff] (!%p140_p2)   ;;  %v1878_v5 = vld [vmem:[%s2417_s1 + $0x10] sm:$0xff] (!%p140_p2)  }
   0x7   : > { %1683 = vmatpush3.bf16.msra.mxu0 (!%p140_p2), %v1874_v1  ;;  %1856 = vmatpush3.bf16.msra.mxu1 (!%p140_p2), %v1874_v1  ;;  %v1879_v6 = vld [vmem:[%s2417_s1 + $0x58] sm:$0xff] (!%p140_p2)   ;;  %v1881_v8 = vld [vmem:[%s2417_s1 + $0x60] sm:$0xff] (!%p140_p2)   ;;  %v1883_v10 = vld [vmem:[%s2417_s1 + $0x68] sm:$0xff] (!%p140_p2)  }
   0x8   : > { %1684 = vmatprep.subr.bf16.mxu0 (!%p140_p2), %v1875_v2  ;;  %1849 = vmatprep.subr.bf16.mxu1 (!%p140_p2), %v1875_v2  ;;  %v1880_v7 = vld [vmem:[%s2417_s1 + $0x18] sm:$0xff] (!%p140_p2)   ;;  %v1882_v9 = vld [vmem:[%s2417_s1 + $0x20] sm:$0xff] (!%p140_p2)   ;;  %v1884_v13 = vld [vmem:[%s2417_s1 + $0x28] sm:$0xff] (!%p140_p2)  }
   0x9   : > { %v1885_v14 = vld [vmem:[%s2417_s1 + $0x70] sm:$0xff] (!%p140_p2)   ;;  %v1887_v16 = vld [vmem:[%s2417_s1 + $0x78] sm:$0xff] (!%p140_p2)   ;;  %v1895_v18 = vld [vmem:[%s2417_s1 + $0x80] sm:$0xff] (!%p140_p2)  }
   0xa   : > { %v1886_v15 = vld [vmem:[%s2417_s1 + $0x30] sm:$0xff] (!%p140_p2)   ;;  %v1888_v17 = vld [vmem:[%s2417_s1 + $0x38] sm:$0xff] (!%p140_p2)   ;;  %v1908_v23 = vld [vmem:[%s2417_s1 + $0x88] sm:$0xff] (!%p140_p2)  }
   0xb   : > { %1685 = vmatpush3.bf16.msra.mxu0 (!%p140_p2), %v1876_v3  ;;  %1857 = vmatpush3.bf16.msra.mxu1 (!%p140_p2), %v1876_v3 }
   0xc   : > { %1686 = vmatprep.subr.bf16.mxu0 (!%p140_p2), %v1877_v4  ;;  %1850 = vmatprep.subr.bf16.mxu1 (!%p140_p2), %v1877_v4 }
   0xd   : > { %s2421_s16 = smov (!%p165_p3, %s1418_s16), 63 }
   0xe   : > { %s1864_s29 = smul.u32 12, %s2421_s16  ;;  %s1421_s5 = sshll.u32 %s2421_s16, 2 }
   0xf   : > { %1687 = vmatpush3.bf16.msra.mxu0 %v1878_v5  ;;  %1858 = vmatpush3.bf16.msra.mxu1 %v1878_v5  ;;  %s2279_s8 = scalar_lea.vmem %s2419_s3, %s1421_s5 }
  0x10   : > { %1688 = vmatprep.subr.bf16.mxu0 %v1879_v6  ;;  %1851 = vmatprep.subr.bf16.mxu1 %v1879_v6  ;;  %s2088_s9 = scalar_lea.vmem %s2416_s0, %s1864_s29 }
  0x11   : > { %v1891_v11 = vld [vmem:[%s2088_s9 + $0x4] ss:$12 sps:$4 sm:$0xff]   ;;  %v1889_v19 = vld [vmem:[%s2088_s9] ss:$12 sps:$4 sm:$0xff]   ;;  %v1896_v21 = vld [vmem:[%s2088_s9 + $0x1c] ss:$12 sps:$4 sm:$0xff]  }
  0x12   : > { %v1894_v12 = vld [vmem:[%s2088_s9 + $0x124] ss:$12 sps:$4 sm:$0xff]   ;;  %715 = vmatprep.mubr.bf16.mxu0 %v1891_v11  ;;  %v1892_v20 = vld [vmem:[%s2088_s9 + $0x120] ss:$12 sps:$4 sm:$0xff]   ;;  %v1898_v22 = vld [vmem:[%s2088_s9 + $0x13c] ss:$12 sps:$4 sm:$0xff]  }
  0x13   : > { %1689 = vmatpush3.bf16.msra.mxu0 %v1880_v7  ;;  %1859 = vmatpush3.bf16.msra.mxu1 %v1880_v7  ;;  %v1900_v24 = vld [vmem:[%s2088_s9 + $0x18] ss:$12 sps:$4 sm:$0xff]   ;;  %v1902_v26 = vld [vmem:[%s2088_s9 + $0x34] ss:$12 sps:$4 sm:$0xff]   ;;  %v1906_v28 = vld [vmem:[%s2088_s9 + $0x30] ss:$12 sps:$4 sm:$0xff]  }
  0x14   : > { %1690 = vmatprep.subr.bf16.mxu0 %v1881_v8  ;;  %1852 = vmatprep.subr.bf16.mxu1 %v1881_v8  ;;  %v1901_v25 = vld [vmem:[%s2088_s9 + $0x138] ss:$12 sps:$4 sm:$0xff]   ;;  %v1904_v27 = vld [vmem:[%s2088_s9 + $0x154] ss:$12 sps:$4 sm:$0xff]   ;;  %v1907_v29 = vld [vmem:[%s2088_s9 + $0x150] ss:$12 sps:$4 sm:$0xff]  }
  0x15   : > { %811 = vmatprep.mubr.bf16.mxu1 %v1894_v12  ;;  %v1909_v30 = vld [vmem:[%s2088_s9 + $0x4c] ss:$12 sps:$4 sm:$0xff]   ;;  %v1913_v32 = vld [vmem:[%s2088_s9 + $0x48] ss:$12 sps:$4 sm:$0xff]   ;;  %v1915_v34 = vld [vmem:[%s2088_s9 + $0x64] ss:$12 sps:$4 sm:$0xff]  }
  0x16   : > { %v1911_v31 = vld [vmem:[%s2088_s9 + $0x16c] ss:$12 sps:$4 sm:$0xff]   ;;  %v1914_v33 = vld [vmem:[%s2088_s9 + $0x168] ss:$12 sps:$4 sm:$0xff]   ;;  %v1924_v41 = vld [vmem:[%s2088_s9 + $0x50] ss:$12 sps:$4 sm:$0xff]  }
  0x17   : > { %1691 = vmatpush3.bf16.msra.mxu0 %v1882_v9  ;;  %1860 = vmatpush3.bf16.msra.mxu1 %v1882_v9  ;;  %v1917_v35 = vld [vmem:[%s2088_s9 + $0x8] ss:$12 sps:$4 sm:$0xff]   ;;  %v1918_v36 = vld [vmem:[%s2088_s9 + $0x60] ss:$12 sps:$4 sm:$0xff]   ;;  %v1922_v39 = vld [vmem:[%s2088_s9 + $0x38] ss:$12 sps:$4 sm:$0xff]  }
  0x18   : > { %1692 = vmatprep.subr.bf16.mxu0 %v1883_v10  ;;  %1853 = vmatprep.subr.bf16.mxu1 %v1883_v10  ;;  %v1919_v37 = vld [vmem:[%s2088_s9 + $0x20] ss:$12 sps:$4 sm:$0xff]   ;;  %v1920_v38 = vld [vmem:[%s2088_s9 + $0x7c] ss:$12 sps:$4 sm:$0xff]   ;;  %v1923_v40 = vld [vmem:[%s2088_s9 + $0x78] ss:$12 sps:$4 sm:$0xff]  }
  0x19   : > { %v1925_v42 = vld [vmem:[%s2088_s9 + $0x94] ss:$12 sps:$4 sm:$0xff]   ;;  %v1928_v44 = vld [vmem:[%s2088_s9 + $0x90] ss:$12 sps:$4 sm:$0xff]   ;;  %v1930_v46 = vld [vmem:[%s2088_s9 + $0xac] ss:$12 sps:$4 sm:$0xff]  }
  0x1a   : > { %v1927_v43 = vld [vmem:[%s2088_s9 + $0x68] ss:$12 sps:$4 sm:$0xff]   ;;  %v1929_v45 = vld [vmem:[%s2088_s9 + $0x80] ss:$12 sps:$4 sm:$0xff]   ;;  %v1932_v47 = vld [vmem:[%s2088_s9 + $0x98] ss:$12 sps:$4 sm:$0xff]  }
  0x1b   : > { %1693 = vmatpush3.bf16.msra.mxu0 %v1884_v13  ;;  %1861 = vmatpush3.bf16.msra.mxu1 %v1884_v13  ;;  %v1933_v48 = vld [vmem:[%s2088_s9 + $0xa8] ss:$12 sps:$4 sm:$0xff]   ;;  %v1934_v49 = vld [vmem:[%s2088_s9 + $0xb0] ss:$12 sps:$4 sm:$0xff]   ;;  %v1938_v52 = vld [vmem:[%s2088_s9 + $0xc0] ss:$12 sps:$4 sm:$0xff]  }
  0x1c   : > { %1694 = vmatprep.subr.bf16.mxu0 %v1885_v14  ;;  %1854 = vmatprep.subr.bf16.mxu1 %v1885_v14  ;;  %v1935_v50 = vld [vmem:[%s2088_s9 + $0xc4] ss:$12 sps:$4 sm:$0xff]   ;;  %v1937_v51 = vld [vmem:[%s2088_s9 + $0xc8] ss:$12 sps:$4 sm:$0xff]   ;;  %v1939_v53 = vld [vmem:[%s2088_s9 + $0xe0] ss:$12 sps:$4 sm:$0xff]  }
  0x1d   : > { %v1940_v54 = vld [vmem:[%s2088_s9 + $0xdc] ss:$12 sps:$4 sm:$0xff]   ;;  %v1942_v55 = vld [vmem:[%s2088_s9 + $0xf8] ss:$12 sps:$4 sm:$0xff]   ;;  %v1945_v58 = vld [vmem:[%s2088_s9 + $0xf4] ss:$12 sps:$4 sm:$0xff]  }
  0x1e   : > { %v1943_v56 = vld [vmem:[%s2088_s9 + $0xd8] ss:$12 sps:$4 sm:$0xff]   ;;  %v1944_v57 = vld [vmem:[%s2088_s9 + $0x110] ss:$12 sps:$4 sm:$0xff]   ;;  %v1947_v59 = vld [vmem:[%s2088_s9 + $0x128] ss:$12 sps:$4 sm:$0xff]  }
  0x1f   : > { %1695 = vmatpush3.bf16.msra.mxu0 %v1886_v15  ;;  %1862 = vmatpush3.bf16.msra.mxu1 %v1886_v15  ;;  %v1948_v60 = vld [vmem:[%s2088_s9 + $0xf0] ss:$12 sps:$4 sm:$0xff]   ;;  %v1949_v61 = vld [vmem:[%s2088_s9 + $0x140] ss:$12 sps:$4 sm:$0xff]   ;;  %v1952_v63 = vld [vmem:[%s2088_s9 + $0x158] ss:$12 sps:$4 sm:$0xff]  }
  0x20   : > { %1696 = vmatprep.subr.bf16.mxu0 %v1887_v16  ;;  %1855 = vmatprep.subr.bf16.mxu1 %v1887_v16  ;;  %v1950_v62 = vld [vmem:[%s2088_s9 + $0x10c] ss:$12 sps:$4 sm:$0xff]   ;;  %v1953_v0 = vld [vmem:[%s2088_s9 + $0x108] ss:$12 sps:$4 sm:$0xff]   ;;  %v1954_v1 = vld [vmem:[%s2088_s9 + $0x170] ss:$12 sps:$4 sm:$0xff]  }
  0x23   : > { %1697 = vmatpush3.bf16.msra.mxu0 %v1888_v17  ;;  %1863 = vmatpush3.bf16.msra.mxu1 %v1888_v17 }
  0x24   : > { %1812 = vmatprep.subr.bf16.mxu1 %v1895_v18 }
  0x26   : > { %716 = vmatmul.mubr.bf16.vlgmr.msra.gmra.mrb[0].mxu0 %v1889_v19  ;;  %812 = vmatmul.mubr.bf16.vlgmr.msra.gmra.mrb[0].mxu1 %v1892_v20 }
  0x27   : > { %1813 = vmatpush3.bf16.msra.mxu1 %v1895_v18  ;;  %723 = vmatprep.mubr.bf16.mxu0 %v1896_v21 }
  0x28   : > { %819 = vmatprep.mubr.bf16.mxu1 %v1898_v22  ;;  %1814 = vmatprep.subr.bf16.mxu1 %v1908_v23 }
  0x2b   : > { %1815 = vmatpush3.bf16.msra.mxu1 %v1908_v23 }
  0x2e   : > { %724 = vmatmul.mubr.bf16.gmra.mrb[4].mxu0 %v1900_v24  ;;  %820 = vmatmul.mubr.bf16.gmra.mrb[4].mxu1 %v1901_v25 }
  0x2f   : > { %731 = vmatprep.mubr.bf16.mxu0 %v1902_v26  ;;  %827 = vmatprep.mubr.bf16.mxu1 %v1904_v27 }
  0x36   : > { %732 = vmatmul.mubr.bf16.gmra.mrb[8].mxu0 %v1906_v28  ;;  %828 = vmatmul.mubr.bf16.gmra.mrb[8].mxu1 %v1907_v29 }
  0x37   : > { %739 = vmatprep.mubr.bf16.mxu0 %v1909_v30  ;;  %835 = vmatprep.mubr.bf16.mxu1 %v1911_v31 }
  0x3e   : > { %740 = vmatmul.mubr.bf16.gmra.mrb[12].mxu0 %v1913_v32  ;;  %836 = vmatmul.mubr.bf16.gmra.mrb[12].mxu1 %v1914_v33 }
  0x3f   : > { %747 = vmatprep.mubr.bf16.mxu0 %v1915_v34  ;;  %1816 = vmatprep.mubr.msk.bf16.mxu1 %vm634_vm0, %v1917_v35 }
  0x46   : > { %748 = vmatmul.mubr.bf16.gmra.mrb[16].mxu0 %v1918_v36  ;;  %1817 = vmatmul.mubr.msk.bf16.vlgmr.msra.gmra.mrb[16].mxu1 %vm634_vm0, %v1919_v37 }
  0x47   : > { %755 = vmatprep.mubr.bf16.mxu0 %v1920_v38  ;;  %1820 = vmatprep.mubr.msk.bf16.mxu1 %vm634_vm0, %v1922_v39 }
  0x4e   : > { %756 = vmatmul.mubr.bf16.gmra.mrb[20].mxu0 %v1923_v40  ;;  %1821 = vmatmul.mubr.msk.bf16.gmra.mrb[20].mxu1 %vm634_vm0, %v1924_v41 }
  0x4f   : > { %763 = vmatprep.mubr.bf16.mxu0 %v1925_v42  ;;  %1824 = vmatprep.mubr.msk.bf16.mxu1 %vm634_vm0, %v1927_v43 }
  0x56   : > { %764 = vmatmul.mubr.bf16.gmra.mrb[24].mxu0 %v1928_v44  ;;  %1825 = vmatmul.mubr.msk.bf16.gmra.mrb[24].mxu1 %vm634_vm0, %v1929_v45 }
  0x57   : > { %771 = vmatprep.mubr.bf16.mxu0 %v1930_v46  ;;  %1828 = vmatprep.mubr.msk.bf16.mxu1 %vm634_vm0, %v1932_v47 }
  0x5e   : > { %772 = vmatmul.mubr.bf16.gmra.mrb[28].mxu0 %v1933_v48  ;;  %1829 = vmatmul.mubr.msk.bf16.gmra.mrb[28].mxu1 %vm634_vm0, %v1934_v49 }
  0x5f   : > { %779 = vmatprep.mubr.bf16.mxu0 %v1935_v50  ;;  %1832 = vmatprep.mubr.msk.bf16.mxu1 %vm634_vm0, %v1937_v51  ;;  %v2200_v50 = vld [vmem:[%s2418_s2] ss:$0 sm:$0xff] }
  0x66   : > { %780 = vmatmul.mubr.bf16.gmra.mrb[32].mxu0 %v1938_v52  ;;  %1833 = vmatmul.mubr.msk.bf16.gmra.mrb[32].mxu1 %vm634_vm0, %v1939_v53 }
  0x67   : > { %787 = vmatprep.mubr.bf16.mxu0 %v1940_v54  ;;  %1836 = vmatprep.mubr.msk.bf16.mxu1 %vm634_vm0, %v1942_v55 }
  0x6e   : > { %788 = vmatmul.mubr.bf16.gmra.mrb[36].mxu0 %v1943_v56  ;;  %1837 = vmatmul.mubr.msk.bf16.gmra.mrb[36].mxu1 %vm634_vm0, %v1944_v57 }
  0x6f   : > { %795 = vmatprep.mubr.bf16.mxu0 %v1945_v58  ;;  %1840 = vmatprep.mubr.msk.bf16.mxu1 %vm634_vm0, %v1947_v59 }
  0x76   : > { %796 = vmatmul.mubr.bf16.gmra.mrb[40].mxu0 %v1948_v60  ;;  %1841 = vmatmul.mubr.msk.bf16.gmra.mrb[40].mxu1 %vm634_vm0, %v1949_v61 }
  0x77   : > { %803 = vmatprep.mubr.bf16.mxu0 %v1950_v62  ;;  %1844 = vmatprep.mubr.msk.bf16.mxu1 %vm634_vm0, %v1952_v63 }
  0x7e   : > { %804 = vmatmul.mubr.bf16.gmra.mrb[44].mxu0 %v1953_v0  ;;  %1845 = vmatmul.mubr.msk.bf16.gmra.mrb[44].mxu1 %vm634_vm0, %v1954_v1 }
  0xf9   : > { %v1698_v2 = vpop.f32.mrb[0].mxu0  ;;  %v1770_v3 = vpop.f32.mrb[0].mxu1 }
  0xfa   : > { %v1699_v4 = vpop.f32.mrb[1].mxu0  ;;  %v1771_v5 = vpop.f32.mrb[1].mxu1 }
  0xfb   : > { %v1700_v6 = vadd.f32 %v1699_v4, %v1698_v2  ;;  %v1701_v7 = vpop.f32.mrb[2].mxu0  ;;  %v2181_v8 = vadd.f32 %v1771_v5, %v1770_v3  ;;  %v1773_v9 = vpop.f32.mrb[2].mxu1 }
  0xfc   : > { %v1702_v10 = vpop.f32.mrb[3].mxu0  ;;  %v1774_v11 = vpop.f32.mrb[3].mxu1 }
  0xfd   : > { %v1703_v12 = vadd.f32 %v1702_v10, %v1701_v7  ;;  %v2183_v13 = vadd.f32 %v1774_v11, %v1773_v9  ;;  %v718_v54 = vadd.f32 %v1700_v6, %v2200_v50 }
  0xff   : > { %v721_v63 = vadd.f32 %v1703_v12, %v2200_v50 }
 0x101   : > { %v1704_v14 = vpop.f32.mrb[4].mxu0  ;;  %v1776_v15 = vpop.f32.mrb[4].mxu1 }
 0x102   : > { %v1705_v16 = vpop.f32.mrb[5].mxu0  ;;  %v1777_v17 = vpop.f32.mrb[5].mxu1 }
 0x103   : > { %v1706_v18 = vadd.f32 %v1705_v16, %v1704_v14  ;;  %v1707_v19 = vpop.f32.mrb[6].mxu0  ;;  %v2185_v20 = vadd.f32 %v1777_v17, %v1776_v15  ;;  %v1779_v21 = vpop.f32.mrb[6].mxu1 }
 0x104   : > { %v1708_v22 = vpop.f32.mrb[7].mxu0  ;;  %v1780_v23 = vpop.f32.mrb[7].mxu1 }
 0x105   : > { %v1709_v24 = vadd.f32 %v1708_v22, %v1707_v19  ;;  %v2187_v25 = vadd.f32 %v1780_v23, %v1779_v21  ;;  %v726_v51 = vadd.f32 %v1706_v18, %v2200_v50 }
 0x107   : > { %v729_v58 = vadd.f32 %v1709_v24, %v2200_v50 }
 0x109   : > { %v1710_v26 = vpop.f32.mrb[8].mxu0  ;;  %v1782_v27 = vpop.f32.mrb[8].mxu1 }
 0x10a   : > { %v1711_v28 = vpop.f32.mrb[9].mxu0  ;;  %v1783_v29 = vpop.f32.mrb[9].mxu1 }
 0x10b   : > { %v1712_v30 = vadd.f32 %v1711_v28, %v1710_v26  ;;  %v1713_v31 = vpop.f32.mrb[10].mxu0  ;;  %v2189_v32 = vadd.f32 %v1783_v29, %v1782_v27  ;;  %v1785_v33 = vpop.f32.mrb[10].mxu1 }
 0x10c   : > { %v1714_v34 = vpop.f32.mrb[11].mxu0  ;;  %v1786_v35 = vpop.f32.mrb[11].mxu1 }
 0x10d   : > { %v1715_v36 = vadd.f32 %v1714_v34, %v1713_v31  ;;  %v2191_v37 = vadd.f32 %v1786_v35, %v1785_v33  ;;  %v734_v12 = vadd.f32 %v1712_v30, %v2200_v50 }
 0x10f   : > { %v737_v24 = vadd.f32 %v1715_v36, %v2200_v50 }
 0x111   : > { %v1716_v38 = vpop.f32.mrb[12].mxu0  ;;  %v1788_v39 = vpop.f32.mrb[12].mxu1 }
 0x112   : > { %v1717_v40 = vpop.f32.mrb[13].mxu0  ;;  %v1789_v41 = vpop.f32.mrb[13].mxu1 }
 0x113   : > { %v1718_v42 = vadd.f32 %v1717_v40, %v1716_v38  ;;  %v1719_v43 = vpop.f32.mrb[14].mxu0  ;;  %v2193_v44 = vadd.f32 %v1789_v41, %v1788_v39  ;;  %v1791_v45 = vpop.f32.mrb[14].mxu1 }
 0x114   : > { %v1720_v46 = vpop.f32.mrb[15].mxu0  ;;  %v1792_v47 = vpop.f32.mrb[15].mxu1 }
 0x115   : > { %v1721_v48 = vadd.f32 %v1720_v46, %v1719_v43  ;;  %v2195_v49 = vadd.f32 %v1792_v47, %v1791_v45  ;;  %v742_v9 = vadd.f32 %v1718_v42, %v2200_v50 }
 0x117   : > { %v745_v18 = vadd.f32 %v1721_v48, %v2200_v50 }
 0x119   : > { %v1722_v52 = vpop.f32.mrb[16].mxu0  ;;  %v1818_v53 = vpop.f32.mrb[16].mxu1 }
 0x11a   : > { %v2204_v55 = vadd.f32 %v1818_v53, %v726_v51  ;;  %v1723_v56 = vpop.f32.mrb[17].mxu0  ;;  %v878_v57 = vpop.f32.mrb[17].mxu1 }
 0x11b   : > { %v1724_v59 = vadd.f32 %v1723_v56, %v1722_v52  ;;  %v2207_v60 = vadd.f32 %v878_v57, %v718_v54  ;;  %v1725_v61 = vpop.f32.mrb[18].mxu0  ;;  %v1819_v62 = vpop.f32.mrb[18].mxu1 }
 0x11c   : > { %v2210_v0 = vadd.f32 %v1819_v62, %v729_v58  ;;  %v1726_v1 = vpop.f32.mrb[19].mxu0  ;;  %v881_v2 = vpop.f32.mrb[19].mxu1 }
 0x11d   : > { %v1727_v3 = vadd.f32 %v1726_v1, %v1725_v61  ;;  %v2212_v4 = vadd.f32 %v881_v2, %v721_v63  ;;  %v750_v36 = vadd.f32 %v1724_v59, %v2200_v50 }
 0x11e   : > { %v1006_v5 = vpack.c.bf16 %v2210_v0, %v2204_v55 }
 0x11f   : > { %v1005_v6 = vpack.c.bf16 %v2212_v4, %v2207_v60  ;;  %v753_v52 = vadd.f32 %v1727_v3, %v2200_v50 }
 0x120   : > { %v1506_v7 = vmul.bf16 3216621497, %v1006_v5 }
 0x121   : > { %v1505_v10 = vmul.bf16 3216621497, %v1005_v6  ;;  %v1728_v11 = vpop.f32.mrb[20].mxu0  ;;  %v1822_v14 = vpop.f32.mrb[20].mxu1 }
 0x122   : > { %1955 = vpow.bf16 %v1506_v7  ;;  %v2220_v15 = vadd.f32 %v1822_v14, %v742_v9  ;;  %v1729_v16 = vpop.f32.mrb[21].mxu0  ;;  %v894_v17 = vpop.f32.mrb[21].mxu1 }
 0x123   : > { %1957 = vpow.bf16 %v1505_v10  ;;  %v1730_v19 = vadd.f32 %v1729_v16, %v1728_v11  ;;  %v2223_v21 = vadd.f32 %v894_v17, %v734_v12  ;;  %v1731_v22 = vpop.f32.mrb[22].mxu0  ;;  %v1823_v23 = vpop.f32.mrb[22].mxu1 }
 0x124   : > { %v2226_v26 = vadd.f32 %v1823_v23, %v745_v18  ;;  %v1732_v27 = vpop.f32.mrb[23].mxu0  ;;  %v897_v28 = vpop.f32.mrb[23].mxu1 }
 0x125   : > { %v1733_v29 = vadd.f32 %v1732_v27, %v1731_v22  ;;  %v2228_v30 = vadd.f32 %v897_v28, %v737_v24  ;;  %v758_v35 = vadd.f32 %v1730_v19, %v2200_v50 }
 0x126   : > { %v1008_v31 = vpack.c.bf16 %v2226_v26, %v2220_v15 }
 0x127   : > { %v1007_v33 = vpack.c.bf16 %v2228_v30, %v2223_v21  ;;  %v761_v45 = vadd.f32 %v1733_v29, %v2200_v50 }
 0x128   : > { %v1508_v34 = vmul.bf16 3216621497, %v1008_v31 }
 0x129   : > { %v1507_v38 = vmul.bf16 3216621497, %v1007_v33  ;;  %v1734_v39 = vpop.f32.mrb[24].mxu0  ;;  %v1826_v40 = vpop.f32.mrb[24].mxu1 }
 0x12a   : > { %1959 = vpow.bf16 %v1508_v34  ;;  %v2236_v41 = vadd.f32 %v1826_v40, %v758_v35  ;;  %v1735_v42 = vpop.f32.mrb[25].mxu0  ;;  %v910_v43 = vpop.f32.mrb[25].mxu1 }
 0x12b   : > { %1961 = vpow.bf16 %v1507_v38  ;;  %v1736_v46 = vadd.f32 %v1735_v42, %v1734_v39  ;;  %v2239_v47 = vadd.f32 %v910_v43, %v750_v36  ;;  %v1737_v48 = vpop.f32.mrb[26].mxu0  ;;  %v1827_v51 = vpop.f32.mrb[26].mxu1 }
 0x12c   : > { %v2242_v53 = vadd.f32 %v1827_v51, %v761_v45  ;;  %v1738_v54 = vpop.f32.mrb[27].mxu0  ;;  %v913_v56 = vpop.f32.mrb[27].mxu1 }
 0x12d   : > { %v1956_v57 = vpop.eup %1955  ;;  %v1739_v58 = vadd.f32 %v1738_v54, %v1737_v48  ;;  %v2244_v59 = vadd.f32 %v913_v56, %v753_v52  ;;  %v766_v9 = vadd.f32 %v1736_v46, %v2200_v50 }
 0x12e   : > { %v1958_v61 = vpop.eup %1957  ;;  %v1086_v62 = vadd.bf16 1065369472, %v1956_v57  ;;  %v1010_v63 = vpack.c.bf16 %v2242_v53, %v2236_v41 }
 0x12f   : > { %v1085_v1 = vadd.bf16 1065369472, %v1958_v61  ;;  %v1009_v2 = vpack.c.bf16 %v2244_v59, %v2239_v47  ;;  %v769_v18 = vadd.f32 %v1739_v58, %v2200_v50 }
 0x130   : > { %1963 = vrcp.bf16 %v1086_v62  ;;  %v1510_v5 = vmul.bf16 3216621497, %v1010_v63 }
 0x131   : > { %1965 = vrcp.bf16 %v1085_v1  ;;  %v1509_v3 = vmul.bf16 3216621497, %v1009_v2  ;;  %v1740_v6 = vpop.f32.mrb[28].mxu0  ;;  %v1830_v7 = vpop.f32.mrb[28].mxu1 }
 0x132   : > { %1967 = vpow.bf16 %v1510_v5  ;;  %v1741_v10 = vpop.f32.mrb[29].mxu0  ;;  %v926_v11 = vpop.f32.mrb[29].mxu1 }
 0x133   : > { %1969 = vpow.bf16 %v1509_v3  ;;  %v1742_v14 = vadd.f32 %v1741_v10, %v1740_v6  ;;  %v2251_v12 = vadd.f32 %v926_v11, %v766_v9  ;;  %v1743_v16 = vpop.f32.mrb[30].mxu0  ;;  %v1831_v17 = vpop.f32.mrb[30].mxu1 }
 0x134   : > { %v1744_v19 = vpop.f32.mrb[31].mxu0  ;;  %v929_v22 = vpop.f32.mrb[31].mxu1 }
 0x135   : > { %v1960_v23 = vpop.eup %1959  ;;  %v774_v24 = vadd.f32 %v1742_v14, %v2200_v50  ;;  %v1745_v27 = vadd.f32 %v1744_v19, %v1743_v16  ;;  %v2255_v28 = vadd.f32 %v929_v22, %v769_v18 }
 0x136   : > { %v1962_v29 = vpop.eup %1961  ;;  %v1088_v31 = vadd.bf16 1065369472, %v1960_v23 }
 0x137   : > { %v1087_v33 = vadd.bf16 1065369472, %v1962_v29  ;;  %v2257_v34 = vadd.f32 %v1830_v7, %v774_v24  ;;  %v777_v35 = vadd.f32 %v1745_v27, %v2200_v50  ;;  %v1011_v38 = vpack.c.bf16 %v2255_v28, %v2251_v12 }
 0x138   : > { %1971 = vrcp.bf16 %v1088_v31 }
 0x139   : > { %1973 = vrcp.bf16 %v1087_v33  ;;  %v2262_v39 = vadd.f32 %v1831_v17, %v777_v35  ;;  %v1511_v40 = vmul.bf16 3216621497, %v1011_v38  ;;  %v1746_v36 = vpop.f32.mrb[32].mxu0  ;;  %v2264_v42 = vpop.f32.mrb[32].mxu1 }
 0x13a   : > { %v1747_v43 = vpop.f32.mrb[33].mxu0  ;;  %v942_v45 = vpop.f32.mrb[33].mxu1 }
 0x13b   : > { %v1964_v46 = vpop.eup %1963  ;;  %v1012_v48 = vpack.c.bf16 %v2262_v39, %v2257_v34  ;;  %1975 = vpow.bf16 %v1511_v40  ;;  %v1748_v51 = vadd.f32 %v1747_v43, %v1746_v36  ;;  %v1749_v52 = vpop.f32.mrb[34].mxu0 }
 0x13c   : > { %v2268_v54 = vpop.f32.mrb[34].mxu1  ;;  %v1966_v56 = vpop.eup %1965  ;;  %v1104_v57 = vmul.bf16 1065369472, %v1964_v46  ;;  %v814_v46 = vadd.f32 %v2181_v8, %v2200_v50  ;;  %v825_v8 = vadd.f32 %v2187_v25, %v2200_v50 }
 0x13d   : > { %v1750_v58 = vpop.f32.mrb[35].mxu0  ;;  %v945_v61 = vpop.f32.mrb[35].mxu1  ;;  %v1102_v63 = vmul.bf16 1065369472, %v1966_v56  ;;  %v1512_v1 = vmul.bf16 3216621497, %v1012_v48  ;;  %v782_v2 = vadd.f32 %v1748_v51, %v2200_v50  ;;  %v2299_v48 = vadd.f32 %v2183_v13, %v2200_v50 }
 0x13e   : > { %v1968_v62 = vpop.eup %1967  ;;  %v1751_v5 = vadd.f32 %v1750_v58, %v1749_v52  ;;  %v1135_v6 = vunpack.c.l.bf16 %v1104_v57  ;;  %v1136_v7 = vunpack.c.h.bf16 %v1104_v57 }
 0x13f   : > { %v1970_v3 = vpop.eup %1969  ;;  %v1090_v9 = vadd.bf16 1065369472, %v1968_v62  ;;  %v1133_v10 = vunpack.c.l.bf16 %v1102_v63  ;;  %v1134_v11 = vunpack.c.h.bf16 %v1102_v63  ;;  %1977 = vpow.bf16 %v1512_v1 }
 0x140   : > { %v1089_v14 = vadd.bf16 1065369472, %v1970_v3  ;;  %v1167_v16 = vmul.f32 %v1135_v6, %v2204_v55  ;;  %v1168_v17 = vmul.f32 %v1136_v7, %v2210_v0  ;;  %v2274_v18 = vadd.f32 %v942_v45, %v782_v2 }
 0x141   : > { %1979 = vrcp.bf16 %v1090_v9  ;;  %v1165_v19 = vmul.f32 %v1133_v10, %v2207_v60  ;;  %v1166_v22 = vmul.f32 %v1134_v11, %v2212_v4  ;;  %v785_v23 = vadd.f32 %v1751_v5, %v2200_v50  ;;  %v1752_v24 = vpop.f32.mrb[36].mxu0  ;;  %v2284_v55 = vpop.f32.mrb[36].mxu1 }
 0x142   : > { %1981 = vrcp.bf16 %v1089_v14  ;;  %v1595_v0 = vpack.c.bf16 %v1168_v17, %v1167_v16  ;;  %v1753_v27 = vpop.f32.mrb[37].mxu0  ;;  %v2286_v29 = vpop.f32.mrb[37].mxu1  ;;  %v822_v63 = vadd.f32 %v2185_v20, %v2200_v50  ;;  %v830_v14 = vadd.f32 %v2189_v32, %v2200_v50 }
 0x143   : > { %v1972_v31 = vpop.eup %1971  ;;  %v1590_v33 = vpack.c.bf16 %v1166_v22, %v1165_v19  ;;  %v2288_v35 = vadd.f32 %v945_v61, %v785_v23  ;;  %v1754_v38 = vadd.f32 %v1753_v27, %v1752_v24  ;;  %v1755_v60 = vpop.f32.mrb[38].mxu0 }
 0x144   : > { %v2290_v40 = vpop.f32.mrb[38].mxu1  ;;  %v1974_v4 = vpop.eup %1973  ;;  %1667 = vst [vmem:[%s2279_s8 + $0x8] sm:$0xff] %v1595_v0   ;;  %v1108_v36 = vmul.bf16 1065369472, %v1972_v31 }
 0x145   : > { %v1756_v43 = vpop.f32.mrb[39].mxu0  ;;  %v2293_v45 = vpop.f32.mrb[39].mxu1  ;;  %1591 = vst [vmem:[%s2279_s8] sm:$0xff] %v1590_v33   ;;  %v1106_v51 = vmul.bf16 1065369472, %v1974_v4  ;;  %v1013_v52 = vpack.c.bf16 %v2288_v35, %v2274_v18  ;;  %v790_v56 = vadd.f32 %v1754_v38, %v2200_v50  ;;  %v838_v4 = vadd.f32 %v2193_v44, %v2200_v50 }
 0x146   : > { %v1757_v57 = vadd.f32 %v1756_v43, %v1755_v60  ;;  %v1976_v58 = vpop.eup %1975  ;;  %v1139_v61 = vunpack.c.l.bf16 %v1108_v36  ;;  %v1140_v62 = vunpack.c.h.bf16 %v1108_v36 }
 0x147   : > { %v1137_v1 = vunpack.c.l.bf16 %v1106_v51  ;;  %v1138_v13 = vunpack.c.h.bf16 %v1106_v51  ;;  %v1091_v2 = vadd.bf16 1065369472, %v1976_v58  ;;  %v1513_v5 = vmul.bf16 3216621497, %v1013_v52 }
 0x148   : > { %v1171_v3 = vmul.f32 %v1139_v61, %v2220_v15  ;;  %v1172_v6 = vmul.f32 %v1140_v62, %v2226_v26  ;;  %v2312_v7 = vadd.f32 %v2264_v42, %v790_v56  ;;  %v793_v9 = vadd.f32 %v1757_v57, %v2200_v50 }
 0x149   : > { %v1169_v10 = vmul.f32 %v1137_v1, %v2223_v21  ;;  %v1170_v20 = vmul.f32 %v1138_v13, %v2228_v30  ;;  %1983 = vrcp.bf16 %v1091_v2  ;;  %v1758_v11 = vpop.f32.mrb[40].mxu0  ;;  %v1842_v25 = vpop.f32.mrb[40].mxu1 }
 0x14a   : > { %v1978_v16 = vpop.eup %1977  ;;  %v1605_v15 = vpack.c.bf16 %v1172_v6, %v1171_v3  ;;  %1985 = vpow.bf16 %v1513_v5  ;;  %v2320_v26 = vadd.f32 %v2268_v54, %v793_v9  ;;  %v2322_v42 = vadd.f32 %v1842_v25, %v822_v63  ;;  %v1759_v17 = vpop.f32.mrb[41].mxu0 }
 0x14b   : > { %v974_v19 = vpop.f32.mrb[41].mxu1  ;;  %v1600_v30 = vpack.c.bf16 %v1170_v20, %v1169_v10  ;;  %v1092_v22 = vadd.bf16 1065369472, %v1978_v16  ;;  %v1760_v23 = vadd.f32 %v1759_v17, %v1758_v11  ;;  %v1761_v0 = vpop.f32.mrb[42].mxu0 }
 0x14c   : > { %v1980_v21 = vpop.eup %1979  ;;  %v2324_v24 = vadd.f32 %v974_v19, %v814_v46  ;;  %v1843_v32 = vpop.f32.mrb[42].mxu1  ;;  %1669 = vst [vmem:[%s2279_s8 + $0x18] sm:$0xff] %v1605_v15   ;;  %v1014_v54 = vpack.c.bf16 %v2320_v26, %v2312_v7 }
 0x14d   : > { %v1982_v27 = vpop.eup %1981  ;;  %v1112_v31 = vmul.bf16 1065369472, %v1980_v21  ;;  %v2329_v33 = vadd.f32 %v1843_v32, %v825_v8  ;;  %v1762_v38 = vpop.f32.mrb[43].mxu0  ;;  %1668 = vst [vmem:[%s2279_s8 + $0x10] sm:$0xff] %v1600_v30   ;;  %1987 = vrcp.bf16 %v1092_v22  ;;  %v798_v43 = vadd.f32 %v1760_v23, %v2200_v50 }
 0x14e   : > { %v977_v60 = vpop.f32.mrb[43].mxu1  ;;  %v1110_v36 = vmul.bf16 1065369472, %v1982_v27  ;;  %v1763_v46 = vadd.f32 %v1762_v38, %v1761_v0  ;;  %v1514_v56 = vmul.bf16 3216621497, %v1014_v54 }
 0x14f   : > { %v1143_v51 = vunpack.c.l.bf16 %v1112_v31  ;;  %v1144_v52 = vunpack.c.h.bf16 %v1112_v31  ;;  %v1018_v57 = vpack.c.bf16 %v2329_v33, %v2322_v42  ;;  %v2338_v62 = vadd.f32 %v2286_v29, %v798_v43 }
 0x150   : > { %v1141_v58 = vunpack.c.l.bf16 %v1110_v36  ;;  %v1142_v61 = vunpack.c.h.bf16 %v1110_v36  ;;  %v801_v63 = vadd.f32 %v1763_v46, %v2200_v50  ;;  %1989 = vpow.bf16 %v1514_v56 }
 0x151   : > { %v1175_v44 = vmul.f32 %v1143_v51, %v2236_v41  ;;  %v1176_v8 = vmul.f32 %v1144_v52, %v2242_v53  ;;  %v1518_v1 = vmul.bf16 3216621497, %v1018_v57  ;;  %v2349_v3 = vadd.f32 %v977_v60, %v2299_v48  ;;  %v1764_v29 = vpop.f32.mrb[44].mxu0  ;;  %v1846_v6 = vpop.f32.mrb[44].mxu1 }
 0x152   : > { %v1173_v13 = vmul.f32 %v1141_v58, %v2239_v47  ;;  %v1174_v2 = vmul.f32 %v1142_v61, %v2244_v59  ;;  %v2346_v5 = vadd.f32 %v2293_v45, %v801_v63  ;;  %v2351_v41 = vadd.f32 %v1846_v6, %v838_v4  ;;  %v1765_v53 = vpop.f32.mrb[45].mxu0  ;;  %v990_v10 = vpop.f32.mrb[45].mxu1 }
 0x153   : > { %v1615_v9 = vpack.c.bf16 %v1176_v8, %v1175_v44  ;;  %1991 = vpow.bf16 %v1518_v1  ;;  %v841_v47 = vadd.f32 %v2195_v49, %v2200_v50  ;;  %v1017_v48 = vpack.c.bf16 %v2349_v3, %v2324_v24  ;;  %v1767_v11 = vpop.f32.mrb[46].mxu0  ;;  %v1847_v25 = vpop.f32.mrb[46].mxu1 }
 0x154   : > { %v1610_v59 = vpack.c.bf16 %v1174_v2, %v1173_v13  ;;  %v1015_v45 = vpack.c.bf16 %v2346_v5, %v2338_v62  ;;  %v1766_v20 = vadd.f32 %v1765_v53, %v1764_v29  ;;  %v1984_v16 = vpop.eup %1983  ;;  %v2360_v15 = vadd.f32 %v990_v10, %v830_v14  ;;  %v1768_v19 = vpop.f32.mrb[47].mxu0 }
 0x155   : > { %1671 = vst [vmem:[%s2279_s8 + $0x28] sm:$0xff] %v1615_v9   ;;  %v2362_v17 = vadd.f32 %v1847_v25, %v841_v47  ;;  %v833_v49 = vadd.f32 %v2191_v37, %v2200_v50  ;;  %v993_v21 = vpop.f32.mrb[47].mxu1  ;;  %v1986_v30 = vpop.eup %1985  ;;  %v1114_v22 = vmul.bf16 1065369472, %v1984_v16  ;;  %v1517_v0 = vmul.bf16 3216621497, %v1017_v48 }
 0x156   : > { %1670 = vst [vmem:[%s2279_s8 + $0x20] sm:$0xff] %v1610_v59   ;;  %v1515_v23 = vmul.bf16 3216621497, %v1015_v45  ;;  %v806_v32 = vadd.f32 %v1766_v20, %v2200_v50  ;;  %v1093_v27 = vadd.bf16 1065369472, %v1986_v30  ;;  %v1769_v14 = vadd.f32 %v1768_v19, %v1767_v11 }
 0x157   : > { %v1020_v31 = vpack.c.bf16 %v2362_v17, %v2351_v41  ;;  %v2370_v54 = vadd.f32 %v993_v21, %v833_v49  ;;  %v1145_v38 = vunpack.c.l.bf16 %v1114_v22  ;;  %v1146_v60 = vunpack.c.h.bf16 %v1114_v22 }
 0x158   : > { %1993 = vpow.bf16 %v1515_v23  ;;  %v2373_v37 = vadd.f32 %v2284_v55, %v806_v32  ;;  %v1988_v4 = vpop.eup %1987  ;;  %v809_v43 = vadd.f32 %v1769_v14, %v2200_v50 }
 0x159   : > { %1995 = vrcp.bf16 %v1093_v27  ;;  %v1520_v36 = vmul.bf16 3216621497, %v1020_v31  ;;  %v1019_v46 = vpack.c.bf16 %v2370_v54, %v2360_v15  ;;  %v1116_v51 = vmul.bf16 1065369472, %v1988_v4 }
 0x15a   : > { %v1177_v52 = vmul.f32 %v1145_v38, %v2251_v12  ;;  %v1178_v56 = vmul.f32 %v1146_v60, %v2255_v28  ;;  %1997 = vpow.bf16 %v1517_v0  ;;  %v2381_v57 = vadd.f32 %v2290_v40, %v809_v43 }
 0x15b   : > { %1999 = vpow.bf16 %v1520_v36  ;;  %v1519_v55 = vmul.bf16 3216621497, %v1019_v46  ;;  %v1990_v58 = vpop.eup %1989  ;;  %v1147_v61 = vunpack.c.l.bf16 %v1116_v51  ;;  %v1148_v63 = vunpack.c.h.bf16 %v1116_v51 }
 0x15c   : > { %v1620_v50 = vpack.c.bf16 %v1178_v56, %v1177_v52  ;;  %v1094_v44 = vadd.bf16 1065369472, %v1990_v58  ;;  %v1016_v8 = vpack.c.bf16 %v2381_v57, %v2373_v37 }
 0x15d   : > { %2001 = vpow.bf16 %v1519_v55  ;;  %v1179_v1 = vmul.f32 %v1147_v61, %v2257_v34  ;;  %v1180_v28 = vmul.f32 %v1148_v63, %v2262_v39 }
 0x15e   : > { %v1992_v12 = vpop.eup %1991  ;;  %1672 = vst [vmem:[%s2279_s8 + $0x30] sm:$0xff] %v1620_v50   ;;  %2003 = vrcp.bf16 %v1094_v44  ;;  %v1516_v13 = vmul.bf16 3216621497, %v1016_v8 }
 0x15f   : > { %v1098_v40 = vadd.bf16 1065369472, %v1992_v12  ;;  %v1625_v2 = vpack.c.bf16 %v1180_v28, %v1179_v1 }
 0x161   : > { %2005 = vrcp.bf16 %v1098_v40  ;;  %1673 = vst [vmem:[%s2279_s8 + $0x38] sm:$0xff] %v1625_v2  }
 0x162   : > { %2007 = vpow.bf16 %v1516_v13 }
 0x163   : > { %v1994_v29 = vpop.eup %1993 }
 0x164   : > { %v1996_v6 = vpop.eup %1995  ;;  %v1095_v9 = vadd.bf16 1065369472, %v1994_v29 }
 0x165   : > { %v1998_v53 = vpop.eup %1997  ;;  %v1118_v10 = vmul.bf16 1065369472, %v1996_v6 }
 0x166   : > { %v2000_v47 = vpop.eup %1999  ;;  %2009 = vrcp.bf16 %v1095_v9  ;;  %v1097_v59 = vadd.bf16 1065369472, %v1998_v53 }
 0x167   : > { %v1149_v34 = vunpack.c.l.bf16 %v1118_v10  ;;  %v1150_v45 = vunpack.c.h.bf16 %v1118_v10  ;;  %v1100_v39 = vadd.bf16 1065369472, %v2000_v47 }
 0x168   : > { %v2002_v48 = vpop.eup %2001  ;;  %2011 = vrcp.bf16 %v1097_v59 }
 0x169   : > { %v1181_v20 = vmul.f32 %v1149_v34, %v2274_v18  ;;  %v1182_v11 = vmul.f32 %v1150_v45, %v2288_v35  ;;  %2013 = vrcp.bf16 %v1100_v39  ;;  %v1099_v25 = vadd.bf16 1065369472, %v2002_v48  ;;  %v2004_v16 = vpop.eup %2003 }
 0x16a   : > { %v1120_v49 = vmul.bf16 1065369472, %v2004_v16 }
 0x16b   : > { %v1630_v19 = vpack.c.bf16 %v1182_v11, %v1181_v20  ;;  %2015 = vrcp.bf16 %v1099_v25 }
 0x16c   : > { %v2006_v21 = vpop.eup %2005  ;;  %v1151_v22 = vunpack.c.l.bf16 %v1120_v49  ;;  %v1152_v23 = vunpack.c.h.bf16 %v1120_v49 }
 0x16d   : > { %v2008_v30 = vpop.eup %2007  ;;  %1674 = vst [vmem:[%s2279_s8 + $0x40] sm:$0xff] %v1630_v19   ;;  %v1128_v0 = vmul.bf16 1065369472, %v2006_v21 }
 0x16e   : > { %v1096_v32 = vadd.bf16 1065369472, %v2008_v30  ;;  %v1183_v27 = vmul.f32 %v1151_v22, %v2312_v7  ;;  %v1184_v18 = vmul.f32 %v1152_v23, %v2320_v26 }
 0x16f   : > { %v1159_v35 = vunpack.c.l.bf16 %v1128_v0  ;;  %v1160_v31 = vunpack.c.h.bf16 %v1128_v0 }
 0x170   : > { %2017 = vrcp.bf16 %v1096_v32  ;;  %v1635_v38 = vpack.c.bf16 %v1184_v18, %v1183_v27 }
 0x171   : > { %v2010_v14 = vpop.eup %2009  ;;  %v1191_v60 = vmul.f32 %v1159_v35, %v2322_v42  ;;  %v1192_v4 = vmul.f32 %v1160_v31, %v2329_v33 }
 0x172   : > { %v1122_v36 = vmul.bf16 1065369472, %v2010_v14  ;;  %1675 = vst [vmem:[%s2279_s8 + $0x48] sm:$0xff] %v1635_v38  }
 0x173   : > { %v2012_v43 = vpop.eup %2011  ;;  %v1655_v46 = vpack.c.bf16 %v1192_v4, %v1191_v60 }
 0x174   : > { %v2014_v51 = vpop.eup %2013  ;;  %v1153_v52 = vunpack.c.l.bf16 %v1122_v36  ;;  %v1154_v56 = vunpack.c.h.bf16 %v1122_v36  ;;  %v1126_v7 = vmul.bf16 1065369472, %v2012_v43 }
 0x175   : > { %1679 = vst [vmem:[%s2279_s8 + $0x68] sm:$0xff] %v1655_v46   ;;  %v1132_v26 = vmul.bf16 1065369472, %v2014_v51 }
 0x176   : > { %v2016_v55 = vpop.eup %2015  ;;  %v1185_v58 = vmul.f32 %v1153_v52, %v2338_v62  ;;  %v1186_v61 = vmul.f32 %v1154_v56, %v2346_v5  ;;  %v1157_v63 = vunpack.c.l.bf16 %v1126_v7  ;;  %v1158_v42 = vunpack.c.h.bf16 %v1126_v7 }
 0x177   : > { %v1163_v50 = vunpack.c.l.bf16 %v1132_v26  ;;  %v1164_v33 = vunpack.c.h.bf16 %v1132_v26  ;;  %v1130_v44 = vmul.bf16 1065369472, %v2016_v55 }
 0x178   : > { %v1640_v8 = vpack.c.bf16 %v1186_v61, %v1185_v58  ;;  %v1189_v12 = vmul.f32 %v1157_v63, %v2324_v24  ;;  %v1190_v1 = vmul.f32 %v1158_v42, %v2349_v3 }
 0x179   : > { %v1195_v28 = vmul.f32 %v1163_v50, %v2351_v41  ;;  %v1196_v40 = vmul.f32 %v1164_v33, %v2362_v17  ;;  %v1161_v62 = vunpack.c.l.bf16 %v1130_v44  ;;  %v1162_v13 = vunpack.c.h.bf16 %v1130_v44 }
 0x17a   : > { %1676 = vst [vmem:[%s2279_s8 + $0x50] sm:$0xff] %v1640_v8   ;;  %v1650_v5 = vpack.c.bf16 %v1190_v1, %v1189_v12 }
 0x17b   : > { %v2018_v2 = vpop.eup %2017  ;;  %v1665_v29 = vpack.c.bf16 %v1196_v40, %v1195_v28  ;;  %v1193_v6 = vmul.f32 %v1161_v62, %v2360_v15  ;;  %v1194_v9 = vmul.f32 %v1162_v13, %v2370_v54 }
 0x17c   : > { %1678 = vst [vmem:[%s2279_s8 + $0x60] sm:$0xff] %v1650_v5   ;;  %v1124_v24 = vmul.bf16 1065369472, %v2018_v2 }
 0x17d   : > { %1681 = vst [vmem:[%s2279_s8 + $0x78] sm:$0xff] %v1665_v29   ;;  %v1660_v3 = vpack.c.bf16 %v1194_v9, %v1193_v6 }
 0x17e   : > { %v1155_v53 = vunpack.c.l.bf16 %v1124_v24  ;;  %v1156_v41 = vunpack.c.h.bf16 %v1124_v24 }
 0x17f   : > { %1680 = vst [vmem:[%s2279_s8 + $0x70] sm:$0xff] %v1660_v3  }
 0x180   : > { %v1187_v17 = vmul.f32 %v1155_v53, %v2373_v37  ;;  %v1188_v10 = vmul.f32 %v1156_v41, %v2381_v57 }
 0x182   : > { %v1645_v47 = vpack.c.bf16 %v1188_v10, %v1187_v17 }
 0x184   : > { %1677 = vst [vmem:[%s2279_s8 + $0x58] sm:$0xff] %v1645_v47  }
 0x185 PF: > { %s13_s12 = sadd.s32 1, %s2025_s12  }
 0x186   : > { %p10_p4 = scmp.ge.s32.totalorder %s13_s12, 4  }
 0x188   :  { %12 = sbr.rel (!%p10_p4) target bundleno = 1 (0x1), region = 62 }

// kernel: custom_backbone_forward.9
= control target key start
LH: loop header
LB: loop body
LE: loop exit
PB: predicated region body
PF: predicated region fallthrough
CT: control target
= control target key end

     0   :  { %12 = vsyncpa [#allocation3], 0  ;;  %s1491_s0 = inlined_call_operand.vmem [shape: bf16[128,216], index: 0, kind: input, shape index: {}]   ;;  %s1492_s1 = inlined_call_operand.vmem [shape: bf16[216,128], index: 1, kind: input, shape index: {}]   ;;  %s1493_s2 = inlined_call_operand.vmem [shape: f32[1,128], index: 2, kind: input, shape index: {}]   ;;  %s1494_s3 = inlined_call_operand.vmem [shape: bf16[128,256], index: 3, kind: input, shape index: {}]   ;;  %s1495_s4 = inlined_call_operand.vmem [shape: f32[1,256], index: 4, kind: input, shape index: {}]   ;;  %s1496_s5 = inlined_call_operand.vmem [shape: bf16[128,128], index: 5, kind: output, shape index: {0}]   ;;  %s1497_s6 = inlined_call_operand.hbm [shape: f32[128,256], index: 6, kind: output, shape index: {1}]  }
   0x1   :  { %14 = vsyncpa [#allocation3 + $0x1], 0  ;;  %s1225_s21 = smov 0   ;;  %s1227_s22 = smov 0  }
   0x2   :  { %s1229_s23 = smov 0   ;;  %s1231_s24 = smov 0  }
   0x3 LB: > { %s1246_s25 = sadd.s32 4294967295, %s1184_s24   ;;  %s909_s26 = sadd.s32 4294967294, %s1184_s24   ;;  %s1184_s24 = sphi %s1231_s24, %s1503_s24   ;;  %s1180_s23 = sphi %s1229_s23, %s1502_s23   ;;  %s1176_s22 = sphi %s1227_s22, %s1501_s22   ;;  %s1172_s21 = sphi %s1225_s21, %s1500_s21  }
   0x4   : > { %s1250_s27 = sadd.s32 1, %s1184_s24   ;;  %s163_s28 = sadd.s32 1, %s1180_s23 }
   0x5   : > { %s160_s29 = ssub.s32 %s1184_s24, %s1250_s27  ;;  %p173_p0 = scmp.ne.s32.totalorder %s1180_s23, %s1176_s22 }
   0x6   : > { %p161_p1 = scmp.eq.s32.totalorder %s160_s29, 0  ;;  %p174_p2 = scmp.eq.s32.totalorder %s1246_s25, 1 }
   0x7   : > { %p179_p3 = scmp.ne.s32.totalorder %s1176_s22, %s1172_s21  ;;  %p180_p4 = scmp.eq.s32.totalorder %s909_s26, 1 }
   0x8   : > { %s1261_s30 = scalar_select %p161_p1, %s1180_s23, %s163_s28  }
   0x9   : > { %p1263_p5 = por %p174_p2, %p173_p0  ;;  %p1267_p6 = por %p180_p4, %p179_p3 }
   0xa   : > { %p912_p7 = scmp.ge.s32.totalorder %s1184_s24, 1  ;;  %p220_p8 = scmp.lt.s32.totalorder %s1184_s24, 3 }
   0xc   : > { %p221_p9 = pnand %p912_p7, %p220_p8 }
   0xd   : > { %v1056_v0 = vld [vmem:[%s1492_s1] sm:$0xff] (!%p221_p9)   ;;  %v1186_v1 = vmov (!%p221_p9), 0   ;;  %v1057_v2 = vld [vmem:[%s1492_s1 + $0x8] sm:$0xff] (!%p221_p9)   ;;  %s914_s13 = sshll.u32 (!%p221_p9), %s1246_s25, 3  ;;  %v1058_v3 = vld [vmem:[%s1492_s1 + $0x10] sm:$0xff] (!%p221_p9)   ;;  %vm431_vm0 = vcmask (!%p221_p9), 719872  }
   0xe   : > { %224 = sbr.rel (%p221_p9) target bundleno = 580 (0x244), region = 40  ;;  %448 = vmatprep.subr.bf16.mxu0 (!%p221_p9), %v1186_v1  ;;  %741 = vmatprep.mubr.bf16.mxu1 (!%p221_p9), %v1186_v1  ;;  %p257_p10 = scmp.lt.s32.totalorder (!%p221_p9), %s914_s13, 15  ;;  %v1059_v4 = vld [vmem:[%s1492_s1 + $0x18] sm:$0xff] (!%p221_p9)   ;;  %v1060_v5 = vld [vmem:[%s1492_s1 + $0x20] sm:$0xff] (!%p221_p9)   ;;  %v1061_v7 = vld [vmem:[%s1492_s1 + $0x28] sm:$0xff] (!%p221_p9)   ;;  %vm444_vm1 = vcmask (!%p221_p9), 1043456  }
   0xf   : > { %449 = vmatpush1.bf16.msra.mxu0 (!%p221_p9), %v1056_v0  ;;  %v1062_v8 = vld [vmem:[%s1492_s1 + $0x30] sm:$0xff] (!%p221_p9)   ;;  %v1063_v9 = vld [vmem:[%s1492_s1 + $0x38] sm:$0xff] (!%p221_p9)   ;;  %v1064_v10 = vld [vmem:[%s1492_s1 + $0x40] sm:$0xff] (!%p221_p9)   ;;  %s990_s15 = sshll.u32 (!%p221_p9), %s1246_s25, 11 }
  0x10   : > { %450 = vmatprep.subr.bf16.mxu0 (!%p221_p9), %v1186_v1  ;;  %v1065_v11 = vld [vmem:[%s1492_s1 + $0x48] sm:$0xff] (!%p221_p9)   ;;  %v1066_v12 = vld [vmem:[%s1492_s1 + $0x50] sm:$0xff] (!%p221_p9)   ;;  %v1067_v13 = vld [vmem:[%s1492_s1 + $0x58] sm:$0xff] (!%p221_p9)   ;;  %s1441_s19 = scalar_lea.hbm (!%p221_p9), %s1497_s6, %s990_s15 }
  0x11   : > { %v1068_v14 = vld [vmem:[%s1492_s1 + $0x60] sm:$0xff] (!%p221_p9)   ;;  %v1069_v15 = vld [vmem:[%s1492_s1 + $0x68] ss:$0 sps:$4 sm:$0xff] (!%p221_p9)   ;;  %v1085_v26 = vld [vmem:[%s1494_s3 + $0x14] ss:$8 sps:$4 sm:$0xff] (!%p221_p9)  }
  0x12   : > { %v446_v16 = vsel (!%p221_p9), %vm444_vm1, %v1069_v15, 0  ;;  %v1082_v24 = vld [vmem:[%s1494_s3 + $0x4] ss:$8 sps:$4 sm:$0xff] (!%p221_p9)   ;;  %v1084_v25 = vld [vmem:[%s1494_s3] ss:$8 sps:$4 sm:$0xff] (!%p221_p9)  }
  0x13   : > { %451 = vmatpush1.bf16.msra.mxu0 (!%p221_p9), %v1057_v2  ;;  %709 = vmatprep.subr.bf16.mxu1 (!%p221_p9), %v1082_v24  ;;  %v1087_v27 = vld [vmem:[%s1494_s3 + $0x10] ss:$8 sps:$4 sm:$0xff] (!%p221_p9)   ;;  %v1088_v28 = vld [vmem:[%s1494_s3 + $0x24] ss:$8 sps:$4 sm:$0xff] (!%p221_p9)   ;;  %v1090_v29 = vld [vmem:[%s1494_s3 + $0x20] ss:$8 sps:$4 sm:$0xff] (!%p221_p9)  }
  0x14   : > { %452 = vmatprep.subr.bf16.mxu0 (!%p221_p9), %v1186_v1  ;;  %710 = vmatpush1.bf16.msra.mxu1 (!%p221_p9), %v1084_v25  ;;  %v1091_v30 = vld [vmem:[%s1494_s3 + $0x34] ss:$8 sps:$4 sm:$0xff] (!%p221_p9)   ;;  %v1093_v31 = vld [vmem:[%s1494_s3 + $0x30] ss:$8 sps:$4 sm:$0xff] (!%p221_p9)   ;;  %v1094_v32 = vld [vmem:[%s1494_s3 + $0x44] ss:$8 sps:$4 sm:$0xff] (!%p221_p9)  }
  0x15   : > { %s1505_s13 = smov (!%p257_p10, %s914_s13), 15  ;;  %711 = vmatprep.subr.bf16.mxu1 %v1085_v26  ;;  %v1096_v33 = vld [vmem:[%s1494_s3 + $0x40] ss:$8 sps:$4 sm:$0xff]   ;;  %v1097_v34 = vld [vmem:[%s1494_s3 + $0x54] ss:$8 sps:$4 sm:$0xff]  }
  0x16   : > { %s980_s16 = sshll.u32 %s1505_s13, 3  ;;  %v1099_v35 = vld [vmem:[%s1494_s3 + $0x50] ss:$8 sps:$4 sm:$0xff]   ;;  %v1100_v36 = vld [vmem:[%s1494_s3 + $0x64] ss:$8 sps:$4 sm:$0xff]   ;;  %s918_s28 = sshll.u32 %s1505_s13, 2 }
  0x17   : > { %453 = vmatpush1.bf16.msra.mxu0 %v1058_v3  ;;  %s1297_s26 = scalar_lea.vmem %s1491_s0, %s980_s16  ;;  %v1102_v37 = vld [vmem:[%s1494_s3 + $0x60] ss:$8 sps:$4 sm:$0xff]   ;;  %v1103_v38 = vld [vmem:[%s1494_s3 + $0x74] ss:$8 sps:$4 sm:$0xff]   ;;  %v1105_v39 = vld [vmem:[%s1494_s3 + $0x70] ss:$8 sps:$4 sm:$0xff]   ;;  %s1406_s9 = scalar_lea.vmem %s1496_s5, %s918_s28 }
  0x18   : > { %454 = vmatprep.subr.bf16.mxu0 %v1186_v1  ;;  %v1072_v6 = vld [vmem:[%s1297_s26 + $0x4] ss:$8 sps:$4 sm:$0xff]   ;;  %v1070_v17 = vld [vmem:[%s1297_s26] ss:$8 sps:$4 sm:$0xff]   ;;  %v1073_v18 = vld [vmem:[%s1297_s26 + $0x14] ss:$8 sps:$4 sm:$0xff]   ;;  %712 = vmatpush1.bf16.msra.mxu1 %v1087_v27 }
  0x19   : > { %942 = vmatprep.mubr.msk.bf16.mxu0 %vm431_vm0, %v1072_v6  ;;  %v1075_v19 = vld [vmem:[%s1297_s26 + $0x10] ss:$8 sps:$4 sm:$0xff]   ;;  %v1076_v20 = vld [vmem:[%s1297_s26 + $0x24] ss:$8 sps:$4 sm:$0xff]   ;;  %v1078_v21 = vld [vmem:[%s1297_s26 + $0x20] ss:$8 sps:$4 sm:$0xff]   ;;  %713 = vmatprep.subr.bf16.mxu1 %v1088_v28 }
  0x1a   : > { %v1079_v22 = vld [vmem:[%s1297_s26 + $0x34] ss:$8 sps:$4 sm:$0xff]   ;;  %v1081_v23 = vld [vmem:[%s1297_s26 + $0x30] ss:$8 sps:$4 sm:$0xff]   ;;  %v919_v40 = vld [vmem:[%s1493_s2] ss:$0 sm:$0xff] }
  0x1b   : > { %455 = vmatpush1.bf16.msra.mxu0 %v1059_v4  ;;  %s253_s13 = sand.u32 1, %s1176_s22   ;;  %s1187_s28 = smov [#allocation2]  }
  0x1c   : > { %456 = vmatprep.subr.bf16.mxu0 %v1186_v1  ;;  %714 = vmatpush1.bf16.msra.mxu1 %v1090_v29  ;;  %s913_s12 = sshll.u32 %s253_s13, 7  ;;  %s1450_s25 = scalar_lea.sflag [#allocation3], %s253_s13 }
  0x1d   : > { %715 = vmatprep.subr.bf16.mxu1 %v1091_v30  ;;  %s1421_s14 = scalar_lea.vmem [#allocation2], %s913_s12  ;;  %s1126_s29 = sshll.u32 %s1187_s28, 4  ;;  %s1127_s29 = int_to_ptr.vmem [resolvable:$false] %s1126_s29 }
  0x1e   : > { %s822_s16 = sshll.u32 %s1421_s14, 4  ;;  %s1128_s26 = scalar_lea.vmem %s1127_s29, 4096  ;;  %s1443_s16 = int_to_ptr.vmem [resolvable:$true] %s822_s16 }
  0x1f   : > { %457 = vmatpush1.bf16.msra.mxu0 %v1060_v5  ;;  %s1122_s20 = scalar_lea.vmem %s1443_s16, 2048  ;;  %p1129_p0 = scmp.lt.s32.totalorder %s1443_s16, %s1127_s29 }
  0x20   : > { %458 = vmatprep.subr.bf16.mxu0 %v1186_v1  ;;  %716 = vmatpush1.bf16.msra.mxu1 %v1093_v31  ;;  %p1123_p11 = scmp.ne.s32.totalorder %s1443_s16, %s1122_s20  ;;  %p1130_p1 = scmp.lt.s32.totalorder %s1128_s26, %s1122_s20 }
  0x21   : > { %717 = vmatprep.subr.bf16.mxu1 %v1094_v32 }
  0x22   : > { %p1124_p12 = pnand %p1123_p11, %p1263_p5  ;;  %p1131_p2 = por %p1130_p1, %p1129_p0 }
  0x23   : > { %459 = vmatpush1.bf16.msra.mxu0 %v1061_v7 }
  0x24   : > { %460 = vmatprep.subr.bf16.mxu0 %v1186_v1  ;;  %718 = vmatpush1.bf16.msra.mxu1 %v1096_v33  ;;  %p1125_p13 = pneg %p1124_p12 }
  0x25   : > { %719 = vmatprep.subr.bf16.mxu1 %v1097_v34 }
  0x26   : > { %p1132_p3 = pnand %p1131_p2, %p1125_p13 }
  0x27   : > { %461 = vmatpush1.bf16.msra.mxu0 %v1062_v8 }
  0x28   : > { %462 = vmatprep.subr.bf16.mxu0 %v1186_v1  ;;  %720 = vmatpush1.bf16.msra.mxu1 %v1099_v35 }
  0x29   : > { %721 = vmatprep.subr.bf16.mxu1 %v1100_v36 }
  0x2b   : > { %463 = vmatpush1.bf16.msra.mxu0 %v1063_v9 }
  0x2c   : > { %464 = vmatprep.subr.bf16.mxu0 %v1186_v1  ;;  %722 = vmatpush1.bf16.msra.mxu1 %v1102_v37 }
  0x2d   : > { %723 = vmatprep.subr.bf16.mxu1 %v1103_v38 }
  0x2f   : > { %465 = vmatpush1.bf16.msra.mxu0 %v1064_v10 }
  0x30   : > { %466 = vmatprep.subr.bf16.mxu0 %v1186_v1  ;;  %724 = vmatpush1.bf16.msra.mxu1 %v1105_v39 }
  0x33   : > { %467 = vmatpush1.bf16.msra.mxu0 %v1065_v11 }
  0x34   : > { %468 = vmatprep.subr.bf16.mxu0 %v1186_v1 }
  0x37   : > { %469 = vmatpush1.bf16.msra.mxu0 %v1066_v12 }
  0x38   : > { %470 = vmatprep.subr.bf16.mxu0 %v1186_v1 }
  0x3b   : > { %471 = vmatpush1.bf16.msra.mxu0 %v1067_v13 }
  0x3c   : > { %472 = vmatprep.subr.bf16.mxu0 %v1186_v1 }
  0x3f   : > { %473 = vmatpush1.bf16.msra.mxu0 %v1068_v14 }
  0x40   : > { %474 = vmatprep.subr.bf16.mxu0 %v1186_v1 }
  0x43   : > { %475 = vmatpush1.bf16.msra.mxu0 %v446_v16 }
  0x46   : > { %481 = vmatmul.mubr.bf16.vlgmr.msra.gmra.mrb[0].mxu0 %v1070_v17 }
  0x47   : > { %943 = vmatprep.mubr.msk.bf16.mxu0 %vm431_vm0, %v1073_v18 }
  0x4e   : > { %489 = vmatmul.mubr.bf16.gmra.mrb[4].mxu0 %v1075_v19 }
  0x4f   : > { %944 = vmatprep.mubr.msk.bf16.mxu0 %vm431_vm0, %v1076_v20 }
  0x56   : > { %497 = vmatmul.mubr.bf16.gmra.mrb[8].mxu0 %v1078_v21 }
  0x57   : > { %945 = vmatprep.mubr.msk.bf16.mxu0 %vm431_vm0, %v1079_v22 }
  0x5e   : > { %505 = vmatmul.mubr.bf16.gmra.mrb[12].mxu0 %v1081_v23 }
 0x119   : > { %v482_v41 = vpop.f32.mrb[0].mxu0 }
 0x11a   : > { %v484_v42 = vpop.f32.mrb[1].mxu0  ;;  %v483_v44 = vadd.f32 %v919_v40, %v482_v41 }
 0x11b   : > { %v485_v43 = vpop.f32.mrb[2].mxu0 }
 0x11c   : > { %v486_v45 = vadd.f32 %v919_v40, %v485_v43  ;;  %v487_v46 = vpop.f32.mrb[3].mxu0 }
 0x11d   : > { %v619_v46 = vlaneseq }
 0x11e   : > { %v513_v47 = vpack.c.bf16 %v486_v45, %v483_v44 }
 0x120   : > { %v946_v48 = vmul.bf16 3216621497, %v513_v47  ;;  %v620_v47 = vshrl.u32 %v619_v46, 7 }
 0x121   : > { %v490_v49 = vpop.f32.mrb[4].mxu0 }
 0x122   : > { %1106 = vpow.bf16 %v946_v48  ;;  %v492_v50 = vpop.f32.mrb[5].mxu0  ;;  %v491_v52 = vadd.f32 %v919_v40, %v490_v49  ;;  %v621_v48 = vsub.s32 0, %v620_v47  ;;  %v617_v49 = vld [vmem:[%s1495_s4] sm:$0x3] }
 0x123   : > { %v493_v51 = vpop.f32.mrb[6].mxu0  ;;  %v625_v50 = vsub.s32 1, %v620_v47 }
 0x124   : > { %v494_v53 = vadd.f32 %v919_v40, %v493_v51  ;;  %v495_v54 = vpop.f32.mrb[7].mxu0  ;;  %v622_v51 = vrot.slane %v617_v49, %v621_v48 }
 0x126   : > { %v514_v55 = vpack.c.bf16 %v494_v53, %v491_v52 }
 0x128   : > { %v947_v56 = vmul.bf16 3216621497, %v514_v55 }
 0x129   : > { %v498_v57 = vpop.f32.mrb[8].mxu0 }
 0x12a   : > { %1108 = vpow.bf16 %v947_v56  ;;  %v500_v58 = vpop.f32.mrb[9].mxu0  ;;  %v499_v60 = vadd.f32 %v919_v40, %v498_v57 }
 0x12b   : > { %v501_v59 = vpop.f32.mrb[10].mxu0 }
 0x12c   : > { %v502_v61 = vadd.f32 %v919_v40, %v501_v59  ;;  %v503_v62 = vpop.f32.mrb[11].mxu0 }
 0x12d   : > { %v1107_v63 = vpop.eup %1106 }
 0x12e   : > { %v533_v0 = vadd.bf16 1065369472, %v1107_v63  ;;  %v515_v2 = vpack.c.bf16 %v502_v61, %v499_v60 }
 0x130   : > { %1110 = vrcp.bf16 %v533_v0  ;;  %v948_v3 = vmul.bf16 3216621497, %v515_v2 }
 0x131   : > { %v506_v4 = vpop.f32.mrb[12].mxu0 }
 0x132   : > { %1112 = vpow.bf16 %v948_v3  ;;  %v508_v5 = vpop.f32.mrb[13].mxu0  ;;  %v507_v7 = vadd.f32 %v919_v40, %v506_v4 }
 0x133   : > { %v509_v6 = vpop.f32.mrb[14].mxu0 }
 0x134   : > { %v510_v8 = vadd.f32 %v919_v40, %v509_v6  ;;  %v511_v9 = vpop.f32.mrb[15].mxu0 }
 0x135   : > { %v1109_v10 = vpop.eup %1108 }
 0x136   : > { %v534_v11 = vadd.bf16 1065369472, %v1109_v10  ;;  %v516_v12 = vpack.c.bf16 %v510_v8, %v507_v7 }
 0x138   : > { %1114 = vrcp.bf16 %v534_v11  ;;  %v949_v13 = vmul.bf16 3216621497, %v516_v12 }
 0x13a   : > { %1116 = vpow.bf16 %v949_v13 }
 0x13b   : > { %v1111_v14 = vpop.eup %1110 }
 0x13c   : > { %v538_v15 = vmul.bf16 1065369472, %v1111_v14 }
 0x13d   : > { %v1113_v16 = vpop.eup %1112 }
 0x13e   : > { %v546_v17 = vunpack.c.h.bf16 %v538_v15  ;;  %v535_v18 = vadd.bf16 1065369472, %v1113_v16  ;;  %v545_v19 = vunpack.c.l.bf16 %v538_v15 }
 0x140   : > { %v554_v20 = vmul.f32 %v546_v17, %v486_v45  ;;  %1118 = vrcp.bf16 %v535_v18  ;;  %v553_v21 = vmul.f32 %v545_v19, %v483_v44 }
 0x142   : > { %v561_v22 = vpack.c.bf16 %v554_v20, %v553_v21 }
 0x143   : > { %v1115_v23 = vpop.eup %1114 }
 0x144   : > { %v540_v24 = vmul.bf16 1065369472, %v1115_v23  ;;  %995 = vst [vmem:[%s1406_s9] sm:$0xff] %v561_v22   ;;  %742 = vmatmul.mubr.bf16.vlgmr.msra.gmra.mrb[0].mxu1 %v561_v22 }
 0x145   : > { %v1117_v25 = vpop.eup %1116  ;;  %751 = vmatprep.mubr.bf16.mxu1 %v1186_v1 }
 0x146   : > { %v548_v26 = vunpack.c.h.bf16 %v540_v24  ;;  %v536_v27 = vadd.bf16 1065369472, %v1117_v25  ;;  %v547_v28 = vunpack.c.l.bf16 %v540_v24 }
 0x148   : > { %v556_v29 = vmul.f32 %v548_v26, %v494_v53  ;;  %1120 = vrcp.bf16 %v536_v27  ;;  %v555_v30 = vmul.f32 %v547_v28, %v491_v52 }
 0x14a   : > { %v562_v31 = vpack.c.bf16 %v556_v29, %v555_v30 }
 0x14b   : > { %v1119_v32 = vpop.eup %1118 }
 0x14c   : > { %v542_v33 = vmul.bf16 1065369472, %v1119_v32  ;;  %1011 = vst [vmem:[%s1406_s9 + $0x8] sm:$0xff] %v562_v31   ;;  %752 = vmatmul.mubr.bf16.gmra.mrb[4].mxu1 %v562_v31 }
 0x14d   : > { %761 = vmatprep.mubr.bf16.mxu1 %v1186_v1 }
 0x14e   : > { %v550_v34 = vunpack.c.h.bf16 %v542_v33  ;;  %v549_v35 = vunpack.c.l.bf16 %v542_v33 }
 0x150   : > { %v558_v36 = vmul.f32 %v550_v34, %v502_v61  ;;  %v557_v37 = vmul.f32 %v549_v35, %v499_v60 }
 0x152   : > { %v563_v38 = vpack.c.bf16 %v558_v36, %v557_v37 }
 0x153   : > { %v1121_v39 = vpop.eup %1120 }
 0x154   : > { %v544_v40 = vmul.bf16 1065369472, %v1121_v39  ;;  %1012 = vst [vmem:[%s1406_s9 + $0x10] sm:$0xff] %v563_v38   ;;  %762 = vmatmul.mubr.bf16.gmra.mrb[8].mxu1 %v563_v38 }
 0x155   : > { %771 = vmatprep.mubr.bf16.mxu1 %v1186_v1  ;;  %v626_v1 = vrot.slane %v617_v49, %v625_v50 }
 0x156   : > { %v552_v41 = vunpack.c.h.bf16 %v544_v40  ;;  %v551_v42 = vunpack.c.l.bf16 %v544_v40 }
 0x158   : > { %v560_v43 = vmul.f32 %v552_v41, %v510_v8  ;;  %v559_v44 = vmul.f32 %v551_v42, %v507_v7 }
 0x15a   : > { %v564_v45 = vpack.c.bf16 %v560_v43, %v559_v44 }
 0x15c   : > { %1013 = vst [vmem:[%s1406_s9 + $0x18] sm:$0xff] %v564_v45   ;;  %772 = vmatmul.mubr.bf16.gmra.mrb[12].mxu1 %v564_v45 }
 0x217   : > { %v743_v52 = vpop.f32.mrb[0].mxu1 }
 0x218   : > { %v744_v53 = vadd.f32 %v743_v52, %v622_v51  ;;  %v745_v54 = vpop.f32.mrb[1].mxu1 }
 0x219   : > { %v746_v55 = vadd.f32 %v745_v54, %v626_v1  ;;  %v747_v56 = vpop.f32.mrb[2].mxu1 }
 0x21a   : > { %782 = vst [vmem:[%s1421_s14] sm:$0xff] %v744_v53  ;;  %v748_v57 = vadd.f32 %v747_v56, %v622_v51  ;;  %v749_v58 = vpop.f32.mrb[3].mxu1 }
 0x21b   : > { %783 = vst [vmem:[%s1421_s14 + $0x8] sm:$0xff] %v746_v55  ;;  %v750_v59 = vadd.f32 %v749_v58, %v626_v1 }
 0x21c   : > { %784 = vst [vmem:[%s1421_s14 + $0x10] sm:$0xff] %v748_v57 }
 0x21d   : > { %785 = vst [vmem:[%s1421_s14 + $0x18] sm:$0xff] %v750_v59 }
 0x21f   : > { %v753_v60 = vpop.f32.mrb[4].mxu1 }
 0x220   : > { %v754_v61 = vadd.f32 %v753_v60, %v622_v51  ;;  %v755_v62 = vpop.f32.mrb[5].mxu1 }
 0x221   : > { %v756_v63 = vadd.f32 %v755_v62, %v626_v1  ;;  %v757_v0 = vpop.f32.mrb[6].mxu1 }
 0x222   : > { %786 = vst [vmem:[%s1421_s14 + $0x20] sm:$0xff] %v754_v61  ;;  %v758_v2 = vadd.f32 %v757_v0, %v622_v51  ;;  %v759_v3 = vpop.f32.mrb[7].mxu1 }
 0x223   : > { %787 = vst [vmem:[%s1421_s14 + $0x28] sm:$0xff] %v756_v63  ;;  %v760_v4 = vadd.f32 %v759_v3, %v626_v1 }
 0x224   : > { %788 = vst [vmem:[%s1421_s14 + $0x30] sm:$0xff] %v758_v2 }
 0x225   : > { %789 = vst [vmem:[%s1421_s14 + $0x38] sm:$0xff] %v760_v4 }
 0x227   : > { %v763_v5 = vpop.f32.mrb[8].mxu1 }
 0x228   : > { %v764_v6 = vadd.f32 %v763_v5, %v622_v51  ;;  %v765_v7 = vpop.f32.mrb[9].mxu1 }
 0x229   : > { %v766_v8 = vadd.f32 %v765_v7, %v626_v1  ;;  %v767_v9 = vpop.f32.mrb[10].mxu1 }
 0x22a   : > { %790 = vst [vmem:[%s1421_s14 + $0x40] sm:$0xff] %v764_v6  ;;  %v768_v10 = vadd.f32 %v767_v9, %v622_v51  ;;  %v769_v11 = vpop.f32.mrb[11].mxu1 }
 0x22b   : > { %791 = vst [vmem:[%s1421_s14 + $0x48] sm:$0xff] %v766_v8  ;;  %v770_v12 = vadd.f32 %v769_v11, %v626_v1 }
 0x22c   : > { %792 = vst [vmem:[%s1421_s14 + $0x50] sm:$0xff] %v768_v10 }
 0x22d   : > { %793 = vst [vmem:[%s1421_s14 + $0x58] sm:$0xff] %v770_v12 }
 0x22f   : > { %v773_v13 = vpop.f32.mrb[12].mxu1 }
 0x230   : > { %v774_v14 = vadd.f32 %v773_v13, %v622_v51  ;;  %v775_v15 = vpop.f32.mrb[13].mxu1 }
 0x231   : > { %v776_v16 = vadd.f32 %v775_v15, %v626_v1  ;;  %v777_v17 = vpop.f32.mrb[14].mxu1 }
 0x232   : > { %794 = vst [vmem:[%s1421_s14 + $0x60] sm:$0xff] %v774_v14  ;;  %v778_v18 = vadd.f32 %v777_v17, %v622_v51  ;;  %v779_v19 = vpop.f32.mrb[15].mxu1 }
 0x233   : > { %795 = vst [vmem:[%s1421_s14 + $0x68] sm:$0xff] %v776_v16  ;;  %v780_v20 = vadd.f32 %v779_v19, %v626_v1 }
 0x234   : > { %796 = vst [vmem:[%s1421_s14 + $0x70] sm:$0xff] %v778_v18 }
 0x235   : > { %797 = vst [vmem:[%s1421_s14 + $0x78] sm:$0xff] %v780_v20 }
 0x236   : > { %1135 = shalt.err (!%p1132_p3)
}
 0x237   : > { %s1136_s9 = scalar_lea.hbm %s1441_s19, 2048  ;;  %s1140_s11 = scalar_lea.hbm %s1497_s6, 4096 }
 0x238   : > { %p1137_p4 = scmp.ne.s32.totalorder %s1441_s19, %s1136_s9  ;;  %p1141_p9 = scmp.lt.u32.totalorder %s1441_s19, %s1497_s6 }
 0x239   : > { %p1142_p10 = scmp.lt.u32.totalorder %s1140_s11, %s1136_s9  ;;  %p1144_p12 = scmp.lt.u32.totalorder %s1136_s9, %s1441_s19 }
 0x23a   : > { %p1138_p7 = pnand %p1137_p4, %p1263_p5 }
 0x23b   : > { %p1143_p11 = por %p1142_p10, %p1141_p9 }
 0x23c   : > { %p1139_p8 = pneg %p1138_p7 }
 0x23d   : > { %p1145_p13 = por %p1144_p12, %p1143_p11 }
 0x23f   : > { %p1146_p0 = pnand %p1145_p13, %p1139_p8 }
 0x241   : > { %1149 = shalt.err (!%p1146_p0)
}
 0x242   : > { %s1188_s15 = smov 256   ;;  %s1189_s17 = smov 16  }
 0x243   : > { %1014 = dma.vmem_to_hbm [thread:$0]  (%p1263_p5), %s1443_s16, 2048, %s1441_s19, %s1450_s25, %s1188_s15, %s1188_s15, %s1189_s17  }
 0x244 PF: > { %p1020_p1 = scmp.ge.s32.totalorder %s1184_s24, 2  ;;  %s845_s18 = sand.u32 1, %s1172_s21  }
 0x245   : > { %s846_s20 = scalar_lea.sflag [#allocation3], %s845_s18 }
 0x246   : > { %p1017_p2 = pnand %p1020_p1, %p1267_p6 }
 0x248   : > { %1167 = dma.done.wait (!%p1017_p2), %s846_s20, 2048  }
 0x249   : > { %1169 = vsyncadd (!%p1017_p2), %s846_s20, 4294965248  ;;  %p17_p3 = scmp.ge.s32.totalorder %s1250_s27, 4   ;;  %s1500_s21 = smov %s1176_s22 }
 0x24a   : > { %s1501_s22 = smov %s1180_s23  ;;  %s1502_s23 = smov %s1261_s30 }
 0x24b   : > { %s1503_s24 = smov %s1250_s27  ;;  %19 = sbr.rel (!%p17_p3) target bundleno = 3 (0x3), region = 87 }
 0x252   :  { %851 = vsyncpa [#allocation3], 1 }
 0x253   :  { %853 = vsyncpa [#allocation3 + $0x1], 1 }

// kernel: custom_backbone_forward.10
= control target key start
LH: loop header
LB: loop body
LE: loop exit
PB: predicated region body
PF: predicated region fallthrough
CT: control target
= control target key end

     0   :  { %s722_s12 = smov 0   ;;  %s815_s0 = inlined_call_operand.vmem [shape: bf16[32,360], index: 0, kind: input, shape index: {}]   ;;  %s816_s1 = inlined_call_operand.vmem [shape: bf16[360,128], index: 1, kind: input, shape index: {}]   ;;  %s817_s2 = inlined_call_operand.vmem [shape: f32[1,128], index: 2, kind: input, shape index: {}]   ;;  %s818_s3 = inlined_call_operand.vmem [shape: bf16[32,128], index: 3, kind: output, shape index: {}]  }
   0x1 LB: > { %s553_s13 = sadd.s32 4294967295, %s698_s12   ;;  %p557_p0 = scmp.ge.s32.totalorder %s698_s12, 1  ;;  %s698_s12 = sphi %s722_s12, %s13_s12  }
   0x2   : > { %p139_p1 = scmp.lt.s32.totalorder %s698_s12, 3 }
   0x4   : > { %p140_p2 = pnand %p557_p0, %p139_p1 }
   0x5   : > { %v661_v0 = vld [vmem:[%s816_s1 + $0x40] sm:$0xff] (!%p140_p2)   ;;  %v700_v2 = vmov (!%p140_p2), 0.0   ;;  %v663_v3 = vld [vmem:[%s816_s1 + $0x48] sm:$0xff] (!%p140_p2)   ;;  %s558_s24 = sshll.u32 (!%p140_p2), %s553_s13, 1  ;;  %v666_v6 = vld [vmem:[%s816_s1 + $0x50] sm:$0xff] (!%p140_p2)   ;;  %vm701_vm0 = vmmov (!%p140_p2), 0  }
   0x6   : > { %143 = sbr.rel (%p140_p2) target bundleno = 298 (0x12a), region = 32  ;;  %v662_v1 = vld [vmem:[%s816_s1] sm:$0xff] (!%p140_p2)   ;;  %632 = vmatprep.subr.bf16.mxu1 (!%p140_p2), %v700_v2  ;;  %602 = vmatprep.subr.bf16.mxu0 (!%p140_p2), %v661_v0  ;;  %v664_v4 = vld [vmem:[%s816_s1 + $0x8] sm:$0xff] (!%p140_p2)   ;;  %v667_v7 = vld [vmem:[%s816_s1 + $0x10] sm:$0xff] (!%p140_p2)   ;;  %p165_p3 = scmp.lt.s32.totalorder (!%p140_p2), %s558_s24, 3  ;;  %vm389_vm1 = vcmask (!%p140_p2), 1043456  }
   0x7   : > { %603 = vmatpush3.bf16.msra.mxu0 (!%p140_p2), %v662_v1  ;;  %v665_v5 = vld [vmem:[%s816_s1 + $0x80] sm:$0xff] (!%p140_p2)   ;;  %646 = vmatprep.mubr.msk.bf16.mxu1 (!%p140_p2), %vm701_vm0, %v700_v2  ;;  %v668_v8 = vld [vmem:[%s816_s1 + $0x88] sm:$0xff] (!%p140_p2)   ;;  %v669_v9 = vld [vmem:[%s816_s1 + $0x58] sm:$0xff] (!%p140_p2)   ;;  %vm385_vm2 = vcmask (!%p140_p2), 850944  }
   0x8   : > { %604 = vmatprep.subr.bf16.mxu0 (!%p140_p2), %v663_v3  ;;  %633 = vmatpush3.bf16.msra.mxu1 (!%p140_p2), %v665_v5  ;;  %v671_v10 = vld [vmem:[%s816_s1 + $0x90] sm:$0xff] (!%p140_p2)   ;;  %v670_v11 = vld [vmem:[%s816_s1 + $0x18] sm:$0xff] (!%p140_p2)   ;;  %v672_v12 = vld [vmem:[%s816_s1 + $0x60] sm:$0xff] (!%p140_p2)  }
   0x9   : > { %634 = vmatprep.subr.bf16.mxu1 (!%p140_p2), %v700_v2  ;;  %v674_v13 = vld [vmem:[%s816_s1 + $0x98] sm:$0xff] (!%p140_p2)   ;;  %v673_v14 = vld [vmem:[%s816_s1 + $0x20] sm:$0xff] (!%p140_p2)   ;;  %v675_v15 = vld [vmem:[%s816_s1 + $0x68] sm:$0xff] (!%p140_p2)  }
   0xa   : > { %v677_v16 = vld [vmem:[%s816_s1 + $0xa0] sm:$0xff] (!%p140_p2)   ;;  %v676_v17 = vld [vmem:[%s816_s1 + $0x28] sm:$0xff] (!%p140_p2)   ;;  %v678_v18 = vld [vmem:[%s816_s1 + $0x70] sm:$0xff] (!%p140_p2)  }
   0xb   : > { %605 = vmatpush3.bf16.msra.mxu0 (!%p140_p2), %v664_v4  ;;  %v679_v19 = vld [vmem:[%s816_s1 + $0x30] sm:$0xff] (!%p140_p2)   ;;  %v680_v20 = vld [vmem:[%s816_s1 + $0xa8] sm:$0xff] (!%p140_p2)   ;;  %v681_v23 = vld [vmem:[%s816_s1 + $0x78] sm:$0xff] (!%p140_p2)  }
   0xc   : > { %606 = vmatprep.subr.bf16.mxu0 (!%p140_p2), %v666_v6  ;;  %635 = vmatpush3.bf16.msra.mxu1 (!%p140_p2), %v668_v8  ;;  %v686_v22 = vld [vmem:[%s816_s1 + $0xb0] ss:$0 sps:$4 sm:$0xff] (!%p140_p2)   ;;  %v682_v24 = vld [vmem:[%s816_s1 + $0x38] sm:$0xff] (!%p140_p2)   ;;  %v562_v32 = vld [vmem:[%s817_s2] ss:$0 sm:$0xff] (!%p140_p2) }
   0xd   : > { %636 = vmatprep.subr.bf16.mxu1 %v700_v2  ;;  %s820_s24 = smov (!%p165_p3, %s558_s24), 3  ;;  %v391_v25 = vsel %vm389_vm1, %v686_v22, 0 }
   0xe   : > { %s650_s19 = smul.u32 12, %s820_s24  ;;  %s561_s16 = sshll.u32 %s820_s24, 2 }
   0xf   : > { %607 = vmatpush3.bf16.msra.mxu0 %v667_v7 }
  0x10   : > { %608 = vmatprep.subr.bf16.mxu0 %v669_v9  ;;  %637 = vmatpush3.bf16.msra.mxu1 %v671_v10  ;;  %s169_s29 = scalar_lea.vmem %s815_s0, %s650_s19  ;;  %s175_s19 = scalar_lea.vmem %s818_s3, %s561_s16 }
  0x11   : > { %638 = vmatprep.subr.bf16.mxu1 %v700_v2  ;;  %v685_v21 = vld [vmem:[%s169_s29 + $0x4] ss:$12 sps:$4 sm:$0xff]   ;;  %v687_v26 = vld [vmem:[%s169_s29 + $0x8] ss:$12 sps:$4 sm:$0xff]   ;;  %v683_v27 = vld [vmem:[%s169_s29] ss:$12 sps:$4 sm:$0xff]  }
  0x12   : > { %425 = vmatprep.mubr.bf16.mxu0 %v685_v21 }
  0x13   : > { %609 = vmatpush3.bf16.msra.mxu0 %v670_v11 }
  0x14   : > { %610 = vmatprep.subr.bf16.mxu0 %v672_v12  ;;  %639 = vmatpush3.bf16.msra.mxu1 %v674_v13 }
  0x15   : > { %640 = vmatprep.subr.bf16.mxu1 %v700_v2 }
  0x17   : > { %611 = vmatpush3.bf16.msra.mxu0 %v673_v14 }
  0x18   : > { %612 = vmatprep.subr.bf16.mxu0 %v675_v15  ;;  %641 = vmatpush3.bf16.msra.mxu1 %v677_v16 }
  0x19   : > { %642 = vmatprep.subr.bf16.mxu1 %v700_v2 }
  0x1b   : > { %613 = vmatpush3.bf16.msra.mxu0 %v676_v17 }
  0x1c   : > { %614 = vmatprep.subr.bf16.mxu0 %v678_v18  ;;  %643 = vmatpush3.bf16.msra.mxu1 %v680_v20 }
  0x1d   : > { %644 = vmatprep.subr.bf16.mxu1 %v700_v2 }
  0x1f   : > { %615 = vmatpush3.bf16.msra.mxu0 %v679_v19 }
  0x20   : > { %616 = vmatprep.subr.bf16.mxu0 %v681_v23  ;;  %645 = vmatpush3.bf16.msra.mxu1 %v391_v25 }
  0x23   : > { %617 = vmatpush3.bf16.msra.mxu0 %v682_v24  ;;  %647 = vmatmul.mubr.msk.bf16.vlgmr.msra.gmra.mrb[0].mxu1 %vm385_vm2, %v687_v26 }
  0x26   : > { %426 = vmatmul.mubr.bf16.vlgmr.msra.gmra.mrb[0].mxu0 %v683_v27 }
  0xf6   : > { %v468_v28 = vpop.f32.mrb[0].mxu1 }
  0xf7   : > { %v648_v30 = vpop.f32.mrb[1].mxu1 }
  0xf8   : > { %v471_v33 = vpop.f32.mrb[2].mxu1 }
  0xf9   : > { %v618_v29 = vpop.f32.mrb[0].mxu0  ;;  %v649_v36 = vpop.f32.mrb[3].mxu1 }
  0xfa   : > { %v619_v31 = vpop.f32.mrb[1].mxu0 }
  0xfb   : > { %v620_v34 = vadd.f32 %v619_v31, %v618_v29  ;;  %v621_v35 = vpop.f32.mrb[2].mxu0 }
  0xfc   : > { %v622_v37 = vpop.f32.mrb[3].mxu0 }
  0xfd   : > { %v428_v38 = vadd.f32 %v620_v34, %v562_v32  ;;  %v623_v39 = vadd.f32 %v622_v37, %v621_v35 }
  0xff   : > { %v469_v40 = vadd.f32 %v468_v28, %v428_v38  ;;  %v431_v41 = vadd.f32 %v623_v39, %v562_v32 }
 0x101   : > { %v472_v42 = vadd.f32 %v471_v33, %v431_v41 }
 0x103   : > { %v475_v43 = vpack.c.bf16 %v472_v42, %v469_v40 }
 0x105   : > { %v590_v44 = vmul.bf16 3216621497, %v475_v43 }
 0x107   : > { %688 = vpow.bf16 %v590_v44 }
 0x112   : > { %v689_v45 = vpop.eup %688 }
 0x113   : > { %v480_v46 = vadd.bf16 1065369472, %v689_v45 }
 0x115   : > { %690 = vrcp.bf16 %v480_v46 }
 0x120   : > { %v691_v47 = vpop.eup %690 }
 0x121   : > { %v482_v48 = vmul.bf16 1065369472, %v691_v47 }
 0x123   : > { %v483_v49 = vunpack.c.l.bf16 %v482_v48  ;;  %v484_v50 = vunpack.c.h.bf16 %v482_v48 }
 0x125   : > { %v485_v51 = vmul.f32 %v483_v49, %v469_v40  ;;  %v486_v52 = vmul.f32 %v484_v50, %v472_v42 }
 0x127   : > { %v600_v53 = vpack.c.bf16 %v486_v52, %v485_v51 }
 0x129   : > { %601 = vst [vmem:[%s175_s19] sm:$0xff] %v600_v53  }
 0x12a PF: > { %s13_s12 = sadd.s32 1, %s698_s12  }
 0x12b   : > { %p10_p4 = scmp.ge.s32.totalorder %s13_s12, 4  }
 0x12d   :  { %12 = sbr.rel (!%p10_p4) target bundleno = 1 (0x1), region = 62 }

// kernel: custom_backbone_forward.11
= control target key start
LH: loop header
LB: loop body
LE: loop exit
PB: predicated region body
PF: predicated region fallthrough
CT: control target
= control target key end

     0   :  { %s1541_s21 = smov 0   ;;  %s1828_s0 = inlined_call_operand.vmem [shape: bf16[32,720], index: 0, kind: input, shape index: {}]   ;;  %s1829_s1 = inlined_call_operand.vmem [shape: bf16[720,128], index: 1, kind: input, shape index: {}]   ;;  %s1830_s2 = inlined_call_operand.vmem [shape: f32[1,128], index: 2, kind: input, shape index: {}]   ;;  %s1831_s3 = inlined_call_operand.vmem [shape: bf16[128,512], index: 3, kind: input, shape index: {}]   ;;  %s1832_s4 = inlined_call_operand.vmem [shape: f32[1,512], index: 4, kind: input, shape index: {}]   ;;  %s1833_s5 = inlined_call_operand.vmem [shape: bf16[32,128], index: 5, kind: output, shape index: {0}]   ;;  %s1834_s6 = inlined_call_operand.vmem [shape: f32[32,512], index: 6, kind: output, shape index: {1}]  }
   0x1 LB: > { %s1227_s22 = sadd.s32 4294967295, %s1503_s21   ;;  %p1231_p0 = scmp.ge.s32.totalorder %s1503_s21, 1  ;;  %s1503_s21 = sphi %s1541_s21, %s17_s21  }
   0x2   : > { %p217_p1 = scmp.lt.s32.totalorder %s1503_s21, 3 }
   0x4   : > { %p218_p2 = pnand %p1231_p0, %p217_p1 }
   0x5   : > { %v1391_v0 = vld [vmem:[%s1829_s1 + $0x40] sm:$0xff] (!%p218_p2)   ;;  %v1395_v4 = vld [vmem:[%s1829_s1 + $0x48] sm:$0xff] (!%p218_p2)   ;;  %v1399_v8 = vld [vmem:[%s1829_s1 + $0x50] sm:$0xff] (!%p218_p2)   ;;  %s1232_s29 = sshll.u32 (!%p218_p2), %s1227_s22, 1  ;;  %v1505_v33 = vmov (!%p218_p2), 0   ;;  %vm678_vm0 = vcmask (!%p218_p2), 654336  }
   0x6   : > { %221 = sbr.rel (%p218_p2) target bundleno = 594 (0x252), region = 40  ;;  %v1392_v1 = vld [vmem:[%s1829_s1] sm:$0xff] (!%p218_p2)   ;;  %1337 = vmatprep.subr.bf16.mxu0 (!%p218_p2), %v1391_v0  ;;  %v1396_v5 = vld [vmem:[%s1829_s1 + $0x8] sm:$0xff] (!%p218_p2)   ;;  %v1400_v9 = vld [vmem:[%s1829_s1 + $0x10] sm:$0xff] (!%p218_p2)   ;;  %p255_p3 = scmp.lt.s32.totalorder (!%p218_p2), %s1232_s29, 3 }
   0x7   : > { %v1393_v2 = vld [vmem:[%s1829_s1 + $0xc0] sm:$0xff] (!%p218_p2)   ;;  %1338 = vmatpush3.bf16.msra.mxu0 (!%p218_p2), %v1392_v1  ;;  %v1397_v6 = vld [vmem:[%s1829_s1 + $0xc8] sm:$0xff] (!%p218_p2)   ;;  %v1401_v10 = vld [vmem:[%s1829_s1 + $0xd0] sm:$0xff] (!%p218_p2)  }
   0x8   : > { %v1394_v3 = vld [vmem:[%s1829_s1 + $0x80] sm:$0xff] (!%p218_p2)   ;;  %1359 = vmatprep.subr.bf16.mxu1 (!%p218_p2), %v1393_v2  ;;  %1339 = vmatprep.subr.bf16.mxu0 (!%p218_p2), %v1395_v4  ;;  %v1398_v7 = vld [vmem:[%s1829_s1 + $0x88] sm:$0xff] (!%p218_p2)   ;;  %v1402_v11 = vld [vmem:[%s1829_s1 + $0x90] sm:$0xff] (!%p218_p2)  }
   0x9   : > { %1360 = vmatpush3.bf16.msra.mxu1 (!%p218_p2), %v1394_v3  ;;  %v1403_v12 = vld [vmem:[%s1829_s1 + $0x58] sm:$0xff] (!%p218_p2)   ;;  %v1407_v16 = vld [vmem:[%s1829_s1 + $0x60] sm:$0xff] (!%p218_p2)   ;;  %v1411_v20 = vld [vmem:[%s1829_s1 + $0x68] sm:$0xff] (!%p218_p2)  }
   0xa   : > { %1361 = vmatprep.subr.bf16.mxu1 (!%p218_p2), %v1397_v6  ;;  %v1404_v13 = vld [vmem:[%s1829_s1 + $0x18] sm:$0xff] (!%p218_p2)   ;;  %v1408_v17 = vld [vmem:[%s1829_s1 + $0x20] sm:$0xff] (!%p218_p2)   ;;  %v1412_v21 = vld [vmem:[%s1829_s1 + $0x28] sm:$0xff] (!%p218_p2)  }
   0xb   : > { %1340 = vmatpush3.bf16.msra.mxu0 (!%p218_p2), %v1396_v5  ;;  %v1405_v14 = vld [vmem:[%s1829_s1 + $0xd8] sm:$0xff] (!%p218_p2)   ;;  %v1409_v18 = vld [vmem:[%s1829_s1 + $0xe0] sm:$0xff] (!%p218_p2)   ;;  %v1413_v22 = vld [vmem:[%s1829_s1 + $0xe8] sm:$0xff] (!%p218_p2)  }
   0xc   : > { %1341 = vmatprep.subr.bf16.mxu0 (!%p218_p2), %v1399_v8  ;;  %v1406_v15 = vld [vmem:[%s1829_s1 + $0x98] sm:$0xff] (!%p218_p2)   ;;  %v1410_v19 = vld [vmem:[%s1829_s1 + $0xa0] sm:$0xff] (!%p218_p2)   ;;  %v1414_v23 = vld [vmem:[%s1829_s1 + $0xa8] sm:$0xff] (!%p218_p2)  }
   0xd   : > { %1362 = vmatpush3.bf16.msra.mxu1 %v1398_v7  ;;  %s1836_s29 = smov (!%p255_p3, %s1232_s29), 3  ;;  %v1415_v24 = vld [vmem:[%s1829_s1 + $0x70] sm:$0xff]   ;;  %v1419_v28 = vld [vmem:[%s1829_s1 + $0x78] sm:$0xff]   ;;  %v1429_v37 = vld [vmem:[%s1829_s1 + $0x100] sm:$0xff]  }
   0xe   : > { %1363 = vmatprep.subr.bf16.mxu1 %v1401_v10  ;;  %s1381_s30 = smul.u32 24, %s1836_s29  ;;  %v1416_v25 = vld [vmem:[%s1829_s1 + $0x30] sm:$0xff]   ;;  %v1420_v29 = vld [vmem:[%s1829_s1 + $0x38] sm:$0xff]   ;;  %v1430_v38 = vld [vmem:[%s1829_s1 + $0x108] sm:$0xff]   ;;  %s1235_s20 = sshll.u32 %s1836_s29, 2 }
   0xf   : > { %1342 = vmatpush3.bf16.msra.mxu0 %v1400_v9  ;;  %v1417_v26 = vld [vmem:[%s1829_s1 + $0xf0] sm:$0xff]   ;;  %v1421_v30 = vld [vmem:[%s1829_s1 + $0xf8] sm:$0xff]   ;;  %v1433_v41 = vld [vmem:[%s1829_s1 + $0x120] sm:$0xff]   ;;  %s265_s25 = scalar_lea.vmem %s1833_s5, %s1235_s20  ;;  %s1329_s13 = sshll.u32 %s1836_s29, 5 }
  0x10   : > { %1343 = vmatprep.subr.bf16.mxu0 %v1403_v12  ;;  %v1418_v27 = vld [vmem:[%s1829_s1 + $0xb0] sm:$0xff]   ;;  %s1644_s16 = scalar_lea.vmem %s1828_s0, %s1381_s30  ;;  %v1425_v34 = vld [vmem:[%s1829_s1 + $0xb8] sm:$0xff]   ;;  %v1434_v43 = vld [vmem:[%s1829_s1 + $0x128] sm:$0xff]   ;;  %s272_s14 = scalar_lea.vmem %s1834_s6, %s1329_s13 }
  0x11   : > { %1364 = vmatpush3.bf16.msra.mxu1 %v1402_v11  ;;  %v1422_v31 = vld [vmem:[%s1644_s16] ss:$24 sps:$4 sm:$0xff]   ;;  %v1424_v32 = vld [vmem:[%s1644_s16 + $0x4] ss:$24 sps:$4 sm:$0xff]   ;;  %v1431_v39 = vld [vmem:[%s1829_s1 + $0x110] sm:$0xff]  }
  0x12   : > { %1365 = vmatprep.subr.bf16.mxu1 %v1405_v14  ;;  %714 = vmatprep.mubr.bf16.mxu0 %v1424_v32  ;;  %v1426_v35 = vld [vmem:[%s1644_s16 + $0x8] ss:$24 sps:$4 sm:$0xff]   ;;  %v1428_v36 = vld [vmem:[%s1644_s16 + $0xc] ss:$24 sps:$4 sm:$0xff]   ;;  %v1432_v40 = vld [vmem:[%s1829_s1 + $0x118] sm:$0xff]  }
  0x13   : > { %1344 = vmatpush3.bf16.msra.mxu0 %v1404_v13  ;;  %755 = vmatprep.mubr.bf16.mxu1 %v1428_v36  ;;  %v1442_v42 = vld [vmem:[%s1644_s16 + $0x14] ss:$24 sps:$4 sm:$0xff]   ;;  %v1436_v45 = vld [vmem:[%s1829_s1 + $0x138] sm:$0xff]   ;;  %v1437_v46 = vld [vmem:[%s1829_s1 + $0x140] sm:$0xff]  }
  0x14   : > { %1345 = vmatprep.subr.bf16.mxu0 %v1407_v16  ;;  %v1435_v44 = vld [vmem:[%s1829_s1 + $0x130] sm:$0xff]   ;;  %v1438_v47 = vld [vmem:[%s1829_s1 + $0x148] sm:$0xff]   ;;  %v1440_v49 = vld [vmem:[%s1829_s1 + $0x158] sm:$0xff]  }
  0x15   : > { %1366 = vmatpush3.bf16.msra.mxu1 %v1406_v15  ;;  %v1439_v48 = vld [vmem:[%s1829_s1 + $0x150] sm:$0xff]   ;;  %v1441_v50 = vld [vmem:[%s1829_s1 + $0x160] sm:$0xff]   ;;  %v1471_v4 = vld [vmem:[%s1831_s3 + $0xc] ss:$16 sps:$4 sm:$0xff]  }
  0x16   : > { %1367 = vmatprep.subr.bf16.mxu1 %v1409_v18  ;;  %v1444_v51 = vld [vmem:[%s1644_s16 + $0x10] ss:$24 sps:$4 sm:$0xff]   ;;  %v1447_v52 = vld [vmem:[%s1831_s3 + $0x4] ss:$16 sps:$4 sm:$0xff]   ;;  %v1239_v6 = vld [vmem:[%s1830_s2] ss:$0 sm:$0xff] }
  0x17   : > { %1346 = vmatpush3.bf16.msra.mxu0 %v1408_v17  ;;  %v1445_v53 = vld [vmem:[%s1831_s3] ss:$16 sps:$4 sm:$0xff]   ;;  %v1450_v54 = vld [vmem:[%s1831_s3 + $0x24] ss:$16 sps:$4 sm:$0xff]  }
  0x18   : > { %1347 = vmatprep.subr.bf16.mxu0 %v1411_v20  ;;  %v1448_v55 = vld [vmem:[%s1831_s3 + $0x20] ss:$16 sps:$4 sm:$0xff]   ;;  %v1453_v56 = vld [vmem:[%s1831_s3 + $0x44] ss:$16 sps:$4 sm:$0xff]  }
  0x19   : > { %1368 = vmatpush3.bf16.msra.mxu1 %v1410_v19  ;;  %v1451_v57 = vld [vmem:[%s1831_s3 + $0x40] ss:$16 sps:$4 sm:$0xff]   ;;  %v1456_v58 = vld [vmem:[%s1831_s3 + $0x64] ss:$16 sps:$4 sm:$0xff]  }
  0x1a   : > { %1369 = vmatprep.subr.bf16.mxu1 %v1413_v22  ;;  %v1454_v59 = vld [vmem:[%s1831_s3 + $0x60] ss:$16 sps:$4 sm:$0xff]   ;;  %v1459_v60 = vld [vmem:[%s1831_s3 + $0x84] ss:$16 sps:$4 sm:$0xff]  }
  0x1b   : > { %1348 = vmatpush3.bf16.msra.mxu0 %v1412_v21  ;;  %v1457_v61 = vld [vmem:[%s1831_s3 + $0x80] ss:$16 sps:$4 sm:$0xff]   ;;  %v1462_v62 = vld [vmem:[%s1831_s3 + $0xa4] ss:$16 sps:$4 sm:$0xff]  }
  0x1c   : > { %1349 = vmatprep.subr.bf16.mxu0 %v1415_v24  ;;  %v1460_v63 = vld [vmem:[%s1831_s3 + $0xa0] ss:$16 sps:$4 sm:$0xff]   ;;  %v1465_v0 = vld [vmem:[%s1831_s3 + $0xc4] ss:$16 sps:$4 sm:$0xff]  }
  0x1d   : > { %1370 = vmatpush3.bf16.msra.mxu1 %v1414_v23  ;;  %v1463_v1 = vld [vmem:[%s1831_s3 + $0xc0] ss:$16 sps:$4 sm:$0xff]   ;;  %v1468_v2 = vld [vmem:[%s1831_s3 + $0xe4] ss:$16 sps:$4 sm:$0xff]  }
  0x1e   : > { %1371 = vmatprep.subr.bf16.mxu1 %v1417_v26  ;;  %v1466_v3 = vld [vmem:[%s1831_s3 + $0xe0] ss:$16 sps:$4 sm:$0xff]  }
  0x1f   : > { %1350 = vmatpush3.bf16.msra.mxu0 %v1416_v25 }
  0x20   : > { %1351 = vmatprep.subr.bf16.mxu0 %v1419_v28 }
  0x21   : > { %1372 = vmatpush3.bf16.msra.mxu1 %v1418_v27 }
  0x22   : > { %1373 = vmatprep.subr.bf16.mxu1 %v1421_v30 }
  0x23   : > { %1352 = vmatpush3.bf16.msra.mxu0 %v1420_v29 }
  0x24   : > { %764 = vmatprep.subr.bf16.mxu0 %v1505_v33 }
  0x25   : > { %1374 = vmatpush3.bf16.msra.mxu1 %v1425_v34 }
  0x26   : > { %715 = vmatmul.mubr.bf16.vlgmr.msra.gmra.mrb[0].mxu0 %v1422_v31  ;;  %1041 = vmatprep.subr.bf16.mxu1 %v1447_v52  ;;  %v1492_v52 = vld [vmem:[%s1831_s3 + $0xec] ss:$16 sps:$4 sm:$0xff]  }
  0x27   : > { %765 = vmatpush1.bf16.msra.mxu0 %v1429_v37  ;;  %1291 = vmatprep.mubr.msk.bf16.mxu0 %vm678_vm0, %v1442_v42  ;;  %v1472_v42 = vld [vmem:[%s1831_s3 + $0x28] ss:$16 sps:$4 sm:$0xff]  }
  0x28   : > { %756 = vmatmul.mubr.bf16.vlgmr.msra.gmra.mrb[0].mxu1 %v1426_v35  ;;  %766 = vmatprep.subr.bf16.mxu0 %v1505_v33 }
  0x29   : > { %1073 = vmatprep.mubr.bf16.mxu1 %v1505_v33  ;;  %1042 = vmatpush1.bf16.msra.mxu1 %v1445_v53  ;;  %v1490_v53 = vld [vmem:[%s1831_s3 + $0xe8] ss:$16 sps:$4 sm:$0xff]  }
  0x2a   : > { %1043 = vmatprep.subr.bf16.mxu1 %v1450_v54  ;;  %v861_v54 = vlaneseq }
  0x2b   : > { %767 = vmatpush1.bf16.msra.mxu0 %v1430_v38 }
  0x2c   : > { %768 = vmatprep.subr.bf16.mxu0 %v1505_v33 }
  0x2d   : > { %1044 = vmatpush1.bf16.msra.mxu1 %v1448_v55  ;;  %v862_v55 = vshrl.u32 %v861_v54, 7 }
  0x2e   : > { %1045 = vmatprep.subr.bf16.mxu1 %v1453_v56 }
  0x2f   : > { %769 = vmatpush1.bf16.msra.mxu0 %v1431_v39  ;;  %v1469_v39 = vld [vmem:[%s1831_s3 + $0x8] ss:$16 sps:$4 sm:$0xff]   ;;  %v863_v56 = vsub.s32 0, %v862_v55 }
  0x30   : > { %770 = vmatprep.subr.bf16.mxu0 %v1505_v33 }
  0x31   : > { %1046 = vmatpush1.bf16.msra.mxu1 %v1451_v57  ;;  %v859_v57 = vld [vmem:[%s1832_s4] sm:$0xf] }
  0x32   : > { %1047 = vmatprep.subr.bf16.mxu1 %v1456_v58  ;;  %v867_v58 = vsub.s32 1, %v862_v55 }
  0x33   : > { %771 = vmatpush1.bf16.msra.mxu0 %v1432_v40 }
  0x34   : > { %772 = vmatprep.subr.bf16.mxu0 %v1505_v33 }
  0x35   : > { %1048 = vmatpush1.bf16.msra.mxu1 %v1454_v59  ;;  %v864_v59 = vrot.slane %v859_v57, %v863_v56 }
  0x36   : > { %1049 = vmatprep.subr.bf16.mxu1 %v1459_v60  ;;  %v868_v60 = vrot.slane %v859_v57, %v867_v58 }
  0x37   : > { %773 = vmatpush1.bf16.msra.mxu0 %v1433_v41  ;;  %v1474_v41 = vld [vmem:[%s1831_s3 + $0x2c] ss:$16 sps:$4 sm:$0xff]  }
  0x38   : > { %774 = vmatprep.subr.bf16.mxu0 %v1505_v33 }
  0x39   : > { %1050 = vmatpush1.bf16.msra.mxu1 %v1457_v61 }
  0x3a   : > { %1051 = vmatprep.subr.bf16.mxu1 %v1462_v62 }
  0x3b   : > { %775 = vmatpush1.bf16.msra.mxu0 %v1434_v43  ;;  %v1477_v43 = vld [vmem:[%s1831_s3 + $0x4c] ss:$16 sps:$4 sm:$0xff]  }
  0x3c   : > { %776 = vmatprep.subr.bf16.mxu0 %v1505_v33 }
  0x3d   : > { %1052 = vmatpush1.bf16.msra.mxu1 %v1460_v63 }
  0x3e   : > { %1053 = vmatprep.subr.bf16.mxu1 %v1465_v0 }
  0x3f   : > { %777 = vmatpush1.bf16.msra.mxu0 %v1435_v44  ;;  %v1475_v44 = vld [vmem:[%s1831_s3 + $0x48] ss:$16 sps:$4 sm:$0xff]  }
  0x40   : > { %778 = vmatprep.subr.bf16.mxu0 %v1505_v33 }
  0x41   : > { %1054 = vmatpush1.bf16.msra.mxu1 %v1463_v1 }
  0x42   : > { %1055 = vmatprep.subr.bf16.mxu1 %v1468_v2 }
  0x43   : > { %779 = vmatpush1.bf16.msra.mxu0 %v1436_v45  ;;  %v1480_v45 = vld [vmem:[%s1831_s3 + $0x6c] ss:$16 sps:$4 sm:$0xff]  }
  0x44   : > { %780 = vmatprep.subr.bf16.mxu0 %v1505_v33 }
  0x45   : > { %1056 = vmatpush1.bf16.msra.mxu1 %v1466_v3 }
  0x46   : > { %1084 = vmatprep.subr.bf16.mxu1 %v1471_v4 }
  0x47   : > { %781 = vmatpush1.bf16.msra.mxu0 %v1437_v46  ;;  %v1483_v46 = vld [vmem:[%s1831_s3 + $0x8c] ss:$16 sps:$4 sm:$0xff]  }
  0x48   : > { %782 = vmatprep.subr.bf16.mxu0 %v1505_v33 }
  0x4b   : > { %783 = vmatpush1.bf16.msra.mxu0 %v1438_v47  ;;  %v1481_v47 = vld [vmem:[%s1831_s3 + $0x88] ss:$16 sps:$4 sm:$0xff]  }
  0x4c   : > { %784 = vmatprep.subr.bf16.mxu0 %v1505_v33 }
  0x4f   : > { %785 = vmatpush1.bf16.msra.mxu0 %v1439_v48  ;;  %v1486_v48 = vld [vmem:[%s1831_s3 + $0xac] ss:$16 sps:$4 sm:$0xff]  }
  0x50   : > { %786 = vmatprep.subr.bf16.mxu0 %v1505_v33 }
  0x53   : > { %787 = vmatpush1.bf16.msra.mxu0 %v1440_v49  ;;  %v1484_v49 = vld [vmem:[%s1831_s3 + $0xa8] ss:$16 sps:$4 sm:$0xff]  }
  0x54   : > { %788 = vmatprep.subr.bf16.mxu0 %v1505_v33 }
  0x57   : > { %789 = vmatpush1.bf16.msra.mxu0 %v1441_v50  ;;  %v1489_v50 = vld [vmem:[%s1831_s3 + $0xcc] ss:$16 sps:$4 sm:$0xff]  }
  0x5a   : > { %797 = vmatmul.mubr.bf16.vlgmr.msra.gmra.mrb[4].mxu0 %v1444_v51  ;;  %v1487_v51 = vld [vmem:[%s1831_s3 + $0xc8] ss:$16 sps:$4 sm:$0xff]  }
  0xf9   : > { %v1353_v5 = vpop.f32.mrb[0].mxu0 }
  0xfa   : > { %v1354_v7 = vpop.f32.mrb[1].mxu0 }
  0xfb   : > { %v1355_v8 = vadd.f32 %v1354_v7, %v1353_v5  ;;  %v1356_v9 = vpop.f32.mrb[2].mxu0  ;;  %v1375_v10 = vpop.f32.mrb[0].mxu1  ;;  %v871_v5 = vsub.s32 2, %v862_v55 }
  0xfc   : > { %v1357_v11 = vpop.f32.mrb[3].mxu0  ;;  %v1376_v14 = vpop.f32.mrb[1].mxu1 }
  0xfd   : > { %v717_v12 = vadd.f32 %v1355_v8, %v1239_v6  ;;  %v1358_v13 = vadd.f32 %v1357_v11, %v1356_v9  ;;  %v1377_v15 = vadd.f32 %v1376_v14, %v1375_v10  ;;  %v1378_v16 = vpop.f32.mrb[2].mxu1  ;;  %v872_v7 = vrot.slane %v859_v57, %v871_v5 }
  0xfe   : > { %v1379_v18 = vpop.f32.mrb[3].mxu1 }
  0xff   : > { %v720_v17 = vadd.f32 %v1358_v13, %v1239_v6  ;;  %v1380_v19 = vadd.f32 %v1379_v18, %v1378_v16  ;;  %v758_v20 = vadd.f32 %v1377_v15, %v717_v12  ;;  %v875_v6 = vsub.s32 3, %v862_v55 }
 0x101   : > { %v761_v21 = vadd.f32 %v1380_v19, %v720_v17  ;;  %v876_v8 = vrot.slane %v859_v57, %v875_v6 }
 0x12d   : > { %v798_v22 = vpop.f32.mrb[4].mxu0 }
 0x12e   : > { %v799_v23 = vadd.f32 %v798_v22, %v758_v20  ;;  %v800_v24 = vpop.f32.mrb[5].mxu0 }
 0x12f   : > { %v801_v25 = vpop.f32.mrb[6].mxu0 }
 0x130   : > { %v802_v26 = vadd.f32 %v801_v25, %v761_v21  ;;  %v803_v27 = vpop.f32.mrb[7].mxu0 }
 0x132   : > { %v805_v28 = vpack.c.bf16 %v802_v26, %v799_v23 }
 0x134   : > { %v1292_v29 = vmul.bf16 3216621497, %v805_v28 }
 0x136   : > { %1493 = vpow.bf16 %v1292_v29 }
 0x141   : > { %v1494_v30 = vpop.eup %1493 }
 0x142   : > { %v810_v31 = vadd.bf16 1065369472, %v1494_v30 }
 0x144   : > { %1495 = vrcp.bf16 %v810_v31 }
 0x14f   : > { %v1496_v32 = vpop.eup %1495 }
 0x150   : > { %v812_v34 = vmul.bf16 1065369472, %v1496_v32 }
 0x152   : > { %v813_v35 = vunpack.c.l.bf16 %v812_v34  ;;  %v814_v36 = vunpack.c.h.bf16 %v812_v34 }
 0x154   : > { %v815_v37 = vmul.f32 %v813_v35, %v799_v23  ;;  %v816_v38 = vmul.f32 %v814_v36, %v802_v26 }
 0x156   : > { %v817_v40 = vpack.c.bf16 %v816_v38, %v815_v37 }
 0x158   : > { %1336 = vst [vmem:[%s265_s25] sm:$0xff] %v817_v40   ;;  %1074 = vmatmul.mubr.bf16.vlgmr.msra.gmra.mrb[4].mxu1 %v817_v40 }
 0x159   : > { %1085 = vmatpush1.bf16.msra.mxu1 %v1469_v39  ;;  %1116 = vmatprep.mubr.bf16.mxu1 %v1505_v33  ;;  %v1478_v33 = vld [vmem:[%s1831_s3 + $0x68] ss:$16 sps:$4 sm:$0xff]  }
 0x15a   : > { %1086 = vmatprep.subr.bf16.mxu1 %v1474_v41 }
 0x15d   : > { %1087 = vmatpush1.bf16.msra.mxu1 %v1472_v42 }
 0x15e   : > { %1088 = vmatprep.subr.bf16.mxu1 %v1477_v43 }
 0x161   : > { %1089 = vmatpush1.bf16.msra.mxu1 %v1475_v44 }
 0x162   : > { %1090 = vmatprep.subr.bf16.mxu1 %v1480_v45 }
 0x165   : > { %1091 = vmatpush1.bf16.msra.mxu1 %v1478_v33 }
 0x166   : > { %1092 = vmatprep.subr.bf16.mxu1 %v1483_v46 }
 0x169   : > { %1093 = vmatpush1.bf16.msra.mxu1 %v1481_v47 }
 0x16a   : > { %1094 = vmatprep.subr.bf16.mxu1 %v1486_v48 }
 0x16d   : > { %1095 = vmatpush1.bf16.msra.mxu1 %v1484_v49 }
 0x16e   : > { %1096 = vmatprep.subr.bf16.mxu1 %v1489_v50 }
 0x171   : > { %1097 = vmatpush1.bf16.msra.mxu1 %v1487_v51 }
 0x172   : > { %1098 = vmatprep.subr.bf16.mxu1 %v1492_v52 }
 0x175   : > { %1099 = vmatpush1.bf16.msra.mxu1 %v1490_v53 }
 0x178   : > { %1117 = vmatmul.mubr.bf16.vlgmr.msra.gmra.mrb[8].mxu1 %v817_v40 }
 0x22b   : > { %v1075_v61 = vpop.f32.mrb[4].mxu1 }
 0x22c   : > { %v1076_v62 = vadd.f32 %v1075_v61, %v864_v59  ;;  %v1077_v63 = vpop.f32.mrb[5].mxu1 }
 0x22d   : > { %v1078_v0 = vadd.f32 %v1077_v63, %v868_v60  ;;  %v1079_v1 = vpop.f32.mrb[6].mxu1 }
 0x22e   : > { %1127 = vst [vmem:[%s272_s14] sm:$0xff] %v1076_v62  ;;  %v1080_v2 = vadd.f32 %v1079_v1, %v864_v59  ;;  %v1081_v3 = vpop.f32.mrb[7].mxu1 }
 0x22f   : > { %1128 = vst [vmem:[%s272_s14 + $0x8] sm:$0xff] %v1078_v0  ;;  %v1082_v4 = vadd.f32 %v1081_v3, %v868_v60 }
 0x230   : > { %1131 = vst [vmem:[%s272_s14 + $0x20] sm:$0xff] %v1080_v2 }
 0x231   : > { %1132 = vst [vmem:[%s272_s14 + $0x28] sm:$0xff] %v1082_v4 }
 0x24b   : > { %v1118_v9 = vpop.f32.mrb[8].mxu1 }
 0x24c   : > { %v1119_v10 = vadd.f32 %v1118_v9, %v872_v7  ;;  %v1120_v11 = vpop.f32.mrb[9].mxu1 }
 0x24d   : > { %v1121_v12 = vadd.f32 %v1120_v11, %v876_v8  ;;  %v1122_v13 = vpop.f32.mrb[10].mxu1 }
 0x24e   : > { %1129 = vst [vmem:[%s272_s14 + $0x10] sm:$0xff] %v1119_v10  ;;  %v1123_v14 = vadd.f32 %v1122_v13, %v872_v7  ;;  %v1124_v15 = vpop.f32.mrb[11].mxu1 }
 0x24f   : > { %1130 = vst [vmem:[%s272_s14 + $0x18] sm:$0xff] %v1121_v12  ;;  %v1125_v16 = vadd.f32 %v1124_v15, %v876_v8 }
 0x250   : > { %1133 = vst [vmem:[%s272_s14 + $0x30] sm:$0xff] %v1123_v14 }
 0x251   : > { %1134 = vst [vmem:[%s272_s14 + $0x38] sm:$0xff] %v1125_v16 }
 0x252 PF: > { %s17_s21 = sadd.s32 1, %s1503_s21  }
 0x253   : > { %p14_p4 = scmp.ge.s32.totalorder %s17_s21, 4  }
 0x255   :  { %16 = sbr.rel (!%p14_p4) target bundleno = 1 (0x1), region = 82 }

// kernel: custom_backbone_forward.12
= control target key start
LH: loop header
LB: loop body
LE: loop exit
PB: predicated region body
PF: predicated region fallthrough
CT: control target
= control target key end

     0   :  { %vm831_vm0 = vcmask 916480   ;;  %s1850_s1 = inlined_call_operand.vmem [shape: bf16[1008,256], index: 1, kind: input, shape index: {}]   ;;  %s1851_s0 = inlined_call_operand.vmem [shape: bf16[16,1008], index: 0, kind: input, shape index: {}]   ;;  %s1852_s2 = inlined_call_operand.vmem [shape: f32[1,256], index: 2, kind: input, shape index: {}]   ;;  %s1853_s3 = inlined_call_operand.vmem [shape: bf16[16,256], index: 3, kind: output, shape index: {}]  }
   0x1   :  { %v1206_v0 = vld [vmem:[%s1850_s1 + $0x4] ss:$8 sps:$4 sm:$0xff]   ;;  %v1210_v2 = vld [vmem:[%s1850_s1] ss:$8 sps:$4 sm:$0xff]   ;;  %v1212_v4 = vld [vmem:[%s1850_s1 + $0x14] ss:$8 sps:$4 sm:$0xff]  }
   0x2   :  { %v1208_v1 = vld [vmem:[%s1850_s1 + $0x204] ss:$8 sps:$4 sm:$0xff]   ;;  %835 = vmatprep.subr.bf16.mxu1 %v1206_v0  ;;  %v1211_v3 = vld [vmem:[%s1850_s1 + $0x200] ss:$8 sps:$4 sm:$0xff]   ;;  %v1214_v5 = vld [vmem:[%s1850_s1 + $0x214] ss:$8 sps:$4 sm:$0xff]  }
   0x3   :  { %921 = vmatprep.subr.bf16.mxu0 %v1208_v1  ;;  %836 = vmatpush1.bf16.msra.mxu1 %v1210_v2  ;;  %v1216_v6 = vld [vmem:[%s1850_s1 + $0x10] ss:$8 sps:$4 sm:$0xff]   ;;  %v1218_v8 = vld [vmem:[%s1850_s1 + $0x24] ss:$8 sps:$4 sm:$0xff]   ;;  %v1222_v10 = vld [vmem:[%s1850_s1 + $0x20] ss:$8 sps:$4 sm:$0xff]  }
   0x4   :  { %922 = vmatpush1.bf16.msra.mxu0 %v1211_v3  ;;  %837 = vmatprep.subr.bf16.mxu1 %v1212_v4  ;;  %v1217_v7 = vld [vmem:[%s1850_s1 + $0x210] ss:$8 sps:$4 sm:$0xff]   ;;  %v1220_v9 = vld [vmem:[%s1850_s1 + $0x224] ss:$8 sps:$4 sm:$0xff]   ;;  %v1223_v11 = vld [vmem:[%s1850_s1 + $0x220] ss:$8 sps:$4 sm:$0xff]  }
   0x5   :  { %923 = vmatprep.subr.bf16.mxu0 %v1214_v5  ;;  %v1224_v12 = vld [vmem:[%s1850_s1 + $0x34] ss:$8 sps:$4 sm:$0xff]   ;;  %v1228_v14 = vld [vmem:[%s1850_s1 + $0x30] ss:$8 sps:$4 sm:$0xff]   ;;  %v1230_v16 = vld [vmem:[%s1850_s1 + $0x44] ss:$8 sps:$4 sm:$0xff]  }
   0x6   :  { %v1226_v13 = vld [vmem:[%s1850_s1 + $0x234] ss:$8 sps:$4 sm:$0xff]   ;;  %v1229_v15 = vld [vmem:[%s1850_s1 + $0x230] ss:$8 sps:$4 sm:$0xff]   ;;  %v1232_v17 = vld [vmem:[%s1850_s1 + $0x244] ss:$8 sps:$4 sm:$0xff]  }
   0x7   :  { %838 = vmatpush1.bf16.msra.mxu1 %v1216_v6  ;;  %v1234_v18 = vld [vmem:[%s1850_s1 + $0x40] ss:$8 sps:$4 sm:$0xff]   ;;  %v1236_v20 = vld [vmem:[%s1850_s1 + $0x54] ss:$8 sps:$4 sm:$0xff]   ;;  %v1240_v22 = vld [vmem:[%s1850_s1 + $0x50] ss:$8 sps:$4 sm:$0xff]  }
   0x8   :  { %924 = vmatpush1.bf16.msra.mxu0 %v1217_v7  ;;  %839 = vmatprep.subr.bf16.mxu1 %v1218_v8  ;;  %v1235_v19 = vld [vmem:[%s1850_s1 + $0x240] ss:$8 sps:$4 sm:$0xff]   ;;  %v1238_v21 = vld [vmem:[%s1850_s1 + $0x254] ss:$8 sps:$4 sm:$0xff]   ;;  %v1241_v23 = vld [vmem:[%s1850_s1 + $0x250] ss:$8 sps:$4 sm:$0xff]  }
   0x9   :  { %925 = vmatprep.subr.bf16.mxu0 %v1220_v9  ;;  %v1242_v24 = vld [vmem:[%s1850_s1 + $0x64] ss:$8 sps:$4 sm:$0xff]   ;;  %v1246_v26 = vld [vmem:[%s1850_s1 + $0x60] ss:$8 sps:$4 sm:$0xff]   ;;  %v1248_v28 = vld [vmem:[%s1850_s1 + $0x74] ss:$8 sps:$4 sm:$0xff]  }
   0xa   :  { %v1244_v25 = vld [vmem:[%s1850_s1 + $0x264] ss:$8 sps:$4 sm:$0xff]   ;;  %v1247_v27 = vld [vmem:[%s1850_s1 + $0x260] ss:$8 sps:$4 sm:$0xff]   ;;  %v1250_v29 = vld [vmem:[%s1850_s1 + $0x274] ss:$8 sps:$4 sm:$0xff]  }
   0xb   :  { %840 = vmatpush1.bf16.msra.mxu1 %v1222_v10  ;;  %v1252_v30 = vld [vmem:[%s1850_s1 + $0x70] ss:$8 sps:$4 sm:$0xff]   ;;  %v1254_v32 = vld [vmem:[%s1850_s1 + $0x84] ss:$8 sps:$4 sm:$0xff]   ;;  %v1258_v34 = vld [vmem:[%s1850_s1 + $0x80] ss:$8 sps:$4 sm:$0xff]  }
   0xc   :  { %926 = vmatpush1.bf16.msra.mxu0 %v1223_v11  ;;  %841 = vmatprep.subr.bf16.mxu1 %v1224_v12  ;;  %v1253_v31 = vld [vmem:[%s1850_s1 + $0x270] ss:$8 sps:$4 sm:$0xff]   ;;  %v1256_v33 = vld [vmem:[%s1850_s1 + $0x284] ss:$8 sps:$4 sm:$0xff]   ;;  %v1259_v35 = vld [vmem:[%s1850_s1 + $0x280] ss:$8 sps:$4 sm:$0xff]  }
   0xd   :  { %927 = vmatprep.subr.bf16.mxu0 %v1226_v13  ;;  %v1260_v36 = vld [vmem:[%s1850_s1 + $0x94] ss:$8 sps:$4 sm:$0xff]   ;;  %v1264_v38 = vld [vmem:[%s1850_s1 + $0x90] ss:$8 sps:$4 sm:$0xff]   ;;  %v1266_v40 = vld [vmem:[%s1850_s1 + $0xa4] ss:$8 sps:$4 sm:$0xff]  }
   0xe   :  { %v1262_v37 = vld [vmem:[%s1850_s1 + $0x294] ss:$8 sps:$4 sm:$0xff]   ;;  %v1265_v39 = vld [vmem:[%s1850_s1 + $0x290] ss:$8 sps:$4 sm:$0xff]   ;;  %v1268_v41 = vld [vmem:[%s1850_s1 + $0x2a4] ss:$8 sps:$4 sm:$0xff]  }
   0xf   :  { %842 = vmatpush1.bf16.msra.mxu1 %v1228_v14  ;;  %v1270_v42 = vld [vmem:[%s1850_s1 + $0xa0] ss:$8 sps:$4 sm:$0xff]   ;;  %v1272_v44 = vld [vmem:[%s1850_s1 + $0xb4] ss:$8 sps:$4 sm:$0xff]   ;;  %v1276_v46 = vld [vmem:[%s1850_s1 + $0xb0] ss:$8 sps:$4 sm:$0xff]  }
  0x10   :  { %928 = vmatpush1.bf16.msra.mxu0 %v1229_v15  ;;  %843 = vmatprep.subr.bf16.mxu1 %v1230_v16  ;;  %v1271_v43 = vld [vmem:[%s1850_s1 + $0x2a0] ss:$8 sps:$4 sm:$0xff]   ;;  %v1274_v45 = vld [vmem:[%s1850_s1 + $0x2b4] ss:$8 sps:$4 sm:$0xff]   ;;  %v1277_v47 = vld [vmem:[%s1850_s1 + $0x2b0] ss:$8 sps:$4 sm:$0xff]  }
  0x11   :  { %929 = vmatprep.subr.bf16.mxu0 %v1232_v17  ;;  %v16_v48 = vld [vmem:[%s1851_s0] sm:$0xff]  ;;  %v18_v53 = vld [vmem:[%s1851_s0 + $0x10] sm:$0xff] }
  0x12   :  { %v20_v49 = vld [vmem:[%s1851_s0 + $0x20] sm:$0xff]  ;;  %v22_v54 = vld [vmem:[%s1851_s0 + $0x30] sm:$0xff] }
  0x13   :  { %844 = vmatpush1.bf16.msra.mxu1 %v1234_v18  ;;  %v1278_v50 = vld [vmem:[%s1850_s1 + $0xc4] ss:$8 sps:$4 sm:$0xff]   ;;  %v1050_v52 = vcombine.high %v16_v48, %v20_v49  ;;  %v1054_v55 = vcombine.high %v18_v53, %v22_v54  ;;  %v1282_v56 = vld [vmem:[%s1850_s1 + $0xc0] ss:$8 sps:$4 sm:$0xff]   ;;  %v1284_v58 = vld [vmem:[%s1850_s1 + $0xd4] ss:$8 sps:$4 sm:$0xff]   ;;  %v1049_v8 = vcombine.low %v16_v48, %v20_v49  ;;  %v1053_v10 = vcombine.low %v18_v53, %v22_v54 }
  0x14   :  { %930 = vmatpush1.bf16.msra.mxu0 %v1235_v19  ;;  %845 = vmatprep.subr.bf16.mxu1 %v1236_v20  ;;  %v1280_v51 = vld [vmem:[%s1850_s1 + $0x2c4] ss:$8 sps:$4 sm:$0xff]   ;;  %v1283_v57 = vld [vmem:[%s1850_s1 + $0x2c0] ss:$8 sps:$4 sm:$0xff]   ;;  %v1286_v59 = vld [vmem:[%s1850_s1 + $0x2d4] ss:$8 sps:$4 sm:$0xff]  }
  0x15   :  { %931 = vmatprep.subr.bf16.mxu0 %v1238_v21  ;;  %867 = vmatprep.mubr.bf16.mxu1 %v1050_v52  ;;  %v1288_v60 = vld [vmem:[%s1850_s1 + $0xd0] ss:$8 sps:$4 sm:$0xff]   ;;  %v1290_v62 = vld [vmem:[%s1850_s1 + $0xe4] ss:$8 sps:$4 sm:$0xff]   ;;  %v1294_v0 = vld [vmem:[%s1850_s1 + $0xe0] ss:$8 sps:$4 sm:$0xff]  }
  0x16   :  { %953 = vmatprep.mubr.bf16.mxu0 %v1054_v55  ;;  %v1289_v61 = vld [vmem:[%s1850_s1 + $0x2d0] ss:$8 sps:$4 sm:$0xff]   ;;  %v1292_v63 = vld [vmem:[%s1850_s1 + $0x2e4] ss:$8 sps:$4 sm:$0xff]   ;;  %v1295_v1 = vld [vmem:[%s1850_s1 + $0x2e0] ss:$8 sps:$4 sm:$0xff]  }
  0x17   :  { %846 = vmatpush1.bf16.msra.mxu1 %v1240_v22  ;;  %v1296_v2 = vld [vmem:[%s1850_s1 + $0xf4] ss:$8 sps:$4 sm:$0xff]   ;;  %v1300_v4 = vld [vmem:[%s1850_s1 + $0xf0] ss:$8 sps:$4 sm:$0xff]   ;;  %v1304_v6 = vld [vmem:[%s1850_s1 + $0x104] ss:$8 sps:$4 sm:$0xff]  }
  0x18   :  { %932 = vmatpush1.bf16.msra.mxu0 %v1241_v23  ;;  %847 = vmatprep.subr.bf16.mxu1 %v1242_v24  ;;  %v1298_v3 = vld [vmem:[%s1850_s1 + $0x2f4] ss:$8 sps:$4 sm:$0xff]   ;;  %v1301_v5 = vld [vmem:[%s1850_s1 + $0x2f0] ss:$8 sps:$4 sm:$0xff]   ;;  %v1307_v7 = vld [vmem:[%s1850_s1 + $0x304] ss:$8 sps:$4 sm:$0xff]  }
  0x19   :  { %933 = vmatprep.subr.bf16.mxu0 %v1244_v25  ;;  %v1302_v9 = vld [vmem:[%s1850_s1 + $0x100] ss:$8 sps:$4 sm:$0xff]   ;;  %v1310_v12 = vld [vmem:[%s1850_s1 + $0x114] ss:$8 sps:$4 sm:$0xff]   ;;  %v1308_v14 = vld [vmem:[%s1850_s1 + $0x110] ss:$8 sps:$4 sm:$0xff]  }
  0x1a   :  { %v1305_v11 = vld [vmem:[%s1850_s1 + $0x300] ss:$8 sps:$4 sm:$0xff]   ;;  %v1313_v13 = vld [vmem:[%s1850_s1 + $0x314] ss:$8 sps:$4 sm:$0xff]   ;;  %v1311_v15 = vld [vmem:[%s1850_s1 + $0x310] ss:$8 sps:$4 sm:$0xff]  }
  0x1b   :  { %848 = vmatpush1.bf16.msra.mxu1 %v1246_v26  ;;  %v1316_v16 = vld [vmem:[%s1850_s1 + $0x124] ss:$8 sps:$4 sm:$0xff]   ;;  %v1314_v18 = vld [vmem:[%s1850_s1 + $0x120] ss:$8 sps:$4 sm:$0xff]   ;;  %v1322_v20 = vld [vmem:[%s1850_s1 + $0x134] ss:$8 sps:$4 sm:$0xff]  }
  0x1c   :  { %934 = vmatpush1.bf16.msra.mxu0 %v1247_v27  ;;  %849 = vmatprep.subr.bf16.mxu1 %v1248_v28  ;;  %v1319_v17 = vld [vmem:[%s1850_s1 + $0x324] ss:$8 sps:$4 sm:$0xff]   ;;  %v1317_v19 = vld [vmem:[%s1850_s1 + $0x320] ss:$8 sps:$4 sm:$0xff]   ;;  %v1325_v21 = vld [vmem:[%s1850_s1 + $0x334] ss:$8 sps:$4 sm:$0xff]  }
  0x1d   :  { %935 = vmatprep.subr.bf16.mxu0 %v1250_v29  ;;  %v1320_v22 = vld [vmem:[%s1850_s1 + $0x130] ss:$8 sps:$4 sm:$0xff]   ;;  %v1328_v24 = vld [vmem:[%s1850_s1 + $0x144] ss:$8 sps:$4 sm:$0xff]   ;;  %v1326_v26 = vld [vmem:[%s1850_s1 + $0x140] ss:$8 sps:$4 sm:$0xff]  }
  0x1e   :  { %v1323_v23 = vld [vmem:[%s1850_s1 + $0x330] ss:$8 sps:$4 sm:$0xff]   ;;  %v1331_v25 = vld [vmem:[%s1850_s1 + $0x344] ss:$8 sps:$4 sm:$0xff]   ;;  %v1329_v27 = vld [vmem:[%s1850_s1 + $0x340] ss:$8 sps:$4 sm:$0xff]  }
  0x1f   :  { %850 = vmatpush1.bf16.msra.mxu1 %v1252_v30  ;;  %v1334_v28 = vld [vmem:[%s1850_s1 + $0x154] ss:$8 sps:$4 sm:$0xff]   ;;  %v1332_v30 = vld [vmem:[%s1850_s1 + $0x150] ss:$8 sps:$4 sm:$0xff]   ;;  %v1350_v48 = vld [vmem:[%s1850_s1 + $0x180] ss:$8 sps:$4 sm:$0xff]  }
  0x20   :  { %936 = vmatpush1.bf16.msra.mxu0 %v1253_v31  ;;  %851 = vmatprep.subr.bf16.mxu1 %v1254_v32  ;;  %v1337_v29 = vld [vmem:[%s1850_s1 + $0x354] ss:$8 sps:$4 sm:$0xff]   ;;  %v1335_v31 = vld [vmem:[%s1850_s1 + $0x350] ss:$8 sps:$4 sm:$0xff]   ;;  %v1353_v49 = vld [vmem:[%s1850_s1 + $0x380] ss:$8 sps:$4 sm:$0xff]  }
  0x21   :  { %937 = vmatprep.subr.bf16.mxu0 %v1256_v33  ;;  %v1702_v32 = vld [vmem:[%s1851_s0 + $0x18] sm:$0xff]  ;;  %v1364_v54 = vld [vmem:[%s1850_s1 + $0x1a4] ss:$8 sps:$4 sm:$0xff]  }
  0x22   :  { %v1707_v33 = vld [vmem:[%s1851_s0 + $0x38] sm:$0xff]  ;;  %v1367_v55 = vld [vmem:[%s1850_s1 + $0x3a4] ss:$8 sps:$4 sm:$0xff]  }
  0x23   :  { %852 = vmatpush1.bf16.msra.mxu1 %v1258_v34  ;;  %v1340_v34 = vld [vmem:[%s1850_s1 + $0x164] ss:$8 sps:$4 sm:$0xff]   ;;  %v1356_v52 = vld [vmem:[%s1850_s1 + $0x190] ss:$8 sps:$4 sm:$0xff]  }
  0x24   :  { %938 = vmatpush1.bf16.msra.mxu0 %v1259_v35  ;;  %853 = vmatprep.subr.bf16.mxu1 %v1260_v36  ;;  %v1343_v35 = vld [vmem:[%s1850_s1 + $0x364] ss:$8 sps:$4 sm:$0xff]   ;;  %v1056_v36 = vcombine.high %v1702_v32, %v1707_v33  ;;  %v1359_v53 = vld [vmem:[%s1850_s1 + $0x390] ss:$8 sps:$4 sm:$0xff]  }
  0x25   :  { %939 = vmatprep.subr.bf16.mxu0 %v1262_v37  ;;  %v1720_v37 = vld [vmem:[%s1851_s0 + $0x8] sm:$0xff] }
  0x27   :  { %854 = vmatpush1.bf16.msra.mxu1 %v1264_v38  ;;  %v1725_v38 = vld [vmem:[%s1851_s0 + $0x28] sm:$0xff] }
  0x28   :  { %940 = vmatpush1.bf16.msra.mxu0 %v1265_v39  ;;  %855 = vmatprep.subr.bf16.mxu1 %v1266_v40  ;;  %v1052_v39 = vcombine.high %v1720_v37, %v1725_v38  ;;  %v1338_v40 = vld [vmem:[%s1850_s1 + $0x160] ss:$8 sps:$4 sm:$0xff]  }
  0x29   :  { %941 = vmatprep.subr.bf16.mxu0 %v1268_v41  ;;  %v1341_v41 = vld [vmem:[%s1850_s1 + $0x360] ss:$8 sps:$4 sm:$0xff]  }
  0x2b   :  { %856 = vmatpush1.bf16.msra.mxu1 %v1270_v42  ;;  %v1346_v42 = vld [vmem:[%s1850_s1 + $0x174] ss:$8 sps:$4 sm:$0xff]  }
  0x2c   :  { %942 = vmatpush1.bf16.msra.mxu0 %v1271_v43  ;;  %857 = vmatprep.subr.bf16.mxu1 %v1272_v44  ;;  %v1349_v43 = vld [vmem:[%s1850_s1 + $0x374] ss:$8 sps:$4 sm:$0xff]   ;;  %v1344_v44 = vld [vmem:[%s1850_s1 + $0x170] ss:$8 sps:$4 sm:$0xff]  }
  0x2d   :  { %943 = vmatprep.subr.bf16.mxu0 %v1274_v45  ;;  %v1347_v45 = vld [vmem:[%s1850_s1 + $0x370] ss:$8 sps:$4 sm:$0xff]  }
  0x2f   :  { %858 = vmatpush1.bf16.msra.mxu1 %v1276_v46  ;;  %v1352_v46 = vld [vmem:[%s1850_s1 + $0x184] ss:$8 sps:$4 sm:$0xff]  }
  0x30   :  { %944 = vmatpush1.bf16.msra.mxu0 %v1277_v47  ;;  %859 = vmatprep.subr.bf16.mxu1 %v1278_v50  ;;  %v1355_v47 = vld [vmem:[%s1850_s1 + $0x384] ss:$8 sps:$4 sm:$0xff]   ;;  %v1358_v50 = vld [vmem:[%s1850_s1 + $0x194] ss:$8 sps:$4 sm:$0xff]  }
  0x31   :  { %945 = vmatprep.subr.bf16.mxu0 %v1280_v51  ;;  %v1361_v51 = vld [vmem:[%s1850_s1 + $0x394] ss:$8 sps:$4 sm:$0xff]  }
  0x33   :  { %860 = vmatpush1.bf16.msra.mxu1 %v1282_v56  ;;  %v1362_v56 = vld [vmem:[%s1850_s1 + $0x1a0] ss:$8 sps:$4 sm:$0xff]  }
  0x34   :  { %946 = vmatpush1.bf16.msra.mxu0 %v1283_v57  ;;  %861 = vmatprep.subr.bf16.mxu1 %v1284_v58  ;;  %v1365_v57 = vld [vmem:[%s1850_s1 + $0x3a0] ss:$8 sps:$4 sm:$0xff]   ;;  %v1370_v58 = vld [vmem:[%s1850_s1 + $0x1b4] ss:$8 sps:$4 sm:$0xff]  }
  0x35   :  { %947 = vmatprep.subr.bf16.mxu0 %v1286_v59  ;;  %v1373_v59 = vld [vmem:[%s1850_s1 + $0x3b4] ss:$8 sps:$4 sm:$0xff]  }
  0x37   :  { %862 = vmatpush1.bf16.msra.mxu1 %v1288_v60  ;;  %v1368_v60 = vld [vmem:[%s1850_s1 + $0x1b0] ss:$8 sps:$4 sm:$0xff]  }
  0x38   :  { %948 = vmatpush1.bf16.msra.mxu0 %v1289_v61  ;;  %863 = vmatprep.subr.bf16.mxu1 %v1290_v62  ;;  %v1371_v61 = vld [vmem:[%s1850_s1 + $0x3b0] ss:$8 sps:$4 sm:$0xff]   ;;  %v1376_v62 = vld [vmem:[%s1850_s1 + $0x1c4] ss:$8 sps:$4 sm:$0xff]  }
  0x39   :  { %949 = vmatprep.subr.bf16.mxu0 %v1292_v63  ;;  %v1379_v63 = vld [vmem:[%s1850_s1 + $0x3c4] ss:$8 sps:$4 sm:$0xff]  }
  0x3b   :  { %864 = vmatpush1.bf16.msra.mxu1 %v1294_v0  ;;  %v1374_v0 = vld [vmem:[%s1850_s1 + $0x1c0] ss:$8 sps:$4 sm:$0xff]  }
  0x3c   :  { %950 = vmatpush1.bf16.msra.mxu0 %v1295_v1  ;;  %865 = vmatprep.subr.bf16.mxu1 %v1296_v2  ;;  %v1377_v1 = vld [vmem:[%s1850_s1 + $0x3c0] ss:$8 sps:$4 sm:$0xff]   ;;  %v1382_v2 = vld [vmem:[%s1850_s1 + $0x1d4] ss:$8 sps:$4 sm:$0xff]  }
  0x3d   :  { %951 = vmatprep.subr.bf16.mxu0 %v1298_v3  ;;  %v1385_v3 = vld [vmem:[%s1850_s1 + $0x3d4] ss:$8 sps:$4 sm:$0xff]  }
  0x3f   :  { %866 = vmatpush1.bf16.msra.mxu1 %v1300_v4  ;;  %v1380_v4 = vld [vmem:[%s1850_s1 + $0x1d0] ss:$8 sps:$4 sm:$0xff]  }
  0x40   :  { %952 = vmatpush1.bf16.msra.mxu0 %v1301_v5  ;;  %878 = vmatprep.subr.bf16.mxu1 %v1304_v6  ;;  %v1383_v5 = vld [vmem:[%s1850_s1 + $0x3d0] ss:$8 sps:$4 sm:$0xff]   ;;  %v1388_v6 = vld [vmem:[%s1850_s1 + $0x1e4] ss:$8 sps:$4 sm:$0xff]  }
  0x41   :  { %964 = vmatprep.subr.bf16.mxu0 %v1307_v7  ;;  %v1391_v7 = vld [vmem:[%s1850_s1 + $0x3e4] ss:$8 sps:$4 sm:$0xff]  }
  0x42   :  { %868 = vmatmul.mubr.bf16.vlgmr.msra.gmra.mrb[0].mxu1 %v1049_v8  ;;  %v1386_v8 = vld [vmem:[%s1850_s1 + $0x1e0] ss:$8 sps:$4 sm:$0xff]  }
  0x43   :  { %954 = vmatmul.mubr.bf16.vlgmr.msra.gmra.mrb[0].mxu0 %v1053_v10  ;;  %879 = vmatpush1.bf16.msra.mxu1 %v1302_v9  ;;  %v1389_v9 = vld [vmem:[%s1850_s1 + $0x3e0] ss:$8 sps:$4 sm:$0xff]   ;;  %v1394_v10 = vld [vmem:[%s1850_s1 + $0x1f4] ss:$8 sps:$4 sm:$0xff]  }
  0x44   :  { %965 = vmatpush1.bf16.msra.mxu0 %v1305_v11  ;;  %880 = vmatprep.subr.bf16.mxu1 %v1310_v12  ;;  %v1055_v11 = vcombine.low %v1702_v32, %v1707_v33  ;;  %v1392_v12 = vld [vmem:[%s1850_s1 + $0x1f0] ss:$8 sps:$4 sm:$0xff]  }
  0x45   :  { %966 = vmatprep.subr.bf16.mxu0 %v1313_v13  ;;  %1183 = vmatprep.mubr.msk.bf16.mxu0 %vm831_vm0, %v1056_v36  ;;  %v1051_v13 = vcombine.low %v1720_v37, %v1725_v38 }
  0x46   :  { %910 = vmatprep.mubr.bf16.mxu1 %v1052_v39 }
  0x47   :  { %881 = vmatpush1.bf16.msra.mxu1 %v1308_v14  ;;  %v152_v14 = vlaneseq }
  0x48   :  { %967 = vmatpush1.bf16.msra.mxu0 %v1311_v15  ;;  %882 = vmatprep.subr.bf16.mxu1 %v1316_v16 }
  0x49   :  { %968 = vmatprep.subr.bf16.mxu0 %v1319_v17  ;;  %v153_v15 = vshrl.u32 %v152_v14, 7  ;;  %v150_v17 = vld [vmem:[%s1852_s2] sm:$0x3] }
  0x4b   :  { %883 = vmatpush1.bf16.msra.mxu1 %v1314_v18  ;;  %v154_v16 = vsub.s32 0, %v153_v15  ;;  %v158_v18 = vsub.s32 1, %v153_v15 }
  0x4c   :  { %969 = vmatpush1.bf16.msra.mxu0 %v1317_v19  ;;  %884 = vmatprep.subr.bf16.mxu1 %v1322_v20 }
  0x4d   :  { %970 = vmatprep.subr.bf16.mxu0 %v1325_v21  ;;  %v155_v21 = vrot.slane %v150_v17, %v154_v16 }
  0x4f   :  { %885 = vmatpush1.bf16.msra.mxu1 %v1320_v22 }
  0x50   :  { %971 = vmatpush1.bf16.msra.mxu0 %v1323_v23  ;;  %886 = vmatprep.subr.bf16.mxu1 %v1328_v24  ;;  %v159_v23 = vrot.slane %v150_v17, %v158_v18 }
  0x51   :  { %972 = vmatprep.subr.bf16.mxu0 %v1331_v25 }
  0x53   :  { %887 = vmatpush1.bf16.msra.mxu1 %v1326_v26 }
  0x54   :  { %973 = vmatpush1.bf16.msra.mxu0 %v1329_v27  ;;  %888 = vmatprep.subr.bf16.mxu1 %v1334_v28 }
  0x55   :  { %974 = vmatprep.subr.bf16.mxu0 %v1337_v29 }
  0x57   :  { %889 = vmatpush1.bf16.msra.mxu1 %v1332_v30 }
  0x58   :  { %975 = vmatpush1.bf16.msra.mxu0 %v1335_v31  ;;  %890 = vmatprep.subr.bf16.mxu1 %v1340_v34 }
  0x59   :  { %976 = vmatprep.subr.bf16.mxu0 %v1343_v35 }
  0x5b   :  { %891 = vmatpush1.bf16.msra.mxu1 %v1338_v40 }
  0x5c   :  { %977 = vmatpush1.bf16.msra.mxu0 %v1341_v41  ;;  %892 = vmatprep.subr.bf16.mxu1 %v1346_v42 }
  0x5d   :  { %978 = vmatprep.subr.bf16.mxu0 %v1349_v43 }
  0x5f   :  { %893 = vmatpush1.bf16.msra.mxu1 %v1344_v44 }
  0x60   :  { %979 = vmatpush1.bf16.msra.mxu0 %v1347_v45  ;;  %894 = vmatprep.subr.bf16.mxu1 %v1352_v46 }
  0x61   :  { %980 = vmatprep.subr.bf16.mxu0 %v1355_v47 }
  0x63   :  { %895 = vmatpush1.bf16.msra.mxu1 %v1350_v48 }
  0x64   :  { %981 = vmatpush1.bf16.msra.mxu0 %v1353_v49  ;;  %896 = vmatprep.subr.bf16.mxu1 %v1358_v50 }
  0x65   :  { %982 = vmatprep.subr.bf16.mxu0 %v1361_v51 }
  0x67   :  { %897 = vmatpush1.bf16.msra.mxu1 %v1356_v52 }
  0x68   :  { %983 = vmatpush1.bf16.msra.mxu0 %v1359_v53  ;;  %898 = vmatprep.subr.bf16.mxu1 %v1364_v54 }
  0x69   :  { %984 = vmatprep.subr.bf16.mxu0 %v1367_v55 }
  0x6b   :  { %899 = vmatpush1.bf16.msra.mxu1 %v1362_v56 }
  0x6c   :  { %985 = vmatpush1.bf16.msra.mxu0 %v1365_v57  ;;  %900 = vmatprep.subr.bf16.mxu1 %v1370_v58 }
  0x6d   :  { %986 = vmatprep.subr.bf16.mxu0 %v1373_v59 }
  0x6f   :  { %901 = vmatpush1.bf16.msra.mxu1 %v1368_v60 }
  0x70   :  { %987 = vmatpush1.bf16.msra.mxu0 %v1371_v61  ;;  %902 = vmatprep.subr.bf16.mxu1 %v1376_v62 }
  0x71   :  { %988 = vmatprep.subr.bf16.mxu0 %v1379_v63 }
  0x73   :  { %903 = vmatpush1.bf16.msra.mxu1 %v1374_v0 }
  0x74   :  { %989 = vmatpush1.bf16.msra.mxu0 %v1377_v1  ;;  %904 = vmatprep.subr.bf16.mxu1 %v1382_v2 }
  0x75   :  { %990 = vmatprep.subr.bf16.mxu0 %v1385_v3 }
  0x77   :  { %905 = vmatpush1.bf16.msra.mxu1 %v1380_v4 }
  0x78   :  { %991 = vmatpush1.bf16.msra.mxu0 %v1383_v5  ;;  %906 = vmatprep.subr.bf16.mxu1 %v1388_v6 }
  0x79   :  { %992 = vmatprep.subr.bf16.mxu0 %v1391_v7 }
  0x7b   :  { %907 = vmatpush1.bf16.msra.mxu1 %v1386_v8 }
  0x7c   :  { %993 = vmatpush1.bf16.msra.mxu0 %v1389_v9  ;;  %908 = vmatprep.subr.bf16.mxu1 %v1394_v10 }
  0x7f   :  { %997 = vmatmul.mubr.bf16.vlgmr.msra.gmra.mrb[0].mxu0 %v1055_v11  ;;  %909 = vmatpush1.bf16.msra.mxu1 %v1392_v12 }
  0x82   :  { %911 = vmatmul.mubr.bf16.vlgmr.msra.gmra.mrb[0].mxu1 %v1051_v13 }
 0x152   :  { %v998_v19 = vpop.f32.mrb[0].mxu0 }
 0x153   :  { %v1000_v20 = vpop.f32.mrb[1].mxu0 }
 0x154   :  { %v1002_v22 = vpop.f32.mrb[2].mxu0 }
 0x155   :  { %v1004_v24 = vpop.f32.mrb[3].mxu0  ;;  %v912_v25 = vpop.f32.mrb[0].mxu1 }
 0x156   :  { %v1190_v26 = vadd.f32 %v912_v25, %v155_v21  ;;  %v914_v27 = vpop.f32.mrb[1].mxu1 }
 0x157   :  { %v1192_v28 = vadd.f32 %v914_v27, %v159_v23  ;;  %v916_v29 = vpop.f32.mrb[2].mxu1 }
 0x158   :  { %v1191_v30 = vadd.f32 %v1190_v26, %v998_v19  ;;  %v1194_v31 = vadd.f32 %v916_v29, %v155_v21  ;;  %v918_v32 = vpop.f32.mrb[3].mxu1 }
 0x159   :  { %v1193_v33 = vadd.f32 %v1192_v28, %v1000_v20  ;;  %v1196_v34 = vadd.f32 %v918_v32, %v159_v23 }
 0x15a   :  { %v1195_v35 = vadd.f32 %v1194_v31, %v1002_v22 }
 0x15b   :  { %v1197_v36 = vadd.f32 %v1196_v34, %v1004_v24 }
 0x15c   :  { %v1007_v37 = vpack.c.bf16 %v1195_v35, %v1191_v30 }
 0x15d   :  { %v1008_v38 = vpack.c.bf16 %v1197_v36, %v1193_v33 }
 0x15e   :  { %v1184_v39 = vmul.bf16 3216621497, %v1007_v37 }
 0x15f   :  { %v1185_v40 = vmul.bf16 3216621497, %v1008_v38 }
 0x160   :  { %1395 = vpow.bf16 %v1184_v39 }
 0x161   :  { %1397 = vpow.bf16 %v1185_v40 }
 0x16b   :  { %v1396_v41 = vpop.eup %1395 }
 0x16c   :  { %v1398_v42 = vpop.eup %1397  ;;  %v1017_v43 = vadd.bf16 1065369472, %v1396_v41 }
 0x16d   :  { %v1018_v44 = vadd.bf16 1065369472, %v1398_v42 }
 0x16e   :  { %1399 = vrcp.bf16 %v1017_v43 }
 0x16f   :  { %1401 = vrcp.bf16 %v1018_v44 }
 0x179   :  { %v1400_v45 = vpop.eup %1399 }
 0x17a   :  { %v1402_v46 = vpop.eup %1401  ;;  %v1020_v47 = vmul.bf16 1065369472, %v1400_v45 }
 0x17b   :  { %v1022_v48 = vmul.bf16 1065369472, %v1402_v46 }
 0x17c   :  { %v1023_v49 = vunpack.c.l.bf16 %v1020_v47  ;;  %v1025_v50 = vunpack.c.h.bf16 %v1020_v47 }
 0x17d   :  { %v1024_v51 = vunpack.c.l.bf16 %v1022_v48  ;;  %v1026_v52 = vunpack.c.h.bf16 %v1022_v48 }
 0x17e   :  { %v1027_v53 = vmul.f32 %v1191_v30, %v1023_v49  ;;  %v1029_v54 = vmul.f32 %v1195_v35, %v1025_v50 }
 0x17f   :  { %v1028_v55 = vmul.f32 %v1193_v33, %v1024_v51  ;;  %v1030_v56 = vmul.f32 %v1197_v36, %v1026_v52 }
 0x181   :  { %v1188_v57 = vpack.c.bf16 %v1028_v55, %v1027_v53  ;;  %v1189_v58 = vpack.c.bf16 %v1030_v56, %v1029_v54 }
 0x183   :  { %1043 = vst [vmem:[%s1853_s3] sm:$0xff] %v1188_v57  ;;  %1044 = vst [vmem:[%s1853_s3 + $0x8] sm:$0xff] %v1189_v58 }

// kernel: custom_backbone_forward.13
= control target key start
LH: loop header
LB: loop body
LE: loop exit
PB: predicated region body
PF: predicated region fallthrough
CT: control target
= control target key end

     0   :  { %vm2288_vm0 = vcmask 523264   ;;  %s16204_s1 = inlined_call_operand.vmem [shape: bf16[1728,384], index: 1, kind: input, shape index: {}]   ;;  %s16205_s0 = inlined_call_operand.vmem [shape: bf16[16,1728], index: 0, kind: input, shape index: {}]   ;;  %s16206_s2 = inlined_call_operand.vmem [shape: f32[1,384], index: 2, kind: input, shape index: {}]   ;;  %s16207_s3 = inlined_call_operand.vmem [shape: bf16[384,1280], index: 3, kind: input, shape index: {}]   ;;  %s16208_s5 = inlined_call_operand.vmem [shape: bf16[1280,1024], index: 5, kind: input, shape index: {}]   ;;  %s16209_s4 = inlined_call_operand.vmem [shape: f32[1,1280], index: 4, kind: input, shape index: {}]   ;;  %s16210_s6 = inlined_call_operand.vmem [shape: f32[1,1024], index: 6, kind: input, shape index: {}]   ;;  %s16211_s7 = inlined_call_operand.vmem [shape: f32[16,1024], index: 7, kind: output, shape index: {}]  }
   0x1   :  { %v11249_v0 = vld [vmem:[%s16204_s1 + $0x4] ss:$12 sps:$4 sm:$0xff]   ;;  %v11253_v2 = vld [vmem:[%s16204_s1] ss:$12 sps:$4 sm:$0xff]   ;;  %v11255_v4 = vld [vmem:[%s16204_s1 + $0x1c] ss:$12 sps:$4 sm:$0xff]  }
   0x2   :  { %v11251_v1 = vld [vmem:[%s16204_s1 + $0x904] ss:$12 sps:$4 sm:$0xff]   ;;  %2292 = vmatprep.subr.bf16.mxu0 %v11249_v0  ;;  %v11254_v3 = vld [vmem:[%s16204_s1 + $0x900] ss:$12 sps:$4 sm:$0xff]   ;;  %v11257_v5 = vld [vmem:[%s16204_s1 + $0x91c] ss:$12 sps:$4 sm:$0xff]  }
   0x3   :  { %2550 = vmatprep.subr.bf16.mxu1 %v11251_v1  ;;  %2293 = vmatpush1.bf16.msra.mxu0 %v11253_v2  ;;  %v11259_v6 = vld [vmem:[%s16204_s1 + $0x18] ss:$12 sps:$4 sm:$0xff]   ;;  %v11261_v8 = vld [vmem:[%s16204_s1 + $0x34] ss:$12 sps:$4 sm:$0xff]   ;;  %v11265_v10 = vld [vmem:[%s16204_s1 + $0x30] ss:$12 sps:$4 sm:$0xff]  }
   0x4   :  { %2551 = vmatpush1.bf16.msra.mxu1 %v11254_v3  ;;  %2294 = vmatprep.subr.bf16.mxu0 %v11255_v4  ;;  %v11260_v7 = vld [vmem:[%s16204_s1 + $0x918] ss:$12 sps:$4 sm:$0xff]   ;;  %v11263_v9 = vld [vmem:[%s16204_s1 + $0x934] ss:$12 sps:$4 sm:$0xff]   ;;  %v11266_v11 = vld [vmem:[%s16204_s1 + $0x930] ss:$12 sps:$4 sm:$0xff]  }
   0x5   :  { %2552 = vmatprep.subr.bf16.mxu1 %v11257_v5  ;;  %v11267_v12 = vld [vmem:[%s16204_s1 + $0x4c] ss:$12 sps:$4 sm:$0xff]   ;;  %v11271_v14 = vld [vmem:[%s16204_s1 + $0x48] ss:$12 sps:$4 sm:$0xff]   ;;  %v11273_v16 = vld [vmem:[%s16204_s1 + $0x64] ss:$12 sps:$4 sm:$0xff]  }
   0x6   :  { %v11269_v13 = vld [vmem:[%s16204_s1 + $0x94c] ss:$12 sps:$4 sm:$0xff]   ;;  %v11272_v15 = vld [vmem:[%s16204_s1 + $0x948] ss:$12 sps:$4 sm:$0xff]   ;;  %v11275_v17 = vld [vmem:[%s16204_s1 + $0x964] ss:$12 sps:$4 sm:$0xff]  }
   0x7   :  { %2295 = vmatpush1.bf16.msra.mxu0 %v11259_v6  ;;  %v11277_v18 = vld [vmem:[%s16204_s1 + $0x60] ss:$12 sps:$4 sm:$0xff]   ;;  %v11279_v20 = vld [vmem:[%s16204_s1 + $0x7c] ss:$12 sps:$4 sm:$0xff]   ;;  %v11283_v22 = vld [vmem:[%s16204_s1 + $0x78] ss:$12 sps:$4 sm:$0xff]  }
   0x8   :  { %2553 = vmatpush1.bf16.msra.mxu1 %v11260_v7  ;;  %2296 = vmatprep.subr.bf16.mxu0 %v11261_v8  ;;  %v11278_v19 = vld [vmem:[%s16204_s1 + $0x960] ss:$12 sps:$4 sm:$0xff]   ;;  %v11281_v21 = vld [vmem:[%s16204_s1 + $0x97c] ss:$12 sps:$4 sm:$0xff]   ;;  %v11284_v23 = vld [vmem:[%s16204_s1 + $0x978] ss:$12 sps:$4 sm:$0xff]  }
   0x9   :  { %2554 = vmatprep.subr.bf16.mxu1 %v11263_v9  ;;  %v11285_v24 = vld [vmem:[%s16204_s1 + $0x94] ss:$12 sps:$4 sm:$0xff]   ;;  %v11289_v26 = vld [vmem:[%s16204_s1 + $0x90] ss:$12 sps:$4 sm:$0xff]   ;;  %v11291_v28 = vld [vmem:[%s16204_s1 + $0xac] ss:$12 sps:$4 sm:$0xff]  }
   0xa   :  { %v11287_v25 = vld [vmem:[%s16204_s1 + $0x994] ss:$12 sps:$4 sm:$0xff]   ;;  %v11290_v27 = vld [vmem:[%s16204_s1 + $0x990] ss:$12 sps:$4 sm:$0xff]   ;;  %v11293_v29 = vld [vmem:[%s16204_s1 + $0x9ac] ss:$12 sps:$4 sm:$0xff]  }
   0xb   :  { %2297 = vmatpush1.bf16.msra.mxu0 %v11265_v10  ;;  %v11295_v30 = vld [vmem:[%s16204_s1 + $0xa8] ss:$12 sps:$4 sm:$0xff]   ;;  %v11297_v32 = vld [vmem:[%s16204_s1 + $0xc4] ss:$12 sps:$4 sm:$0xff]   ;;  %v11301_v34 = vld [vmem:[%s16204_s1 + $0xc0] ss:$12 sps:$4 sm:$0xff]  }
   0xc   :  { %2555 = vmatpush1.bf16.msra.mxu1 %v11266_v11  ;;  %2298 = vmatprep.subr.bf16.mxu0 %v11267_v12  ;;  %v11296_v31 = vld [vmem:[%s16204_s1 + $0x9a8] ss:$12 sps:$4 sm:$0xff]   ;;  %v11299_v33 = vld [vmem:[%s16204_s1 + $0x9c4] ss:$12 sps:$4 sm:$0xff]   ;;  %v11302_v35 = vld [vmem:[%s16204_s1 + $0x9c0] ss:$12 sps:$4 sm:$0xff]  }
   0xd   :  { %2556 = vmatprep.subr.bf16.mxu1 %v11269_v13  ;;  %v11303_v36 = vld [vmem:[%s16204_s1 + $0xdc] ss:$12 sps:$4 sm:$0xff]   ;;  %v11325_v38 = vld [vmem:[%s16205_s0 + $0x34] ss:$56 sps:$4 sm:$0xff]   ;;  %v11307_v39 = vld [vmem:[%s16204_s1 + $0xd8] ss:$12 sps:$4 sm:$0xff]  }
   0xe   :  { %v11305_v37 = vld [vmem:[%s16204_s1 + $0x9dc] ss:$12 sps:$4 sm:$0xff]   ;;  %v11308_v40 = vld [vmem:[%s16204_s1 + $0x9d8] ss:$12 sps:$4 sm:$0xff]   ;;  %v11309_v41 = vld [vmem:[%s16204_s1 + $0xf4] ss:$12 sps:$4 sm:$0xff]   ;;  %10073 = vmatprep.mubr.msk.bf16.mxu1 %vm2288_vm0, %v11325_v38 }
   0xf   :  { %2299 = vmatpush1.bf16.msra.mxu0 %v11271_v14  ;;  %v11311_v42 = vld [vmem:[%s16204_s1 + $0x9f4] ss:$12 sps:$4 sm:$0xff]   ;;  %v11313_v43 = vld [vmem:[%s16204_s1 + $0xf0] ss:$12 sps:$4 sm:$0xff]   ;;  %v11315_v45 = vld [vmem:[%s16204_s1 + $0x10c] ss:$12 sps:$4 sm:$0xff]  }
  0x10   :  { %2557 = vmatpush1.bf16.msra.mxu1 %v11272_v15  ;;  %2300 = vmatprep.subr.bf16.mxu0 %v11273_v16  ;;  %v11314_v44 = vld [vmem:[%s16204_s1 + $0x9f0] ss:$12 sps:$4 sm:$0xff]   ;;  %v11317_v46 = vld [vmem:[%s16204_s1 + $0xa0c] ss:$12 sps:$4 sm:$0xff]   ;;  %v11319_v47 = vld [vmem:[%s16204_s1 + $0x108] ss:$12 sps:$4 sm:$0xff]  }
  0x11   :  { %2558 = vmatprep.subr.bf16.mxu1 %v11275_v17  ;;  %v11320_v48 = vld [vmem:[%s16204_s1 + $0xa08] ss:$12 sps:$4 sm:$0xff]   ;;  %v11321_v49 = vld [vmem:[%s16204_s1 + $0x124] ss:$12 sps:$4 sm:$0xff]   ;;  %v11327_v52 = vld [vmem:[%s16204_s1 + $0x120] ss:$12 sps:$4 sm:$0xff]  }
  0x12   :  { %v11323_v50 = vld [vmem:[%s16205_s0 + $0x30] ss:$56 sps:$4 sm:$0xff]   ;;  %v11346_v54 = vld [vmem:[%s16205_s0 + $0x4] ss:$56 sps:$4 sm:$0xff]   ;;  %v11331_v56 = vld [vmem:[%s16204_s1 + $0xe0] ss:$12 sps:$4 sm:$0xff]  }
  0x13   :  { %2301 = vmatpush1.bf16.msra.mxu0 %v11277_v18  ;;  %v11326_v51 = vld [vmem:[%s16204_s1 + $0xc8] ss:$12 sps:$4 sm:$0xff]   ;;  %2324 = vmatprep.mubr.bf16.mxu0 %v11346_v54  ;;  %v11332_v57 = vld [vmem:[%s16204_s1 + $0x138] ss:$12 sps:$4 sm:$0xff]   ;;  %v11333_v58 = vld [vmem:[%s16204_s1 + $0x20] ss:$12 sps:$4 sm:$0xff]  }
  0x14   :  { %2559 = vmatpush1.bf16.msra.mxu1 %v11278_v19  ;;  %2302 = vmatprep.subr.bf16.mxu0 %v11279_v20  ;;  %v11328_v53 = vld [vmem:[%s16204_s1 + $0x8] ss:$12 sps:$4 sm:$0xff]   ;;  %v11336_v60 = vld [vmem:[%s16204_s1 + $0xf8] ss:$12 sps:$4 sm:$0xff]   ;;  %v11337_v61 = vld [vmem:[%s16204_s1 + $0x150] ss:$12 sps:$4 sm:$0xff]  }
  0x15   :  { %2560 = vmatprep.subr.bf16.mxu1 %v11281_v21  ;;  %v11329_v55 = vld [vmem:[%s16204_s1 + $0x13c] ss:$12 sps:$4 sm:$0xff]   ;;  %v11334_v59 = vld [vmem:[%s16204_s1 + $0x154] ss:$12 sps:$4 sm:$0xff]   ;;  %v11338_v62 = vld [vmem:[%s16204_s1 + $0x38] ss:$12 sps:$4 sm:$0xff]  }
  0x16   :  { %v11339_v63 = vld [vmem:[%s16204_s1 + $0x16c] ss:$12 sps:$4 sm:$0xff]   ;;  %v11341_v0 = vld [vmem:[%s16204_s1 + $0x110] ss:$12 sps:$4 sm:$0xff]   ;;  %v11342_v1 = vld [vmem:[%s16204_s1 + $0x168] ss:$12 sps:$4 sm:$0xff]  }
  0x17   :  { %2303 = vmatpush1.bf16.msra.mxu0 %v11283_v22  ;;  %v11343_v2 = vld [vmem:[%s16204_s1 + $0x50] ss:$12 sps:$4 sm:$0xff]   ;;  %v11350_v4 = vld [vmem:[%s16204_s1 + $0x128] ss:$12 sps:$4 sm:$0xff]   ;;  %v11344_v5 = vld [vmem:[%s16205_s0] ss:$56 sps:$4 sm:$0xff]  }
  0x18   :  { %2561 = vmatpush1.bf16.msra.mxu1 %v11284_v23  ;;  %2304 = vmatprep.subr.bf16.mxu0 %v11285_v24  ;;  %v11349_v3 = vld [vmem:[%s16204_s1 + $0x184] ss:$12 sps:$4 sm:$0xff]   ;;  %v11347_v6 = vld [vmem:[%s16204_s1 + $0x180] ss:$12 sps:$4 sm:$0xff]   ;;  %v11351_v7 = vld [vmem:[%s16204_s1 + $0x68] ss:$12 sps:$4 sm:$0xff]  }
  0x19   :  { %2562 = vmatprep.subr.bf16.mxu1 %v11287_v25  ;;  %v11354_v8 = vld [vmem:[%s16204_s1 + $0x19c] ss:$12 sps:$4 sm:$0xff]   ;;  %v11355_v9 = vld [vmem:[%s16204_s1 + $0x140] ss:$12 sps:$4 sm:$0xff]   ;;  %v11352_v10 = vld [vmem:[%s16204_s1 + $0x198] ss:$12 sps:$4 sm:$0xff]  }
  0x1a   :  { %v11356_v11 = vld [vmem:[%s16204_s1 + $0x80] ss:$12 sps:$4 sm:$0xff]   ;;  %v11360_v13 = vld [vmem:[%s16204_s1 + $0x158] ss:$12 sps:$4 sm:$0xff]   ;;  %v11357_v14 = vld [vmem:[%s16204_s1 + $0x1b0] ss:$12 sps:$4 sm:$0xff]  }
  0x1b   :  { %2305 = vmatpush1.bf16.msra.mxu0 %v11289_v26  ;;  %v11359_v12 = vld [vmem:[%s16204_s1 + $0x1b4] ss:$12 sps:$4 sm:$0xff]   ;;  %v11361_v15 = vld [vmem:[%s16204_s1 + $0x98] ss:$12 sps:$4 sm:$0xff]   ;;  %v11365_v17 = vld [vmem:[%s16204_s1 + $0x170] ss:$12 sps:$4 sm:$0xff]  }
  0x1c   :  { %2563 = vmatpush1.bf16.msra.mxu1 %v11290_v27  ;;  %2306 = vmatprep.subr.bf16.mxu0 %v11291_v28  ;;  %v11364_v16 = vld [vmem:[%s16204_s1 + $0x1cc] ss:$12 sps:$4 sm:$0xff]   ;;  %v11362_v18 = vld [vmem:[%s16204_s1 + $0x1c8] ss:$12 sps:$4 sm:$0xff]   ;;  %v11366_v19 = vld [vmem:[%s16204_s1 + $0xb0] ss:$12 sps:$4 sm:$0xff]  }
  0x1d   :  { %2564 = vmatprep.subr.bf16.mxu1 %v11293_v29  ;;  %v11369_v20 = vld [vmem:[%s16204_s1 + $0x1e4] ss:$12 sps:$4 sm:$0xff]   ;;  %v11370_v21 = vld [vmem:[%s16204_s1 + $0x248] ss:$12 sps:$4 sm:$0xff]   ;;  %v11367_v22 = vld [vmem:[%s16204_s1 + $0x1e0] ss:$12 sps:$4 sm:$0xff]  }
  0x1e   :  { %v11371_v23 = vld [vmem:[%s16204_s1 + $0x188] ss:$12 sps:$4 sm:$0xff]   ;;  %v11375_v25 = vld [vmem:[%s16204_s1 + $0x260] ss:$12 sps:$4 sm:$0xff]   ;;  %v11372_v26 = vld [vmem:[%s16204_s1 + $0x1f8] ss:$12 sps:$4 sm:$0xff]  }
  0x1f   :  { %2307 = vmatpush1.bf16.msra.mxu0 %v11295_v30  ;;  %v11374_v24 = vld [vmem:[%s16204_s1 + $0x1fc] ss:$12 sps:$4 sm:$0xff]   ;;  %v11376_v27 = vld [vmem:[%s16204_s1 + $0x1a0] ss:$12 sps:$4 sm:$0xff]   ;;  %v11380_v29 = vld [vmem:[%s16204_s1 + $0x278] ss:$12 sps:$4 sm:$0xff]  }
  0x20   :  { %2565 = vmatpush1.bf16.msra.mxu1 %v11296_v31  ;;  %2308 = vmatprep.subr.bf16.mxu0 %v11297_v32  ;;  %v11379_v28 = vld [vmem:[%s16204_s1 + $0x214] ss:$12 sps:$4 sm:$0xff]   ;;  %v11377_v30 = vld [vmem:[%s16204_s1 + $0x210] ss:$12 sps:$4 sm:$0xff]   ;;  %v11381_v31 = vld [vmem:[%s16204_s1 + $0x1b8] ss:$12 sps:$4 sm:$0xff]  }
  0x21   :  { %2566 = vmatprep.subr.bf16.mxu1 %v11299_v33  ;;  %v11384_v32 = vld [vmem:[%s16204_s1 + $0x22c] ss:$12 sps:$4 sm:$0xff]   ;;  %v11385_v33 = vld [vmem:[%s16204_s1 + $0x290] ss:$12 sps:$4 sm:$0xff]   ;;  %v11390_v38 = vld [vmem:[%s16204_s1 + $0x2a8] ss:$12 sps:$4 sm:$0xff]  }
  0x23   :  { %2309 = vmatpush1.bf16.msra.mxu0 %v11301_v34  ;;  %v11412_v34 = vld [vmem:[%s16205_s0 + $0xc] ss:$56 sps:$4 sm:$0xff]  }
  0x24   :  { %2567 = vmatpush1.bf16.msra.mxu1 %v11302_v35  ;;  %2310 = vmatprep.subr.bf16.mxu0 %v11303_v36  ;;  %v11382_v35 = vld [vmem:[%s16204_s1 + $0x228] ss:$12 sps:$4 sm:$0xff]   ;;  %v11386_v36 = vld [vmem:[%s16204_s1 + $0x1d0] ss:$12 sps:$4 sm:$0xff]  }
  0x25   :  { %2568 = vmatprep.subr.bf16.mxu1 %v11305_v37  ;;  %v11389_v37 = vld [vmem:[%s16204_s1 + $0x244] ss:$12 sps:$4 sm:$0xff]  }
  0x27   :  { %2311 = vmatpush1.bf16.msra.mxu0 %v11307_v39  ;;  %v11387_v39 = vld [vmem:[%s16204_s1 + $0x240] ss:$12 sps:$4 sm:$0xff]  }
  0x28   :  { %2569 = vmatpush1.bf16.msra.mxu1 %v11308_v40  ;;  %2312 = vmatprep.subr.bf16.mxu0 %v11309_v41  ;;  %v11391_v40 = vld [vmem:[%s16204_s1 + $0x1e8] ss:$12 sps:$4 sm:$0xff]  }
  0x29   :  { %2570 = vmatprep.subr.bf16.mxu1 %v11311_v42  ;;  %v11394_v41 = vld [vmem:[%s16204_s1 + $0x25c] ss:$12 sps:$4 sm:$0xff]   ;;  %v11395_v42 = vld [vmem:[%s16204_s1 + $0x2c0] ss:$12 sps:$4 sm:$0xff]  }
  0x2b   :  { %2313 = vmatpush1.bf16.msra.mxu0 %v11313_v43  ;;  %v11392_v43 = vld [vmem:[%s16204_s1 + $0x258] ss:$12 sps:$4 sm:$0xff]  }
  0x2c   :  { %2571 = vmatpush1.bf16.msra.mxu1 %v11314_v44  ;;  %2314 = vmatprep.subr.bf16.mxu0 %v11315_v45  ;;  %v11396_v44 = vld [vmem:[%s16204_s1 + $0x200] ss:$12 sps:$4 sm:$0xff]  }
  0x2d   :  { %2572 = vmatprep.subr.bf16.mxu1 %v11317_v46  ;;  %v11399_v45 = vld [vmem:[%s16204_s1 + $0x274] ss:$12 sps:$4 sm:$0xff]   ;;  %v11400_v46 = vld [vmem:[%s16204_s1 + $0x2d8] ss:$12 sps:$4 sm:$0xff]  }
  0x2f   :  { %2315 = vmatpush1.bf16.msra.mxu0 %v11319_v47  ;;  %v11397_v47 = vld [vmem:[%s16204_s1 + $0x270] ss:$12 sps:$4 sm:$0xff]  }
  0x30   :  { %2573 = vmatpush1.bf16.msra.mxu1 %v11320_v48  ;;  %2316 = vmatprep.subr.bf16.mxu0 %v11321_v49  ;;  %v11401_v48 = vld [vmem:[%s16204_s1 + $0x218] ss:$12 sps:$4 sm:$0xff]  }
  0x31   :  { %10968 = vmatprep.subr.bf16.mxu1 %v11326_v51  ;;  %v11404_v49 = vld [vmem:[%s16204_s1 + $0x28c] ss:$12 sps:$4 sm:$0xff]   ;;  %v11402_v51 = vld [vmem:[%s16204_s1 + $0x288] ss:$12 sps:$4 sm:$0xff]  }
  0x33   :  { %2583 = vmatmul.mubr.bf16.vlgmr.msra.gmra.mrb[0].mxu1 %v11323_v50  ;;  %2317 = vmatpush1.bf16.msra.mxu0 %v11327_v52  ;;  %v11405_v50 = vld [vmem:[%s16204_s1 + $0x2f0] ss:$12 sps:$4 sm:$0xff]  }
  0x34   :  { %10969 = vmatpush3.bf16.msra.mxu1 %v11328_v53  ;;  %2318 = vmatprep.subr.bf16.mxu0 %v11329_v55  ;;  %v11406_v52 = vld [vmem:[%s16204_s1 + $0x230] ss:$12 sps:$4 sm:$0xff]   ;;  %v11407_v55 = vld [vmem:[%s16204_s1 + $0x2a0] ss:$12 sps:$4 sm:$0xff]  }
  0x35   :  { %10970 = vmatprep.subr.bf16.mxu1 %v11331_v56  ;;  %2625 = vmatprep.mubr.bf16.mxu1 %v11346_v54  ;;  %v11409_v53 = vld [vmem:[%s16204_s1 + $0x2a4] ss:$12 sps:$4 sm:$0xff]   ;;  %v11413_v54 = vld [vmem:[%s16204_s1 + $0x3c8] ss:$12 sps:$4 sm:$0xff]  }
  0x36   :  { %v11410_v56 = vld [vmem:[%s16205_s0 + $0x8] ss:$56 sps:$4 sm:$0xff]  }
  0x37   :  { %2319 = vmatpush1.bf16.msra.mxu0 %v11332_v57  ;;  %v11414_v57 = vld [vmem:[%s16204_s1 + $0x308] ss:$12 sps:$4 sm:$0xff]  }
  0x38   :  { %10971 = vmatpush3.bf16.msra.mxu1 %v11333_v58  ;;  %2320 = vmatprep.subr.bf16.mxu0 %v11334_v59  ;;  %v11417_v58 = vld [vmem:[%s16204_s1 + $0x2bc] ss:$12 sps:$4 sm:$0xff]   ;;  %v11418_v59 = vld [vmem:[%s16204_s1 + $0x3e0] ss:$12 sps:$4 sm:$0xff]  }
  0x39   :  { %10972 = vmatprep.subr.bf16.mxu1 %v11336_v60  ;;  %v11415_v60 = vld [vmem:[%s16204_s1 + $0x2b8] ss:$12 sps:$4 sm:$0xff]  }
  0x3b   :  { %2321 = vmatpush1.bf16.msra.mxu0 %v11337_v61  ;;  %v11419_v61 = vld [vmem:[%s16204_s1 + $0x320] ss:$12 sps:$4 sm:$0xff]  }
  0x3c   :  { %10973 = vmatpush3.bf16.msra.mxu1 %v11338_v62  ;;  %2322 = vmatprep.subr.bf16.mxu0 %v11339_v63  ;;  %v11422_v62 = vld [vmem:[%s16204_s1 + $0x2d4] ss:$12 sps:$4 sm:$0xff]   ;;  %v11423_v63 = vld [vmem:[%s16204_s1 + $0x3f8] ss:$12 sps:$4 sm:$0xff]  }
  0x3d   :  { %10974 = vmatprep.subr.bf16.mxu1 %v11341_v0  ;;  %v11455_v0 = vld [vmem:[%s16205_s0 + $0x14] ss:$56 sps:$4 sm:$0xff]  }
  0x3f   :  { %2323 = vmatpush1.bf16.msra.mxu0 %v11342_v1  ;;  %v11420_v1 = vld [vmem:[%s16204_s1 + $0x2d0] ss:$12 sps:$4 sm:$0xff]  }
  0x40   :  { %10975 = vmatpush3.bf16.msra.mxu1 %v11343_v2  ;;  %2335 = vmatprep.subr.bf16.mxu0 %v11349_v3  ;;  %v11424_v2 = vld [vmem:[%s16204_s1 + $0x338] ss:$12 sps:$4 sm:$0xff]  }
  0x41   :  { %10976 = vmatprep.subr.bf16.mxu1 %v11350_v4  ;;  %v11427_v3 = vld [vmem:[%s16204_s1 + $0x2ec] ss:$12 sps:$4 sm:$0xff]   ;;  %v11428_v4 = vld [vmem:[%s16204_s1 + $0x410] ss:$12 sps:$4 sm:$0xff]  }
  0x42   :  { %2325 = vmatmul.mubr.bf16.vlgmr.msra.gmra.mrb[0].mxu0 %v11344_v5 }
  0x43   :  { %2336 = vmatpush1.bf16.msra.mxu0 %v11347_v6  ;;  %2367 = vmatprep.mubr.bf16.mxu0 %v11412_v34  ;;  %v11429_v6 = vld [vmem:[%s16204_s1 + $0x350] ss:$12 sps:$4 sm:$0xff]  }
  0x44   :  { %10977 = vmatpush3.bf16.msra.mxu1 %v11351_v7  ;;  %2337 = vmatprep.subr.bf16.mxu0 %v11354_v8  ;;  %v11432_v7 = vld [vmem:[%s16204_s1 + $0x304] ss:$12 sps:$4 sm:$0xff]   ;;  %v11433_v8 = vld [vmem:[%s16204_s1 + $0x428] ss:$12 sps:$4 sm:$0xff]  }
  0x45   :  { %10978 = vmatprep.subr.bf16.mxu1 %v11355_v9  ;;  %v11430_v9 = vld [vmem:[%s16204_s1 + $0x300] ss:$12 sps:$4 sm:$0xff]  }
  0x47   :  { %2338 = vmatpush1.bf16.msra.mxu0 %v11352_v10  ;;  %v11434_v10 = vld [vmem:[%s16204_s1 + $0x368] ss:$12 sps:$4 sm:$0xff]  }
  0x48   :  { %10979 = vmatpush3.bf16.msra.mxu1 %v11356_v11  ;;  %2339 = vmatprep.subr.bf16.mxu0 %v11359_v12  ;;  %v11437_v11 = vld [vmem:[%s16204_s1 + $0x31c] ss:$12 sps:$4 sm:$0xff]   ;;  %v11438_v12 = vld [vmem:[%s16204_s1 + $0x440] ss:$12 sps:$4 sm:$0xff]  }
  0x49   :  { %10980 = vmatprep.subr.bf16.mxu1 %v11360_v13  ;;  %v11435_v13 = vld [vmem:[%s16204_s1 + $0x318] ss:$12 sps:$4 sm:$0xff]  }
  0x4b   :  { %2340 = vmatpush1.bf16.msra.mxu0 %v11357_v14  ;;  %v11439_v14 = vld [vmem:[%s16204_s1 + $0x380] ss:$12 sps:$4 sm:$0xff]  }
  0x4c   :  { %10981 = vmatpush3.bf16.msra.mxu1 %v11361_v15  ;;  %2341 = vmatprep.subr.bf16.mxu0 %v11364_v16  ;;  %v11442_v15 = vld [vmem:[%s16204_s1 + $0x334] ss:$12 sps:$4 sm:$0xff]   ;;  %v11443_v16 = vld [vmem:[%s16204_s1 + $0x458] ss:$12 sps:$4 sm:$0xff]  }
  0x4d   :  { %10982 = vmatprep.subr.bf16.mxu1 %v11365_v17  ;;  %v11440_v17 = vld [vmem:[%s16204_s1 + $0x330] ss:$12 sps:$4 sm:$0xff]  }
  0x4f   :  { %2342 = vmatpush1.bf16.msra.mxu0 %v11362_v18  ;;  %v11444_v18 = vld [vmem:[%s16204_s1 + $0x398] ss:$12 sps:$4 sm:$0xff]  }
  0x50   :  { %10983 = vmatpush3.bf16.msra.mxu1 %v11366_v19  ;;  %2343 = vmatprep.subr.bf16.mxu0 %v11369_v20  ;;  %v11447_v19 = vld [vmem:[%s16204_s1 + $0x34c] ss:$12 sps:$4 sm:$0xff]   ;;  %v11448_v20 = vld [vmem:[%s16204_s1 + $0x470] ss:$12 sps:$4 sm:$0xff]  }
  0x51   :  { %10990 = vmatprep.subr.bf16.mxu1 %v11370_v21  ;;  %v11445_v21 = vld [vmem:[%s16204_s1 + $0x348] ss:$12 sps:$4 sm:$0xff]  }
  0x53   :  { %2626 = vmatmul.mubr.bf16.vlgmr.msra.gmra.mrb[4].mxu1 %v11344_v5  ;;  %2344 = vmatpush1.bf16.msra.mxu0 %v11367_v22  ;;  %v11425_v5 = vld [vmem:[%s16204_s1 + $0x2e8] ss:$12 sps:$4 sm:$0xff]   ;;  %v11449_v22 = vld [vmem:[%s16204_s1 + $0x3b0] ss:$12 sps:$4 sm:$0xff]  }
  0x54   :  { %10991 = vmatpush3.bf16.msra.mxu1 %v11371_v23  ;;  %2345 = vmatprep.subr.bf16.mxu0 %v11374_v24  ;;  %v11452_v23 = vld [vmem:[%s16204_s1 + $0x364] ss:$12 sps:$4 sm:$0xff]   ;;  %v11456_v24 = vld [vmem:[%s16204_s1 + $0x548] ss:$12 sps:$4 sm:$0xff]  }
  0x55   :  { %10992 = vmatprep.subr.bf16.mxu1 %v11375_v25  ;;  %2666 = vmatprep.mubr.bf16.mxu1 %v11412_v34  ;;  %v11450_v25 = vld [vmem:[%s16204_s1 + $0x360] ss:$12 sps:$4 sm:$0xff]   ;;  %v11466_v34 = vld [vmem:[%s16204_s1 + $0x578] ss:$12 sps:$4 sm:$0xff]  }
  0x57   :  { %2346 = vmatpush1.bf16.msra.mxu0 %v11372_v26  ;;  %v12624_v26 = vld [vmem:[%s16205_s0 + $0x10] ss:$56 sps:$4 sm:$0xff]  }
  0x58   :  { %10993 = vmatpush3.bf16.msra.mxu1 %v11376_v27  ;;  %2347 = vmatprep.subr.bf16.mxu0 %v11379_v28  ;;  %v11457_v27 = vld [vmem:[%s16204_s1 + $0x488] ss:$12 sps:$4 sm:$0xff]  }
  0x59   :  { %10994 = vmatprep.subr.bf16.mxu1 %v11380_v29  ;;  %v11460_v28 = vld [vmem:[%s16204_s1 + $0x37c] ss:$12 sps:$4 sm:$0xff]   ;;  %v11461_v29 = vld [vmem:[%s16204_s1 + $0x560] ss:$12 sps:$4 sm:$0xff]  }
  0x5b   :  { %2348 = vmatpush1.bf16.msra.mxu0 %v11377_v30  ;;  %v12638_v30 = vld [vmem:[%s16205_s0 + $0x1c] ss:$56 sps:$4 sm:$0xff]  }
  0x5c   :  { %10995 = vmatpush3.bf16.msra.mxu1 %v11381_v31  ;;  %2349 = vmatprep.subr.bf16.mxu0 %v11384_v32  ;;  %v11458_v31 = vld [vmem:[%s16204_s1 + $0x378] ss:$12 sps:$4 sm:$0xff]   ;;  %v11462_v32 = vld [vmem:[%s16204_s1 + $0x4a0] ss:$12 sps:$4 sm:$0xff]  }
  0x5d   :  { %10996 = vmatprep.subr.bf16.mxu1 %v11385_v33  ;;  %v11465_v33 = vld [vmem:[%s16204_s1 + $0x394] ss:$12 sps:$4 sm:$0xff]  }
  0x5f   :  { %2350 = vmatpush1.bf16.msra.mxu0 %v11382_v35  ;;  %v11463_v35 = vld [vmem:[%s16204_s1 + $0x390] ss:$12 sps:$4 sm:$0xff]  }
  0x60   :  { %10997 = vmatpush3.bf16.msra.mxu1 %v11386_v36  ;;  %2351 = vmatprep.subr.bf16.mxu0 %v11389_v37  ;;  %v11467_v36 = vld [vmem:[%s16204_s1 + $0x4b8] ss:$12 sps:$4 sm:$0xff]  }
  0x61   :  { %10998 = vmatprep.subr.bf16.mxu1 %v11390_v38  ;;  %v11470_v37 = vld [vmem:[%s16204_s1 + $0x3ac] ss:$12 sps:$4 sm:$0xff]   ;;  %v11471_v38 = vld [vmem:[%s16204_s1 + $0x590] ss:$12 sps:$4 sm:$0xff]  }
  0x63   :  { %2352 = vmatpush1.bf16.msra.mxu0 %v11387_v39  ;;  %v11468_v39 = vld [vmem:[%s16204_s1 + $0x3a8] ss:$12 sps:$4 sm:$0xff]  }
  0x64   :  { %10999 = vmatpush3.bf16.msra.mxu1 %v11391_v40  ;;  %2353 = vmatprep.subr.bf16.mxu0 %v11394_v41  ;;  %v11472_v40 = vld [vmem:[%s16204_s1 + $0x4d0] ss:$12 sps:$4 sm:$0xff]  }
  0x65   :  { %11000 = vmatprep.subr.bf16.mxu1 %v11395_v42  ;;  %v11475_v41 = vld [vmem:[%s16204_s1 + $0x3c4] ss:$12 sps:$4 sm:$0xff]   ;;  %v11476_v42 = vld [vmem:[%s16204_s1 + $0x5a8] ss:$12 sps:$4 sm:$0xff]  }
  0x67   :  { %2354 = vmatpush1.bf16.msra.mxu0 %v11392_v43  ;;  %v11473_v43 = vld [vmem:[%s16204_s1 + $0x3c0] ss:$12 sps:$4 sm:$0xff]  }
  0x68   :  { %11001 = vmatpush3.bf16.msra.mxu1 %v11396_v44  ;;  %2355 = vmatprep.subr.bf16.mxu0 %v11399_v45  ;;  %v11477_v44 = vld [vmem:[%s16204_s1 + $0x4e8] ss:$12 sps:$4 sm:$0xff]  }
  0x69   :  { %11002 = vmatprep.subr.bf16.mxu1 %v11400_v46  ;;  %v11480_v45 = vld [vmem:[%s16204_s1 + $0x3dc] ss:$12 sps:$4 sm:$0xff]   ;;  %v11481_v46 = vld [vmem:[%s16204_s1 + $0x5c0] ss:$12 sps:$4 sm:$0xff]  }
  0x6b   :  { %2356 = vmatpush1.bf16.msra.mxu0 %v11397_v47  ;;  %v11478_v47 = vld [vmem:[%s16204_s1 + $0x3d8] ss:$12 sps:$4 sm:$0xff]  }
  0x6c   :  { %11003 = vmatpush3.bf16.msra.mxu1 %v11401_v48  ;;  %2357 = vmatprep.subr.bf16.mxu0 %v11404_v49  ;;  %v11482_v48 = vld [vmem:[%s16204_s1 + $0x500] ss:$12 sps:$4 sm:$0xff]  }
  0x6d   :  { %11004 = vmatprep.subr.bf16.mxu1 %v11405_v50  ;;  %v11485_v49 = vld [vmem:[%s16204_s1 + $0x3f4] ss:$12 sps:$4 sm:$0xff]   ;;  %v11486_v50 = vld [vmem:[%s16204_s1 + $0x5d8] ss:$12 sps:$4 sm:$0xff]  }
  0x6f   :  { %2358 = vmatpush1.bf16.msra.mxu0 %v11402_v51  ;;  %v11483_v51 = vld [vmem:[%s16204_s1 + $0x3f0] ss:$12 sps:$4 sm:$0xff]  }
  0x70   :  { %11005 = vmatpush3.bf16.msra.mxu1 %v11406_v52  ;;  %2359 = vmatprep.subr.bf16.mxu0 %v11409_v53  ;;  %v11487_v52 = vld [vmem:[%s16204_s1 + $0x518] ss:$12 sps:$4 sm:$0xff]  }
  0x71   :  { %11012 = vmatprep.subr.bf16.mxu1 %v11413_v54  ;;  %v11490_v53 = vld [vmem:[%s16204_s1 + $0x40c] ss:$12 sps:$4 sm:$0xff]   ;;  %v11491_v54 = vld [vmem:[%s16204_s1 + $0x5f0] ss:$12 sps:$4 sm:$0xff]  }
  0x73   :  { %2667 = vmatmul.mubr.bf16.vlgmr.msra.gmra.mrb[8].mxu1 %v11410_v56  ;;  %2360 = vmatpush1.bf16.msra.mxu0 %v11407_v55  ;;  %v11488_v55 = vld [vmem:[%s16204_s1 + $0x408] ss:$12 sps:$4 sm:$0xff]  }
  0x74   :  { %11013 = vmatpush3.bf16.msra.mxu1 %v11414_v57  ;;  %2361 = vmatprep.subr.bf16.mxu0 %v11417_v58  ;;  %v11495_v57 = vld [vmem:[%s16204_s1 + $0x424] ss:$12 sps:$4 sm:$0xff]   ;;  %v11499_v58 = vld [vmem:[%s16204_s1 + $0x6c8] ss:$12 sps:$4 sm:$0xff]  }
  0x75   :  { %11014 = vmatprep.subr.bf16.mxu1 %v11418_v59  ;;  %2707 = vmatprep.mubr.bf16.mxu1 %v11455_v0  ;;  %v11493_v59 = vld [vmem:[%s16204_s1 + $0x420] ss:$12 sps:$4 sm:$0xff]  }
  0x77   :  { %2362 = vmatpush1.bf16.msra.mxu0 %v11415_v60  ;;  %v12732_v60 = vld [vmem:[%s16205_s0 + $0x18] ss:$56 sps:$4 sm:$0xff]  }
  0x78   :  { %11015 = vmatpush3.bf16.msra.mxu1 %v11419_v61  ;;  %2363 = vmatprep.subr.bf16.mxu0 %v11422_v62  ;;  %v11500_v61 = vld [vmem:[%s16204_s1 + $0x608] ss:$12 sps:$4 sm:$0xff]  }
  0x79   :  { %11016 = vmatprep.subr.bf16.mxu1 %v11423_v63  ;;  %v11503_v62 = vld [vmem:[%s16204_s1 + $0x43c] ss:$12 sps:$4 sm:$0xff]   ;;  %v11504_v63 = vld [vmem:[%s16204_s1 + $0x6e0] ss:$12 sps:$4 sm:$0xff]  }
  0x7b   :  { %2364 = vmatpush1.bf16.msra.mxu0 %v11420_v1  ;;  %v12749_v1 = vld [vmem:[%s16205_s0 + $0x24] ss:$56 sps:$4 sm:$0xff]  }
  0x7c   :  { %11017 = vmatpush3.bf16.msra.mxu1 %v11424_v2  ;;  %2365 = vmatprep.subr.bf16.mxu0 %v11427_v3  ;;  %v11505_v2 = vld [vmem:[%s16204_s1 + $0x620] ss:$12 sps:$4 sm:$0xff]  }
  0x7d   :  { %11018 = vmatprep.subr.bf16.mxu1 %v11428_v4  ;;  %v11508_v3 = vld [vmem:[%s16204_s1 + $0x454] ss:$12 sps:$4 sm:$0xff]   ;;  %v11509_v4 = vld [vmem:[%s16204_s1 + $0x6f8] ss:$12 sps:$4 sm:$0xff]  }
  0x7f   :  { %2366 = vmatpush1.bf16.msra.mxu0 %v11425_v5  ;;  %v11506_v5 = vld [vmem:[%s16204_s1 + $0x450] ss:$12 sps:$4 sm:$0xff]  }
  0x80   :  { %11019 = vmatpush3.bf16.msra.mxu1 %v11429_v6  ;;  %2378 = vmatprep.subr.bf16.mxu0 %v11432_v7  ;;  %v11510_v6 = vld [vmem:[%s16204_s1 + $0x638] ss:$12 sps:$4 sm:$0xff]  }
  0x81   :  { %11020 = vmatprep.subr.bf16.mxu1 %v11433_v8  ;;  %v11513_v7 = vld [vmem:[%s16204_s1 + $0x46c] ss:$12 sps:$4 sm:$0xff]   ;;  %v11514_v8 = vld [vmem:[%s16204_s1 + $0x710] ss:$12 sps:$4 sm:$0xff]  }
  0x82   :  { %2368 = vmatmul.mubr.bf16.vlgmr.msra.gmra.mrb[0].mxu0 %v11410_v56  ;;  %v11492_v56 = vld [vmem:[%s16204_s1 + $0x530] ss:$12 sps:$4 sm:$0xff]  }
  0x83   :  { %2379 = vmatpush1.bf16.msra.mxu0 %v11430_v9  ;;  %2410 = vmatprep.mubr.bf16.mxu0 %v11455_v0  ;;  %v11501_v0 = vld [vmem:[%s16204_s1 + $0x438] ss:$12 sps:$4 sm:$0xff]   ;;  %v11511_v9 = vld [vmem:[%s16204_s1 + $0x468] ss:$12 sps:$4 sm:$0xff]  }
  0x84   :  { %11021 = vmatpush3.bf16.msra.mxu1 %v11434_v10  ;;  %2380 = vmatprep.subr.bf16.mxu0 %v11437_v11  ;;  %v11515_v10 = vld [vmem:[%s16204_s1 + $0x650] ss:$12 sps:$4 sm:$0xff]  }
  0x85   :  { %11022 = vmatprep.subr.bf16.mxu1 %v11438_v12  ;;  %v11518_v11 = vld [vmem:[%s16204_s1 + $0x484] ss:$12 sps:$4 sm:$0xff]   ;;  %v11519_v12 = vld [vmem:[%s16204_s1 + $0x728] ss:$12 sps:$4 sm:$0xff]  }
  0x87   :  { %2381 = vmatpush1.bf16.msra.mxu0 %v11435_v13  ;;  %v11516_v13 = vld [vmem:[%s16204_s1 + $0x480] ss:$12 sps:$4 sm:$0xff]  }
  0x88   :  { %11023 = vmatpush3.bf16.msra.mxu1 %v11439_v14  ;;  %2382 = vmatprep.subr.bf16.mxu0 %v11442_v15  ;;  %v11520_v14 = vld [vmem:[%s16204_s1 + $0x668] ss:$12 sps:$4 sm:$0xff]  }
  0x89   :  { %11024 = vmatprep.subr.bf16.mxu1 %v11443_v16  ;;  %v11523_v15 = vld [vmem:[%s16204_s1 + $0x49c] ss:$12 sps:$4 sm:$0xff]   ;;  %v11524_v16 = vld [vmem:[%s16204_s1 + $0x740] ss:$12 sps:$4 sm:$0xff]  }
  0x8b   :  { %2383 = vmatpush1.bf16.msra.mxu0 %v11440_v17  ;;  %v11521_v17 = vld [vmem:[%s16204_s1 + $0x498] ss:$12 sps:$4 sm:$0xff]  }
  0x8c   :  { %11025 = vmatpush3.bf16.msra.mxu1 %v11444_v18  ;;  %2384 = vmatprep.subr.bf16.mxu0 %v11447_v19  ;;  %v11525_v18 = vld [vmem:[%s16204_s1 + $0x680] ss:$12 sps:$4 sm:$0xff]  }
  0x8d   :  { %11026 = vmatprep.subr.bf16.mxu1 %v11448_v20  ;;  %v11528_v19 = vld [vmem:[%s16204_s1 + $0x4b4] ss:$12 sps:$4 sm:$0xff]   ;;  %v11529_v20 = vld [vmem:[%s16204_s1 + $0x758] ss:$12 sps:$4 sm:$0xff]  }
  0x8f   :  { %2385 = vmatpush1.bf16.msra.mxu0 %v11445_v21  ;;  %v11526_v21 = vld [vmem:[%s16204_s1 + $0x4b0] ss:$12 sps:$4 sm:$0xff]  }
  0x90   :  { %11027 = vmatpush3.bf16.msra.mxu1 %v11449_v22  ;;  %2386 = vmatprep.subr.bf16.mxu0 %v11452_v23  ;;  %v11530_v22 = vld [vmem:[%s16204_s1 + $0x698] ss:$12 sps:$4 sm:$0xff]  }
  0x91   :  { %11034 = vmatprep.subr.bf16.mxu1 %v11456_v24  ;;  %v11533_v23 = vld [vmem:[%s16204_s1 + $0x4cc] ss:$12 sps:$4 sm:$0xff]   ;;  %v11534_v24 = vld [vmem:[%s16204_s1 + $0x770] ss:$12 sps:$4 sm:$0xff]  }
  0x93   :  { %2708 = vmatmul.mubr.bf16.vlgmr.msra.gmra.mrb[12].mxu1 %v12624_v26  ;;  %2387 = vmatpush1.bf16.msra.mxu0 %v11450_v25  ;;  %v11531_v25 = vld [vmem:[%s16204_s1 + $0x4c8] ss:$12 sps:$4 sm:$0xff]  }
  0x94   :  { %11035 = vmatpush3.bf16.msra.mxu1 %v11457_v27  ;;  %2388 = vmatprep.subr.bf16.mxu0 %v11460_v28  ;;  %v11538_v27 = vld [vmem:[%s16204_s1 + $0x4e4] ss:$12 sps:$4 sm:$0xff]   ;;  %v11542_v28 = vld [vmem:[%s16204_s1 + $0x848] ss:$12 sps:$4 sm:$0xff]  }
  0x95   :  { %11036 = vmatprep.subr.bf16.mxu1 %v11461_v29  ;;  %2748 = vmatprep.mubr.bf16.mxu1 %v12638_v30  ;;  %v11536_v29 = vld [vmem:[%s16204_s1 + $0x4e0] ss:$12 sps:$4 sm:$0xff]  }
  0x97   :  { %2389 = vmatpush1.bf16.msra.mxu0 %v11458_v31  ;;  %v11543_v31 = vld [vmem:[%s16204_s1 + $0x788] ss:$12 sps:$4 sm:$0xff]  }
  0x98   :  { %11037 = vmatpush3.bf16.msra.mxu1 %v11462_v32  ;;  %2390 = vmatprep.subr.bf16.mxu0 %v11465_v33  ;;  %v11546_v32 = vld [vmem:[%s16204_s1 + $0x4fc] ss:$12 sps:$4 sm:$0xff]   ;;  %v11547_v33 = vld [vmem:[%s16204_s1 + $0x860] ss:$12 sps:$4 sm:$0xff]  }
  0x99   :  { %11038 = vmatprep.subr.bf16.mxu1 %v11466_v34  ;;  %v12856_v34 = vld [vmem:[%s16205_s0 + $0x2c] ss:$56 sps:$4 sm:$0xff]  }
  0x9b   :  { %2391 = vmatpush1.bf16.msra.mxu0 %v11463_v35  ;;  %v11544_v35 = vld [vmem:[%s16204_s1 + $0x4f8] ss:$12 sps:$4 sm:$0xff]  }
  0x9c   :  { %11039 = vmatpush3.bf16.msra.mxu1 %v11467_v36  ;;  %2392 = vmatprep.subr.bf16.mxu0 %v11470_v37  ;;  %v11548_v36 = vld [vmem:[%s16204_s1 + $0x7a0] ss:$12 sps:$4 sm:$0xff]  }
  0x9d   :  { %11040 = vmatprep.subr.bf16.mxu1 %v11471_v38  ;;  %v11551_v37 = vld [vmem:[%s16204_s1 + $0x514] ss:$12 sps:$4 sm:$0xff]   ;;  %v11552_v38 = vld [vmem:[%s16204_s1 + $0x878] ss:$12 sps:$4 sm:$0xff]  }
  0x9f   :  { %2393 = vmatpush1.bf16.msra.mxu0 %v11468_v39  ;;  %v11549_v39 = vld [vmem:[%s16204_s1 + $0x510] ss:$12 sps:$4 sm:$0xff]  }
  0xa0   :  { %11041 = vmatpush3.bf16.msra.mxu1 %v11472_v40  ;;  %2394 = vmatprep.subr.bf16.mxu0 %v11475_v41  ;;  %v11553_v40 = vld [vmem:[%s16204_s1 + $0x7b8] ss:$12 sps:$4 sm:$0xff]  }
  0xa1   :  { %11042 = vmatprep.subr.bf16.mxu1 %v11476_v42  ;;  %v11556_v41 = vld [vmem:[%s16204_s1 + $0x52c] ss:$12 sps:$4 sm:$0xff]   ;;  %v11557_v42 = vld [vmem:[%s16204_s1 + $0x890] ss:$12 sps:$4 sm:$0xff]  }
  0xa3   :  { %2395 = vmatpush1.bf16.msra.mxu0 %v11473_v43  ;;  %v11554_v43 = vld [vmem:[%s16204_s1 + $0x528] ss:$12 sps:$4 sm:$0xff]  }
  0xa4   :  { %11043 = vmatpush3.bf16.msra.mxu1 %v11477_v44  ;;  %2396 = vmatprep.subr.bf16.mxu0 %v11480_v45  ;;  %v11558_v44 = vld [vmem:[%s16204_s1 + $0x7d0] ss:$12 sps:$4 sm:$0xff]  }
  0xa5   :  { %11044 = vmatprep.subr.bf16.mxu1 %v11481_v46  ;;  %v11561_v45 = vld [vmem:[%s16204_s1 + $0x544] ss:$12 sps:$4 sm:$0xff]   ;;  %v11562_v46 = vld [vmem:[%s16204_s1 + $0x8a8] ss:$12 sps:$4 sm:$0xff]  }
  0xa7   :  { %2397 = vmatpush1.bf16.msra.mxu0 %v11478_v47  ;;  %v11559_v47 = vld [vmem:[%s16204_s1 + $0x540] ss:$12 sps:$4 sm:$0xff]  }
  0xa8   :  { %11045 = vmatpush3.bf16.msra.mxu1 %v11482_v48  ;;  %2398 = vmatprep.subr.bf16.mxu0 %v11485_v49  ;;  %v11563_v48 = vld [vmem:[%s16204_s1 + $0x7e8] ss:$12 sps:$4 sm:$0xff]  }
  0xa9   :  { %11046 = vmatprep.subr.bf16.mxu1 %v11486_v50  ;;  %v11566_v49 = vld [vmem:[%s16204_s1 + $0x55c] ss:$12 sps:$4 sm:$0xff]   ;;  %v11567_v50 = vld [vmem:[%s16204_s1 + $0x8c0] ss:$12 sps:$4 sm:$0xff]  }
  0xab   :  { %2399 = vmatpush1.bf16.msra.mxu0 %v11483_v51  ;;  %v11564_v51 = vld [vmem:[%s16204_s1 + $0x558] ss:$12 sps:$4 sm:$0xff]  }
  0xac   :  { %11047 = vmatpush3.bf16.msra.mxu1 %v11487_v52  ;;  %2400 = vmatprep.subr.bf16.mxu0 %v11490_v53  ;;  %v11568_v52 = vld [vmem:[%s16204_s1 + $0x800] ss:$12 sps:$4 sm:$0xff]  }
  0xad   :  { %11048 = vmatprep.subr.bf16.mxu1 %v11491_v54  ;;  %v11571_v53 = vld [vmem:[%s16204_s1 + $0x574] ss:$12 sps:$4 sm:$0xff]   ;;  %v11572_v54 = vld [vmem:[%s16204_s1 + $0x8d8] ss:$12 sps:$4 sm:$0xff]  }
  0xaf   :  { %2401 = vmatpush1.bf16.msra.mxu0 %v11488_v55  ;;  %v11569_v55 = vld [vmem:[%s16204_s1 + $0x570] ss:$12 sps:$4 sm:$0xff]  }
  0xb0   :  { %11049 = vmatpush3.bf16.msra.mxu1 %v11492_v56  ;;  %2402 = vmatprep.subr.bf16.mxu0 %v11495_v57  ;;  %v11573_v56 = vld [vmem:[%s16204_s1 + $0x818] ss:$12 sps:$4 sm:$0xff]  }
  0xb1   :  { %11056 = vmatprep.subr.bf16.mxu1 %v11499_v58  ;;  %v11576_v57 = vld [vmem:[%s16204_s1 + $0x58c] ss:$12 sps:$4 sm:$0xff]   ;;  %v11577_v58 = vld [vmem:[%s16204_s1 + $0x8f0] ss:$12 sps:$4 sm:$0xff]  }
  0xb3   :  { %2749 = vmatmul.mubr.bf16.vlgmr.msra.gmra.mrb[16].mxu1 %v12732_v60  ;;  %2403 = vmatpush1.bf16.msra.mxu0 %v11493_v59  ;;  %v11574_v59 = vld [vmem:[%s16204_s1 + $0x588] ss:$12 sps:$4 sm:$0xff]  }
  0xb4   :  { %11057 = vmatpush3.bf16.msra.mxu1 %v11500_v61  ;;  %2404 = vmatprep.subr.bf16.mxu0 %v11503_v62  ;;  %v11578_v61 = vld [vmem:[%s16204_s1 + $0x830] ss:$12 sps:$4 sm:$0xff]  }
  0xb5   :  { %11058 = vmatprep.subr.bf16.mxu1 %v11504_v63  ;;  %2789 = vmatprep.mubr.bf16.mxu1 %v12749_v1  ;;  %v11584_v62 = vld [vmem:[%s16204_s1 + $0x5a4] ss:$12 sps:$4 sm:$0xff]   ;;  %v12944_v63 = vld [vmem:[%s16205_s0 + $0x28] ss:$56 sps:$4 sm:$0xff]  }
  0xb7   :  { %2405 = vmatpush1.bf16.msra.mxu0 %v11501_v0  ;;  %v11582_v0 = vld [vmem:[%s16204_s1 + $0x5a0] ss:$12 sps:$4 sm:$0xff]  }
  0xb8   :  { %11059 = vmatpush3.bf16.msra.mxu1 %v11505_v2  ;;  %2406 = vmatprep.subr.bf16.mxu0 %v11508_v3  ;;  %v11585_v2 = vld [vmem:[%s16204_s1 + $0x908] ss:$12 sps:$4 sm:$0xff]   ;;  %v12117_v3 = vmov 0  }
  0xb9   :  { %11060 = vmatprep.subr.bf16.mxu1 %v11509_v4  ;;  %v11588_v4 = vld [vmem:[%s16204_s1 + $0x5bc] ss:$12 sps:$4 sm:$0xff]  }
  0xbb   :  { %2407 = vmatpush1.bf16.msra.mxu0 %v11506_v5  ;;  %v11586_v5 = vld [vmem:[%s16204_s1 + $0x5b8] ss:$12 sps:$4 sm:$0xff]  }
  0xbc   :  { %11061 = vmatpush3.bf16.msra.mxu1 %v11510_v6  ;;  %2408 = vmatprep.subr.bf16.mxu0 %v11513_v7  ;;  %v11589_v6 = vld [vmem:[%s16204_s1 + $0x920] ss:$12 sps:$4 sm:$0xff]  }
  0xbd   :  { %11062 = vmatprep.subr.bf16.mxu1 %v11514_v8  ;;  %v11592_v7 = vld [vmem:[%s16204_s1 + $0x5d4] ss:$12 sps:$4 sm:$0xff]  }
  0xbe   :  { %v12114_v8 = vld [vmem:[%s16205_s0 + $0x34] ss:$56 sps:$4 sm:$0xff]  }
  0xbf   :  { %2409 = vmatpush1.bf16.msra.mxu0 %v11511_v9  ;;  %v11590_v9 = vld [vmem:[%s16204_s1 + $0x5d0] ss:$12 sps:$4 sm:$0xff]  }
  0xc0   :  { %11063 = vmatpush3.bf16.msra.mxu1 %v11515_v10  ;;  %2421 = vmatprep.subr.bf16.mxu0 %v11518_v11  ;;  %v11593_v10 = vld [vmem:[%s16204_s1 + $0x938] ss:$12 sps:$4 sm:$0xff]  }
  0xc1   :  { %11064 = vmatprep.subr.bf16.mxu1 %v11519_v12  ;;  %v11596_v11 = vld [vmem:[%s16204_s1 + $0x5ec] ss:$12 sps:$4 sm:$0xff]   ;;  %v11594_v12 = vld [vmem:[%s16204_s1 + $0x5e8] ss:$12 sps:$4 sm:$0xff]  }
  0xc2   :  { %2411 = vmatmul.mubr.bf16.vlgmr.msra.gmra.mrb[0].mxu0 %v12624_v26  ;;  %v11535_v26 = vld [vmem:[%s16204_s1 + $0x6b0] ss:$12 sps:$4 sm:$0xff]  }
  0xc3   :  { %2422 = vmatpush1.bf16.msra.mxu0 %v11516_v13  ;;  %2453 = vmatprep.mubr.bf16.mxu0 %v12638_v30  ;;  %v12842_v30 = vld [vmem:[%s16205_s0 + $0x20] ss:$56 sps:$4 sm:$0xff]   ;;  %v11597_v13 = vld [vmem:[%s16204_s1 + $0x950] ss:$12 sps:$4 sm:$0xff]  }
  0xc4   :  { %11065 = vmatpush3.bf16.msra.mxu1 %v11520_v14  ;;  %2423 = vmatprep.subr.bf16.mxu0 %v11523_v15  ;;  %v11600_v14 = vld [vmem:[%s16204_s1 + $0x604] ss:$12 sps:$4 sm:$0xff]   ;;  %v11598_v15 = vld [vmem:[%s16204_s1 + $0x600] ss:$12 sps:$4 sm:$0xff]  }
  0xc5   :  { %11066 = vmatprep.subr.bf16.mxu1 %v11524_v16  ;;  %v11601_v16 = vld [vmem:[%s16204_s1 + $0x968] ss:$12 sps:$4 sm:$0xff]  }
  0xc7   :  { %2424 = vmatpush1.bf16.msra.mxu0 %v11521_v17  ;;  %v11604_v17 = vld [vmem:[%s16204_s1 + $0x61c] ss:$12 sps:$4 sm:$0xff]  }
  0xc8   :  { %11067 = vmatpush3.bf16.msra.mxu1 %v11525_v18  ;;  %2425 = vmatprep.subr.bf16.mxu0 %v11528_v19  ;;  %v11602_v18 = vld [vmem:[%s16204_s1 + $0x618] ss:$12 sps:$4 sm:$0xff]   ;;  %v11605_v19 = vld [vmem:[%s16204_s1 + $0x980] ss:$12 sps:$4 sm:$0xff]  }
  0xc9   :  { %11068 = vmatprep.subr.bf16.mxu1 %v11529_v20  ;;  %v11608_v20 = vld [vmem:[%s16204_s1 + $0x634] ss:$12 sps:$4 sm:$0xff]  }
  0xcb   :  { %2426 = vmatpush1.bf16.msra.mxu0 %v11526_v21 }
  0xcc   :  { %11069 = vmatpush3.bf16.msra.mxu1 %v11530_v22  ;;  %2427 = vmatprep.subr.bf16.mxu0 %v11533_v23  ;;  %v11606_v22 = vld [vmem:[%s16204_s1 + $0x630] ss:$12 sps:$4 sm:$0xff]   ;;  %v11609_v23 = vld [vmem:[%s16204_s1 + $0x998] ss:$12 sps:$4 sm:$0xff]  }
  0xcd   :  { %11070 = vmatprep.subr.bf16.mxu1 %v11534_v24 }
  0xcf   :  { %2428 = vmatpush1.bf16.msra.mxu0 %v11531_v25 }
  0xd0   :  { %11071 = vmatpush3.bf16.msra.mxu1 %v11535_v26  ;;  %2429 = vmatprep.subr.bf16.mxu0 %v11538_v27  ;;  %v11610_v26 = vld [vmem:[%s16204_s1 + $0x648] ss:$12 sps:$4 sm:$0xff]   ;;  %v11613_v27 = vld [vmem:[%s16204_s1 + $0x9b0] ss:$12 sps:$4 sm:$0xff]  }
  0xd1   :  { %11078 = vmatprep.subr.bf16.mxu1 %v11542_v28  ;;  %v11616_v28 = vld [vmem:[%s16204_s1 + $0x664] ss:$12 sps:$4 sm:$0xff]  }
  0xd3   :  { %2790 = vmatmul.mubr.bf16.vlgmr.msra.gmra.mrb[20].mxu1 %v12842_v30  ;;  %2430 = vmatpush1.bf16.msra.mxu0 %v11536_v29  ;;  %v11614_v29 = vld [vmem:[%s16204_s1 + $0x660] ss:$12 sps:$4 sm:$0xff]  }
  0xd4   :  { %11079 = vmatpush3.bf16.msra.mxu1 %v11543_v31  ;;  %2431 = vmatprep.subr.bf16.mxu0 %v11546_v32  ;;  %v11617_v31 = vld [vmem:[%s16204_s1 + $0x9c8] ss:$12 sps:$4 sm:$0xff]  }
  0xd5   :  { %11080 = vmatprep.subr.bf16.mxu1 %v11547_v33  ;;  %2830 = vmatprep.mubr.bf16.mxu1 %v12856_v34  ;;  %v11620_v32 = vld [vmem:[%s16204_s1 + $0x67c] ss:$12 sps:$4 sm:$0xff]   ;;  %v11618_v33 = vld [vmem:[%s16204_s1 + $0x678] ss:$12 sps:$4 sm:$0xff]  }
  0xd7   :  { %2432 = vmatpush1.bf16.msra.mxu0 %v11544_v35  ;;  %v11621_v35 = vld [vmem:[%s16204_s1 + $0x9e0] ss:$12 sps:$4 sm:$0xff]  }
  0xd8   :  { %11081 = vmatpush3.bf16.msra.mxu1 %v11548_v36  ;;  %2433 = vmatprep.subr.bf16.mxu0 %v11551_v37  ;;  %v11624_v36 = vld [vmem:[%s16204_s1 + $0x694] ss:$12 sps:$4 sm:$0xff]   ;;  %v11622_v37 = vld [vmem:[%s16204_s1 + $0x690] ss:$12 sps:$4 sm:$0xff]  }
  0xd9   :  { %11082 = vmatprep.subr.bf16.mxu1 %v11552_v38  ;;  %v11625_v38 = vld [vmem:[%s16204_s1 + $0x9f8] ss:$12 sps:$4 sm:$0xff]  }
  0xdb   :  { %2434 = vmatpush1.bf16.msra.mxu0 %v11549_v39  ;;  %v11628_v39 = vld [vmem:[%s16204_s1 + $0x6ac] ss:$12 sps:$4 sm:$0xff]  }
  0xdc   :  { %11083 = vmatpush3.bf16.msra.mxu1 %v11553_v40  ;;  %2435 = vmatprep.subr.bf16.mxu0 %v11556_v41  ;;  %v11626_v40 = vld [vmem:[%s16204_s1 + $0x6a8] ss:$12 sps:$4 sm:$0xff]   ;;  %v11629_v41 = vld [vmem:[%s16204_s1 + $0xa10] ss:$12 sps:$4 sm:$0xff]  }
  0xdd   :  { %11084 = vmatprep.subr.bf16.mxu1 %v11557_v42  ;;  %v11632_v42 = vld [vmem:[%s16204_s1 + $0x6c4] ss:$12 sps:$4 sm:$0xff]  }
  0xdf   :  { %2436 = vmatpush1.bf16.msra.mxu0 %v11554_v43  ;;  %v11630_v43 = vld [vmem:[%s16204_s1 + $0x6c0] ss:$12 sps:$4 sm:$0xff]  }
  0xe0   :  { %11085 = vmatpush3.bf16.msra.mxu1 %v11558_v44  ;;  %2437 = vmatprep.subr.bf16.mxu0 %v11561_v45  ;;  %v11635_v44 = vld [vmem:[%s16204_s1 + $0x6dc] ss:$12 sps:$4 sm:$0xff]  }
  0xe1   :  { %11086 = vmatprep.subr.bf16.mxu1 %v11562_v46  ;;  %v12115_v45 = vld [vmem:[%s16205_s0 + $0x30] ss:$56 sps:$4 sm:$0xff]   ;;  %v11633_v46 = vld [vmem:[%s16204_s1 + $0x6d8] ss:$12 sps:$4 sm:$0xff]  }
  0xe3   :  { %2438 = vmatpush1.bf16.msra.mxu0 %v11559_v47  ;;  %v11638_v47 = vld [vmem:[%s16204_s1 + $0x6f4] ss:$12 sps:$4 sm:$0xff]  }
  0xe4   :  { %11087 = vmatpush3.bf16.msra.mxu1 %v11563_v48  ;;  %2439 = vmatprep.subr.bf16.mxu0 %v11566_v49 }
  0xe5   :  { %11088 = vmatprep.subr.bf16.mxu1 %v11567_v50  ;;  %v11636_v50 = vld [vmem:[%s16204_s1 + $0x6f0] ss:$12 sps:$4 sm:$0xff]  }
  0xe7   :  { %2440 = vmatpush1.bf16.msra.mxu0 %v11564_v51 }
  0xe8   :  { %11089 = vmatpush3.bf16.msra.mxu1 %v11568_v52  ;;  %2441 = vmatprep.subr.bf16.mxu0 %v11571_v53  ;;  %v11641_v53 = vld [vmem:[%s16204_s1 + $0x70c] ss:$12 sps:$4 sm:$0xff]  }
  0xe9   :  { %11090 = vmatprep.subr.bf16.mxu1 %v11572_v54 }
  0xeb   :  { %2442 = vmatpush1.bf16.msra.mxu0 %v11569_v55 }
  0xec   :  { %11091 = vmatpush3.bf16.msra.mxu1 %v11573_v56  ;;  %2443 = vmatprep.subr.bf16.mxu0 %v11576_v57  ;;  %v11639_v56 = vld [vmem:[%s16204_s1 + $0x708] ss:$12 sps:$4 sm:$0xff]   ;;  %v11644_v57 = vld [vmem:[%s16204_s1 + $0x724] ss:$12 sps:$4 sm:$0xff]  }
  0xed   :  { %11092 = vmatprep.subr.bf16.mxu1 %v11577_v58  ;;  %v11642_v58 = vld [vmem:[%s16204_s1 + $0x720] ss:$12 sps:$4 sm:$0xff]  }
  0xef   :  { %2444 = vmatpush1.bf16.msra.mxu0 %v11574_v59  ;;  %v11647_v59 = vld [vmem:[%s16204_s1 + $0x73c] ss:$12 sps:$4 sm:$0xff]  }
  0xf0   :  { %11093 = vmatpush3.bf16.msra.mxu1 %v11578_v61  ;;  %2445 = vmatprep.subr.bf16.mxu0 %v11584_v62  ;;  %v11645_v61 = vld [vmem:[%s16204_s1 + $0x738] ss:$12 sps:$4 sm:$0xff]   ;;  %v11650_v62 = vld [vmem:[%s16204_s1 + $0x754] ss:$12 sps:$4 sm:$0xff]  }
  0xf1   :  { %2839 = vmatprep.subr.bf16.mxu1 %v12117_v3 }
  0xf3   :  { %2831 = vmatmul.mubr.bf16.vlgmr.msra.gmra.mrb[24].mxu1 %v12944_v63  ;;  %2446 = vmatpush1.bf16.msra.mxu0 %v11582_v0  ;;  %v476_v0 = vlaneseq }
  0xf4   :  { %2840 = vmatpush1.bf16.msra.mxu1 %v11585_v2  ;;  %2447 = vmatprep.subr.bf16.mxu0 %v11588_v4  ;;  %v11648_v2 = vld [vmem:[%s16204_s1 + $0x750] ss:$12 sps:$4 sm:$0xff]   ;;  %v11653_v4 = vld [vmem:[%s16204_s1 + $0x76c] ss:$12 sps:$4 sm:$0xff]  }
  0xf5   :  { %2841 = vmatprep.subr.bf16.mxu1 %v12117_v3  ;;  %10074 = vmatprep.mubr.msk.bf16.mxu1 %vm2288_vm0, %v12114_v8 }
  0xf7   :  { %2448 = vmatpush1.bf16.msra.mxu0 %v11586_v5  ;;  %v13126_v5 = vshrl.u32 %v476_v0, 7 }
  0xf8   :  { %2842 = vmatpush1.bf16.msra.mxu1 %v11589_v6  ;;  %2449 = vmatprep.subr.bf16.mxu0 %v11592_v7  ;;  %v11651_v6 = vld [vmem:[%s16204_s1 + $0x768] ss:$12 sps:$4 sm:$0xff]   ;;  %v11656_v7 = vld [vmem:[%s16204_s1 + $0x784] ss:$12 sps:$4 sm:$0xff]  }
  0xf9   :  { %2843 = vmatprep.subr.bf16.mxu1 %v12117_v3  ;;  %v13135_v8 = vsub.s32 2, %v13126_v5 }
  0xfb   :  { %2450 = vmatpush1.bf16.msra.mxu0 %v11590_v9  ;;  %v13140_v9 = vld [vmem:[%s16206_s2] sm:$0x7] }
  0xfc   :  { %2844 = vmatpush1.bf16.msra.mxu1 %v11593_v10  ;;  %2451 = vmatprep.subr.bf16.mxu0 %v11596_v11  ;;  %v11654_v10 = vld [vmem:[%s16204_s1 + $0x780] ss:$12 sps:$4 sm:$0xff]   ;;  %v11659_v11 = vld [vmem:[%s16204_s1 + $0x79c] ss:$12 sps:$4 sm:$0xff]  }
  0xfd   :  { %2845 = vmatprep.subr.bf16.mxu1 %v12117_v3 }
  0xff   :  { %2452 = vmatpush1.bf16.msra.mxu0 %v11594_v12  ;;  %v487_v12 = vrot.slane %v13140_v9, %v13135_v8 }
 0x100   :  { %2846 = vmatpush1.bf16.msra.mxu1 %v11597_v13  ;;  %2464 = vmatprep.subr.bf16.mxu0 %v11600_v14  ;;  %v11657_v13 = vld [vmem:[%s16204_s1 + $0x798] ss:$12 sps:$4 sm:$0xff]   ;;  %v11662_v14 = vld [vmem:[%s16204_s1 + $0x7b4] ss:$12 sps:$4 sm:$0xff]  }
 0x101   :  { %2847 = vmatprep.subr.bf16.mxu1 %v12117_v3 }
 0x102   :  { %2454 = vmatmul.mubr.bf16.vlgmr.msra.gmra.mrb[0].mxu0 %v12732_v60 }
 0x103   :  { %2465 = vmatpush1.bf16.msra.mxu0 %v11598_v15  ;;  %2496 = vmatprep.mubr.bf16.mxu0 %v12749_v1  ;;  %v11612_v1 = vld [vmem:[%s16204_s1 + $0x64c] ss:$12 sps:$4 sm:$0xff]  }
 0x104   :  { %2848 = vmatpush1.bf16.msra.mxu1 %v11601_v16  ;;  %2466 = vmatprep.subr.bf16.mxu0 %v11604_v17 }
 0x105   :  { %2849 = vmatprep.subr.bf16.mxu1 %v12117_v3 }
 0x106   :  { %v13013_v60 = vpop.f32.mrb[0].mxu1 }
 0x107   :  { %v13015_v21 = vpop.f32.mrb[1].mxu1  ;;  %2467 = vmatpush1.bf16.msra.mxu0 %v11602_v18 }
 0x108   :  { %2850 = vmatpush1.bf16.msra.mxu1 %v11605_v19  ;;  %v13023_v24 = vpop.f32.mrb[2].mxu1  ;;  %2468 = vmatprep.subr.bf16.mxu0 %v11608_v20 }
 0x109   :  { %2851 = vmatprep.subr.bf16.mxu1 %v12117_v3  ;;  %v13029_v25 = vpop.f32.mrb[3].mxu1 }
 0x10b   :  { %2469 = vmatpush1.bf16.msra.mxu0 %v11606_v22 }
 0x10c   :  { %2852 = vmatpush1.bf16.msra.mxu1 %v11609_v23  ;;  %2470 = vmatprep.subr.bf16.mxu0 %v11612_v1 }
 0x10d   :  { %2853 = vmatprep.subr.bf16.mxu1 %v12117_v3 }
 0x10f   :  { %2471 = vmatpush1.bf16.msra.mxu0 %v11610_v26  ;;  %v11663_v26 = vld [vmem:[%s16204_s1 + $0x7c8] ss:$12 sps:$4 sm:$0xff]  }
 0x110   :  { %2854 = vmatpush1.bf16.msra.mxu1 %v11613_v27  ;;  %2472 = vmatprep.subr.bf16.mxu0 %v11616_v28  ;;  %v11668_v28 = vld [vmem:[%s16204_s1 + $0x7e4] ss:$12 sps:$4 sm:$0xff]  }
 0x111   :  { %2855 = vmatprep.subr.bf16.mxu1 %v12117_v3 }
 0x113   :  { %2473 = vmatpush1.bf16.msra.mxu0 %v11614_v29  ;;  %v11666_v29 = vld [vmem:[%s16204_s1 + $0x7e0] ss:$12 sps:$4 sm:$0xff]  }
 0x114   :  { %2856 = vmatpush1.bf16.msra.mxu1 %v11617_v31  ;;  %2474 = vmatprep.subr.bf16.mxu0 %v11620_v32  ;;  %v11671_v31 = vld [vmem:[%s16204_s1 + $0x7fc] ss:$12 sps:$4 sm:$0xff]   ;;  %v11669_v32 = vld [vmem:[%s16204_s1 + $0x7f8] ss:$12 sps:$4 sm:$0xff]  }
 0x115   :  { %2857 = vmatprep.subr.bf16.mxu1 %v12117_v3 }
 0x117   :  { %2475 = vmatpush1.bf16.msra.mxu0 %v11618_v33  ;;  %v11674_v33 = vld [vmem:[%s16204_s1 + $0x814] ss:$12 sps:$4 sm:$0xff]  }
 0x118   :  { %2858 = vmatpush1.bf16.msra.mxu1 %v11621_v35  ;;  %2476 = vmatprep.subr.bf16.mxu0 %v11624_v36  ;;  %v11672_v35 = vld [vmem:[%s16204_s1 + $0x810] ss:$12 sps:$4 sm:$0xff]   ;;  %v11677_v36 = vld [vmem:[%s16204_s1 + $0x82c] ss:$12 sps:$4 sm:$0xff]  }
 0x119   :  { %2859 = vmatprep.subr.bf16.mxu1 %v12117_v3 }
 0x11b   :  { %2477 = vmatpush1.bf16.msra.mxu0 %v11622_v37  ;;  %v11675_v37 = vld [vmem:[%s16204_s1 + $0x828] ss:$12 sps:$4 sm:$0xff]  }
 0x11c   :  { %2860 = vmatpush1.bf16.msra.mxu1 %v11625_v38  ;;  %2478 = vmatprep.subr.bf16.mxu0 %v11628_v39  ;;  %v11680_v38 = vld [vmem:[%s16204_s1 + $0x844] ss:$12 sps:$4 sm:$0xff]   ;;  %v11678_v39 = vld [vmem:[%s16204_s1 + $0x840] ss:$12 sps:$4 sm:$0xff]  }
 0x11d   :  { %2861 = vmatprep.subr.bf16.mxu1 %v12117_v3 }
 0x11f   :  { %2479 = vmatpush1.bf16.msra.mxu0 %v11626_v40  ;;  %v11683_v40 = vld [vmem:[%s16204_s1 + $0x85c] ss:$12 sps:$4 sm:$0xff]  }
 0x120   :  { %2862 = vmatpush1.bf16.msra.mxu1 %v11629_v41  ;;  %2480 = vmatprep.subr.bf16.mxu0 %v11632_v42  ;;  %v11681_v41 = vld [vmem:[%s16204_s1 + $0x858] ss:$12 sps:$4 sm:$0xff]   ;;  %v11686_v42 = vld [vmem:[%s16204_s1 + $0x874] ss:$12 sps:$4 sm:$0xff]  }
 0x123   :  { %2872 = vmatmul.mubr.bf16.vlgmr.msra.gmra.mrb[28].mxu1 %v12115_v45  ;;  %2481 = vmatpush1.bf16.msra.mxu0 %v11630_v43  ;;  %v11684_v45 = vld [vmem:[%s16204_s1 + $0x870] ss:$12 sps:$4 sm:$0xff]  }
 0x124   :  { %2482 = vmatprep.subr.bf16.mxu0 %v11635_v44 }
 0x126   :  { %v10984_v48 = vpop.f32.mrb[4].mxu1 }
 0x127   :  { %v10985_v49 = vpop.f32.mrb[5].mxu1  ;;  %2483 = vmatpush1.bf16.msra.mxu0 %v11633_v46 }
 0x128   :  { %v10986_v51 = vadd.f32 %v10985_v49, %v10984_v48  ;;  %v10987_v52 = vpop.f32.mrb[6].mxu1  ;;  %2484 = vmatprep.subr.bf16.mxu0 %v11638_v47  ;;  %v11689_v48 = vld [vmem:[%s16204_s1 + $0x88c] ss:$12 sps:$4 sm:$0xff]  }
 0x129   :  { %v10988_v54 = vpop.f32.mrb[7].mxu1 }
 0x12a   :  { %v10989_v55 = vadd.f32 %v10988_v54, %v10987_v52  ;;  %v2628_v15 = vadd.f32 %v10986_v51, %v487_v12  ;;  %v11687_v52 = vld [vmem:[%s16204_s1 + $0x888] ss:$12 sps:$4 sm:$0xff]   ;;  %v11692_v54 = vld [vmem:[%s16204_s1 + $0x8a4] ss:$12 sps:$4 sm:$0xff]  }
 0x12b   :  { %2485 = vmatpush1.bf16.msra.mxu0 %v11636_v50 }
 0x12c   :  { %2486 = vmatprep.subr.bf16.mxu0 %v11641_v53  ;;  %v2631_v18 = vadd.f32 %v10989_v55, %v487_v12  ;;  %v11690_v55 = vld [vmem:[%s16204_s1 + $0x8a0] ss:$12 sps:$4 sm:$0xff]  }
 0x12f   :  { %2487 = vmatpush1.bf16.msra.mxu0 %v11639_v56  ;;  %v11695_v56 = vld [vmem:[%s16204_s1 + $0x8bc] ss:$12 sps:$4 sm:$0xff]  }
 0x130   :  { %2488 = vmatprep.subr.bf16.mxu0 %v11644_v57  ;;  %v11693_v57 = vld [vmem:[%s16204_s1 + $0x8b8] ss:$12 sps:$4 sm:$0xff]  }
 0x133   :  { %2489 = vmatpush1.bf16.msra.mxu0 %v11642_v58  ;;  %v11698_v58 = vld [vmem:[%s16204_s1 + $0x8d4] ss:$12 sps:$4 sm:$0xff]  }
 0x134   :  { %2490 = vmatprep.subr.bf16.mxu0 %v11647_v59  ;;  %v11696_v59 = vld [vmem:[%s16204_s1 + $0x8d0] ss:$12 sps:$4 sm:$0xff]  }
 0x137   :  { %2491 = vmatpush1.bf16.msra.mxu0 %v11645_v61  ;;  %v11701_v61 = vld [vmem:[%s16204_s1 + $0x8ec] ss:$12 sps:$4 sm:$0xff]  }
 0x138   :  { %2492 = vmatprep.subr.bf16.mxu0 %v11650_v62  ;;  %v11699_v62 = vld [vmem:[%s16204_s1 + $0x8e8] ss:$12 sps:$4 sm:$0xff]  }
 0x13b   :  { %2493 = vmatpush1.bf16.msra.mxu0 %v11648_v2 }
 0x13c   :  { %2494 = vmatprep.subr.bf16.mxu0 %v11653_v4 }
 0x13f   :  { %2495 = vmatpush1.bf16.msra.mxu0 %v11651_v6 }
 0x140   :  { %2507 = vmatprep.subr.bf16.mxu0 %v11656_v7 }
 0x142   :  { %2497 = vmatmul.mubr.bf16.vlgmr.msra.gmra.mrb[0].mxu0 %v12842_v30  ;;  %v11660_v30 = vld [vmem:[%s16204_s1 + $0x7b0] ss:$12 sps:$4 sm:$0xff]  }
 0x143   :  { %2508 = vmatpush1.bf16.msra.mxu0 %v11654_v10  ;;  %2539 = vmatprep.mubr.bf16.mxu0 %v12856_v34  ;;  %v11665_v34 = vld [vmem:[%s16204_s1 + $0x7cc] ss:$12 sps:$4 sm:$0xff]  }
 0x144   :  { %2509 = vmatprep.subr.bf16.mxu0 %v11659_v11 }
 0x146   :  { %v11006_v16 = vpop.f32.mrb[8].mxu1 }
 0x147   :  { %v11007_v17 = vpop.f32.mrb[9].mxu1  ;;  %2510 = vmatpush1.bf16.msra.mxu0 %v11657_v13  ;;  %v11702_v13 = vld [vmem:[%s16207_s3] ss:$40 sps:$4 sm:$0xff]  }
 0x148   :  { %v11008_v19 = vadd.f32 %v11007_v17, %v11006_v16  ;;  %v11009_v20 = vpop.f32.mrb[10].mxu1  ;;  %2511 = vmatprep.subr.bf16.mxu0 %v11662_v14  ;;  %v11704_v14 = vld [vmem:[%s16207_s3 + $0x4] ss:$40 sps:$4 sm:$0xff]   ;;  %v11708_v16 = vld [vmem:[%s16207_s3 + $0x50] ss:$40 sps:$4 sm:$0xff]  }
 0x149   :  { %v11010_v22 = vpop.f32.mrb[11].mxu1  ;;  %4413 = vmatprep.subr.bf16.mxu1 %v11704_v14  ;;  %v11710_v17 = vld [vmem:[%s16207_s3 + $0x54] ss:$40 sps:$4 sm:$0xff]  }
 0x14a   :  { %v2669_v23 = vadd.f32 %v11008_v19, %v2628_v15  ;;  %v11011_v1 = vadd.f32 %v11010_v22, %v11009_v20  ;;  %v11707_v15 = vld [vmem:[%s16207_s3 + $0x14] ss:$40 sps:$4 sm:$0xff]   ;;  %4414 = vmatpush1.bf16.msra.mxu1 %v11702_v13  ;;  %v11716_v20 = vld [vmem:[%s16207_s3 + $0xa4] ss:$40 sps:$4 sm:$0xff]   ;;  %v11714_v22 = vld [vmem:[%s16207_s3 + $0xa0] ss:$40 sps:$4 sm:$0xff]  }
 0x14b   :  { %2512 = vmatpush1.bf16.msra.mxu0 %v11660_v30  ;;  %v11711_v30 = vld [vmem:[%s16207_s3 + $0x60] ss:$40 sps:$4 sm:$0xff]   ;;  %4415 = vmatprep.subr.bf16.mxu1 %v11710_v17  ;;  %v11764_v13 = vld [vmem:[%s16207_s3 + $0x324] ss:$40 sps:$4 sm:$0xff]   ;;  %v11767_v14 = vld [vmem:[%s16207_s3 + $0x334] ss:$40 sps:$4 sm:$0xff]  }
 0x14c   :  { %v2672_v27 = vadd.f32 %v11011_v1, %v2631_v18  ;;  %2513 = vmatprep.subr.bf16.mxu0 %v11665_v34  ;;  %v11713_v18 = vld [vmem:[%s16207_s3 + $0x64] ss:$40 sps:$4 sm:$0xff]  }
 0x14d   :  { %v11773_v17 = vld [vmem:[%s16207_s3 + $0x384] ss:$40 sps:$4 sm:$0xff]  }
 0x14e   :  { %4416 = vmatpush1.bf16.msra.mxu1 %v11708_v16  ;;  %v11770_v16 = vld [vmem:[%s16207_s3 + $0x374] ss:$40 sps:$4 sm:$0xff]  }
 0x14f   :  { %2514 = vmatpush1.bf16.msra.mxu0 %v11663_v26  ;;  %4417 = vmatprep.subr.bf16.mxu1 %v11716_v20  ;;  %v11779_v20 = vld [vmem:[%s16207_s3 + $0x3d4] ss:$40 sps:$4 sm:$0xff]  }
 0x150   :  { %2515 = vmatprep.subr.bf16.mxu0 %v11668_v28 }
 0x152   :  { %4418 = vmatpush1.bf16.msra.mxu1 %v11714_v22  ;;  %v11777_v22 = vld [vmem:[%s16207_s3 + $0x3d0] ss:$40 sps:$4 sm:$0xff]  }
 0x153   :  { %2516 = vmatpush1.bf16.msra.mxu0 %v11666_v29  ;;  %v11722_v29 = vld [vmem:[%s16207_s3 + $0xf4] ss:$40 sps:$4 sm:$0xff]  }
 0x154   :  { %2517 = vmatprep.subr.bf16.mxu0 %v11671_v31  ;;  %4419 = vmatprep.subr.bf16.mxu1 %v11722_v29  ;;  %v11780_v29 = vld [vmem:[%s16207_s3 + $0x410] ss:$40 sps:$4 sm:$0xff]  }
 0x157   :  { %2518 = vmatpush1.bf16.msra.mxu0 %v11669_v32 }
 0x158   :  { %2519 = vmatprep.subr.bf16.mxu0 %v11674_v33  ;;  %v11725_v33 = vld [vmem:[%s16207_s3 + $0x104] ss:$40 sps:$4 sm:$0xff]  }
 0x15b   :  { %2520 = vmatpush1.bf16.msra.mxu0 %v11672_v35  ;;  %v11720_v35 = vld [vmem:[%s16207_s3 + $0xf0] ss:$40 sps:$4 sm:$0xff]  }
 0x15c   :  { %2521 = vmatprep.subr.bf16.mxu0 %v11677_v36  ;;  %v11723_v36 = vld [vmem:[%s16207_s3 + $0x100] ss:$40 sps:$4 sm:$0xff]   ;;  %4420 = vmatpush1.bf16.msra.mxu1 %v11720_v35 }
 0x15f   :  { %2522 = vmatpush1.bf16.msra.mxu0 %v11675_v37 }
 0x160   :  { %2523 = vmatprep.subr.bf16.mxu0 %v11680_v38  ;;  %v11728_v38 = vld [vmem:[%s16207_s3 + $0x144] ss:$40 sps:$4 sm:$0xff]  }
 0x161   :  { %4421 = vmatprep.subr.bf16.mxu1 %v11728_v38 }
 0x163   :  { %2524 = vmatpush1.bf16.msra.mxu0 %v11678_v39  ;;  %v11731_v39 = vld [vmem:[%s16207_s3 + $0x154] ss:$40 sps:$4 sm:$0xff]  }
 0x164   :  { %2525 = vmatprep.subr.bf16.mxu0 %v11683_v40  ;;  %v11726_v40 = vld [vmem:[%s16207_s3 + $0x140] ss:$40 sps:$4 sm:$0xff]  }
 0x165   :  { %4422 = vmatpush1.bf16.msra.mxu1 %v11726_v40  ;;  %v11789_v40 = vld [vmem:[%s16207_s3 + $0x470] ss:$40 sps:$4 sm:$0xff]  }
 0x166   :  { %v11028_v43 = vpop.f32.mrb[12].mxu1 }
 0x167   :  { %v11029_v44 = vpop.f32.mrb[13].mxu1  ;;  %2526 = vmatpush1.bf16.msra.mxu0 %v11681_v41  ;;  %v11729_v41 = vld [vmem:[%s16207_s3 + $0x150] ss:$40 sps:$4 sm:$0xff]  }
 0x168   :  { %v11030_v46 = vadd.f32 %v11029_v44, %v11028_v43  ;;  %v11031_v47 = vpop.f32.mrb[14].mxu1  ;;  %2527 = vmatprep.subr.bf16.mxu0 %v11686_v42 }
 0x169   :  { %v11032_v49 = vpop.f32.mrb[15].mxu1 }
 0x16a   :  { %v2710_v50 = vadd.f32 %v11030_v46, %v2669_v23  ;;  %v11033_v51 = vadd.f32 %v11032_v49, %v11031_v47  ;;  %v11719_v23 = vld [vmem:[%s16207_s3 + $0xb4] ss:$40 sps:$4 sm:$0xff]  }
 0x16b   :  { %2528 = vmatpush1.bf16.msra.mxu0 %v11684_v45 }
 0x16c   :  { %v2713_v53 = vadd.f32 %v11033_v51, %v2672_v27  ;;  %2529 = vmatprep.subr.bf16.mxu0 %v11689_v48  ;;  %v11717_v27 = vld [vmem:[%s16207_s3 + $0xb0] ss:$40 sps:$4 sm:$0xff]   ;;  %v11737_v51 = vld [vmem:[%s16207_s3 + $0x1a4] ss:$40 sps:$4 sm:$0xff]  }
 0x16f   :  { %2530 = vmatpush1.bf16.msra.mxu0 %v11687_v52  ;;  %v11732_v52 = vld [vmem:[%s16207_s3 + $0x190] ss:$40 sps:$4 sm:$0xff]  }
 0x170   :  { %2531 = vmatprep.subr.bf16.mxu0 %v11692_v54  ;;  %v11740_v54 = vld [vmem:[%s16207_s3 + $0x1e4] ss:$40 sps:$4 sm:$0xff]  }
 0x173   :  { %2532 = vmatpush1.bf16.msra.mxu0 %v11690_v55  ;;  %v11743_v55 = vld [vmem:[%s16207_s3 + $0x1f4] ss:$40 sps:$4 sm:$0xff]  }
 0x174   :  { %2533 = vmatprep.subr.bf16.mxu0 %v11695_v56  ;;  %v11738_v56 = vld [vmem:[%s16207_s3 + $0x1e0] ss:$40 sps:$4 sm:$0xff]  }
 0x177   :  { %2534 = vmatpush1.bf16.msra.mxu0 %v11693_v57  ;;  %v11741_v57 = vld [vmem:[%s16207_s3 + $0x1f0] ss:$40 sps:$4 sm:$0xff]  }
 0x178   :  { %2535 = vmatprep.subr.bf16.mxu0 %v11698_v58  ;;  %v11746_v58 = vld [vmem:[%s16207_s3 + $0x234] ss:$40 sps:$4 sm:$0xff]  }
 0x17b   :  { %2536 = vmatpush1.bf16.msra.mxu0 %v11696_v59  ;;  %v11749_v59 = vld [vmem:[%s16207_s3 + $0x244] ss:$40 sps:$4 sm:$0xff]  }
 0x17c   :  { %2537 = vmatprep.subr.bf16.mxu0 %v11701_v61  ;;  %v11744_v61 = vld [vmem:[%s16207_s3 + $0x230] ss:$40 sps:$4 sm:$0xff]  }
 0x17f   :  { %2538 = vmatpush1.bf16.msra.mxu0 %v11699_v62  ;;  %v11747_v62 = vld [vmem:[%s16207_s3 + $0x240] ss:$40 sps:$4 sm:$0xff]  }
 0x180   :  { %4585 = vmatprep.subr.bf16.mxu0 %v11707_v15  ;;  %v11765_v15 = vld [vmem:[%s16207_s3 + $0x330] ss:$40 sps:$4 sm:$0xff]  }
 0x182   :  { %2540 = vmatmul.mubr.bf16.vlgmr.msra.gmra.mrb[0].mxu0 %v12944_v63  ;;  %v11705_v63 = vld [vmem:[%s16207_s3 + $0x10] ss:$40 sps:$4 sm:$0xff]  }
 0x183   :  { %4586 = vmatpush1.bf16.msra.mxu0 %v11705_v63  ;;  %v11762_v63 = vld [vmem:[%s16207_s3 + $0x320] ss:$40 sps:$4 sm:$0xff]  }
 0x184   :  { %4587 = vmatprep.subr.bf16.mxu0 %v11713_v18  ;;  %v11771_v18 = vld [vmem:[%s16207_s3 + $0x380] ss:$40 sps:$4 sm:$0xff]  }
 0x186   :  { %v11050_v0 = vpop.f32.mrb[16].mxu1 }
 0x187   :  { %v11051_v2 = vpop.f32.mrb[17].mxu1  ;;  %4588 = vmatpush1.bf16.msra.mxu0 %v11711_v30  ;;  %v11768_v30 = vld [vmem:[%s16207_s3 + $0x370] ss:$40 sps:$4 sm:$0xff]  }
 0x188   :  { %v11052_v4 = vadd.f32 %v11051_v2, %v11050_v0  ;;  %v11053_v6 = vpop.f32.mrb[18].mxu1  ;;  %4589 = vmatprep.subr.bf16.mxu0 %v11719_v23  ;;  %v11752_v0 = vld [vmem:[%s16207_s3 + $0x284] ss:$40 sps:$4 sm:$0xff]   ;;  %v11755_v2 = vld [vmem:[%s16207_s3 + $0x294] ss:$40 sps:$4 sm:$0xff]  }
 0x189   :  { %v11054_v7 = vpop.f32.mrb[19].mxu1 }
 0x18a   :  { %v2751_v10 = vadd.f32 %v11052_v4, %v2710_v50  ;;  %v11055_v11 = vadd.f32 %v11054_v7, %v11053_v6  ;;  %v11734_v50 = vld [vmem:[%s16207_s3 + $0x194] ss:$40 sps:$4 sm:$0xff]   ;;  %v11750_v4 = vld [vmem:[%s16207_s3 + $0x280] ss:$40 sps:$4 sm:$0xff]   ;;  %v11753_v6 = vld [vmem:[%s16207_s3 + $0x290] ss:$40 sps:$4 sm:$0xff]  }
 0x18b   :  { %4590 = vmatpush1.bf16.msra.mxu0 %v11717_v27  ;;  %4423 = vmatprep.subr.bf16.mxu1 %v11734_v50  ;;  %v11758_v7 = vld [vmem:[%s16207_s3 + $0x2d4] ss:$40 sps:$4 sm:$0xff]  }
 0x18c   :  { %v2754_v12 = vadd.f32 %v11055_v11, %v2713_v53  ;;  %4591 = vmatprep.subr.bf16.mxu0 %v11725_v33  ;;  %v11735_v53 = vld [vmem:[%s16207_s3 + $0x1a0] ss:$40 sps:$4 sm:$0xff]   ;;  %4424 = vmatpush1.bf16.msra.mxu1 %v11732_v52  ;;  %v11756_v11 = vld [vmem:[%s16207_s3 + $0x2d0] ss:$40 sps:$4 sm:$0xff]  }
 0x18d   :  { %4425 = vmatprep.subr.bf16.mxu1 %v11740_v54 }
 0x18f   :  { %4592 = vmatpush1.bf16.msra.mxu0 %v11723_v36  ;;  %v11788_v36 = vld [vmem:[%s16207_s3 + $0x464] ss:$40 sps:$4 sm:$0xff]  }
 0x190   :  { %4593 = vmatprep.subr.bf16.mxu0 %v11731_v39  ;;  %4426 = vmatpush1.bf16.msra.mxu1 %v11738_v56  ;;  %v11786_v39 = vld [vmem:[%s16207_s3 + $0x460] ss:$40 sps:$4 sm:$0xff]  }
 0x191   :  { %4427 = vmatprep.subr.bf16.mxu1 %v11746_v58  ;;  %v13450_v58 = vsub.s32 1, %v13126_v5 }
 0x193   :  { %4594 = vmatpush1.bf16.msra.mxu0 %v11729_v41 }
 0x194   :  { %4595 = vmatprep.subr.bf16.mxu0 %v11737_v51  ;;  %4428 = vmatpush1.bf16.msra.mxu1 %v11744_v61  ;;  %v483_v61 = vrot.slane %v13140_v9, %v13450_v58 }
 0x195   :  { %4429 = vmatprep.subr.bf16.mxu1 %v11752_v0 }
 0x197   :  { %4596 = vmatpush1.bf16.msra.mxu0 %v11735_v53 }
 0x198   :  { %4597 = vmatprep.subr.bf16.mxu0 %v11743_v55  ;;  %4430 = vmatpush1.bf16.msra.mxu1 %v11750_v4 }
 0x199   :  { %4431 = vmatprep.subr.bf16.mxu1 %v11758_v7 }
 0x19b   :  { %4598 = vmatpush1.bf16.msra.mxu0 %v11741_v57  ;;  %v13447_v57 = vsub.s32 0, %v13126_v5 }
 0x19c   :  { %4599 = vmatprep.subr.bf16.mxu0 %v11749_v59  ;;  %4432 = vmatpush1.bf16.msra.mxu1 %v11756_v11 }
 0x19d   :  { %4433 = vmatprep.subr.bf16.mxu1 %v11764_v13  ;;  %v479_v59 = vrot.slane %v13140_v9, %v13447_v57 }
 0x19f   :  { %4600 = vmatpush1.bf16.msra.mxu0 %v11747_v62 }
 0x1a0   :  { %4601 = vmatprep.subr.bf16.mxu0 %v11755_v2  ;;  %4434 = vmatpush1.bf16.msra.mxu1 %v11762_v63 }
 0x1a1   :  { %4435 = vmatprep.subr.bf16.mxu1 %v11770_v16 }
 0x1a3   :  { %4602 = vmatpush1.bf16.msra.mxu0 %v11753_v6 }
 0x1a4   :  { %4436 = vmatpush1.bf16.msra.mxu1 %v11768_v30 }
 0x1a6   :  { %v11072_v19 = vpop.f32.mrb[20].mxu1 }
 0x1a7   :  { %v11073_v34 = vpop.f32.mrb[21].mxu1 }
 0x1a8   :  { %v11074_v1 = vadd.f32 %v11073_v34, %v11072_v19  ;;  %v11075_v26 = vpop.f32.mrb[22].mxu1  ;;  %v11776_v19 = vld [vmem:[%s16207_s3 + $0x3c4] ss:$40 sps:$4 sm:$0xff]   ;;  %v11774_v34 = vld [vmem:[%s16207_s3 + $0x3c0] ss:$40 sps:$4 sm:$0xff]  }
 0x1a9   :  { %v11076_v28 = vpop.f32.mrb[23].mxu1  ;;  %4437 = vmatprep.subr.bf16.mxu1 %v11776_v19 }
 0x1aa   :  { %v2792_v31 = vadd.f32 %v11074_v1, %v2751_v10  ;;  %v11077_v32 = vadd.f32 %v11076_v28, %v11075_v26  ;;  %v11761_v10 = vld [vmem:[%s16207_s3 + $0x2e4] ss:$40 sps:$4 sm:$0xff]   ;;  %4438 = vmatpush1.bf16.msra.mxu1 %v11774_v34  ;;  %v11782_v1 = vld [vmem:[%s16207_s3 + $0x414] ss:$40 sps:$4 sm:$0xff]  }
 0x1ab   :  { %4603 = vmatprep.subr.bf16.mxu0 %v11761_v10  ;;  %v11785_v26 = vld [vmem:[%s16207_s3 + $0x424] ss:$40 sps:$4 sm:$0xff]   ;;  %4439 = vmatprep.subr.bf16.mxu1 %v11782_v1 }
 0x1ac   :  { %v2795_v37 = vadd.f32 %v11077_v32, %v2754_v12  ;;  %v11759_v12 = vld [vmem:[%s16207_s3 + $0x2e0] ss:$40 sps:$4 sm:$0xff]  }
 0x1ad   :  { %4604 = vmatpush1.bf16.msra.mxu0 %v11759_v12 }
 0x1ae   :  { %4605 = vmatprep.subr.bf16.mxu0 %v11767_v14  ;;  %4440 = vmatpush1.bf16.msra.mxu1 %v11780_v29 }
 0x1af   :  { %4441 = vmatprep.subr.bf16.mxu1 %v11788_v36  ;;  %v11806_v36 = vld [vmem:[%s16207_s3 + $0x554] ss:$40 sps:$4 sm:$0xff]  }
 0x1b1   :  { %4606 = vmatpush1.bf16.msra.mxu0 %v11765_v15 }
 0x1b2   :  { %4607 = vmatprep.subr.bf16.mxu0 %v11773_v17  ;;  %4442 = vmatpush1.bf16.msra.mxu1 %v11786_v39  ;;  %v11807_v39 = vld [vmem:[%s16207_s3 + $0x560] ss:$40 sps:$4 sm:$0xff]  }
 0x1b5   :  { %4608 = vmatpush1.bf16.msra.mxu0 %v11771_v18 }
 0x1b6   :  { %4609 = vmatprep.subr.bf16.mxu0 %v11779_v20 }
 0x1b9   :  { %4610 = vmatpush1.bf16.msra.mxu0 %v11777_v22 }
 0x1ba   :  { %4611 = vmatprep.subr.bf16.mxu0 %v11785_v26 }
 0x1c6   :  { %v11094_v42 = vpop.f32.mrb[24].mxu1 }
 0x1c7   :  { %v11095_v43 = vpop.f32.mrb[25].mxu1 }
 0x1c8   :  { %v11096_v44 = vadd.f32 %v11095_v43, %v11094_v42  ;;  %v11097_v45 = vpop.f32.mrb[26].mxu1  ;;  %v11794_v42 = vld [vmem:[%s16207_s3 + $0x4b4] ss:$40 sps:$4 sm:$0xff]   ;;  %v11797_v43 = vld [vmem:[%s16207_s3 + $0x4c4] ss:$40 sps:$4 sm:$0xff]  }
 0x1c9   :  { %v11098_v46 = vpop.f32.mrb[27].mxu1  ;;  %4443 = vmatprep.subr.bf16.mxu1 %v11794_v42  ;;  %v11810_v42 = vld [vmem:[%s16207_s3 + $0x5a0] ss:$40 sps:$4 sm:$0xff]  }
 0x1ca   :  { %v11099_v47 = vadd.f32 %v11098_v46, %v11097_v45  ;;  %v13300_v48 = vadd.f32 %v11096_v44, %v2792_v31  ;;  %v11783_v31 = vld [vmem:[%s16207_s3 + $0x420] ss:$40 sps:$4 sm:$0xff]   ;;  %v11792_v44 = vld [vmem:[%s16207_s3 + $0x4b0] ss:$40 sps:$4 sm:$0xff]   ;;  %v11800_v46 = vld [vmem:[%s16207_s3 + $0x504] ss:$40 sps:$4 sm:$0xff]  }
 0x1cb   :  { %4612 = vmatpush1.bf16.msra.mxu0 %v11783_v31  ;;  %v11795_v45 = vld [vmem:[%s16207_s3 + $0x4c0] ss:$40 sps:$4 sm:$0xff]   ;;  %4444 = vmatpush1.bf16.msra.mxu1 %v11792_v44  ;;  %v11818_v44 = vld [vmem:[%s16207_s3 + $0x5f4] ss:$40 sps:$4 sm:$0xff]  }
 0x1cc   :  { %v13302_v49 = vadd.f32 %v11099_v47, %v2795_v37  ;;  %v11791_v37 = vld [vmem:[%s16207_s3 + $0x474] ss:$40 sps:$4 sm:$0xff]   ;;  %4456 = vmatprep.subr.bf16.mxu1 %v11800_v46  ;;  %v11816_v46 = vld [vmem:[%s16207_s3 + $0x5f0] ss:$40 sps:$4 sm:$0xff]  }
 0x1cd   :  { %4613 = vmatprep.subr.bf16.mxu0 %v11791_v37  ;;  %v11803_v47 = vld [vmem:[%s16207_s3 + $0x514] ss:$40 sps:$4 sm:$0xff]   ;;  %v11809_v37 = vld [vmem:[%s16207_s3 + $0x564] ss:$40 sps:$4 sm:$0xff]  }
 0x1cf   :  { %4614 = vmatpush1.bf16.msra.mxu0 %v11789_v40  ;;  %v11812_v40 = vld [vmem:[%s16207_s3 + $0x5a4] ss:$40 sps:$4 sm:$0xff]  }
 0x1d0   :  { %4615 = vmatprep.subr.bf16.mxu0 %v11797_v43  ;;  %v11813_v43 = vld [vmem:[%s16207_s3 + $0x5b0] ss:$40 sps:$4 sm:$0xff]  }
 0x1d3   :  { %4616 = vmatpush1.bf16.msra.mxu0 %v11795_v45  ;;  %v11821_v45 = vld [vmem:[%s16207_s3 + $0x604] ss:$40 sps:$4 sm:$0xff]  }
 0x1d4   :  { %4628 = vmatprep.subr.bf16.mxu0 %v11803_v47  ;;  %v11819_v47 = vld [vmem:[%s16207_s3 + $0x600] ss:$40 sps:$4 sm:$0xff]  }
 0x1f6   :  { %v2873_v23 = vpop.f32.mrb[28].mxu1 }
 0x1f7   :  { %v2874_v27 = vadd.f32 %v2873_v23, %v13300_v48  ;;  %v2875_v28 = vpop.f32.mrb[29].mxu1 }
 0x1f8   :  { %v2876_v32 = vpop.f32.mrb[30].mxu1 }
 0x1f9   :  { %v2877_v33 = vadd.f32 %v2876_v32, %v13302_v49  ;;  %v2878_v35 = vpop.f32.mrb[31].mxu1 }
 0x1fa   :  { %v11801_v35 = vld [vmem:[%s16207_s3 + $0x510] ss:$40 sps:$4 sm:$0xff]  }
 0x1fb   :  { %v2882_v38 = vpack.c.bf16 %v2877_v33, %v2874_v27 }
 0x1fd   :  { %v10077_v41 = vmul.bf16 3216621497, %v2882_v38  ;;  %v11804_v38 = vld [vmem:[%s16207_s3 + $0x550] ss:$40 sps:$4 sm:$0xff]  }
 0x1ff   :  { %12062 = vpow.bf16 %v10077_v41  ;;  %v11815_v41 = vld [vmem:[%s16207_s3 + $0x5b4] ss:$40 sps:$4 sm:$0xff]  }
 0x20a   :  { %v12063_v48 = vpop.eup %12062 }
 0x20b   :  { %v2897_v49 = vadd.bf16 1065369472, %v12063_v48  ;;  %v11824_v48 = vld [vmem:[%s16207_s3 + $0x644] ss:$40 sps:$4 sm:$0xff]  }
 0x20d   :  { %12064 = vrcp.bf16 %v2897_v49  ;;  %v11827_v49 = vld [vmem:[%s16207_s3 + $0x654] ss:$40 sps:$4 sm:$0xff]  }
 0x218   :  { %v12065_v50 = vpop.eup %12064 }
 0x219   :  { %v2903_v51 = vmul.bf16 1065369472, %v12065_v50  ;;  %v11822_v50 = vld [vmem:[%s16207_s3 + $0x640] ss:$40 sps:$4 sm:$0xff]  }
 0x21b   :  { %v2906_v52 = vunpack.c.l.bf16 %v2903_v51  ;;  %v2909_v53 = vunpack.c.h.bf16 %v2903_v51  ;;  %v11825_v51 = vld [vmem:[%s16207_s3 + $0x650] ss:$40 sps:$4 sm:$0xff]  }
 0x21d   :  { %v2912_v54 = vmul.f32 %v2906_v52, %v2874_v27  ;;  %v2915_v55 = vmul.f32 %v2909_v53, %v2877_v33  ;;  %v11798_v33 = vld [vmem:[%s16207_s3 + $0x500] ss:$40 sps:$4 sm:$0xff]   ;;  %v11830_v52 = vld [vmem:[%s16207_s3 + $0x694] ss:$40 sps:$4 sm:$0xff]   ;;  %v11833_v53 = vld [vmem:[%s16207_s3 + $0x6a4] ss:$40 sps:$4 sm:$0xff]  }
 0x21f   :  { %v13444_v56 = vpack.c.bf16 %v2915_v55, %v2912_v54  ;;  %v11828_v54 = vld [vmem:[%s16207_s3 + $0x690] ss:$40 sps:$4 sm:$0xff]   ;;  %v11831_v55 = vld [vmem:[%s16207_s3 + $0x6a0] ss:$40 sps:$4 sm:$0xff]  }
 0x255   :  { %v2541_v62 = vpop.f32.mrb[0].mxu0 }
 0x256   :  { %v11100_v0 = vadd.f32 %v2541_v62, %v479_v59  ;;  %v2543_v2 = vpop.f32.mrb[1].mxu0  ;;  %v11834_v62 = vld [vmem:[%s16207_s3 + $0x6e0] ss:$40 sps:$4 sm:$0xff]  }
 0x257   :  { %v11102_v4 = vadd.f32 %v2543_v2, %v483_v61  ;;  %v2545_v6 = vpop.f32.mrb[2].mxu0  ;;  %v11842_v2 = vld [vmem:[%s16207_s3 + $0x734] ss:$40 sps:$4 sm:$0xff]  }
 0x258   :  { %v11101_v7 = vadd.f32 %v11100_v0, %v13013_v60  ;;  %v11104_v10 = vadd.f32 %v2545_v6, %v479_v59  ;;  %v2547_v11 = vpop.f32.mrb[3].mxu0  ;;  %v11836_v59 = vld [vmem:[%s16207_s3 + $0x6e4] ss:$40 sps:$4 sm:$0xff]   ;;  %v11837_v0 = vld [vmem:[%s16207_s3 + $0x6f0] ss:$40 sps:$4 sm:$0xff]  }
 0x259   :  { %v11103_v12 = vadd.f32 %v11102_v4, %v13015_v21  ;;  %v11106_v13 = vadd.f32 %v2547_v11, %v483_v61  ;;  %v11839_v61 = vld [vmem:[%s16207_s3 + $0x6f4] ss:$40 sps:$4 sm:$0xff]   ;;  %v11845_v4 = vld [vmem:[%s16207_s3 + $0x744] ss:$40 sps:$4 sm:$0xff]   ;;  %v11840_v6 = vld [vmem:[%s16207_s3 + $0x730] ss:$40 sps:$4 sm:$0xff]  }
 0x25a   :  { %v11105_v14 = vadd.f32 %v11104_v10, %v13023_v24  ;;  %v11848_v10 = vld [vmem:[%s16207_s3 + $0xc] ss:$40 sps:$4 sm:$0xff]  }
 0x25b   :  { %v11107_v63 = vadd.f32 %v11106_v13, %v13029_v25  ;;  %v11851_v11 = vld [vmem:[%s16207_s3 + $0x24] ss:$40 sps:$4 sm:$0xff]   ;;  %v11849_v13 = vld [vmem:[%s16207_s3 + $0x20] ss:$40 sps:$4 sm:$0xff]  }
 0x25c   :  { %v2880_v15 = vpack.c.bf16 %v11105_v14, %v11101_v7 }
 0x25d   :  { %v2881_v16 = vpack.c.bf16 %v11107_v63, %v11103_v12 }
 0x25e   :  { %v10075_v17 = vmul.bf16 3216621497, %v2880_v15  ;;  %v11852_v15 = vld [vmem:[%s16207_s3 + $0x58] ss:$40 sps:$4 sm:$0xff]  }
 0x25f   :  { %v10076_v9 = vmul.bf16 3216621497, %v2881_v16  ;;  %v11855_v16 = vld [vmem:[%s16207_s3 + $0x70] ss:$40 sps:$4 sm:$0xff]  }
 0x260   :  { %12066 = vpow.bf16 %v10075_v17  ;;  %v11860_v17 = vld [vmem:[%s16207_s3 + $0xac] ss:$40 sps:$4 sm:$0xff]  }
 0x261   :  { %12068 = vpow.bf16 %v10076_v9  ;;  %v11863_v9 = vld [vmem:[%s16207_s3 + $0xc4] ss:$40 sps:$4 sm:$0xff]  }
 0x26b   :  { %v12067_v30 = vpop.eup %12066 }
 0x26c   :  { %v12069_v18 = vpop.eup %12068  ;;  %v2895_v19 = vadd.bf16 1065369472, %v12067_v30  ;;  %v11858_v30 = vld [vmem:[%s16207_s3 + $0xa8] ss:$40 sps:$4 sm:$0xff]  }
 0x26d   :  { %v2896_v20 = vadd.bf16 1065369472, %v12069_v18  ;;  %v11861_v18 = vld [vmem:[%s16207_s3 + $0xc0] ss:$40 sps:$4 sm:$0xff]  }
 0x26e   :  { %12070 = vrcp.bf16 %v2895_v19  ;;  %v11866_v19 = vld [vmem:[%s16207_s3 + $0xfc] ss:$40 sps:$4 sm:$0xff]  }
 0x26f   :  { %12072 = vrcp.bf16 %v2896_v20  ;;  %v11869_v20 = vld [vmem:[%s16207_s3 + $0x114] ss:$40 sps:$4 sm:$0xff]  }
 0x279   :  { %v12071_v60 = vpop.eup %12070 }
 0x27a   :  { %v12073_v34 = vpop.eup %12072  ;;  %v2899_v21 = vmul.bf16 1065369472, %v12071_v60  ;;  %v11864_v60 = vld [vmem:[%s16207_s3 + $0xf8] ss:$40 sps:$4 sm:$0xff]  }
 0x27b   :  { %v2901_v22 = vmul.bf16 1065369472, %v12073_v34  ;;  %v11867_v34 = vld [vmem:[%s16207_s3 + $0x110] ss:$40 sps:$4 sm:$0xff]  }
 0x27c   :  { %v2904_v23 = vunpack.c.l.bf16 %v2899_v21  ;;  %v2907_v24 = vunpack.c.h.bf16 %v2899_v21  ;;  %v11872_v21 = vld [vmem:[%s16207_s3 + $0x14c] ss:$40 sps:$4 sm:$0xff]  }
 0x27d   :  { %v2905_v1 = vunpack.c.l.bf16 %v2901_v22  ;;  %v2908_v25 = vunpack.c.h.bf16 %v2901_v22  ;;  %v11875_v22 = vld [vmem:[%s16207_s3 + $0x164] ss:$40 sps:$4 sm:$0xff]  }
 0x27e   :  { %v2910_v26 = vmul.f32 %v11101_v7, %v2904_v23  ;;  %v2913_v27 = vmul.f32 %v11105_v14, %v2907_v24  ;;  %v11843_v7 = vld [vmem:[%s16207_s3 + $0x740] ss:$40 sps:$4 sm:$0xff]   ;;  %v11854_v14 = vld [vmem:[%s16207_s3 + $0x5c] ss:$40 sps:$4 sm:$0xff]  }
 0x27f   :  { %v2911_v28 = vmul.f32 %v11103_v12, %v2905_v1  ;;  %v2914_v29 = vmul.f32 %v11107_v63, %v2908_v25  ;;  %v11846_v12 = vld [vmem:[%s16207_s3 + $0x8] ss:$40 sps:$4 sm:$0xff]   ;;  %v11857_v63 = vld [vmem:[%s16207_s3 + $0x74] ss:$40 sps:$4 sm:$0xff]  }
 0x280   :  { %v13460_v31 = vpack.c.bf16 %v2913_v27, %v2910_v26  ;;  %v11870_v23 = vld [vmem:[%s16207_s3 + $0x148] ss:$40 sps:$4 sm:$0xff]   ;;  %v11878_v1 = vld [vmem:[%s16207_s3 + $0x19c] ss:$40 sps:$4 sm:$0xff]   ;;  %v11876_v26 = vld [vmem:[%s16207_s3 + $0x198] ss:$40 sps:$4 sm:$0xff]  }
 0x281   :  { %v13462_v32 = vpack.c.bf16 %v2914_v29, %v2911_v28  ;;  %v11873_v24 = vld [vmem:[%s16207_s3 + $0x160] ss:$40 sps:$4 sm:$0xff]   ;;  %v11881_v25 = vld [vmem:[%s16207_s3 + $0x1b4] ss:$40 sps:$4 sm:$0xff]   ;;  %v11879_v27 = vld [vmem:[%s16207_s3 + $0x1b0] ss:$40 sps:$4 sm:$0xff]  }
 0x282   :  { %v11884_v28 = vld [vmem:[%s16207_s3 + $0x1ec] ss:$40 sps:$4 sm:$0xff]  }
 0x283   :  { %4445 = vmatprep.mubr.bf16.mxu1 %v13462_v32  ;;  %4617 = vmatprep.mubr.bf16.mxu0 %v13462_v32  ;;  %v11887_v29 = vld [vmem:[%s16207_s3 + $0x204] ss:$40 sps:$4 sm:$0xff]  }
 0x284   :  { %4446 = vmatmul.mubr.bf16.vlgmr.msra.gmra.mrb[32].mxu1 %v13460_v31  ;;  %4618 = vmatmul.mubr.bf16.vlgmr.msra.gmra.mrb[4].mxu0 %v13460_v31 }
 0x285   :  { %4457 = vmatpush1.bf16.msra.mxu1 %v11798_v33  ;;  %4629 = vmatpush1.bf16.msra.mxu0 %v11801_v35  ;;  %v11882_v33 = vld [vmem:[%s16207_s3 + $0x1e8] ss:$40 sps:$4 sm:$0xff]  }
 0x286   :  { %4458 = vmatprep.subr.bf16.mxu1 %v11806_v36  ;;  %4630 = vmatprep.subr.bf16.mxu0 %v11809_v37  ;;  %v11885_v35 = vld [vmem:[%s16207_s3 + $0x200] ss:$40 sps:$4 sm:$0xff]   ;;  %v11890_v36 = vld [vmem:[%s16207_s3 + $0x23c] ss:$40 sps:$4 sm:$0xff]  }
 0x287   :  { %4488 = vmatprep.mubr.bf16.mxu1 %v12117_v3  ;;  %4660 = vmatprep.mubr.bf16.mxu0 %v12117_v3  ;;  %v11893_v37 = vld [vmem:[%s16207_s3 + $0x254] ss:$40 sps:$4 sm:$0xff]  }
 0x289   :  { %4459 = vmatpush1.bf16.msra.mxu1 %v11804_v38  ;;  %4631 = vmatpush1.bf16.msra.mxu0 %v11807_v39  ;;  %v11888_v38 = vld [vmem:[%s16207_s3 + $0x238] ss:$40 sps:$4 sm:$0xff]  }
 0x28a   :  { %4460 = vmatprep.subr.bf16.mxu1 %v11812_v40  ;;  %4632 = vmatprep.subr.bf16.mxu0 %v11815_v41  ;;  %v11891_v39 = vld [vmem:[%s16207_s3 + $0x250] ss:$40 sps:$4 sm:$0xff]   ;;  %v11896_v40 = vld [vmem:[%s16207_s3 + $0x28c] ss:$40 sps:$4 sm:$0xff]  }
 0x28b   :  { %v11899_v41 = vld [vmem:[%s16207_s3 + $0x2a4] ss:$40 sps:$4 sm:$0xff]  }
 0x28d   :  { %4461 = vmatpush1.bf16.msra.mxu1 %v11810_v42  ;;  %4633 = vmatpush1.bf16.msra.mxu0 %v11813_v43  ;;  %v11894_v42 = vld [vmem:[%s16207_s3 + $0x288] ss:$40 sps:$4 sm:$0xff]  }
 0x28e   :  { %4462 = vmatprep.subr.bf16.mxu1 %v11818_v44  ;;  %4634 = vmatprep.subr.bf16.mxu0 %v11821_v45  ;;  %v11897_v43 = vld [vmem:[%s16207_s3 + $0x2a0] ss:$40 sps:$4 sm:$0xff]   ;;  %v11902_v44 = vld [vmem:[%s16207_s3 + $0x2dc] ss:$40 sps:$4 sm:$0xff]  }
 0x28f   :  { %v11905_v45 = vld [vmem:[%s16207_s3 + $0x2f4] ss:$40 sps:$4 sm:$0xff]  }
 0x291   :  { %4463 = vmatpush1.bf16.msra.mxu1 %v11816_v46  ;;  %4635 = vmatpush1.bf16.msra.mxu0 %v11819_v47  ;;  %v11900_v46 = vld [vmem:[%s16207_s3 + $0x2d8] ss:$40 sps:$4 sm:$0xff]  }
 0x292   :  { %4464 = vmatprep.subr.bf16.mxu1 %v11824_v48  ;;  %4636 = vmatprep.subr.bf16.mxu0 %v11827_v49  ;;  %v11903_v47 = vld [vmem:[%s16207_s3 + $0x2f0] ss:$40 sps:$4 sm:$0xff]   ;;  %v11908_v48 = vld [vmem:[%s16207_s3 + $0x32c] ss:$40 sps:$4 sm:$0xff]  }
 0x293   :  { %v11911_v49 = vld [vmem:[%s16207_s3 + $0x344] ss:$40 sps:$4 sm:$0xff]  }
 0x295   :  { %4465 = vmatpush1.bf16.msra.mxu1 %v11822_v50  ;;  %4637 = vmatpush1.bf16.msra.mxu0 %v11825_v51  ;;  %v11906_v50 = vld [vmem:[%s16207_s3 + $0x328] ss:$40 sps:$4 sm:$0xff]  }
 0x296   :  { %4466 = vmatprep.subr.bf16.mxu1 %v11830_v52  ;;  %4638 = vmatprep.subr.bf16.mxu0 %v11833_v53  ;;  %v11909_v51 = vld [vmem:[%s16207_s3 + $0x340] ss:$40 sps:$4 sm:$0xff]   ;;  %v11914_v52 = vld [vmem:[%s16207_s3 + $0x37c] ss:$40 sps:$4 sm:$0xff]  }
 0x297   :  { %v11917_v53 = vld [vmem:[%s16207_s3 + $0x394] ss:$40 sps:$4 sm:$0xff]  }
 0x299   :  { %4467 = vmatpush1.bf16.msra.mxu1 %v11828_v54  ;;  %4639 = vmatpush1.bf16.msra.mxu0 %v11831_v55  ;;  %v11912_v54 = vld [vmem:[%s16207_s3 + $0x378] ss:$40 sps:$4 sm:$0xff]  }
 0x29a   :  { %4468 = vmatprep.subr.bf16.mxu1 %v11836_v59  ;;  %4640 = vmatprep.subr.bf16.mxu0 %v11839_v61  ;;  %v11915_v55 = vld [vmem:[%s16207_s3 + $0x390] ss:$40 sps:$4 sm:$0xff]   ;;  %v11920_v59 = vld [vmem:[%s16207_s3 + $0x3cc] ss:$40 sps:$4 sm:$0xff]  }
 0x29b   :  { %v11923_v61 = vld [vmem:[%s16207_s3 + $0x3e4] ss:$40 sps:$4 sm:$0xff]  }
 0x29d   :  { %4469 = vmatpush1.bf16.msra.mxu1 %v11834_v62  ;;  %4641 = vmatpush1.bf16.msra.mxu0 %v11837_v0  ;;  %v11918_v62 = vld [vmem:[%s16207_s3 + $0x3c8] ss:$40 sps:$4 sm:$0xff]  }
 0x29e   :  { %4470 = vmatprep.subr.bf16.mxu1 %v11842_v2  ;;  %4642 = vmatprep.subr.bf16.mxu0 %v11845_v4  ;;  %v11921_v0 = vld [vmem:[%s16207_s3 + $0x3e0] ss:$40 sps:$4 sm:$0xff]   ;;  %v11926_v2 = vld [vmem:[%s16207_s3 + $0x41c] ss:$40 sps:$4 sm:$0xff]  }
 0x29f   :  { %v11929_v4 = vld [vmem:[%s16207_s3 + $0x434] ss:$40 sps:$4 sm:$0xff]  }
 0x2a1   :  { %4471 = vmatpush1.bf16.msra.mxu1 %v11840_v6  ;;  %4643 = vmatpush1.bf16.msra.mxu0 %v11843_v7  ;;  %v11924_v6 = vld [vmem:[%s16207_s3 + $0x418] ss:$40 sps:$4 sm:$0xff]  }
 0x2a2   :  { %4499 = vmatprep.subr.bf16.mxu1 %v11848_v10  ;;  %4757 = vmatprep.subr.bf16.mxu0 %v11851_v11  ;;  %v11927_v7 = vld [vmem:[%s16207_s3 + $0x430] ss:$40 sps:$4 sm:$0xff]   ;;  %v11932_v10 = vld [vmem:[%s16207_s3 + $0x46c] ss:$40 sps:$4 sm:$0xff]  }
 0x2a3   :  { %v11935_v11 = vld [vmem:[%s16207_s3 + $0x484] ss:$40 sps:$4 sm:$0xff]  }
 0x2a4   :  { %4489 = vmatmul.mubr.bf16.vlgmr.msra.gmra.mrb[32].mxu1 %v13444_v56  ;;  %4661 = vmatmul.mubr.bf16.vlgmr.msra.gmra.mrb[4].mxu0 %v13444_v56 }
 0x2a5   :  { %4500 = vmatpush1.bf16.msra.mxu1 %v11846_v12  ;;  %4531 = vmatprep.mubr.bf16.mxu1 %v13462_v32  ;;  %v11930_v12 = vld [vmem:[%s16207_s3 + $0x468] ss:$40 sps:$4 sm:$0xff]  }
 0x2a6   :  { %4758 = vmatpush1.bf16.msra.mxu0 %v11849_v13  ;;  %4789 = vmatprep.mubr.bf16.mxu0 %v13462_v32  ;;  %v11933_v13 = vld [vmem:[%s16207_s3 + $0x480] ss:$40 sps:$4 sm:$0xff]  }
 0x2a7   :  { %4501 = vmatprep.subr.bf16.mxu1 %v11854_v14  ;;  %4759 = vmatprep.subr.bf16.mxu0 %v11857_v63  ;;  %v11938_v14 = vld [vmem:[%s16207_s3 + $0x4bc] ss:$40 sps:$4 sm:$0xff]  }
 0x2a8   :  { %v11941_v63 = vld [vmem:[%s16207_s3 + $0x4d4] ss:$40 sps:$4 sm:$0xff]  }
 0x2a9   :  { %4502 = vmatpush1.bf16.msra.mxu1 %v11852_v15  ;;  %v11936_v15 = vld [vmem:[%s16207_s3 + $0x4b8] ss:$40 sps:$4 sm:$0xff]  }
 0x2aa   :  { %4760 = vmatpush1.bf16.msra.mxu0 %v11855_v16  ;;  %4503 = vmatprep.subr.bf16.mxu1 %v11860_v17  ;;  %v11939_v16 = vld [vmem:[%s16207_s3 + $0x4d0] ss:$40 sps:$4 sm:$0xff]   ;;  %v11944_v17 = vld [vmem:[%s16207_s3 + $0x50c] ss:$40 sps:$4 sm:$0xff]  }
 0x2ab   :  { %4761 = vmatprep.subr.bf16.mxu0 %v11863_v9  ;;  %v11947_v9 = vld [vmem:[%s16207_s3 + $0x524] ss:$40 sps:$4 sm:$0xff]  }
 0x2ad   :  { %4504 = vmatpush1.bf16.msra.mxu1 %v11858_v30  ;;  %v11942_v30 = vld [vmem:[%s16207_s3 + $0x508] ss:$40 sps:$4 sm:$0xff]  }
 0x2ae   :  { %4762 = vmatpush1.bf16.msra.mxu0 %v11861_v18  ;;  %4505 = vmatprep.subr.bf16.mxu1 %v11866_v19  ;;  %v11945_v18 = vld [vmem:[%s16207_s3 + $0x520] ss:$40 sps:$4 sm:$0xff]   ;;  %v11950_v19 = vld [vmem:[%s16207_s3 + $0x55c] ss:$40 sps:$4 sm:$0xff]  }
 0x2af   :  { %4763 = vmatprep.subr.bf16.mxu0 %v11869_v20  ;;  %v11953_v20 = vld [vmem:[%s16207_s3 + $0x574] ss:$40 sps:$4 sm:$0xff]  }
 0x2b1   :  { %4506 = vmatpush1.bf16.msra.mxu1 %v11864_v60  ;;  %v11948_v60 = vld [vmem:[%s16207_s3 + $0x558] ss:$40 sps:$4 sm:$0xff]  }
 0x2b2   :  { %4764 = vmatpush1.bf16.msra.mxu0 %v11867_v34  ;;  %4507 = vmatprep.subr.bf16.mxu1 %v11872_v21  ;;  %v11951_v34 = vld [vmem:[%s16207_s3 + $0x570] ss:$40 sps:$4 sm:$0xff]   ;;  %v11956_v21 = vld [vmem:[%s16207_s3 + $0x5ac] ss:$40 sps:$4 sm:$0xff]  }
 0x2b3   :  { %4765 = vmatprep.subr.bf16.mxu0 %v11875_v22  ;;  %v11959_v22 = vld [vmem:[%s16207_s3 + $0x5c4] ss:$40 sps:$4 sm:$0xff]  }
 0x2b5   :  { %4508 = vmatpush1.bf16.msra.mxu1 %v11870_v23  ;;  %v11954_v23 = vld [vmem:[%s16207_s3 + $0x5a8] ss:$40 sps:$4 sm:$0xff]  }
 0x2b6   :  { %4766 = vmatpush1.bf16.msra.mxu0 %v11873_v24  ;;  %4509 = vmatprep.subr.bf16.mxu1 %v11878_v1  ;;  %v11957_v24 = vld [vmem:[%s16207_s3 + $0x5c0] ss:$40 sps:$4 sm:$0xff]   ;;  %v11962_v1 = vld [vmem:[%s16207_s3 + $0x5fc] ss:$40 sps:$4 sm:$0xff]  }
 0x2b7   :  { %4767 = vmatprep.subr.bf16.mxu0 %v11881_v25  ;;  %v11965_v25 = vld [vmem:[%s16207_s3 + $0x614] ss:$40 sps:$4 sm:$0xff]  }
 0x2b9   :  { %4510 = vmatpush1.bf16.msra.mxu1 %v11876_v26  ;;  %v11960_v26 = vld [vmem:[%s16207_s3 + $0x5f8] ss:$40 sps:$4 sm:$0xff]  }
 0x2ba   :  { %4768 = vmatpush1.bf16.msra.mxu0 %v11879_v27  ;;  %4511 = vmatprep.subr.bf16.mxu1 %v11884_v28  ;;  %v11963_v27 = vld [vmem:[%s16207_s3 + $0x610] ss:$40 sps:$4 sm:$0xff]   ;;  %v11968_v28 = vld [vmem:[%s16207_s3 + $0x64c] ss:$40 sps:$4 sm:$0xff]  }
 0x2bb   :  { %4769 = vmatprep.subr.bf16.mxu0 %v11887_v29  ;;  %v11971_v29 = vld [vmem:[%s16207_s3 + $0x664] ss:$40 sps:$4 sm:$0xff]  }
 0x2bd   :  { %4512 = vmatpush1.bf16.msra.mxu1 %v11882_v33  ;;  %v11966_v33 = vld [vmem:[%s16207_s3 + $0x648] ss:$40 sps:$4 sm:$0xff]  }
 0x2be   :  { %4770 = vmatpush1.bf16.msra.mxu0 %v11885_v35  ;;  %4513 = vmatprep.subr.bf16.mxu1 %v11890_v36  ;;  %v11969_v35 = vld [vmem:[%s16207_s3 + $0x660] ss:$40 sps:$4 sm:$0xff]   ;;  %v11974_v36 = vld [vmem:[%s16207_s3 + $0x69c] ss:$40 sps:$4 sm:$0xff]  }
 0x2bf   :  { %4771 = vmatprep.subr.bf16.mxu0 %v11893_v37  ;;  %v11977_v37 = vld [vmem:[%s16207_s3 + $0x6b4] ss:$40 sps:$4 sm:$0xff]  }
 0x2c1   :  { %4514 = vmatpush1.bf16.msra.mxu1 %v11888_v38  ;;  %v11972_v38 = vld [vmem:[%s16207_s3 + $0x698] ss:$40 sps:$4 sm:$0xff]  }
 0x2c2   :  { %4772 = vmatpush1.bf16.msra.mxu0 %v11891_v39  ;;  %4515 = vmatprep.subr.bf16.mxu1 %v11896_v40  ;;  %v11975_v39 = vld [vmem:[%s16207_s3 + $0x6b0] ss:$40 sps:$4 sm:$0xff]   ;;  %v11980_v40 = vld [vmem:[%s16207_s3 + $0x6ec] ss:$40 sps:$4 sm:$0xff]  }
 0x2c3   :  { %4773 = vmatprep.subr.bf16.mxu0 %v11899_v41  ;;  %v11983_v41 = vld [vmem:[%s16207_s3 + $0x704] ss:$40 sps:$4 sm:$0xff]  }
 0x2c5   :  { %4516 = vmatpush1.bf16.msra.mxu1 %v11894_v42  ;;  %v11978_v42 = vld [vmem:[%s16207_s3 + $0x6e8] ss:$40 sps:$4 sm:$0xff]  }
 0x2c6   :  { %4774 = vmatpush1.bf16.msra.mxu0 %v11897_v43  ;;  %4517 = vmatprep.subr.bf16.mxu1 %v11902_v44  ;;  %v11981_v43 = vld [vmem:[%s16207_s3 + $0x700] ss:$40 sps:$4 sm:$0xff]   ;;  %v11986_v44 = vld [vmem:[%s16207_s3 + $0x73c] ss:$40 sps:$4 sm:$0xff]  }
 0x2c7   :  { %4775 = vmatprep.subr.bf16.mxu0 %v11905_v45  ;;  %v11989_v45 = vld [vmem:[%s16207_s3 + $0x754] ss:$40 sps:$4 sm:$0xff]  }
 0x2c9   :  { %4518 = vmatpush1.bf16.msra.mxu1 %v11900_v46  ;;  %v4974_v46 = vld [vmem:[%s16208_s5 + $0x8] sm:$0xff] }
 0x2ca   :  { %4776 = vmatpush1.bf16.msra.mxu0 %v11903_v47  ;;  %4519 = vmatprep.subr.bf16.mxu1 %v11908_v48  ;;  %v4978_v47 = vld [vmem:[%s16208_s5 + $0x28] sm:$0xff]  ;;  %v11984_v48 = vld [vmem:[%s16207_s3 + $0x738] ss:$40 sps:$4 sm:$0xff]  }
 0x2cb   :  { %4777 = vmatprep.subr.bf16.mxu0 %v11911_v49  ;;  %v11987_v49 = vld [vmem:[%s16207_s3 + $0x750] ss:$40 sps:$4 sm:$0xff]  }
 0x2cd   :  { %4520 = vmatpush1.bf16.msra.mxu1 %v11906_v50  ;;  %v11992_v50 = vld [vmem:[%s16207_s3 + $0x1c] ss:$40 sps:$4 sm:$0xff]  }
 0x2ce   :  { %4778 = vmatpush1.bf16.msra.mxu0 %v11909_v51  ;;  %4521 = vmatprep.subr.bf16.mxu1 %v11914_v52  ;;  %v10331_v51 = vcombine.high %v4974_v46, %v4978_v47  ;;  %v11990_v52 = vld [vmem:[%s16207_s3 + $0x18] ss:$40 sps:$4 sm:$0xff]  }
 0x2cf   :  { %4779 = vmatprep.subr.bf16.mxu0 %v11917_v53  ;;  %v4982_v53 = vld [vmem:[%s16208_s5 + $0x48] sm:$0xff] }
 0x2d1   :  { %4522 = vmatpush1.bf16.msra.mxu1 %v11912_v54  ;;  %v4986_v54 = vld [vmem:[%s16208_s5 + $0x68] sm:$0xff] }
 0x2d2   :  { %4780 = vmatpush1.bf16.msra.mxu0 %v11915_v55  ;;  %4523 = vmatprep.subr.bf16.mxu1 %v11920_v59  ;;  %v11995_v55 = vld [vmem:[%s16207_s3 + $0x6c] ss:$40 sps:$4 sm:$0xff]   ;;  %v10330_v59 = vcombine.low %v4974_v46, %v4978_v47 }
 0x2d3   :  { %4781 = vmatprep.subr.bf16.mxu0 %v11923_v61  ;;  %v10339_v61 = vcombine.high %v4982_v53, %v4986_v54  ;;  %v12019_v46 = vld [vmem:[%s16207_s3 + $0x2ec] ss:$40 sps:$4 sm:$0xff]  }
 0x2d5   :  { %4524 = vmatpush1.bf16.msra.mxu1 %v11918_v62  ;;  %v11993_v62 = vld [vmem:[%s16207_s3 + $0x68] ss:$40 sps:$4 sm:$0xff]  }
 0x2d6   :  { %4782 = vmatpush1.bf16.msra.mxu0 %v11921_v0  ;;  %4525 = vmatprep.subr.bf16.mxu1 %v11926_v2  ;;  %v4990_v0 = vld [vmem:[%s16208_s5 + $0x88] sm:$0xff] }
 0x2d7   :  { %4783 = vmatprep.subr.bf16.mxu0 %v11929_v4  ;;  %v4994_v2 = vld [vmem:[%s16208_s5 + $0xa8] sm:$0xff]  ;;  %v11998_v4 = vld [vmem:[%s16207_s3 + $0xbc] ss:$40 sps:$4 sm:$0xff]  }
 0x2d9   :  { %4526 = vmatpush1.bf16.msra.mxu1 %v11924_v6  ;;  %v10338_v6 = vcombine.low %v4982_v53, %v4986_v54  ;;  %v12022_v53 = vld [vmem:[%s16207_s3 + $0x33c] ss:$40 sps:$4 sm:$0xff]   ;;  %v13996_v54 = vld [vmem:[%s16208_s5 + $0x428] sm:$0xff] }
 0x2da   :  { %4784 = vmatpush1.bf16.msra.mxu0 %v11927_v7  ;;  %4527 = vmatprep.subr.bf16.mxu1 %v11932_v10  ;;  %v10347_v7 = vcombine.high %v4990_v0, %v4994_v2  ;;  %v11996_v10 = vld [vmem:[%s16207_s3 + $0xb8] ss:$40 sps:$4 sm:$0xff]  }
 0x2db   :  { %4785 = vmatprep.subr.bf16.mxu0 %v11935_v11  ;;  %v4998_v11 = vld [vmem:[%s16208_s5 + $0xc8] sm:$0xff] }
 0x2dd   :  { %4528 = vmatpush1.bf16.msra.mxu1 %v11930_v12  ;;  %v12001_v12 = vld [vmem:[%s16207_s3 + $0x10c] ss:$40 sps:$4 sm:$0xff]  }
 0x2de   :  { %4786 = vmatpush1.bf16.msra.mxu0 %v11933_v13  ;;  %4529 = vmatprep.subr.bf16.mxu1 %v11938_v14  ;;  %v10346_v13 = vcombine.low %v4990_v0, %v4994_v2  ;;  %v5062_v0 = vld [vmem:[%s16208_s5 + $0x2c8] sm:$0xff] }
 0x2df   :  { %4787 = vmatprep.subr.bf16.mxu0 %v11941_v63  ;;  %v11999_v63 = vld [vmem:[%s16207_s3 + $0x108] ss:$40 sps:$4 sm:$0xff]  }
 0x2e0   :  { %v5066_v2 = vld [vmem:[%s16208_s5 + $0x2e8] sm:$0xff] }
 0x2e1   :  { %4530 = vmatpush1.bf16.msra.mxu1 %v11936_v15  ;;  %v5006_v15 = vld [vmem:[%s16208_s5 + $0x108] sm:$0xff] }
 0x2e2   :  { %4788 = vmatpush1.bf16.msra.mxu0 %v11939_v16  ;;  %4542 = vmatprep.subr.bf16.mxu1 %v11944_v17  ;;  %v5010_v16 = vld [vmem:[%s16208_s5 + $0x128] sm:$0xff]  ;;  %v12004_v17 = vld [vmem:[%s16207_s3 + $0x15c] ss:$40 sps:$4 sm:$0xff]  }
 0x2e3   :  { %4800 = vmatprep.subr.bf16.mxu0 %v11947_v9 }
 0x2e4   :  { %4532 = vmatmul.mubr.bf16.vlgmr.msra.gmra.mrb[36].mxu1 %v13460_v31 }
 0x2e5   :  { %4790 = vmatmul.mubr.bf16.vlgmr.msra.gmra.mrb[8].mxu0 %v13460_v31  ;;  %4543 = vmatpush1.bf16.msra.mxu1 %v11942_v30  ;;  %v10363_v30 = vcombine.high %v5006_v15, %v5010_v16 }
 0x2e6   :  { %4801 = vmatpush1.bf16.msra.mxu0 %v11945_v18  ;;  %4544 = vmatprep.subr.bf16.mxu1 %v11950_v19  ;;  %v12002_v18 = vld [vmem:[%s16207_s3 + $0x158] ss:$40 sps:$4 sm:$0xff]   ;;  %v5014_v19 = vld [vmem:[%s16208_s5 + $0x148] sm:$0xff] }
 0x2e7   :  { %4802 = vmatprep.subr.bf16.mxu0 %v11953_v20  ;;  %4574 = vmatprep.mubr.bf16.mxu1 %v12117_v3  ;;  %v5018_v20 = vld [vmem:[%s16208_s5 + $0x168] sm:$0xff] }
 0x2e8   :  { %4832 = vmatprep.mubr.bf16.mxu0 %v12117_v3 }
 0x2e9   :  { %4545 = vmatpush1.bf16.msra.mxu1 %v11948_v60  ;;  %v12007_v60 = vld [vmem:[%s16207_s3 + $0x1ac] ss:$40 sps:$4 sm:$0xff]  }
 0x2ea   :  { %4803 = vmatpush1.bf16.msra.mxu0 %v11951_v34  ;;  %4546 = vmatprep.subr.bf16.mxu1 %v11956_v21  ;;  %v10362_v34 = vcombine.low %v5006_v15, %v5010_v16  ;;  %v10371_v21 = vcombine.high %v5014_v19, %v5018_v20  ;;  %v5078_v15 = vld [vmem:[%s16208_s5 + $0x348] sm:$0xff] }
 0x2eb   :  { %4804 = vmatprep.subr.bf16.mxu0 %v11959_v22  ;;  %v12005_v22 = vld [vmem:[%s16207_s3 + $0x1a8] ss:$40 sps:$4 sm:$0xff]  }
 0x2ec   :  { %v5082_v16 = vld [vmem:[%s16208_s5 + $0x368] sm:$0xff] }
 0x2ed   :  { %4547 = vmatpush1.bf16.msra.mxu1 %v11954_v23  ;;  %v5022_v23 = vld [vmem:[%s16208_s5 + $0x188] sm:$0xff] }
 0x2ee   :  { %4805 = vmatpush1.bf16.msra.mxu0 %v11957_v24  ;;  %4548 = vmatprep.subr.bf16.mxu1 %v11962_v1  ;;  %v5026_v24 = vld [vmem:[%s16208_s5 + $0x1a8] sm:$0xff]  ;;  %v12010_v1 = vld [vmem:[%s16207_s3 + $0x1fc] ss:$40 sps:$4 sm:$0xff]  }
 0x2ef   :  { %4806 = vmatprep.subr.bf16.mxu0 %v11965_v25  ;;  %v10370_v25 = vcombine.low %v5014_v19, %v5018_v20  ;;  %v5086_v19 = vld [vmem:[%s16208_s5 + $0x388] sm:$0xff] }
 0x2f0   :  { %v5090_v20 = vld [vmem:[%s16208_s5 + $0x3a8] sm:$0xff] }
 0x2f1   :  { %4549 = vmatpush1.bf16.msra.mxu1 %v11960_v26  ;;  %v10379_v26 = vcombine.high %v5022_v23, %v5026_v24 }
 0x2f2   :  { %4807 = vmatpush1.bf16.msra.mxu0 %v11963_v27  ;;  %4550 = vmatprep.subr.bf16.mxu1 %v11968_v28  ;;  %v12008_v27 = vld [vmem:[%s16207_s3 + $0x1f8] ss:$40 sps:$4 sm:$0xff]   ;;  %v5030_v28 = vld [vmem:[%s16208_s5 + $0x1c8] sm:$0xff] }
 0x2f3   :  { %4808 = vmatprep.subr.bf16.mxu0 %v11971_v29  ;;  %v5034_v29 = vld [vmem:[%s16208_s5 + $0x1e8] sm:$0xff] }
 0x2f5   :  { %4551 = vmatpush1.bf16.msra.mxu1 %v11966_v33  ;;  %v12013_v33 = vld [vmem:[%s16207_s3 + $0x24c] ss:$40 sps:$4 sm:$0xff]  }
 0x2f6   :  { %4809 = vmatpush1.bf16.msra.mxu0 %v11969_v35  ;;  %4552 = vmatprep.subr.bf16.mxu1 %v11974_v36  ;;  %v10378_v35 = vcombine.low %v5022_v23, %v5026_v24  ;;  %v10387_v36 = vcombine.high %v5030_v28, %v5034_v29  ;;  %v5094_v23 = vld [vmem:[%s16208_s5 + $0x3c8] sm:$0xff] }
 0x2f7   :  { %4810 = vmatprep.subr.bf16.mxu0 %v11977_v37  ;;  %v12011_v37 = vld [vmem:[%s16207_s3 + $0x248] ss:$40 sps:$4 sm:$0xff]  }
 0x2f8   :  { %v5098_v24 = vld [vmem:[%s16208_s5 + $0x3e8] sm:$0xff] }
 0x2f9   :  { %4553 = vmatpush1.bf16.msra.mxu1 %v11972_v38  ;;  %v5038_v38 = vld [vmem:[%s16208_s5 + $0x208] sm:$0xff] }
 0x2fa   :  { %4811 = vmatpush1.bf16.msra.mxu0 %v11975_v39  ;;  %4554 = vmatprep.subr.bf16.mxu1 %v11980_v40  ;;  %v5042_v39 = vld [vmem:[%s16208_s5 + $0x228] sm:$0xff]  ;;  %v12016_v40 = vld [vmem:[%s16207_s3 + $0x29c] ss:$40 sps:$4 sm:$0xff]  }
 0x2fb   :  { %4812 = vmatprep.subr.bf16.mxu0 %v11983_v41  ;;  %v10386_v41 = vcombine.low %v5030_v28, %v5034_v29  ;;  %v10394_v47 = vcombine.low %v5038_v38, %v5042_v39  ;;  %v12040_v28 = vld [vmem:[%s16207_s3 + $0x51c] ss:$40 sps:$4 sm:$0xff]   ;;  %v10450_v29 = vcombine.low %v5094_v23, %v5098_v24 }
 0x2fd   :  { %4555 = vmatpush1.bf16.msra.mxu1 %v11978_v42  ;;  %v10395_v42 = vcombine.high %v5038_v38, %v5042_v39  ;;  %v12046_v38 = vld [vmem:[%s16207_s3 + $0x5bc] ss:$40 sps:$4 sm:$0xff]   ;;  %v12044_v39 = vld [vmem:[%s16207_s3 + $0x5b8] ss:$40 sps:$4 sm:$0xff]  }
 0x2fe   :  { %4813 = vmatpush1.bf16.msra.mxu0 %v11981_v43  ;;  %4556 = vmatprep.subr.bf16.mxu1 %v11986_v44  ;;  %v12014_v43 = vld [vmem:[%s16207_s3 + $0x298] ss:$40 sps:$4 sm:$0xff]   ;;  %v5046_v44 = vld [vmem:[%s16208_s5 + $0x248] sm:$0xff] }
 0x2ff   :  { %4814 = vmatprep.subr.bf16.mxu0 %v11989_v45  ;;  %v5050_v45 = vld [vmem:[%s16208_s5 + $0x268] sm:$0xff] }
 0x301   :  { %4557 = vmatpush1.bf16.msra.mxu1 %v11984_v48  ;;  %v12017_v48 = vld [vmem:[%s16207_s3 + $0x2e8] ss:$40 sps:$4 sm:$0xff]  }
 0x302   :  { %4815 = vmatpush1.bf16.msra.mxu0 %v11987_v49  ;;  %4671 = vmatprep.subr.bf16.mxu1 %v11992_v50  ;;  %v10403_v49 = vcombine.high %v5046_v44, %v5050_v45  ;;  %v5054_v50 = vld [vmem:[%s16208_s5 + $0x288] sm:$0xff] }
 0x303   :  { %9070 = vmatprep.subr.bf16.mxu0 %v10331_v51  ;;  %v5058_v51 = vld [vmem:[%s16208_s5 + $0x2a8] sm:$0xff] }
 0x304   :  { %4575 = vmatmul.mubr.bf16.vlgmr.msra.gmra.mrb[36].mxu1 %v13444_v56 }
 0x305   :  { %4833 = vmatmul.mubr.bf16.vlgmr.msra.gmra.mrb[8].mxu0 %v13444_v56  ;;  %4672 = vmatpush1.bf16.msra.mxu1 %v11990_v52  ;;  %v13988_v52 = vld [vmem:[%s16208_s5 + $0x408] sm:$0xff] }
 0x306   :  { %4703 = vmatprep.mubr.bf16.mxu1 %v13462_v32  ;;  %4673 = vmatprep.subr.bf16.mxu1 %v11995_v55  ;;  %v5002_v32 = vld [vmem:[%s16208_s5 + $0xe8] sm:$0xff]  ;;  %v10402_v55 = vcombine.low %v5046_v44, %v5050_v45  ;;  %v12058_v44 = vld [vmem:[%s16207_s3 + $0x6fc] ss:$40 sps:$4 sm:$0xff]   ;;  %v12056_v45 = vld [vmem:[%s16207_s3 + $0x6f8] ss:$40 sps:$4 sm:$0xff]  }
 0x307   :  { %9071 = vmatpush1.bf16.msra.mxu0 %v10330_v59  ;;  %v10355_v14 = vcombine.high %v4998_v11, %v5002_v32  ;;  %v10354_v9 = vcombine.low %v4998_v11, %v5002_v32  ;;  %v10458_v59 = vcombine.low %v13988_v52, %v13996_v54  ;;  %v5070_v11 = vld [vmem:[%s16208_s5 + $0x308] sm:$0xff] }
 0x308   :  { %9072 = vmatprep.subr.bf16.mxu0 %v10339_v61  ;;  %v10411_v61 = vcombine.high %v5054_v50, %v5058_v51  ;;  %v5074_v32 = vld [vmem:[%s16208_s5 + $0x328] sm:$0xff] }
 0x309   :  { %4674 = vmatpush1.bf16.msra.mxu1 %v11993_v62  ;;  %v12020_v62 = vld [vmem:[%s16207_s3 + $0x338] ss:$40 sps:$4 sm:$0xff]  }
 0x30a   :  { %4675 = vmatprep.subr.bf16.mxu1 %v11998_v4  ;;  %v12025_v4 = vld [vmem:[%s16207_s3 + $0x38c] ss:$40 sps:$4 sm:$0xff]  }
 0x30b   :  { %9073 = vmatpush1.bf16.msra.mxu0 %v10338_v6  ;;  %v10410_v6 = vcombine.low %v5054_v50, %v5058_v51  ;;  %v4981_v51 = vld [vmem:[%s16208_s5 + $0x40] sm:$0xff] }
 0x30c   :  { %9074 = vmatprep.subr.bf16.mxu0 %v10347_v7  ;;  %v10419_v7 = vcombine.high %v5062_v0, %v5066_v2 }
 0x30d   :  { %4676 = vmatpush1.bf16.msra.mxu1 %v11996_v10  ;;  %v12023_v10 = vld [vmem:[%s16207_s3 + $0x388] ss:$40 sps:$4 sm:$0xff]  }
 0x30e   :  { %4677 = vmatprep.subr.bf16.mxu1 %v12001_v12  ;;  %v12028_v12 = vld [vmem:[%s16207_s3 + $0x3dc] ss:$40 sps:$4 sm:$0xff]  }
 0x30f   :  { %9075 = vmatpush1.bf16.msra.mxu0 %v10346_v13  ;;  %v10418_v13 = vcombine.low %v5062_v0, %v5066_v2  ;;  %v4993_v0 = vld [vmem:[%s16208_s5 + $0xa0] sm:$0xff] }
 0x310   :  { %9076 = vmatprep.subr.bf16.mxu0 %v10355_v14  ;;  %v10427_v14 = vcombine.high %v5070_v11, %v5074_v32 }
 0x311   :  { %4678 = vmatpush1.bf16.msra.mxu1 %v11999_v63  ;;  %v12026_v63 = vld [vmem:[%s16207_s3 + $0x3d8] ss:$40 sps:$4 sm:$0xff]  }
 0x312   :  { %4679 = vmatprep.subr.bf16.mxu1 %v12004_v17  ;;  %v12031_v17 = vld [vmem:[%s16207_s3 + $0x42c] ss:$40 sps:$4 sm:$0xff]  }
 0x313   :  { %9077 = vmatpush1.bf16.msra.mxu0 %v10354_v9  ;;  %v10426_v9 = vcombine.low %v5070_v11, %v5074_v32  ;;  %v5009_v32 = vld [vmem:[%s16208_s5 + $0x120] sm:$0xff] }
 0x314   :  { %9078 = vmatprep.subr.bf16.mxu0 %v10363_v30  ;;  %v10435_v30 = vcombine.high %v5078_v15, %v5082_v16 }
 0x315   :  { %4680 = vmatpush1.bf16.msra.mxu1 %v12002_v18  ;;  %v12029_v18 = vld [vmem:[%s16207_s3 + $0x428] ss:$40 sps:$4 sm:$0xff]  }
 0x316   :  { %4681 = vmatprep.subr.bf16.mxu1 %v12007_v60  ;;  %v12034_v60 = vld [vmem:[%s16207_s3 + $0x47c] ss:$40 sps:$4 sm:$0xff]  }
 0x317   :  { %9079 = vmatpush1.bf16.msra.mxu0 %v10362_v34  ;;  %v10434_v34 = vcombine.low %v5078_v15, %v5082_v16  ;;  %v3181_v16 = vsub.s32 4, %v13126_v5 }
 0x318   :  { %9080 = vmatprep.subr.bf16.mxu0 %v10371_v21  ;;  %v10443_v21 = vcombine.high %v5086_v19, %v5090_v20 }
 0x319   :  { %4682 = vmatpush1.bf16.msra.mxu1 %v12005_v22  ;;  %v12032_v22 = vld [vmem:[%s16207_s3 + $0x478] ss:$40 sps:$4 sm:$0xff]  }
 0x31a   :  { %4683 = vmatprep.subr.bf16.mxu1 %v12010_v1  ;;  %v12037_v1 = vld [vmem:[%s16207_s3 + $0x4cc] ss:$40 sps:$4 sm:$0xff]  }
 0x31b   :  { %9081 = vmatpush1.bf16.msra.mxu0 %v10370_v25  ;;  %v10442_v25 = vcombine.low %v5086_v19, %v5090_v20  ;;  %v5025_v19 = vld [vmem:[%s16208_s5 + $0x1a0] sm:$0xff] }
 0x31c   :  { %9082 = vmatprep.subr.bf16.mxu0 %v10379_v26  ;;  %v10451_v26 = vcombine.high %v5094_v23, %v5098_v24  ;;  %v5033_v23 = vld [vmem:[%s16208_s5 + $0x1e0] sm:$0xff] }
 0x31d   :  { %4684 = vmatpush1.bf16.msra.mxu1 %v12008_v27  ;;  %v12035_v27 = vld [vmem:[%s16207_s3 + $0x4c8] ss:$40 sps:$4 sm:$0xff]  }
 0x31e   :  { %4685 = vmatprep.subr.bf16.mxu1 %v12013_v33  ;;  %v10459_v33 = vcombine.high %v13988_v52, %v13996_v54  ;;  %v5130_v52 = vld [vmem:[%s16208_s5 + $0x4e8] sm:$0xff] }
 0x31f   :  { %9083 = vmatpush1.bf16.msra.mxu0 %v10378_v35  ;;  %v12038_v35 = vld [vmem:[%s16207_s3 + $0x518] ss:$40 sps:$4 sm:$0xff]  }
 0x320   :  { %9084 = vmatprep.subr.bf16.mxu0 %v10387_v36  ;;  %v12043_v36 = vld [vmem:[%s16207_s3 + $0x56c] ss:$40 sps:$4 sm:$0xff]  }
 0x321   :  { %4686 = vmatpush1.bf16.msra.mxu1 %v12011_v37  ;;  %v12041_v37 = vld [vmem:[%s16207_s3 + $0x568] ss:$40 sps:$4 sm:$0xff]  }
 0x322   :  { %4687 = vmatprep.subr.bf16.mxu1 %v12016_v40  ;;  %v12052_v40 = vld [vmem:[%s16207_s3 + $0x65c] ss:$40 sps:$4 sm:$0xff]  }
 0x323   :  { %9085 = vmatpush1.bf16.msra.mxu0 %v10386_v41  ;;  %v12050_v41 = vld [vmem:[%s16207_s3 + $0x658] ss:$40 sps:$4 sm:$0xff]  }
 0x324   :  { %9086 = vmatprep.subr.bf16.mxu0 %v10395_v42  ;;  %v12055_v42 = vld [vmem:[%s16207_s3 + $0x6ac] ss:$40 sps:$4 sm:$0xff]  }
 0x325   :  { %4688 = vmatpush1.bf16.msra.mxu1 %v12014_v43  ;;  %v12053_v43 = vld [vmem:[%s16207_s3 + $0x6a8] ss:$40 sps:$4 sm:$0xff]  }
 0x326   :  { %4689 = vmatprep.subr.bf16.mxu1 %v12019_v46  ;;  %v12061_v46 = vld [vmem:[%s16207_s3 + $0x74c] ss:$40 sps:$4 sm:$0xff]  }
 0x327   :  { %9087 = vmatpush1.bf16.msra.mxu0 %v10394_v47  ;;  %v4973_v47 = vld [vmem:[%s16208_s5] sm:$0xff] }
 0x328   :  { %9088 = vmatprep.subr.bf16.mxu0 %v10403_v49  ;;  %v12059_v49 = vld [vmem:[%s16207_s3 + $0x748] ss:$40 sps:$4 sm:$0xff]  }
 0x329   :  { %4690 = vmatpush1.bf16.msra.mxu1 %v12017_v48  ;;  %v4977_v48 = vld [vmem:[%s16208_s5 + $0x20] sm:$0xff] }
 0x32a   :  { %4691 = vmatprep.subr.bf16.mxu1 %v12022_v53  ;;  %v10329_v50 = vcombine.high %v4973_v47, %v4977_v48  ;;  %v4985_v53 = vld [vmem:[%s16208_s5 + $0x60] sm:$0xff] }
 0x32b   :  { %9089 = vmatpush1.bf16.msra.mxu0 %v10402_v55  ;;  %v10328_v55 = vcombine.low %v4973_v47, %v4977_v48  ;;  %v10336_v2 = vcombine.low %v4981_v51, %v4985_v53 }
 0x32c   :  { %9090 = vmatprep.subr.bf16.mxu0 %v10411_v61  ;;  %v10337_v61 = vcombine.high %v4981_v51, %v4985_v53 }
 0x32d   :  { %4692 = vmatpush1.bf16.msra.mxu1 %v12020_v62  ;;  %v4989_v62 = vld [vmem:[%s16208_s5 + $0x80] sm:$0xff] }
 0x32e   :  { %4693 = vmatprep.subr.bf16.mxu1 %v12025_v4  ;;  %v10345_v4 = vcombine.high %v4989_v62, %v4993_v0 }
 0x32f   :  { %9091 = vmatpush1.bf16.msra.mxu0 %v10410_v6  ;;  %v4997_v6 = vld [vmem:[%s16208_s5 + $0xc0] sm:$0xff] }
 0x330   :  { %9092 = vmatprep.subr.bf16.mxu0 %v10419_v7  ;;  %v5001_v7 = vld [vmem:[%s16208_s5 + $0xe0] sm:$0xff] }
 0x331   :  { %4694 = vmatpush1.bf16.msra.mxu1 %v12023_v10  ;;  %v10344_v10 = vcombine.low %v4989_v62, %v4993_v0  ;;  %v10353_v11 = vcombine.high %v4997_v6, %v5001_v7 }
 0x332   :  { %4695 = vmatprep.subr.bf16.mxu1 %v12028_v12  ;;  %v10352_v12 = vcombine.low %v4997_v6, %v5001_v7 }
 0x333   :  { %9093 = vmatpush1.bf16.msra.mxu0 %v10418_v13 }
 0x334   :  { %9094 = vmatprep.subr.bf16.mxu0 %v10427_v14  ;;  %v5013_v14 = vld [vmem:[%s16208_s5 + $0x140] sm:$0xff] }
 0x335   :  { %4696 = vmatpush1.bf16.msra.mxu1 %v12026_v63  ;;  %v5017_v63 = vld [vmem:[%s16208_s5 + $0x160] sm:$0xff] }
 0x336   :  { %4697 = vmatprep.subr.bf16.mxu1 %v12031_v17  ;;  %v10369_v17 = vcombine.high %v5013_v14, %v5017_v63  ;;  %v10368_v20 = vcombine.low %v5013_v14, %v5017_v63 }
 0x337   :  { %9095 = vmatpush1.bf16.msra.mxu0 %v10426_v9  ;;  %v14156_v9 = vld [vmem:[%s16209_s4] sm:$0xff] }
 0x338   :  { %9096 = vmatprep.subr.bf16.mxu0 %v10435_v30  ;;  %v3185_v30 = vsub.s32 5, %v13126_v5 }
 0x339   :  { %4698 = vmatpush1.bf16.msra.mxu1 %v12029_v18  ;;  %v5021_v18 = vld [vmem:[%s16208_s5 + $0x180] sm:$0xff] }
 0x33a   :  { %4699 = vmatprep.subr.bf16.mxu1 %v12034_v60  ;;  %v3166_v60 = vrot.slane %v14156_v9, %v13447_v57 }
 0x33b   :  { %9097 = vmatpush1.bf16.msra.mxu0 %v10434_v34  ;;  %v3182_v34 = vrot.slane %v14156_v9, %v3181_v16 }
 0x33c   :  { %9098 = vmatprep.subr.bf16.mxu0 %v10443_v21  ;;  %v10377_v21 = vcombine.high %v5021_v18, %v5025_v19 }
 0x33d   :  { %4700 = vmatpush1.bf16.msra.mxu1 %v12032_v22  ;;  %v5029_v22 = vld [vmem:[%s16208_s5 + $0x1c0] sm:$0xff] }
 0x33e   :  { %4701 = vmatprep.subr.bf16.mxu1 %v12037_v1  ;;  %v10384_v51 = vcombine.low %v5029_v22, %v5033_v23 }
 0x33f   :  { %9099 = vmatpush1.bf16.msra.mxu0 %v10442_v25  ;;  %v3170_v25 = vrot.slane %v14156_v9, %v13450_v58 }
 0x340   :  { %9100 = vmatprep.subr.bf16.mxu0 %v10451_v26  ;;  %v3186_v26 = vrot.slane %v14156_v9, %v3185_v30 }
 0x341   :  { %4702 = vmatpush1.bf16.msra.mxu1 %v12035_v27 }
 0x342   :  { %4714 = vmatprep.subr.bf16.mxu1 %v12040_v28 }
 0x343   :  { %9101 = vmatpush1.bf16.msra.mxu0 %v10450_v29 }
 0x344   :  { %4704 = vmatmul.mubr.bf16.vlgmr.msra.gmra.mrb[40].mxu1 %v13460_v31  ;;  %9113 = vmatprep.subr.bf16.mxu0 %v10459_v33  ;;  %v12049_v31 = vld [vmem:[%s16207_s3 + $0x60c] ss:$40 sps:$4 sm:$0xff]  }
 0x345   :  { %4715 = vmatpush1.bf16.msra.mxu1 %v12038_v35  ;;  %4746 = vmatprep.mubr.bf16.mxu1 %v12117_v3  ;;  %v12047_v3 = vld [vmem:[%s16207_s3 + $0x608] ss:$40 sps:$4 sm:$0xff]   ;;  %v10376_v35 = vcombine.low %v5021_v18, %v5025_v19  ;;  %v5073_v18 = vld [vmem:[%s16208_s5 + $0x320] sm:$0xff] }
 0x346   :  { %4716 = vmatprep.subr.bf16.mxu1 %v12043_v36  ;;  %v10385_v36 = vcombine.high %v5029_v22, %v5033_v23 }
 0x349   :  { %4717 = vmatpush1.bf16.msra.mxu1 %v12041_v37 }
 0x34a   :  { %4718 = vmatprep.subr.bf16.mxu1 %v12046_v38 }
 0x34d   :  { %4719 = vmatpush1.bf16.msra.mxu1 %v12044_v39 }
 0x34e   :  { %4720 = vmatprep.subr.bf16.mxu1 %v12049_v31 }
 0x351   :  { %4721 = vmatpush1.bf16.msra.mxu1 %v12047_v3 }
 0x352   :  { %4722 = vmatprep.subr.bf16.mxu1 %v12052_v40 }
 0x355   :  { %4723 = vmatpush1.bf16.msra.mxu1 %v12050_v41 }
 0x356   :  { %4724 = vmatprep.subr.bf16.mxu1 %v12055_v42 }
 0x359   :  { %4725 = vmatpush1.bf16.msra.mxu1 %v12053_v43 }
 0x35a   :  { %4726 = vmatprep.subr.bf16.mxu1 %v12058_v44 }
 0x35d   :  { %4727 = vmatpush1.bf16.msra.mxu1 %v12056_v45  ;;  %v5037_v45 = vld [vmem:[%s16208_s5 + $0x200] sm:$0xff] }
 0x35e   :  { %4728 = vmatprep.subr.bf16.mxu1 %v12061_v46  ;;  %v5041_v46 = vld [vmem:[%s16208_s5 + $0x220] sm:$0xff] }
 0x35f   :  { %v10392_v6 = vcombine.low %v5037_v45, %v5041_v46 }
 0x361   :  { %4729 = vmatpush1.bf16.msra.mxu1 %v12059_v49 }
 0x362   :  { %8855 = vmatprep.subr.bf16.mxu1 %v10329_v50 }
 0x364   :  { %4747 = vmatmul.mubr.bf16.vlgmr.msra.gmra.mrb[40].mxu1 %v13444_v56  ;;  %v5005_v56 = vld [vmem:[%s16208_s5 + $0x100] sm:$0xff] }
 0x365   :  { %8856 = vmatpush1.bf16.msra.mxu1 %v10328_v55  ;;  %v10361_v13 = vcombine.high %v5005_v56, %v5009_v32  ;;  %v10360_v15 = vcombine.low %v5005_v56, %v5009_v32 }
 0x366   :  { %8857 = vmatprep.subr.bf16.mxu1 %v10337_v61  ;;  %v10393_v61 = vcombine.high %v5037_v45, %v5041_v46 }
 0x369   :  { %8858 = vmatpush1.bf16.msra.mxu1 %v10336_v2  ;;  %v5045_v2 = vld [vmem:[%s16208_s5 + $0x240] sm:$0xff] }
 0x36a   :  { %8859 = vmatprep.subr.bf16.mxu1 %v10345_v4  ;;  %v5049_v4 = vld [vmem:[%s16208_s5 + $0x260] sm:$0xff] }
 0x36b   :  { %v10401_v7 = vcombine.high %v5045_v2, %v5049_v4  ;;  %v10400_v56 = vcombine.low %v5045_v2, %v5049_v4 }
 0x36d   :  { %8860 = vmatpush1.bf16.msra.mxu1 %v10344_v10  ;;  %v5053_v10 = vld [vmem:[%s16208_s5 + $0x280] sm:$0xff] }
 0x36e   :  { %8861 = vmatprep.subr.bf16.mxu1 %v10353_v11  ;;  %v5057_v11 = vld [vmem:[%s16208_s5 + $0x2a0] sm:$0xff] }
 0x36f   :  { %v10409_v32 = vcombine.high %v5053_v10, %v5057_v11  ;;  %v10408_v14 = vcombine.low %v5053_v10, %v5057_v11 }
 0x371   :  { %8862 = vmatpush1.bf16.msra.mxu1 %v10352_v12  ;;  %v5061_v12 = vld [vmem:[%s16208_s5 + $0x2c0] sm:$0xff] }
 0x372   :  { %8863 = vmatprep.subr.bf16.mxu1 %v10361_v13  ;;  %v5065_v13 = vld [vmem:[%s16208_s5 + $0x2e0] sm:$0xff] }
 0x373   :  { %v10417_v63 = vcombine.high %v5061_v12, %v5065_v13 }
 0x375   :  { %8864 = vmatpush1.bf16.msra.mxu1 %v10360_v15 }
 0x376   :  { %8865 = vmatprep.subr.bf16.mxu1 %v10369_v17  ;;  %v5069_v17 = vld [vmem:[%s16208_s5 + $0x300] sm:$0xff] }
 0x377   :  { %v4490_v24 = vpop.f32.mrb[32].mxu1  ;;  %v4662_v1 = vpop.f32.mrb[4].mxu0 }
 0x378   :  { %v4492_v27 = vpop.f32.mrb[33].mxu1  ;;  %v4664_v28 = vpop.f32.mrb[5].mxu0  ;;  %v14181_v37 = vadd.f32 %v4490_v24, %v3166_v60  ;;  %v14183_v38 = vadd.f32 %v4662_v1, %v3182_v34  ;;  %v10425_v24 = vcombine.high %v5069_v17, %v5073_v18 }
 0x379   :  { %v4494_v29 = vpop.f32.mrb[34].mxu1  ;;  %v4666_v33 = vpop.f32.mrb[6].mxu0  ;;  %8866 = vmatpush1.bf16.msra.mxu1 %v10368_v20  ;;  %v14189_v41 = vadd.f32 %v4492_v27, %v3170_v25  ;;  %v14191_v42 = vadd.f32 %v4664_v28, %v3186_v26  ;;  %v10424_v27 = vcombine.low %v5069_v17, %v5073_v18  ;;  %v5109_v18 = vld [vmem:[%s16208_s5 + $0x440] sm:$0xff] }
 0x37a   :  { %v14185_v39 = vadd.f32 %v4494_v29, %v3166_v60  ;;  %v14187_v31 = vadd.f32 %v4666_v33, %v3182_v34  ;;  %v4496_v3 = vpop.f32.mrb[35].mxu1  ;;  %v4668_v40 = vpop.f32.mrb[7].mxu0  ;;  %8867 = vmatprep.subr.bf16.mxu1 %v10377_v21  ;;  %v10416_v21 = vcombine.low %v5061_v12, %v5065_v13  ;;  %v5085_v29 = vld [vmem:[%s16208_s5 + $0x380] sm:$0xff] }
 0x37b   :  { %v14193_v43 = vadd.f32 %v4496_v3, %v3170_v25  ;;  %v14195_v44 = vadd.f32 %v4668_v40, %v3186_v26  ;;  %v5077_v25 = vld [vmem:[%s16208_s5 + $0x340] sm:$0xff] }
 0x37c   :  { %v4843_v47 = vpack.c.bf16 %v14185_v39, %v14181_v37  ;;  %v4847_v48 = vpack.c.bf16 %v14187_v31, %v14183_v38  ;;  %v5081_v26 = vld [vmem:[%s16208_s5 + $0x360] sm:$0xff] }
 0x37d   :  { %v4844_v49 = vpack.c.bf16 %v14193_v43, %v14189_v41  ;;  %v4848_v50 = vpack.c.bf16 %v14195_v44, %v14191_v42  ;;  %8868 = vmatpush1.bf16.msra.mxu1 %v10376_v35  ;;  %v10433_v28 = vcombine.high %v5077_v25, %v5081_v26  ;;  %v5089_v33 = vld [vmem:[%s16208_s5 + $0x3a0] sm:$0xff]  ;;  %v10432_v35 = vcombine.low %v5077_v25, %v5081_v26  ;;  %v5122_v25 = vld [vmem:[%s16208_s5 + $0x4a8] sm:$0xff] }
 0x37e   :  { %v10318_v53 = vmul.bf16 3216621497, %v4843_v47  ;;  %v10322_v55 = vmul.bf16 3216621497, %v4847_v48  ;;  %8869 = vmatprep.subr.bf16.mxu1 %v10385_v36  ;;  %v10441_v36 = vcombine.high %v5085_v29, %v5089_v33  ;;  %v5093_v3 = vld [vmem:[%s16208_s5 + $0x3c0] sm:$0xff]  ;;  %v10440_v46 = vcombine.low %v5085_v29, %v5089_v33 }
 0x37f   :  { %v10319_v62 = vmul.bf16 3216621497, %v4844_v49  ;;  %v10323_v0 = vmul.bf16 3216621497, %v4848_v50  ;;  %v5097_v40 = vld [vmem:[%s16208_s5 + $0x3e0] sm:$0xff] }
 0x380   :  { %12074 = vpow.bf16 %v10318_v53  ;;  %v10449_v49 = vcombine.high %v5093_v3, %v5097_v40  ;;  %v5101_v50 = vld [vmem:[%s16208_s5 + $0x400] sm:$0xff]  ;;  %v10448_v4 = vcombine.low %v5093_v3, %v5097_v40 }
 0x381   :  { %12076 = vpow.bf16 %v10322_v55  ;;  %8870 = vmatpush1.bf16.msra.mxu1 %v10384_v51  ;;  %v5105_v51 = vld [vmem:[%s16208_s5 + $0x420] sm:$0xff] }
 0x382   :  { %12078 = vpow.bf16 %v10319_v62  ;;  %8871 = vmatprep.subr.bf16.mxu1 %v10393_v61  ;;  %v10457_v11 = vcombine.high %v5101_v50, %v5105_v51  ;;  %v5125_v33 = vld [vmem:[%s16208_s5 + $0x4c0] sm:$0xff] }
 0x383   :  { %12080 = vpow.bf16 %v10323_v0 }
 0x385   :  { %8872 = vmatpush1.bf16.msra.mxu1 %v10392_v6 }
 0x386   :  { %8873 = vmatprep.subr.bf16.mxu1 %v10401_v7 }
 0x389   :  { %8874 = vmatpush1.bf16.msra.mxu1 %v10400_v56 }
 0x38a   :  { %8875 = vmatprep.subr.bf16.mxu1 %v10409_v32 }
 0x38b   :  { %v12075_v15 = vpop.eup %12074 }
 0x38c   :  { %v12077_v19 = vpop.eup %12076  ;;  %v4893_v20 = vadd.bf16 1065369472, %v12075_v15 }
 0x38d   :  { %v12079_v60 = vpop.eup %12078  ;;  %v4897_v34 = vadd.bf16 1065369472, %v12077_v19  ;;  %8876 = vmatpush1.bf16.msra.mxu1 %v10408_v14 }
 0x38e   :  { %v12081_v22 = vpop.eup %12080  ;;  %12082 = vrcp.bf16 %v4893_v20  ;;  %v4894_v23 = vadd.bf16 1065369472, %v12079_v60  ;;  %8877 = vmatprep.subr.bf16.mxu1 %v10417_v63 }
 0x38f   :  { %12084 = vrcp.bf16 %v4897_v34  ;;  %v4898_v1 = vadd.bf16 1065369472, %v12081_v22 }
 0x390   :  { %12086 = vrcp.bf16 %v4894_v23 }
 0x391   :  { %12088 = vrcp.bf16 %v4898_v1  ;;  %8878 = vmatpush1.bf16.msra.mxu1 %v10416_v21  ;;  %v10456_v21 = vcombine.low %v5101_v50, %v5105_v51  ;;  %v5117_v1 = vld [vmem:[%s16208_s5 + $0x480] sm:$0xff] }
 0x392   :  { %8879 = vmatprep.subr.bf16.mxu1 %v10425_v24 }
 0x395   :  { %8880 = vmatpush1.bf16.msra.mxu1 %v10424_v27 }
 0x396   :  { %8881 = vmatprep.subr.bf16.mxu1 %v10433_v28 }
 0x399   :  { %v12083_v45 = vpop.eup %12082  ;;  %8882 = vmatpush1.bf16.msra.mxu1 %v10432_v35  ;;  %v5129_v35 = vld [vmem:[%s16208_s5 + $0x4e0] sm:$0xff] }
 0x39a   :  { %v12085_v47 = vpop.eup %12084  ;;  %v4904_v48 = vmul.bf16 1065369472, %v12083_v45  ;;  %8883 = vmatprep.subr.bf16.mxu1 %v10441_v36  ;;  %v5126_v36 = vld [vmem:[%s16208_s5 + $0x4c8] sm:$0xff]  ;;  %v10481_v3 = vcombine.high %v5125_v33, %v5129_v35  ;;  %v5133_v45 = vld [vmem:[%s16208_s5 + $0x500] sm:$0xff] }
 0x39b   :  { %v12087_v53 = vpop.eup %12086  ;;  %v4912_v55 = vmul.bf16 1065369472, %v12085_v47  ;;  %v10483_v40 = vcombine.high %v5126_v36, %v5130_v52  ;;  %v5134_v47 = vld [vmem:[%s16208_s5 + $0x508] sm:$0xff]  ;;  %v10482_v50 = vcombine.low %v5126_v36, %v5130_v52  ;;  %v5181_v52 = vld [vmem:[%s16208_s5 + $0x680] sm:$0xff] }
 0x39c   :  { %v12089_v61 = vpop.eup %12088  ;;  %v4923_v62 = vunpack.c.l.bf16 %v4904_v48  ;;  %v4933_v0 = vunpack.c.h.bf16 %v4904_v48  ;;  %v4906_v2 = vmul.bf16 1065369472, %v12087_v53  ;;  %v5138_v48 = vld [vmem:[%s16208_s5 + $0x528] sm:$0xff] }
 0x39d   :  { %v4927_v6 = vunpack.c.l.bf16 %v4912_v55  ;;  %v4937_v7 = vunpack.c.h.bf16 %v4912_v55  ;;  %v4914_v10 = vmul.bf16 1065369472, %v12089_v61  ;;  %8884 = vmatpush1.bf16.msra.mxu1 %v10440_v46  ;;  %v5137_v46 = vld [vmem:[%s16208_s5 + $0x520] sm:$0xff]  ;;  %v10491_v53 = vcombine.high %v5134_v47, %v5138_v48 }
 0x39e   :  { %v4943_v56 = vmul.f32 %v14181_v37, %v4923_v62  ;;  %v4953_v32 = vmul.f32 %v14185_v39, %v4933_v0  ;;  %v4924_v12 = vunpack.c.l.bf16 %v4906_v2  ;;  %v4934_v13 = vunpack.c.h.bf16 %v4906_v2  ;;  %8885 = vmatprep.subr.bf16.mxu1 %v10449_v49  ;;  %v5113_v39 = vld [vmem:[%s16208_s5 + $0x460] sm:$0xff]  ;;  %v5142_v62 = vld [vmem:[%s16208_s5 + $0x548] sm:$0xff] }
 0x39f   :  { %v4947_v14 = vmul.f32 %v14183_v38, %v4927_v6  ;;  %v4957_v63 = vmul.f32 %v14187_v31, %v4937_v7  ;;  %v4928_v15 = vunpack.c.l.bf16 %v4914_v10  ;;  %v4938_v17 = vunpack.c.h.bf16 %v4914_v10  ;;  %v5110_v38 = vld [vmem:[%s16208_s5 + $0x448] sm:$0xff]  ;;  %v5141_v55 = vld [vmem:[%s16208_s5 + $0x540] sm:$0xff] }
 0x3a0   :  { %v14266_v19 = vpack.c.bf16 %v4953_v32, %v4943_v56  ;;  %v4944_v20 = vmul.f32 %v14189_v41, %v4924_v12  ;;  %v4954_v37 = vmul.f32 %v14193_v43, %v4934_v13  ;;  %v5114_v31 = vld [vmem:[%s16208_s5 + $0x468] sm:$0xff]  ;;  %v10465_v23 = vcombine.high %v5109_v18, %v5113_v39  ;;  %v5145_v61 = vld [vmem:[%s16208_s5 + $0x560] sm:$0xff] }
 0x3a1   :  { %v14279_v60 = vpack.c.bf16 %v4957_v63, %v4947_v14  ;;  %v4948_v34 = vmul.f32 %v14191_v42, %v4928_v15  ;;  %v4958_v41 = vmul.f32 %v14195_v44, %v4938_v17  ;;  %8886 = vmatpush1.bf16.msra.mxu1 %v10448_v4  ;;  %v10467_v24 = vcombine.high %v5110_v38, %v5114_v31  ;;  %v5121_v42 = vld [vmem:[%s16208_s5 + $0x4a0] sm:$0xff]  ;;  %v5118_v44 = vld [vmem:[%s16208_s5 + $0x488] sm:$0xff] }
 0x3a2   :  { %v14283_v43 = vpack.c.bf16 %v4954_v37, %v4944_v20  ;;  %8898 = vmatprep.subr.bf16.mxu1 %v10457_v11  ;;  %v10464_v26 = vcombine.low %v5109_v18, %v5113_v39  ;;  %v10466_v27 = vcombine.low %v5110_v38, %v5114_v31  ;;  %v10473_v28 = vcombine.high %v5117_v1, %v5121_v42  ;;  %v5146_v0 = vld [vmem:[%s16208_s5 + $0x568] sm:$0xff]  ;;  %v5149_v10 = vld [vmem:[%s16208_s5 + $0x580] sm:$0xff] }
 0x3a3   :  { %v14285_v22 = vpack.c.bf16 %v4958_v41, %v4948_v34  ;;  %v10475_v29 = vcombine.high %v5118_v44, %v5122_v25  ;;  %v10472_v54 = vcombine.low %v5117_v1, %v5121_v42  ;;  %v10480_v49 = vcombine.low %v5125_v33, %v5129_v35  ;;  %v5153_v11 = vld [vmem:[%s16208_s5 + $0x5a0] sm:$0xff]  ;;  %v5150_v56 = vld [vmem:[%s16208_s5 + $0x588] sm:$0xff] }
 0x3a4   :  { %8887 = vmatprep.mubr.bf16.mxu1 %v14283_v43  ;;  %9102 = vmatprep.mubr.bf16.mxu0 %v14283_v43  ;;  %v10489_v51 = vcombine.high %v5133_v45, %v5137_v46  ;;  %v10488_v2 = vcombine.low %v5133_v45, %v5137_v46  ;;  %v10490_v4 = vcombine.low %v5134_v47, %v5138_v48  ;;  %v5154_v32 = vld [vmem:[%s16208_s5 + $0x5a8] sm:$0xff]  ;;  %v5157_v15 = vld [vmem:[%s16208_s5 + $0x5c0] sm:$0xff] }
 0x3a5   :  { %8888 = vmatmul.mubr.bf16.vlgmr.msra.gmra.mrb[44].mxu1 %v14266_v19  ;;  %9103 = vmatmul.mubr.bf16.vlgmr.msra.gmra.mrb[12].mxu0 %v14266_v19  ;;  %v10497_v6 = vcombine.high %v5141_v55, %v5145_v61  ;;  %v10499_v7 = vcombine.high %v5142_v62, %v5146_v0  ;;  %v10496_v12 = vcombine.low %v5141_v55, %v5145_v61  ;;  %v5161_v17 = vld [vmem:[%s16208_s5 + $0x5e0] sm:$0xff]  ;;  %v5158_v18 = vld [vmem:[%s16208_s5 + $0x5c8] sm:$0xff] }
 0x3a6   :  { %8899 = vmatpush1.bf16.msra.mxu1 %v10456_v21  ;;  %9114 = vmatpush1.bf16.msra.mxu0 %v10458_v59  ;;  %v10474_v59 = vcombine.low %v5118_v44, %v5122_v25  ;;  %v10498_v13 = vcombine.low %v5142_v62, %v5146_v0  ;;  %v10505_v14 = vcombine.high %v5149_v10, %v5153_v11  ;;  %v5162_v20 = vld [vmem:[%s16208_s5 + $0x5e8] sm:$0xff]  ;;  %v5165_v34 = vld [vmem:[%s16208_s5 + $0x600] sm:$0xff] }
 0x3a7   :  { %8900 = vmatprep.subr.bf16.mxu1 %v10465_v23  ;;  %9115 = vmatprep.subr.bf16.mxu0 %v10467_v24  ;;  %v10507_v63 = vcombine.high %v5150_v56, %v5154_v32  ;;  %v10504_v37 = vcombine.low %v5149_v10, %v5153_v11  ;;  %v10506_v39 = vcombine.low %v5150_v56, %v5154_v32  ;;  %v5169_v41 = vld [vmem:[%s16208_s5 + $0x620] sm:$0xff]  ;;  %v5166_v21 = vld [vmem:[%s16208_s5 + $0x608] sm:$0xff] }
 0x3a8   :  { %v10513_v38 = vcombine.high %v5157_v15, %v5161_v17  ;;  %v10515_v31 = vcombine.high %v5158_v18, %v5162_v20  ;;  %v5170_v23 = vld [vmem:[%s16208_s5 + $0x628] sm:$0xff]  ;;  %v10512_v24 = vcombine.low %v5157_v15, %v5161_v17  ;;  %v10514_v1 = vcombine.low %v5158_v18, %v5162_v20  ;;  %v5173_v25 = vld [vmem:[%s16208_s5 + $0x640] sm:$0xff] }
 0x3a9   :  { %v10521_v42 = vcombine.high %v5165_v34, %v5169_v41  ;;  %v10523_v44 = vcombine.high %v5166_v21, %v5170_v23  ;;  %v10522_v33 = vcombine.low %v5166_v21, %v5170_v23  ;;  %v5189_v48 = vld [vmem:[%s16208_s5 + $0x6c0] sm:$0xff]  ;;  %v3160_v17 = vld [vmem:[%s16209_s4 + $0x8] sm:$0x3]  ;;  %v3177_v18 = vsub.s32 3, %v13126_v5 }
 0x3aa   :  { %8901 = vmatpush1.bf16.msra.mxu1 %v10464_v26  ;;  %9116 = vmatpush1.bf16.msra.mxu0 %v10466_v27  ;;  %v5177_v26 = vld [vmem:[%s16208_s5 + $0x660] sm:$0xff]  ;;  %v5174_v27 = vld [vmem:[%s16208_s5 + $0x648] sm:$0xff]  ;;  %v3198_v23 = vrot.slane %v3160_v17, %v13447_v57 }
 0x3ab   :  { %8902 = vmatprep.subr.bf16.mxu1 %v10473_v28  ;;  %9117 = vmatprep.subr.bf16.mxu0 %v10475_v29  ;;  %v5178_v28 = vld [vmem:[%s16208_s5 + $0x668] sm:$0xff]  ;;  %v10520_v29 = vcombine.low %v5165_v34, %v5169_v41  ;;  %v10529_v35 = vcombine.high %v5173_v25, %v5177_v26  ;;  %v5197_v0 = vld [vmem:[%s16208_s5 + $0x700] sm:$0xff]  ;;  %v3174_v41 = vrot.slane %v14156_v9, %v13135_v8 }
 0x3ac   :  { %v10531_v36 = vcombine.high %v5174_v27, %v5178_v28  ;;  %v10530_v45 = vcombine.low %v5174_v27, %v5178_v28  ;;  %v5205_v32 = vld [vmem:[%s16208_s5 + $0x740] sm:$0xff]  ;;  %v5218_v34 = vld [vmem:[%s16208_s5 + $0x7a8] sm:$0xff]  ;;  %v3178_v27 = vrot.slane %v14156_v9, %v3177_v18 }
 0x3ad   :  { %v5221_v21 = vld [vmem:[%s16208_s5 + $0x7c0] sm:$0xff] }
 0x3ae   :  { %8903 = vmatpush1.bf16.msra.mxu1 %v10472_v54  ;;  %9118 = vmatpush1.bf16.msra.mxu0 %v10474_v59  ;;  %v5185_v54 = vld [vmem:[%s16208_s5 + $0x6a0] sm:$0xff]  ;;  %v5182_v59 = vld [vmem:[%s16208_s5 + $0x688] sm:$0xff] }
 0x3af   :  { %8904 = vmatprep.subr.bf16.mxu1 %v10481_v3  ;;  %9119 = vmatprep.subr.bf16.mxu0 %v10483_v40  ;;  %v5186_v3 = vld [vmem:[%s16208_s5 + $0x6a8] sm:$0xff]  ;;  %v10528_v40 = vcombine.low %v5173_v25, %v5177_v26  ;;  %v10537_v46 = vcombine.high %v5181_v52, %v5185_v54 }
 0x3b0   :  { %v10539_v47 = vcombine.high %v5182_v59, %v5186_v3  ;;  %v10538_v55 = vcombine.low %v5182_v59, %v5186_v3  ;;  %v5226_v25 = vld [vmem:[%s16208_s5 + $0x7e8] sm:$0xff] }
 0x3b2   :  { %8905 = vmatpush1.bf16.msra.mxu1 %v10480_v49  ;;  %9120 = vmatpush1.bf16.msra.mxu0 %v10482_v50  ;;  %v5193_v49 = vld [vmem:[%s16208_s5 + $0x6e0] sm:$0xff]  ;;  %v5190_v50 = vld [vmem:[%s16208_s5 + $0x6c8] sm:$0xff] }
 0x3b3   :  { %8906 = vmatprep.subr.bf16.mxu1 %v10489_v51  ;;  %9121 = vmatprep.subr.bf16.mxu0 %v10491_v53  ;;  %v5194_v51 = vld [vmem:[%s16208_s5 + $0x6e8] sm:$0xff]  ;;  %v10536_v53 = vcombine.low %v5181_v52, %v5185_v54  ;;  %v10545_v61 = vcombine.high %v5189_v48, %v5193_v49 }
 0x3b4   :  { %v10547_v62 = vcombine.high %v5190_v50, %v5194_v51  ;;  %v10546_v10 = vcombine.low %v5190_v50, %v5194_v51 }
 0x3b6   :  { %8907 = vmatpush1.bf16.msra.mxu1 %v10488_v2  ;;  %9122 = vmatpush1.bf16.msra.mxu0 %v10490_v4  ;;  %v5201_v2 = vld [vmem:[%s16208_s5 + $0x720] sm:$0xff]  ;;  %v5198_v4 = vld [vmem:[%s16208_s5 + $0x708] sm:$0xff] }
 0x3b7   :  { %8908 = vmatprep.subr.bf16.mxu1 %v10497_v6  ;;  %9123 = vmatprep.subr.bf16.mxu0 %v10499_v7  ;;  %v5202_v6 = vld [vmem:[%s16208_s5 + $0x728] sm:$0xff]  ;;  %v10544_v7 = vcombine.low %v5189_v48, %v5193_v49  ;;  %v10553_v11 = vcombine.high %v5197_v0, %v5201_v2 }
 0x3b8   :  { %v10555_v56 = vcombine.high %v5198_v4, %v5202_v6  ;;  %v10554_v15 = vcombine.low %v5198_v4, %v5202_v6  ;;  %v14499_v4 = vld [vmem:[%s16208_s5 + $0x820] sm:$0xff]  ;;  %v14504_v6 = vld [vmem:[%s16208_s5 + $0x808] sm:$0xff] }
 0x3ba   :  { %8909 = vmatpush1.bf16.msra.mxu1 %v10496_v12  ;;  %9124 = vmatpush1.bf16.msra.mxu0 %v10498_v13  ;;  %v5209_v12 = vld [vmem:[%s16208_s5 + $0x760] sm:$0xff]  ;;  %v5206_v13 = vld [vmem:[%s16208_s5 + $0x748] sm:$0xff] }
 0x3bb   :  { %8910 = vmatprep.subr.bf16.mxu1 %v10505_v14  ;;  %9125 = vmatprep.subr.bf16.mxu0 %v10507_v63  ;;  %v5210_v14 = vld [vmem:[%s16208_s5 + $0x768] sm:$0xff]  ;;  %v10552_v63 = vcombine.low %v5197_v0, %v5201_v2  ;;  %v10561_v20 = vcombine.high %v5205_v32, %v5209_v12 }
 0x3be   :  { %8911 = vmatpush1.bf16.msra.mxu1 %v10504_v37  ;;  %9126 = vmatpush1.bf16.msra.mxu0 %v10506_v39  ;;  %v10563_v37 = vcombine.high %v5206_v13, %v5210_v14  ;;  %v5213_v39 = vld [vmem:[%s16208_s5 + $0x780] sm:$0xff] }
 0x3bf   :  { %8912 = vmatprep.subr.bf16.mxu1 %v10513_v38  ;;  %9127 = vmatprep.subr.bf16.mxu0 %v10515_v31  ;;  %v5217_v38 = vld [vmem:[%s16208_s5 + $0x7a0] sm:$0xff]  ;;  %v5214_v31 = vld [vmem:[%s16208_s5 + $0x788] sm:$0xff] }
 0x3c0   :  { %v10569_v28 = vcombine.high %v5213_v39, %v5217_v38  ;;  %v10568_v59 = vcombine.low %v5213_v39, %v5217_v38  ;;  %v10570_v3 = vcombine.low %v5214_v31, %v5218_v34 }
 0x3c2   :  { %8913 = vmatpush1.bf16.msra.mxu1 %v10512_v24  ;;  %9128 = vmatpush1.bf16.msra.mxu0 %v10514_v1  ;;  %v10560_v24 = vcombine.low %v5205_v32, %v5209_v12  ;;  %v10562_v1 = vcombine.low %v5206_v13, %v5210_v14 }
 0x3c3   :  { %8914 = vmatprep.subr.bf16.mxu1 %v10521_v42  ;;  %9129 = vmatprep.subr.bf16.mxu0 %v10523_v44  ;;  %v5225_v42 = vld [vmem:[%s16208_s5 + $0x7e0] sm:$0xff]  ;;  %v5222_v44 = vld [vmem:[%s16208_s5 + $0x7c8] sm:$0xff] }
 0x3c4   :  { %v10576_v12 = vcombine.low %v5221_v21, %v5225_v42  ;;  %v10578_v13 = vcombine.low %v5222_v44, %v5226_v25 }
 0x3c6   :  { %8915 = vmatpush1.bf16.msra.mxu1 %v10520_v29  ;;  %9130 = vmatpush1.bf16.msra.mxu0 %v10522_v33  ;;  %v10571_v29 = vcombine.high %v5214_v31, %v5218_v34 }
 0x3c7   :  { %8916 = vmatprep.subr.bf16.mxu1 %v10529_v35  ;;  %9131 = vmatprep.subr.bf16.mxu0 %v10531_v36  ;;  %v3202_v36 = vrot.slane %v3160_v17, %v13450_v58 }
 0x3ca   :  { %8917 = vmatpush1.bf16.msra.mxu1 %v10528_v40  ;;  %9132 = vmatpush1.bf16.msra.mxu0 %v10530_v45  ;;  %v10577_v40 = vcombine.high %v5221_v21, %v5225_v42  ;;  %v10579_v45 = vcombine.high %v5222_v44, %v5226_v25 }
 0x3cb   :  { %8918 = vmatprep.subr.bf16.mxu1 %v10537_v46  ;;  %9133 = vmatprep.subr.bf16.mxu0 %v10539_v47 }
 0x3ce   :  { %8919 = vmatpush1.bf16.msra.mxu1 %v10536_v53  ;;  %9134 = vmatpush1.bf16.msra.mxu0 %v10538_v55 }
 0x3cf   :  { %8920 = vmatprep.subr.bf16.mxu1 %v10545_v61  ;;  %9135 = vmatprep.subr.bf16.mxu0 %v10547_v62  ;;  %v14488_v61 = vld [vmem:[%s16208_s5 + $0x800] sm:$0xff] }
 0x3d2   :  { %8921 = vmatpush1.bf16.msra.mxu1 %v10544_v7  ;;  %9136 = vmatpush1.bf16.msra.mxu0 %v10546_v10  ;;  %v14509_v7 = vld [vmem:[%s16208_s5 + $0x828] sm:$0xff] }
 0x3d3   :  { %8922 = vmatprep.subr.bf16.mxu1 %v10553_v11  ;;  %9137 = vmatprep.subr.bf16.mxu0 %v10555_v56  ;;  %v10587_v17 = vcombine.high %v14504_v6, %v14509_v7 }
 0x3d6   :  { %8923 = vmatpush1.bf16.msra.mxu1 %v10552_v63  ;;  %9138 = vmatpush1.bf16.msra.mxu0 %v10554_v15  ;;  %v10585_v15 = vcombine.high %v14488_v61, %v14499_v4 }
 0x3d7   :  { %v4576_v26 = vpop.f32.mrb[36].mxu1  ;;  %8924 = vmatprep.subr.bf16.mxu1 %v10561_v20  ;;  %9139 = vmatprep.subr.bf16.mxu0 %v10563_v37 }
 0x3d8   :  { %v4834_v33 = vpop.f32.mrb[8].mxu0  ;;  %v4578_v35 = vpop.f32.mrb[37].mxu1  ;;  %v14473_v46 = vadd.f32 %v4576_v26, %v3174_v41 }
 0x3d9   :  { %v4836_v52 = vpop.f32.mrb[9].mxu0  ;;  %v4580_v54 = vpop.f32.mrb[38].mxu1  ;;  %v14475_v47 = vadd.f32 %v4834_v33, %v3198_v23  ;;  %v14479_v50 = vadd.f32 %v4578_v35, %v3178_v27 }
 0x3da   :  { %v14477_v48 = vadd.f32 %v4580_v54, %v3174_v41  ;;  %v4838_v9 = vpop.f32.mrb[10].mxu0  ;;  %v4582_v49 = vpop.f32.mrb[39].mxu1  ;;  %8925 = vmatpush1.bf16.msra.mxu1 %v10560_v24  ;;  %9140 = vmatpush1.bf16.msra.mxu0 %v10562_v1  ;;  %v14490_v62 = vadd.f32 %v4836_v52, %v3202_v36 }
 0x3db   :  { %v14481_v51 = vadd.f32 %v4838_v9, %v3198_v23  ;;  %v14483_v53 = vadd.f32 %v4582_v49, %v3178_v27  ;;  %v4840_v55 = vpop.f32.mrb[11].mxu0  ;;  %8926 = vmatprep.subr.bf16.mxu1 %v10569_v28  ;;  %9141 = vmatprep.subr.bf16.mxu0 %v10571_v29 }
 0x3dc   :  { %v4845_v0 = vpack.c.bf16 %v14477_v48, %v14473_v46  ;;  %v14494_v2 = vadd.f32 %v4840_v55, %v3202_v36 }
 0x3dd   :  { %v4851_v10 = vpack.c.bf16 %v14481_v51, %v14475_v47  ;;  %v4846_v11 = vpack.c.bf16 %v14483_v53, %v14479_v50 }
 0x3de   :  { %v10320_v56 = vmul.bf16 3216621497, %v4845_v0  ;;  %v4852_v32 = vpack.c.bf16 %v14494_v2, %v14490_v62  ;;  %8927 = vmatpush1.bf16.msra.mxu1 %v10568_v59  ;;  %9142 = vmatpush1.bf16.msra.mxu0 %v10570_v3 }
 0x3df   :  { %v10326_v14 = vmul.bf16 3216621497, %v4851_v10  ;;  %v10321_v63 = vmul.bf16 3216621497, %v4846_v11  ;;  %8928 = vmatprep.subr.bf16.mxu1 %v10577_v40  ;;  %9143 = vmatprep.subr.bf16.mxu0 %v10579_v45 }
 0x3e0   :  { %12090 = vpow.bf16 %v10320_v56  ;;  %v10327_v20 = vmul.bf16 3216621497, %v4852_v32  ;;  %v10584_v32 = vcombine.low %v14488_v61, %v14499_v4  ;;  %v5246_v61 = vld [vmem:[%s16208_s5 + $0x888] sm:$0xff] }
 0x3e1   :  { %12092 = vpow.bf16 %v10326_v14  ;;  %v5250_v4 = vld [vmem:[%s16208_s5 + $0x8a8] sm:$0xff] }
 0x3e2   :  { %12094 = vpow.bf16 %v10321_v63  ;;  %8929 = vmatpush1.bf16.msra.mxu1 %v10576_v12  ;;  %9144 = vmatpush1.bf16.msra.mxu0 %v10578_v13  ;;  %v5245_v12 = vld [vmem:[%s16208_s5 + $0x880] sm:$0xff] }
 0x3e3   :  { %12096 = vpow.bf16 %v10327_v20  ;;  %8941 = vmatprep.subr.bf16.mxu1 %v10585_v15  ;;  %9156 = vmatprep.subr.bf16.mxu0 %v10587_v17  ;;  %v5249_v63 = vld [vmem:[%s16208_s5 + $0x8a0] sm:$0xff]  ;;  %v10603_v17 = vcombine.high %v5246_v61, %v5250_v4 }
 0x3e4   :  { %v10601_v15 = vcombine.high %v5245_v12, %v5249_v63  ;;  %v5253_v20 = vld [vmem:[%s16208_s5 + $0x8c0] sm:$0xff] }
 0x3eb   :  { %v12091_v37 = vpop.eup %12090 }
 0x3ec   :  { %v12093_v39 = vpop.eup %12092  ;;  %v4895_v38 = vadd.bf16 1065369472, %v12091_v37  ;;  %v5257_v37 = vld [vmem:[%s16208_s5 + $0x8e0] sm:$0xff] }
 0x3ed   :  { %v12095_v31 = vpop.eup %12094  ;;  %v4901_v34 = vadd.bf16 1065369472, %v12093_v39  ;;  %v5254_v39 = vld [vmem:[%s16208_s5 + $0x8c8] sm:$0xff] }
 0x3ee   :  { %v12097_v41 = vpop.eup %12096  ;;  %12098 = vrcp.bf16 %v4895_v38  ;;  %v4896_v21 = vadd.bf16 1065369472, %v12095_v31  ;;  %v5258_v38 = vld [vmem:[%s16208_s5 + $0x8e8] sm:$0xff]  ;;  %v10600_v31 = vcombine.low %v5245_v12, %v5249_v63 }
 0x3ef   :  { %12100 = vrcp.bf16 %v4901_v34  ;;  %v4902_v23 = vadd.bf16 1065369472, %v12097_v41  ;;  %v10602_v34 = vcombine.low %v5246_v61, %v5250_v4  ;;  %v10609_v41 = vcombine.high %v5253_v20, %v5257_v37  ;;  %v5294_v63 = vld [vmem:[%s16208_s5 + $0xa08] sm:$0xff] }
 0x3f0   :  { %12102 = vrcp.bf16 %v4896_v21  ;;  %v10611_v21 = vcombine.high %v5254_v39, %v5258_v38  ;;  %v5298_v61 = vld [vmem:[%s16208_s5 + $0xa28] sm:$0xff] }
 0x3f1   :  { %12104 = vrcp.bf16 %v4902_v23  ;;  %v5261_v23 = vld [vmem:[%s16208_s5 + $0x900] sm:$0xff] }
 0x3f9   :  { %v12099_v24 = vpop.eup %12098 }
 0x3fa   :  { %v12101_v1 = vpop.eup %12100  ;;  %v4908_v42 = vmul.bf16 1065369472, %v12099_v24  ;;  %v5265_v24 = vld [vmem:[%s16208_s5 + $0x920] sm:$0xff] }
 0x3fb   :  { %v12103_v44 = vpop.eup %12102  ;;  %v4920_v25 = vmul.bf16 1065369472, %v12101_v1  ;;  %v5262_v1 = vld [vmem:[%s16208_s5 + $0x908] sm:$0xff] }
 0x3fc   :  { %v12105_v26 = vpop.eup %12104  ;;  %v4925_v27 = vunpack.c.l.bf16 %v4908_v42  ;;  %v4935_v28 = vunpack.c.h.bf16 %v4908_v42  ;;  %v4910_v29 = vmul.bf16 1065369472, %v12103_v44  ;;  %v5266_v42 = vld [vmem:[%s16208_s5 + $0x928] sm:$0xff]  ;;  %v10608_v44 = vcombine.low %v5253_v20, %v5257_v37  ;;  %v5305_v20 = vld [vmem:[%s16208_s5 + $0xa60] sm:$0xff] }
 0x3fd   :  { %v4931_v33 = vunpack.c.l.bf16 %v4920_v25  ;;  %v4941_v35 = vunpack.c.h.bf16 %v4920_v25  ;;  %v4922_v36 = vmul.bf16 1065369472, %v12105_v26  ;;  %v10610_v25 = vcombine.low %v5254_v39, %v5258_v38  ;;  %v5302_v37 = vld [vmem:[%s16208_s5 + $0xa48] sm:$0xff] }
 0x3fe   :  { %v4945_v52 = vmul.f32 %v14473_v46, %v4925_v27  ;;  %v4955_v54 = vmul.f32 %v14477_v48, %v4935_v28  ;;  %v4926_v59 = vunpack.c.l.bf16 %v4910_v29  ;;  %v4936_v3 = vunpack.c.h.bf16 %v4910_v29  ;;  %v5237_v46 = vld [vmem:[%s16208_s5 + $0x840] sm:$0xff]  ;;  %v5306_v39 = vld [vmem:[%s16208_s5 + $0xa68] sm:$0xff] }
 0x3ff   :  { %v4951_v40 = vmul.f32 %v14475_v47, %v4931_v33  ;;  %v4961_v45 = vmul.f32 %v14481_v51, %v4941_v35  ;;  %v4932_v9 = vunpack.c.l.bf16 %v4922_v36  ;;  %v4942_v49 = vunpack.c.h.bf16 %v4922_v36  ;;  %v5241_v51 = vld [vmem:[%s16208_s5 + $0x860] sm:$0xff]  ;;  %v5270_v33 = vld [vmem:[%s16208_s5 + $0x948] sm:$0xff] }
 0x400   :  { %v14525_v55 = vpack.c.bf16 %v4955_v54, %v4945_v52  ;;  %v4946_v0 = vmul.f32 %v14479_v50, %v4926_v59  ;;  %v4956_v10 = vmul.f32 %v14483_v53, %v4936_v3  ;;  %v5238_v50 = vld [vmem:[%s16208_s5 + $0x848] sm:$0xff]  ;;  %v10593_v13 = vcombine.high %v5237_v46, %v5241_v51  ;;  %v5269_v28 = vld [vmem:[%s16208_s5 + $0x940] sm:$0xff] }
 0x401   :  { %v14532_v11 = vpack.c.bf16 %v4961_v45, %v4951_v40  ;;  %v4952_v48 = vmul.f32 %v14490_v62, %v4932_v9  ;;  %v4962_v47 = vmul.f32 %v14494_v2, %v4942_v49  ;;  %v5242_v53 = vld [vmem:[%s16208_s5 + $0x868] sm:$0xff]  ;;  %v10586_v62 = vcombine.low %v14504_v6, %v14509_v7  ;;  %v5273_v29 = vld [vmem:[%s16208_s5 + $0x960] sm:$0xff] }
 0x402   :  { %v14545_v56 = vpack.c.bf16 %v4956_v10, %v4946_v0  ;;  %v10595_v14 = vcombine.high %v5238_v50, %v5242_v53  ;;  %v10592_v6 = vcombine.low %v5237_v46, %v5241_v51  ;;  %v10594_v7 = vcombine.low %v5238_v50, %v5242_v53  ;;  %v5274_v35 = vld [vmem:[%s16208_s5 + $0x968] sm:$0xff]  ;;  %v5277_v3 = vld [vmem:[%s16208_s5 + $0x980] sm:$0xff] }
 0x403   :  { %v14551_v2 = vpack.c.bf16 %v4962_v47, %v4952_v48  ;;  %v10617_v26 = vcombine.high %v5261_v23, %v5265_v24  ;;  %v10619_v27 = vcombine.high %v5262_v1, %v5266_v42  ;;  %v10616_v36 = vcombine.low %v5261_v23, %v5265_v24  ;;  %v5281_v40 = vld [vmem:[%s16208_s5 + $0x9a0] sm:$0xff]  ;;  %v5278_v45 = vld [vmem:[%s16208_s5 + $0x988] sm:$0xff] }
 0x404   :  { %8930 = vmatprep.mubr.bf16.mxu1 %v14545_v56  ;;  %9145 = vmatprep.mubr.bf16.mxu0 %v14545_v56  ;;  %v10618_v52 = vcombine.low %v5262_v1, %v5266_v42  ;;  %v10625_v54 = vcombine.high %v5269_v28, %v5273_v29  ;;  %v10627_v59 = vcombine.high %v5270_v33, %v5274_v35  ;;  %v5282_v9 = vld [vmem:[%s16208_s5 + $0x9a8] sm:$0xff]  ;;  %v5285_v48 = vld [vmem:[%s16208_s5 + $0x9c0] sm:$0xff] }
 0x405   :  { %8931 = vmatmul.mubr.bf16.vlgmr.msra.gmra.mrb[44].mxu1 %v14525_v55  ;;  %9146 = vmatmul.mubr.bf16.vlgmr.msra.gmra.mrb[12].mxu0 %v14525_v55  ;;  %v10624_v49 = vcombine.low %v5269_v28, %v5273_v29  ;;  %v10626_v0 = vcombine.low %v5270_v33, %v5274_v35  ;;  %v10633_v10 = vcombine.high %v5277_v3, %v5281_v40  ;;  %v5289_v47 = vld [vmem:[%s16208_s5 + $0x9e0] sm:$0xff]  ;;  %v5286_v51 = vld [vmem:[%s16208_s5 + $0x9c8] sm:$0xff] }
 0x406   :  { %8942 = vmatpush1.bf16.msra.mxu1 %v10584_v32  ;;  %9157 = vmatpush1.bf16.msra.mxu0 %v10586_v62  ;;  %v10635_v46 = vcombine.high %v5278_v45, %v5282_v9  ;;  %v5290_v50 = vld [vmem:[%s16208_s5 + $0x9e8] sm:$0xff]  ;;  %v10632_v53 = vcombine.low %v5277_v3, %v5281_v40  ;;  %v10634_v32 = vcombine.low %v5278_v45, %v5282_v9  ;;  %v5313_v23 = vld [vmem:[%s16208_s5 + $0xaa0] sm:$0xff] }
 0x407   :  { %8973 = vmatprep.mubr.bf16.mxu1 %v14285_v22  ;;  %9188 = vmatprep.mubr.bf16.mxu0 %v14285_v22  ;;  %v10641_v62 = vcombine.high %v5285_v48, %v5289_v47  ;;  %v10643_v12 = vcombine.high %v5286_v51, %v5290_v50  ;;  %v10640_v4 = vcombine.low %v5285_v48, %v5289_v47  ;;  %v5310_v24 = vld [vmem:[%s16208_s5 + $0xa88] sm:$0xff]  ;;  %v5321_v28 = vld [vmem:[%s16208_s5 + $0xae0] sm:$0xff] }
 0x408   :  { %8943 = vmatprep.subr.bf16.mxu1 %v10593_v13  ;;  %9158 = vmatprep.subr.bf16.mxu0 %v10595_v14  ;;  %v5293_v13 = vld [vmem:[%s16208_s5 + $0xa00] sm:$0xff]  ;;  %v5314_v1 = vld [vmem:[%s16208_s5 + $0xaa8] sm:$0xff] }
 0x409   :  { %v5297_v14 = vld [vmem:[%s16208_s5 + $0xa20] sm:$0xff]  ;;  %v5318_v29 = vld [vmem:[%s16208_s5 + $0xac8] sm:$0xff] }
 0x40a   :  { %8944 = vmatpush1.bf16.msra.mxu1 %v10592_v6  ;;  %9159 = vmatpush1.bf16.msra.mxu0 %v10594_v7  ;;  %v10642_v6 = vcombine.low %v5286_v51, %v5290_v50  ;;  %v10649_v7 = vcombine.high %v5293_v13, %v5297_v14  ;;  %v10648_v38 = vcombine.low %v5293_v13, %v5297_v14  ;;  %v5322_v33 = vld [vmem:[%s16208_s5 + $0xae8] sm:$0xff]  ;;  %v5329_v3 = vld [vmem:[%s16208_s5 + $0xb20] sm:$0xff]  ;;  %v3193_v13 = vsub.s32 7, %v13126_v5 }
 0x40b   :  { %8945 = vmatprep.subr.bf16.mxu1 %v10601_v15  ;;  %9160 = vmatprep.subr.bf16.mxu0 %v10603_v17  ;;  %v10651_v15 = vcombine.high %v5294_v63, %v5298_v61  ;;  %v5301_v17 = vld [vmem:[%s16208_s5 + $0xa40] sm:$0xff]  ;;  %v5326_v40 = vld [vmem:[%s16208_s5 + $0xb08] sm:$0xff] }
 0x40c   :  { %v10656_v42 = vcombine.low %v5301_v17, %v5305_v20  ;;  %v5330_v45 = vld [vmem:[%s16208_s5 + $0xb28] sm:$0xff]  ;;  %v5337_v48 = vld [vmem:[%s16208_s5 + $0xb60] sm:$0xff] }
 0x40d   :  { %v5334_v47 = vld [vmem:[%s16208_s5 + $0xb48] sm:$0xff]  ;;  %v5341_v14 = vld [vmem:[%s16208_s5 + $0xb80] sm:$0xff] }
 0x40e   :  { %8946 = vmatpush1.bf16.msra.mxu1 %v10600_v31  ;;  %9161 = vmatpush1.bf16.msra.mxu0 %v10602_v34  ;;  %v10650_v31 = vcombine.low %v5294_v63, %v5298_v61  ;;  %v10657_v34 = vcombine.high %v5301_v17, %v5305_v20  ;;  %v5338_v51 = vld [vmem:[%s16208_s5 + $0xb68] sm:$0xff]  ;;  %v5345_v63 = vld [vmem:[%s16208_s5 + $0xba0] sm:$0xff] }
 0x40f   :  { %8947 = vmatprep.subr.bf16.mxu1 %v10609_v41  ;;  %9162 = vmatprep.subr.bf16.mxu0 %v10611_v21  ;;  %v10659_v41 = vcombine.high %v5302_v37, %v5306_v39  ;;  %v5309_v21 = vld [vmem:[%s16208_s5 + $0xa80] sm:$0xff]  ;;  %v5342_v61 = vld [vmem:[%s16208_s5 + $0xb88] sm:$0xff]  ;;  %v10690_v17 = vcombine.low %v5334_v47, %v5338_v51 }
 0x410   :  { %v10664_v35 = vcombine.low %v5309_v21, %v5313_v23 }
 0x412   :  { %8948 = vmatpush1.bf16.msra.mxu1 %v10608_v44  ;;  %9163 = vmatpush1.bf16.msra.mxu0 %v10610_v25  ;;  %v10658_v44 = vcombine.low %v5302_v37, %v5306_v39  ;;  %v10665_v25 = vcombine.high %v5309_v21, %v5313_v23  ;;  %v10697_v39 = vcombine.high %v5341_v14, %v5345_v63  ;;  %v5350_v21 = vld [vmem:[%s16208_s5 + $0xbc8] sm:$0xff] }
 0x413   :  { %8949 = vmatprep.subr.bf16.mxu1 %v10617_v26  ;;  %9164 = vmatprep.subr.bf16.mxu0 %v10619_v27  ;;  %v10667_v26 = vcombine.high %v5310_v24, %v5314_v1  ;;  %v5317_v27 = vld [vmem:[%s16208_s5 + $0xac0] sm:$0xff]  ;;  %v5354_v23 = vld [vmem:[%s16208_s5 + $0xbe8] sm:$0xff] }
 0x414   :  { %v10672_v9 = vcombine.low %v5317_v27, %v5321_v28 }
 0x416   :  { %8950 = vmatpush1.bf16.msra.mxu1 %v10616_v36  ;;  %9165 = vmatpush1.bf16.msra.mxu0 %v10618_v52  ;;  %v10666_v36 = vcombine.low %v5310_v24, %v5314_v1  ;;  %v10673_v52 = vcombine.high %v5317_v27, %v5321_v28  ;;  %v10696_v1 = vcombine.low %v5341_v14, %v5345_v63  ;;  %v5373_v14 = vld [vmem:[%s16208_s5 + $0xc80] sm:$0xff] }
 0x417   :  { %8951 = vmatprep.subr.bf16.mxu1 %v10625_v54  ;;  %9166 = vmatprep.subr.bf16.mxu0 %v10627_v59  ;;  %v10675_v54 = vcombine.high %v5318_v29, %v5322_v33  ;;  %v5325_v59 = vld [vmem:[%s16208_s5 + $0xb00] sm:$0xff] }
 0x418   :  { %v10680_v50 = vcombine.low %v5325_v59, %v5329_v3  ;;  %v5377_v63 = vld [vmem:[%s16208_s5 + $0xca0] sm:$0xff] }
 0x41a   :  { %8952 = vmatpush1.bf16.msra.mxu1 %v10624_v49  ;;  %9167 = vmatpush1.bf16.msra.mxu0 %v10626_v0  ;;  %v10674_v49 = vcombine.low %v5318_v29, %v5322_v33  ;;  %v10681_v0 = vcombine.high %v5325_v59, %v5329_v3  ;;  %v10707_v33 = vcombine.high %v5350_v21, %v5354_v23  ;;  %v5362_v59 = vld [vmem:[%s16208_s5 + $0xc28] sm:$0xff] }
 0x41b   :  { %8953 = vmatprep.subr.bf16.mxu1 %v10633_v10  ;;  %9168 = vmatprep.subr.bf16.mxu0 %v10635_v46  ;;  %v10683_v10 = vcombine.high %v5326_v40, %v5330_v45  ;;  %v5333_v46 = vld [vmem:[%s16208_s5 + $0xb40] sm:$0xff] }
 0x41e   :  { %8954 = vmatpush1.bf16.msra.mxu1 %v10632_v53  ;;  %9169 = vmatpush1.bf16.msra.mxu0 %v10634_v32  ;;  %v10682_v53 = vcombine.low %v5326_v40, %v5330_v45  ;;  %v3189_v32 = vsub.s32 6, %v13126_v5 }
 0x41f   :  { %8955 = vmatprep.subr.bf16.mxu1 %v10641_v62  ;;  %9170 = vmatprep.subr.bf16.mxu0 %v10643_v12  ;;  %v10689_v62 = vcombine.high %v5333_v46, %v5337_v48  ;;  %v10691_v12 = vcombine.high %v5334_v47, %v5338_v51  ;;  %v5366_v47 = vld [vmem:[%s16208_s5 + $0xc48] sm:$0xff] }
 0x420   :  { %v5370_v51 = vld [vmem:[%s16208_s5 + $0xc68] sm:$0xff] }
 0x422   :  { %8956 = vmatpush1.bf16.msra.mxu1 %v10640_v4  ;;  %9171 = vmatpush1.bf16.msra.mxu0 %v10642_v6  ;;  %v5346_v4 = vld [vmem:[%s16208_s5 + $0xba8] sm:$0xff]  ;;  %v12116_v6 = vld [vmem:[%s16209_s4] sm:$0xff] }
 0x423   :  { %8957 = vmatprep.subr.bf16.mxu1 %v10649_v7  ;;  %9172 = vmatprep.subr.bf16.mxu0 %v10651_v15  ;;  %v3190_v7 = vrot.slane %v12116_v6, %v3189_v32  ;;  %v10688_v15 = vcombine.low %v5333_v46, %v5337_v48  ;;  %v3194_v37 = vrot.slane %v12116_v6, %v3193_v13  ;;  %v5365_v46 = vld [vmem:[%s16208_s5 + $0xc40] sm:$0xff] }
 0x424   :  { %v5369_v48 = vld [vmem:[%s16208_s5 + $0xc60] sm:$0xff] }
 0x425   :  { %v10720_v6 = vcombine.low %v5365_v46, %v5369_v48 }
 0x426   :  { %8958 = vmatpush1.bf16.msra.mxu1 %v10648_v38  ;;  %9173 = vmatpush1.bf16.msra.mxu0 %v10650_v31  ;;  %v10699_v38 = vcombine.high %v5342_v61, %v5346_v4  ;;  %v5349_v31 = vld [vmem:[%s16208_s5 + $0xbc0] sm:$0xff] }
 0x427   :  { %8959 = vmatprep.subr.bf16.mxu1 %v10657_v34  ;;  %9174 = vmatprep.subr.bf16.mxu0 %v10659_v41  ;;  %v5353_v34 = vld [vmem:[%s16208_s5 + $0xbe0] sm:$0xff] }
 0x428   :  { %v10705_v27 = vcombine.high %v5349_v31, %v5353_v34  ;;  %v10704_v45 = vcombine.low %v5349_v31, %v5353_v34  ;;  %v10728_v31 = vcombine.low %v5373_v14, %v5377_v63 }
 0x42a   :  { %8960 = vmatpush1.bf16.msra.mxu1 %v10656_v42  ;;  %9175 = vmatpush1.bf16.msra.mxu0 %v10658_v44  ;;  %v10698_v42 = vcombine.low %v5342_v61, %v5346_v4  ;;  %v5374_v61 = vld [vmem:[%s16208_s5 + $0xc88] sm:$0xff] }
 0x42b   :  { %8961 = vmatprep.subr.bf16.mxu1 %v10665_v25  ;;  %9176 = vmatprep.subr.bf16.mxu0 %v10667_v26  ;;  %v5378_v4 = vld [vmem:[%s16208_s5 + $0xca8] sm:$0xff] }
 0x42c   :  { %v10730_v34 = vcombine.low %v5374_v61, %v5378_v4 }
 0x42e   :  { %8962 = vmatpush1.bf16.msra.mxu1 %v10664_v35  ;;  %9177 = vmatpush1.bf16.msra.mxu0 %v10666_v36  ;;  %v5357_v35 = vld [vmem:[%s16208_s5 + $0xc00] sm:$0xff] }
 0x42f   :  { %8963 = vmatprep.subr.bf16.mxu1 %v10673_v52  ;;  %9178 = vmatprep.subr.bf16.mxu0 %v10675_v54  ;;  %v5361_v52 = vld [vmem:[%s16208_s5 + $0xc20] sm:$0xff]  ;;  %v5358_v54 = vld [vmem:[%s16208_s5 + $0xc08] sm:$0xff] }
 0x432   :  { %8964 = vmatpush1.bf16.msra.mxu1 %v10672_v9  ;;  %9179 = vmatpush1.bf16.msra.mxu0 %v10674_v49  ;;  %v10706_v9 = vcombine.low %v5350_v21, %v5354_v23 }
 0x433   :  { %8965 = vmatprep.subr.bf16.mxu1 %v10681_v0  ;;  %9180 = vmatprep.subr.bf16.mxu0 %v10683_v10  ;;  %v10713_v0 = vcombine.high %v5357_v35, %v5361_v52  ;;  %v10715_v10 = vcombine.high %v5358_v54, %v5362_v59 }
 0x436   :  { %8966 = vmatpush1.bf16.msra.mxu1 %v10680_v50  ;;  %9181 = vmatpush1.bf16.msra.mxu0 %v10682_v53  ;;  %v10712_v50 = vcombine.low %v5357_v35, %v5361_v52  ;;  %v10714_v53 = vcombine.low %v5358_v54, %v5362_v59 }
 0x437   :  { %v4748_v20 = vpop.f32.mrb[40].mxu1  ;;  %8967 = vmatprep.subr.bf16.mxu1 %v10689_v62  ;;  %9182 = vmatprep.subr.bf16.mxu0 %v10691_v12  ;;  %v10721_v62 = vcombine.high %v5365_v46, %v5369_v48  ;;  %v10723_v12 = vcombine.high %v5366_v47, %v5370_v51  ;;  %v5405_v48 = vld [vmem:[%s16208_s5 + $0xd80] sm:$0xff] }
 0x438   :  { %v4750_v41 = vpop.f32.mrb[41].mxu1  ;;  %v14736_v44 = vadd.f32 %v4748_v20, %v3190_v7  ;;  %v5381_v20 = vld [vmem:[%s16208_s5 + $0xcc0] sm:$0xff] }
 0x439   :  { %v4752_v24 = vpop.f32.mrb[42].mxu1  ;;  %v14740_v28 = vadd.f32 %v4750_v41, %v3194_v37 }
 0x43a   :  { %8968 = vmatpush1.bf16.msra.mxu1 %v10688_v15  ;;  %9183 = vmatpush1.bf16.msra.mxu0 %v10690_v17  ;;  %v14738_v25 = vadd.f32 %v4752_v24, %v3190_v7  ;;  %v4754_v26 = vpop.f32.mrb[43].mxu1  ;;  %v10722_v7 = vcombine.low %v5366_v47, %v5370_v51  ;;  %v10729_v15 = vcombine.high %v5373_v14, %v5377_v63  ;;  %v5389_v24 = vld [vmem:[%s16208_s5 + $0xd00] sm:$0xff]  ;;  %v5406_v51 = vld [vmem:[%s16208_s5 + $0xd88] sm:$0xff] }
 0x43b   :  { %v14742_v29 = vadd.f32 %v4754_v26, %v3194_v37  ;;  %8969 = vmatprep.subr.bf16.mxu1 %v10697_v39  ;;  %9184 = vmatprep.subr.bf16.mxu0 %v10699_v38  ;;  %v10731_v17 = vcombine.high %v5374_v61, %v5378_v4  ;;  %v5385_v37 = vld [vmem:[%s16208_s5 + $0xce0] sm:$0xff]  ;;  %v5382_v39 = vld [vmem:[%s16208_s5 + $0xcc8] sm:$0xff] }
 0x43c   :  { %v4849_v36 = vpack.c.bf16 %v14738_v25, %v14736_v44  ;;  %v5386_v38 = vld [vmem:[%s16208_s5 + $0xce8] sm:$0xff]  ;;  %v10737_v21 = vcombine.high %v5381_v20, %v5385_v37  ;;  %v5393_v26 = vld [vmem:[%s16208_s5 + $0xd20] sm:$0xff] }
 0x43d   :  { %v4850_v3 = vpack.c.bf16 %v14742_v29, %v14740_v28  ;;  %v10739_v23 = vcombine.high %v5382_v39, %v5386_v38  ;;  %v10738_v52 = vcombine.low %v5382_v39, %v5386_v38  ;;  %v10745_v54 = vcombine.high %v5389_v24, %v5393_v26  ;;  %v5409_v47 = vld [vmem:[%s16208_s5 + $0xda0] sm:$0xff]  ;;  %v5414_v4 = vld [vmem:[%s16208_s5 + $0xdc8] sm:$0xff] }
 0x43e   :  { %v10324_v40 = vmul.bf16 3216621497, %v4849_v36  ;;  %8970 = vmatpush1.bf16.msra.mxu1 %v10696_v1  ;;  %9185 = vmatpush1.bf16.msra.mxu0 %v10698_v42  ;;  %v10736_v36 = vcombine.low %v5381_v20, %v5385_v37  ;;  %v5413_v63 = vld [vmem:[%s16208_s5 + $0xdc0] sm:$0xff]  ;;  %v10760_v20 = vcombine.low %v5405_v48, %v5409_v47 }
 0x43f   :  { %v10325_v49 = vmul.bf16 3216621497, %v4850_v3  ;;  %8971 = vmatprep.subr.bf16.mxu1 %v10705_v27  ;;  %9186 = vmatprep.subr.bf16.mxu0 %v10707_v33  ;;  %v5390_v27 = vld [vmem:[%s16208_s5 + $0xd08] sm:$0xff]  ;;  %v5397_v3 = vld [vmem:[%s16208_s5 + $0xd40] sm:$0xff] }
 0x440   :  { %12106 = vpow.bf16 %v10324_v40  ;;  %v5394_v33 = vld [vmem:[%s16208_s5 + $0xd28] sm:$0xff]  ;;  %v5401_v40 = vld [vmem:[%s16208_s5 + $0xd60] sm:$0xff] }
 0x441   :  { %12108 = vpow.bf16 %v10325_v49  ;;  %v10747_v59 = vcombine.high %v5390_v27, %v5394_v33  ;;  %v10744_v49 = vcombine.low %v5389_v24, %v5393_v26  ;;  %v5417_v61 = vld [vmem:[%s16208_s5 + $0xde0] sm:$0xff]  ;;  %v5422_v26 = vld [vmem:[%s16208_s5 + $0xe08] sm:$0xff] }
 0x442   :  { %8972 = vmatpush1.bf16.msra.mxu1 %v10704_v45  ;;  %9187 = vmatpush1.bf16.msra.mxu0 %v10706_v9  ;;  %v5398_v45 = vld [vmem:[%s16208_s5 + $0xd48] sm:$0xff]  ;;  %v10769_v38 = vcombine.high %v5413_v63, %v5417_v61 }
 0x443   :  { %8984 = vmatprep.subr.bf16.mxu1 %v10713_v0  ;;  %9199 = vmatprep.subr.bf16.mxu0 %v10715_v10  ;;  %v5402_v9 = vld [vmem:[%s16208_s5 + $0xd68] sm:$0xff]  ;;  %v10746_v0 = vcombine.low %v5390_v27, %v5394_v33  ;;  %v10753_v10 = vcombine.high %v5397_v3, %v5401_v40 }
 0x444   :  { %v10755_v46 = vcombine.high %v5398_v45, %v5402_v9  ;;  %v5426_v27 = vld [vmem:[%s16208_s5 + $0xe28] sm:$0xff] }
 0x445   :  { %8974 = vmatmul.mubr.bf16.vlgmr.msra.gmra.mrb[44].mxu1 %v14279_v60  ;;  %9189 = vmatmul.mubr.bf16.vlgmr.msra.gmra.mrb[12].mxu0 %v14279_v60 }
 0x446   :  { %8985 = vmatpush1.bf16.msra.mxu1 %v10712_v50  ;;  %9200 = vmatpush1.bf16.msra.mxu0 %v10714_v53  ;;  %v5410_v50 = vld [vmem:[%s16208_s5 + $0xda8] sm:$0xff]  ;;  %v10752_v53 = vcombine.low %v5397_v3, %v5401_v40  ;;  %v5429_v3 = vld [vmem:[%s16208_s5 + $0xe40] sm:$0xff] }
 0x447   :  { %8986 = vmatprep.subr.bf16.mxu1 %v10721_v62  ;;  %9201 = vmatprep.subr.bf16.mxu0 %v10723_v12  ;;  %v10754_v62 = vcombine.low %v5398_v45, %v5402_v9  ;;  %v10761_v12 = vcombine.high %v5405_v48, %v5409_v47  ;;  %v10763_v14 = vcombine.high %v5406_v51, %v5410_v50  ;;  %v5441_v48 = vld [vmem:[%s16208_s5 + $0xea0] sm:$0xff]  ;;  %v5438_v47 = vld [vmem:[%s16208_s5 + $0xe88] sm:$0xff] }
 0x448   :  { %v10762_v37 = vcombine.low %v5406_v51, %v5410_v50  ;;  %v10779_v45 = vcombine.high %v5422_v26, %v5426_v27  ;;  %v5442_v51 = vld [vmem:[%s16208_s5 + $0xea8] sm:$0xff] }
 0x44a   :  { %8987 = vmatpush1.bf16.msra.mxu1 %v10720_v6  ;;  %9202 = vmatpush1.bf16.msra.mxu0 %v10722_v7  ;;  %v5418_v6 = vld [vmem:[%s16208_s5 + $0xde8] sm:$0xff] }
 0x44b   :  { %v12107_v41 = vpop.eup %12106  ;;  %8988 = vmatprep.subr.bf16.mxu1 %v10729_v15  ;;  %9203 = vmatprep.subr.bf16.mxu0 %v10731_v17 }
 0x44c   :  { %v12109_v1 = vpop.eup %12108  ;;  %v4899_v42 = vadd.bf16 1065369472, %v12107_v41 }
 0x44d   :  { %v4900_v35 = vadd.bf16 1065369472, %v12109_v1 }
 0x44e   :  { %12110 = vrcp.bf16 %v4899_v42  ;;  %8989 = vmatpush1.bf16.msra.mxu1 %v10728_v31  ;;  %9204 = vmatpush1.bf16.msra.mxu0 %v10730_v34  ;;  %v10771_v31 = vcombine.high %v5414_v4, %v5418_v6  ;;  %v10768_v42 = vcombine.low %v5413_v63, %v5417_v61  ;;  %v5449_v63 = vld [vmem:[%s16208_s5 + $0xee0] sm:$0xff]  ;;  %v5446_v61 = vld [vmem:[%s16208_s5 + $0xec8] sm:$0xff] }
 0x44f   :  { %12112 = vrcp.bf16 %v4900_v35  ;;  %8990 = vmatprep.subr.bf16.mxu1 %v10737_v21  ;;  %9205 = vmatprep.subr.bf16.mxu0 %v10739_v23  ;;  %v5421_v21 = vld [vmem:[%s16208_s5 + $0xe00] sm:$0xff] }
 0x450   :  { %v5425_v23 = vld [vmem:[%s16208_s5 + $0xe20] sm:$0xff] }
 0x451   :  { %v10776_v9 = vcombine.low %v5421_v21, %v5425_v23 }
 0x452   :  { %8991 = vmatpush1.bf16.msra.mxu1 %v10736_v36  ;;  %9206 = vmatpush1.bf16.msra.mxu0 %v10738_v52  ;;  %v10770_v36 = vcombine.low %v5414_v4, %v5418_v6  ;;  %v5450_v4 = vld [vmem:[%s16208_s5 + $0xee8] sm:$0xff] }
 0x453   :  { %8992 = vmatprep.subr.bf16.mxu1 %v10745_v54  ;;  %9207 = vmatprep.subr.bf16.mxu0 %v10747_v59  ;;  %v10777_v59 = vcombine.high %v5421_v21, %v5425_v23  ;;  %v5461_v23 = vld [vmem:[%s16208_s5 + $0xf40] sm:$0xff] }
 0x456   :  { %8993 = vmatpush1.bf16.msra.mxu1 %v10744_v49  ;;  %9208 = vmatpush1.bf16.msra.mxu0 %v10746_v0  ;;  %v10778_v49 = vcombine.low %v5422_v26, %v5426_v27 }
 0x457   :  { %8994 = vmatprep.subr.bf16.mxu1 %v10753_v10  ;;  %9209 = vmatprep.subr.bf16.mxu0 %v10755_v46  ;;  %v5437_v46 = vld [vmem:[%s16208_s5 + $0xe80] sm:$0xff] }
 0x458   :  { %v10792_v6 = vcombine.low %v5437_v46, %v5441_v48 }
 0x459   :  { %v12111_v7 = vpop.eup %12110 }
 0x45a   :  { %v12113_v15 = vpop.eup %12112  ;;  %v4916_v17 = vmul.bf16 1065369472, %v12111_v7  ;;  %8995 = vmatpush1.bf16.msra.mxu1 %v10752_v53  ;;  %9210 = vmatpush1.bf16.msra.mxu0 %v10754_v62  ;;  %v10793_v62 = vcombine.high %v5437_v46, %v5441_v48  ;;  %v10794_v7 = vcombine.low %v5438_v47, %v5442_v51 }
 0x45b   :  { %v4918_v39 = vmul.bf16 1065369472, %v12113_v15  ;;  %8996 = vmatprep.subr.bf16.mxu1 %v10761_v12  ;;  %9211 = vmatprep.subr.bf16.mxu0 %v10763_v14  ;;  %v10795_v12 = vcombine.high %v5438_v47, %v5442_v51  ;;  %v5445_v14 = vld [vmem:[%s16208_s5 + $0xec0] sm:$0xff] }
 0x45c   :  { %v4929_v34 = vunpack.c.l.bf16 %v4916_v17  ;;  %v4939_v41 = vunpack.c.h.bf16 %v4916_v17  ;;  %v10801_v15 = vcombine.high %v5445_v14, %v5449_v63  ;;  %v10803_v17 = vcombine.high %v5446_v61, %v5450_v4  ;;  %v5485_v51 = vld [vmem:[%s16208_s5 + $0x1000] sm:$0xff] }
 0x45d   :  { %v4930_v24 = vunpack.c.l.bf16 %v4918_v39  ;;  %v4940_v1 = vunpack.c.h.bf16 %v4918_v39  ;;  %v5454_v39 = vld [vmem:[%s16208_s5 + $0xf08] sm:$0xff] }
 0x45e   :  { %v4949_v33 = vmul.f32 %v14736_v44, %v4929_v34  ;;  %v4959_v35 = vmul.f32 %v14738_v25, %v4939_v41  ;;  %8997 = vmatpush1.bf16.msra.mxu1 %v10760_v20  ;;  %9212 = vmatpush1.bf16.msra.mxu0 %v10762_v37  ;;  %v5433_v44 = vld [vmem:[%s16208_s5 + $0xe60] sm:$0xff]  ;;  %v5430_v25 = vld [vmem:[%s16208_s5 + $0xe48] sm:$0xff]  ;;  %v10802_v34 = vcombine.low %v5446_v61, %v5450_v4 }
 0x45f   :  { %v4950_v52 = vmul.f32 %v14740_v28, %v4930_v24  ;;  %v4960_v54 = vmul.f32 %v14742_v29, %v4940_v1  ;;  %8998 = vmatprep.subr.bf16.mxu1 %v10769_v38  ;;  %9213 = vmatprep.subr.bf16.mxu0 %v10771_v31  ;;  %v5434_v28 = vld [vmem:[%s16208_s5 + $0xe68] sm:$0xff]  ;;  %v10785_v0 = vcombine.high %v5429_v3, %v5433_v44  ;;  %v5453_v20 = vld [vmem:[%s16208_s5 + $0xf00] sm:$0xff] }
 0x460   :  { %v14865_v40 = vpack.c.bf16 %v4959_v35, %v4949_v33  ;;  %v10787_v10 = vcombine.high %v5430_v25, %v5434_v28  ;;  %v10784_v50 = vcombine.low %v5429_v3, %v5433_v44  ;;  %v10786_v53 = vcombine.low %v5430_v25, %v5434_v28  ;;  %v5457_v37 = vld [vmem:[%s16208_s5 + $0xf20] sm:$0xff]  ;;  %v5458_v38 = vld [vmem:[%s16208_s5 + $0xf28] sm:$0xff] }
 0x461   :  { %v14876_v29 = vpack.c.bf16 %v4960_v54, %v4950_v52  ;;  %v10800_v31 = vcombine.low %v5445_v14, %v5449_v63  ;;  %v10809_v41 = vcombine.high %v5453_v20, %v5457_v37  ;;  %v10811_v21 = vcombine.high %v5454_v39, %v5458_v38  ;;  %v5465_v24 = vld [vmem:[%s16208_s5 + $0xf60] sm:$0xff]  ;;  %v5462_v1 = vld [vmem:[%s16208_s5 + $0xf48] sm:$0xff] }
 0x462   :  { %8999 = vmatpush1.bf16.msra.mxu1 %v10768_v42  ;;  %9214 = vmatpush1.bf16.msra.mxu0 %v10770_v36  ;;  %v5466_v42 = vld [vmem:[%s16208_s5 + $0xf68] sm:$0xff]  ;;  %v10808_v26 = vcombine.low %v5453_v20, %v5457_v37  ;;  %v10810_v27 = vcombine.low %v5454_v39, %v5458_v38  ;;  %v10817_v33 = vcombine.high %v5461_v23, %v5465_v24  ;;  %v5469_v36 = vld [vmem:[%s16208_s5 + $0xf80] sm:$0xff] }
 0x463   :  { %9000 = vmatprep.subr.bf16.mxu1 %v10777_v59  ;;  %9016 = vmatprep.mubr.bf16.mxu1 %v14876_v29  ;;  %v10819_v35 = vcombine.high %v5462_v1, %v5466_v42  ;;  %v5473_v52 = vld [vmem:[%s16208_s5 + $0xfa0] sm:$0xff]  ;;  %v5470_v54 = vld [vmem:[%s16208_s5 + $0xf88] sm:$0xff]  ;;  %v10816_v3 = vcombine.low %v5461_v23, %v5465_v24 }
 0x464   :  { %9215 = vmatprep.subr.bf16.mxu0 %v10779_v45  ;;  %9231 = vmatprep.mubr.bf16.mxu0 %v14876_v29  ;;  %v5474_v59 = vld [vmem:[%s16208_s5 + $0xfa8] sm:$0xff]  ;;  %v10818_v45 = vcombine.low %v5462_v1, %v5466_v42  ;;  %v10825_v44 = vcombine.high %v5469_v36, %v5473_v52  ;;  %v5477_v28 = vld [vmem:[%s16208_s5 + $0xfc0] sm:$0xff] }
 0x465   :  { %v10827_v25 = vcombine.high %v5470_v54, %v5474_v59  ;;  %v10826_v46 = vcombine.low %v5470_v54, %v5474_v59  ;;  %v5493_v4 = vld [vmem:[%s16208_s5 + $0x1040] sm:$0xff] }
 0x466   :  { %9001 = vmatpush1.bf16.msra.mxu1 %v10776_v9  ;;  %9216 = vmatpush1.bf16.msra.mxu0 %v10778_v49  ;;  %v5481_v9 = vld [vmem:[%s16208_s5 + $0xfe0] sm:$0xff]  ;;  %v5478_v49 = vld [vmem:[%s16208_s5 + $0xfc8] sm:$0xff] }
 0x467   :  { %9002 = vmatprep.subr.bf16.mxu1 %v10785_v0  ;;  %9217 = vmatprep.subr.bf16.mxu0 %v10787_v10  ;;  %v5482_v0 = vld [vmem:[%s16208_s5 + $0xfe8] sm:$0xff]  ;;  %v10824_v10 = vcombine.low %v5469_v36, %v5473_v52  ;;  %v10833_v48 = vcombine.high %v5477_v28, %v5481_v9  ;;  %v5501_v38 = vld [vmem:[%s16208_s5 + $0x1080] sm:$0xff] }
 0x468   :  { %v10835_v47 = vcombine.high %v5478_v49, %v5482_v0  ;;  %v10834_v14 = vcombine.low %v5478_v49, %v5482_v0  ;;  %v5509_v42 = vld [vmem:[%s16208_s5 + $0x10c0] sm:$0xff] }
 0x469   :  { %v5517_v59 = vld [vmem:[%s16208_s5 + $0x1100] sm:$0xff] }
 0x46a   :  { %9003 = vmatpush1.bf16.msra.mxu1 %v10784_v50  ;;  %9218 = vmatpush1.bf16.msra.mxu0 %v10786_v53  ;;  %v5489_v50 = vld [vmem:[%s16208_s5 + $0x1020] sm:$0xff]  ;;  %v5486_v53 = vld [vmem:[%s16208_s5 + $0x1008] sm:$0xff] }
 0x46b   :  { %9004 = vmatprep.subr.bf16.mxu1 %v10793_v62  ;;  %9219 = vmatprep.subr.bf16.mxu0 %v10795_v12  ;;  %v5490_v62 = vld [vmem:[%s16208_s5 + $0x1028] sm:$0xff]  ;;  %v10832_v12 = vcombine.low %v5477_v28, %v5481_v9  ;;  %v10841_v63 = vcombine.high %v5485_v51, %v5489_v50  ;;  %v5525_v0 = vld [vmem:[%s16208_s5 + $0x1140] sm:$0xff] }
 0x46c   :  { %v10843_v61 = vcombine.high %v5486_v53, %v5490_v62  ;;  %v10842_v20 = vcombine.low %v5486_v53, %v5490_v62  ;;  %v5533_v62 = vld [vmem:[%s16208_s5 + $0x1180] sm:$0xff] }
 0x46e   :  { %9005 = vmatpush1.bf16.msra.mxu1 %v10792_v6  ;;  %9220 = vmatpush1.bf16.msra.mxu0 %v10794_v7  ;;  %v5497_v6 = vld [vmem:[%s16208_s5 + $0x1060] sm:$0xff]  ;;  %v5494_v7 = vld [vmem:[%s16208_s5 + $0x1048] sm:$0xff] }
 0x46f   :  { %9006 = vmatprep.subr.bf16.mxu1 %v10801_v15  ;;  %9221 = vmatprep.subr.bf16.mxu0 %v10803_v17  ;;  %v5498_v15 = vld [vmem:[%s16208_s5 + $0x1068] sm:$0xff]  ;;  %v10840_v17 = vcombine.low %v5485_v51, %v5489_v50  ;;  %v10849_v37 = vcombine.high %v5493_v4, %v5497_v6 }
 0x470   :  { %v10851_v39 = vcombine.high %v5494_v7, %v5498_v15  ;;  %v10850_v23 = vcombine.low %v5494_v7, %v5498_v15  ;;  %v5541_v15 = vld [vmem:[%s16208_s5 + $0x11c0] sm:$0xff] }
 0x472   :  { %9007 = vmatpush1.bf16.msra.mxu1 %v10800_v31  ;;  %9222 = vmatpush1.bf16.msra.mxu0 %v10802_v34  ;;  %v5505_v31 = vld [vmem:[%s16208_s5 + $0x10a0] sm:$0xff]  ;;  %v5502_v34 = vld [vmem:[%s16208_s5 + $0x1088] sm:$0xff] }
 0x473   :  { %9008 = vmatprep.subr.bf16.mxu1 %v10809_v41  ;;  %9223 = vmatprep.subr.bf16.mxu0 %v10811_v21  ;;  %v5506_v41 = vld [vmem:[%s16208_s5 + $0x10a8] sm:$0xff]  ;;  %v10848_v21 = vcombine.low %v5493_v4, %v5497_v6  ;;  %v10857_v24 = vcombine.high %v5501_v38, %v5505_v31 }
 0x474   :  { %v10859_v1 = vcombine.high %v5502_v34, %v5506_v41  ;;  %v10858_v36 = vcombine.low %v5502_v34, %v5506_v41  ;;  %v5549_v41 = vld [vmem:[%s16208_s5 + $0x1200] sm:$0xff] }
 0x476   :  { %9009 = vmatpush1.bf16.msra.mxu1 %v10808_v26  ;;  %9224 = vmatpush1.bf16.msra.mxu0 %v10810_v27  ;;  %v5513_v26 = vld [vmem:[%s16208_s5 + $0x10e0] sm:$0xff]  ;;  %v5510_v27 = vld [vmem:[%s16208_s5 + $0x10c8] sm:$0xff] }
 0x477   :  { %9010 = vmatprep.subr.bf16.mxu1 %v10817_v33  ;;  %9225 = vmatprep.subr.bf16.mxu0 %v10819_v35  ;;  %v5514_v33 = vld [vmem:[%s16208_s5 + $0x10e8] sm:$0xff]  ;;  %v10856_v35 = vcombine.low %v5501_v38, %v5505_v31  ;;  %v10865_v52 = vcombine.high %v5509_v42, %v5513_v26 }
 0x478   :  { %v10867_v54 = vcombine.high %v5510_v27, %v5514_v33  ;;  %v10866_v28 = vcombine.low %v5510_v27, %v5514_v33  ;;  %v5557_v33 = vld [vmem:[%s16208_s5 + $0x1240] sm:$0xff] }
 0x47a   :  { %9011 = vmatpush1.bf16.msra.mxu1 %v10816_v3  ;;  %9226 = vmatpush1.bf16.msra.mxu0 %v10818_v45  ;;  %v5521_v3 = vld [vmem:[%s16208_s5 + $0x1120] sm:$0xff]  ;;  %v5518_v45 = vld [vmem:[%s16208_s5 + $0x1108] sm:$0xff] }
 0x47b   :  { %9012 = vmatprep.subr.bf16.mxu1 %v10825_v44  ;;  %9227 = vmatprep.subr.bf16.mxu0 %v10827_v25  ;;  %v5522_v44 = vld [vmem:[%s16208_s5 + $0x1128] sm:$0xff]  ;;  %v10864_v25 = vcombine.low %v5509_v42, %v5513_v26  ;;  %v10873_v9 = vcombine.high %v5517_v59, %v5521_v3 }
 0x47c   :  { %v10875_v49 = vcombine.high %v5518_v45, %v5522_v44  ;;  %v10874_v51 = vcombine.low %v5518_v45, %v5522_v44  ;;  %v5565_v44 = vld [vmem:[%s16208_s5 + $0x1280] sm:$0xff] }
 0x47e   :  { %9013 = vmatpush1.bf16.msra.mxu1 %v10824_v10  ;;  %9228 = vmatpush1.bf16.msra.mxu0 %v10826_v46  ;;  %v5529_v10 = vld [vmem:[%s16208_s5 + $0x1160] sm:$0xff]  ;;  %v5526_v46 = vld [vmem:[%s16208_s5 + $0x1148] sm:$0xff] }
 0x47f   :  { %9014 = vmatprep.subr.bf16.mxu1 %v10833_v48  ;;  %9229 = vmatprep.subr.bf16.mxu0 %v10835_v47  ;;  %v5530_v48 = vld [vmem:[%s16208_s5 + $0x1168] sm:$0xff]  ;;  %v10872_v47 = vcombine.low %v5517_v59, %v5521_v3  ;;  %v10881_v50 = vcombine.high %v5525_v0, %v5529_v10 }
 0x480   :  { %v10883_v53 = vcombine.high %v5526_v46, %v5530_v48  ;;  %v10882_v4 = vcombine.low %v5526_v46, %v5530_v48  ;;  %v5573_v48 = vld [vmem:[%s16208_s5 + $0x12c0] sm:$0xff] }
 0x482   :  { %9015 = vmatpush1.bf16.msra.mxu1 %v10832_v12  ;;  %9230 = vmatpush1.bf16.msra.mxu0 %v10834_v14  ;;  %v5537_v12 = vld [vmem:[%s16208_s5 + $0x11a0] sm:$0xff]  ;;  %v5534_v14 = vld [vmem:[%s16208_s5 + $0x1188] sm:$0xff] }
 0x483   :  { %9027 = vmatprep.subr.bf16.mxu1 %v10841_v63  ;;  %9242 = vmatprep.subr.bf16.mxu0 %v10843_v61  ;;  %v5538_v63 = vld [vmem:[%s16208_s5 + $0x11a8] sm:$0xff]  ;;  %v10880_v61 = vcombine.low %v5525_v0, %v5529_v10  ;;  %v10889_v6 = vcombine.high %v5533_v62, %v5537_v12 }
 0x484   :  { %v10891_v7 = vcombine.high %v5534_v14, %v5538_v63  ;;  %v10890_v38 = vcombine.low %v5534_v14, %v5538_v63  ;;  %v5581_v63 = vld [vmem:[%s16208_s5 + $0x1300] sm:$0xff] }
 0x485   :  { %9017 = vmatmul.mubr.bf16.vlgmr.msra.gmra.mrb[44].mxu1 %v14865_v40  ;;  %9232 = vmatmul.mubr.bf16.vlgmr.msra.gmra.mrb[12].mxu0 %v14865_v40 }
 0x486   :  { %9028 = vmatpush1.bf16.msra.mxu1 %v10840_v17  ;;  %9059 = vmatprep.mubr.bf16.mxu1 %v14551_v2  ;;  %v5545_v17 = vld [vmem:[%s16208_s5 + $0x11e0] sm:$0xff] }
 0x487   :  { %9243 = vmatpush1.bf16.msra.mxu0 %v10842_v20  ;;  %9274 = vmatprep.mubr.bf16.mxu0 %v14551_v2  ;;  %v5542_v20 = vld [vmem:[%s16208_s5 + $0x11c8] sm:$0xff]  ;;  %v10897_v31 = vcombine.high %v5541_v15, %v5545_v17 }
 0x488   :  { %9029 = vmatprep.subr.bf16.mxu1 %v10849_v37  ;;  %9244 = vmatprep.subr.bf16.mxu0 %v10851_v39  ;;  %v5546_v37 = vld [vmem:[%s16208_s5 + $0x11e8] sm:$0xff]  ;;  %v10888_v39 = vcombine.low %v5533_v62, %v5537_v12 }
 0x489   :  { %v10899_v34 = vcombine.high %v5542_v20, %v5546_v37  ;;  %v10898_v42 = vcombine.low %v5542_v20, %v5546_v37  ;;  %v5589_v37 = vld [vmem:[%s16208_s5 + $0x1340] sm:$0xff] }
 0x48a   :  { %9030 = vmatpush1.bf16.msra.mxu1 %v10848_v21  ;;  %v5553_v21 = vld [vmem:[%s16208_s5 + $0x1220] sm:$0xff] }
 0x48b   :  { %9245 = vmatpush1.bf16.msra.mxu0 %v10850_v23  ;;  %9031 = vmatprep.subr.bf16.mxu1 %v10857_v24  ;;  %v5550_v23 = vld [vmem:[%s16208_s5 + $0x1208] sm:$0xff]  ;;  %v10905_v26 = vcombine.high %v5549_v41, %v5553_v21 }
 0x48c   :  { %9246 = vmatprep.subr.bf16.mxu0 %v10859_v1  ;;  %v5554_v24 = vld [vmem:[%s16208_s5 + $0x1228] sm:$0xff]  ;;  %v10896_v1 = vcombine.low %v5541_v15, %v5545_v17 }
 0x48d   :  { %v10907_v27 = vcombine.high %v5550_v23, %v5554_v24  ;;  %v10906_v59 = vcombine.low %v5550_v23, %v5554_v24  ;;  %v5597_v24 = vld [vmem:[%s16208_s5 + $0x1380] sm:$0xff] }
 0x48e   :  { %9032 = vmatpush1.bf16.msra.mxu1 %v10856_v35  ;;  %v5561_v35 = vld [vmem:[%s16208_s5 + $0x1260] sm:$0xff] }
 0x48f   :  { %9247 = vmatpush1.bf16.msra.mxu0 %v10858_v36  ;;  %9033 = vmatprep.subr.bf16.mxu1 %v10865_v52  ;;  %v5558_v36 = vld [vmem:[%s16208_s5 + $0x1248] sm:$0xff]  ;;  %v10913_v3 = vcombine.high %v5557_v33, %v5561_v35 }
 0x490   :  { %9248 = vmatprep.subr.bf16.mxu0 %v10867_v54  ;;  %v5562_v52 = vld [vmem:[%s16208_s5 + $0x1268] sm:$0xff]  ;;  %v10904_v54 = vcombine.low %v5549_v41, %v5553_v21 }
 0x491   :  { %v10915_v45 = vcombine.high %v5558_v36, %v5562_v52  ;;  %v10914_v0 = vcombine.low %v5558_v36, %v5562_v52  ;;  %v5605_v52 = vld [vmem:[%s16208_s5 + $0x13c0] sm:$0xff] }
 0x492   :  { %9034 = vmatpush1.bf16.msra.mxu1 %v10864_v25  ;;  %v5569_v25 = vld [vmem:[%s16208_s5 + $0x12a0] sm:$0xff] }
 0x493   :  { %9249 = vmatpush1.bf16.msra.mxu0 %v10866_v28  ;;  %9035 = vmatprep.subr.bf16.mxu1 %v10873_v9  ;;  %v5566_v28 = vld [vmem:[%s16208_s5 + $0x1288] sm:$0xff]  ;;  %v10921_v10 = vcombine.high %v5565_v44, %v5569_v25 }
 0x494   :  { %9250 = vmatprep.subr.bf16.mxu0 %v10875_v49  ;;  %v5570_v9 = vld [vmem:[%s16208_s5 + $0x12a8] sm:$0xff]  ;;  %v10912_v49 = vcombine.low %v5557_v33, %v5561_v35 }
 0x495   :  { %v10923_v46 = vcombine.high %v5566_v28, %v5570_v9  ;;  %v10922_v62 = vcombine.low %v5566_v28, %v5570_v9  ;;  %v4975_v9 = vld [vmem:[%s16208_s5 + $0x10] sm:$0xff] }
 0x496   :  { %9036 = vmatpush1.bf16.msra.mxu1 %v10872_v47  ;;  %v5577_v47 = vld [vmem:[%s16208_s5 + $0x12e0] sm:$0xff] }
 0x497   :  { %9251 = vmatpush1.bf16.msra.mxu0 %v10874_v51  ;;  %9037 = vmatprep.subr.bf16.mxu1 %v10881_v50  ;;  %v5574_v51 = vld [vmem:[%s16208_s5 + $0x12c8] sm:$0xff]  ;;  %v10929_v12 = vcombine.high %v5573_v48, %v5577_v47 }
 0x498   :  { %9252 = vmatprep.subr.bf16.mxu0 %v10883_v53  ;;  %v5578_v50 = vld [vmem:[%s16208_s5 + $0x12e8] sm:$0xff]  ;;  %v10920_v53 = vcombine.low %v5565_v44, %v5569_v25 }
 0x499   :  { %v10931_v14 = vcombine.high %v5574_v51, %v5578_v50  ;;  %v10930_v15 = vcombine.low %v5574_v51, %v5578_v50  ;;  %v4983_v50 = vld [vmem:[%s16208_s5 + $0x50] sm:$0xff] }
 0x49a   :  { %9038 = vmatpush1.bf16.msra.mxu1 %v10880_v61  ;;  %v5585_v61 = vld [vmem:[%s16208_s5 + $0x1320] sm:$0xff] }
 0x49b   :  { %9253 = vmatpush1.bf16.msra.mxu0 %v10882_v4  ;;  %9039 = vmatprep.subr.bf16.mxu1 %v10889_v6  ;;  %v5582_v4 = vld [vmem:[%s16208_s5 + $0x1308] sm:$0xff]  ;;  %v10937_v17 = vcombine.high %v5581_v63, %v5585_v61 }
 0x49c   :  { %9254 = vmatprep.subr.bf16.mxu0 %v10891_v7  ;;  %v5586_v6 = vld [vmem:[%s16208_s5 + $0x1328] sm:$0xff]  ;;  %v10928_v7 = vcombine.low %v5573_v48, %v5577_v47 }
 0x49d   :  { %v10939_v20 = vcombine.high %v5582_v4, %v5586_v6  ;;  %v10938_v41 = vcombine.low %v5582_v4, %v5586_v6  ;;  %v4991_v4 = vld [vmem:[%s16208_s5 + $0x90] sm:$0xff] }
 0x49e   :  { %9040 = vmatpush1.bf16.msra.mxu1 %v10888_v39  ;;  %v5593_v39 = vld [vmem:[%s16208_s5 + $0x1360] sm:$0xff]  ;;  %v4995_v6 = vld [vmem:[%s16208_s5 + $0xb0] sm:$0xff] }
 0x49f   :  { %9255 = vmatpush1.bf16.msra.mxu0 %v10890_v38  ;;  %9041 = vmatprep.subr.bf16.mxu1 %v10897_v31  ;;  %v5590_v38 = vld [vmem:[%s16208_s5 + $0x1348] sm:$0xff]  ;;  %v10945_v21 = vcombine.high %v5589_v37, %v5593_v39 }
 0x4a0   :  { %9256 = vmatprep.subr.bf16.mxu0 %v10899_v34  ;;  %v5594_v31 = vld [vmem:[%s16208_s5 + $0x1368] sm:$0xff]  ;;  %v10936_v34 = vcombine.low %v5581_v63, %v5585_v61 }
 0x4a1   :  { %v10947_v23 = vcombine.high %v5590_v38, %v5594_v31  ;;  %v10946_v33 = vcombine.low %v5590_v38, %v5594_v31  ;;  %v4999_v31 = vld [vmem:[%s16208_s5 + $0xd0] sm:$0xff] }
 0x4a2   :  { %9042 = vmatpush1.bf16.msra.mxu1 %v10896_v1  ;;  %v5601_v1 = vld [vmem:[%s16208_s5 + $0x13a0] sm:$0xff] }
 0x4a3   :  { %9257 = vmatpush1.bf16.msra.mxu0 %v10898_v42  ;;  %9043 = vmatprep.subr.bf16.mxu1 %v10905_v26  ;;  %v5598_v42 = vld [vmem:[%s16208_s5 + $0x1388] sm:$0xff]  ;;  %v10953_v35 = vcombine.high %v5597_v24, %v5601_v1 }
 0x4a4   :  { %9258 = vmatprep.subr.bf16.mxu0 %v10907_v27  ;;  %v5602_v26 = vld [vmem:[%s16208_s5 + $0x13a8] sm:$0xff]  ;;  %v10944_v27 = vcombine.low %v5589_v37, %v5593_v39  ;;  %v10349_v39 = vcombine.high %v4991_v4, %v4995_v6 }
 0x4a5   :  { %v10955_v36 = vcombine.high %v5598_v42, %v5602_v26  ;;  %v10954_v44 = vcombine.low %v5598_v42, %v5602_v26  ;;  %v5007_v42 = vld [vmem:[%s16208_s5 + $0x110] sm:$0xff] }
 0x4a6   :  { %9044 = vmatpush1.bf16.msra.mxu1 %v10904_v54  ;;  %v5609_v54 = vld [vmem:[%s16208_s5 + $0x13e0] sm:$0xff]  ;;  %v5011_v26 = vld [vmem:[%s16208_s5 + $0x130] sm:$0xff] }
 0x4a7   :  { %9259 = vmatpush1.bf16.msra.mxu0 %v10906_v59  ;;  %9045 = vmatprep.subr.bf16.mxu1 %v10913_v3  ;;  %v5606_v59 = vld [vmem:[%s16208_s5 + $0x13c8] sm:$0xff]  ;;  %v10961_v25 = vcombine.high %v5605_v52, %v5609_v54 }
 0x4a8   :  { %9260 = vmatprep.subr.bf16.mxu0 %v10915_v45  ;;  %v5610_v3 = vld [vmem:[%s16208_s5 + $0x13e8] sm:$0xff]  ;;  %v10952_v45 = vcombine.low %v5597_v24, %v5601_v1 }
 0x4a9   :  { %v10963_v28 = vcombine.high %v5606_v59, %v5610_v3  ;;  %v10962_v48 = vcombine.low %v5606_v59, %v5610_v3  ;;  %v5015_v59 = vld [vmem:[%s16208_s5 + $0x150] sm:$0xff] }
 0x4aa   :  { %9046 = vmatpush1.bf16.msra.mxu1 %v10912_v49  ;;  %v4979_v49 = vld [vmem:[%s16208_s5 + $0x30] sm:$0xff] }
 0x4ab   :  { %9261 = vmatpush1.bf16.msra.mxu0 %v10914_v0  ;;  %9047 = vmatprep.subr.bf16.mxu1 %v10921_v10  ;;  %v4976_v0 = vld [vmem:[%s16208_s5 + $0x18] sm:$0xff]  ;;  %v10333_v47 = vcombine.high %v4975_v9, %v4979_v49  ;;  %v5019_v3 = vld [vmem:[%s16208_s5 + $0x170] sm:$0xff] }
 0x4ac   :  { %9262 = vmatprep.subr.bf16.mxu0 %v10923_v46  ;;  %v4980_v10 = vld [vmem:[%s16208_s5 + $0x38] sm:$0xff]  ;;  %v10960_v46 = vcombine.low %v5605_v52, %v5609_v54  ;;  %v10365_v52 = vcombine.high %v5007_v42, %v5011_v26 }
 0x4ad   :  { %v10335_v51 = vcombine.high %v4976_v0, %v4980_v10  ;;  %v10334_v63 = vcombine.low %v4976_v0, %v4980_v10  ;;  %v5023_v0 = vld [vmem:[%s16208_s5 + $0x190] sm:$0xff] }
 0x4ae   :  { %9048 = vmatpush1.bf16.msra.mxu1 %v10920_v53  ;;  %v4987_v53 = vld [vmem:[%s16208_s5 + $0x70] sm:$0xff] }
 0x4af   :  { %9263 = vmatpush1.bf16.msra.mxu0 %v10922_v62  ;;  %9049 = vmatprep.subr.bf16.mxu1 %v10929_v12  ;;  %v10332_v62 = vcombine.low %v4975_v9, %v4979_v49  ;;  %v4984_v12 = vld [vmem:[%s16208_s5 + $0x58] sm:$0xff]  ;;  %v10341_v61 = vcombine.high %v4983_v50, %v4987_v53  ;;  %v10373_v9 = vcombine.high %v5015_v59, %v5019_v3  ;;  %v5027_v10 = vld [vmem:[%s16208_s5 + $0x1b0] sm:$0xff] }
 0x4b0   :  { %9264 = vmatprep.subr.bf16.mxu0 %v10931_v14  ;;  %v4988_v14 = vld [vmem:[%s16208_s5 + $0x78] sm:$0xff] }
 0x4b1   :  { %v10342_v37 = vcombine.low %v4984_v12, %v4988_v14 }
 0x4b2   :  { %9050 = vmatpush1.bf16.msra.mxu1 %v10928_v7  ;;  %v10343_v7 = vcombine.high %v4984_v12, %v4988_v14  ;;  %v5035_v12 = vld [vmem:[%s16208_s5 + $0x1f0] sm:$0xff]  ;;  %v5032_v14 = vld [vmem:[%s16208_s5 + $0x1d8] sm:$0xff] }
 0x4b3   :  { %9265 = vmatpush1.bf16.msra.mxu0 %v10930_v15  ;;  %9051 = vmatprep.subr.bf16.mxu1 %v10937_v17  ;;  %v4992_v15 = vld [vmem:[%s16208_s5 + $0x98] sm:$0xff] }
 0x4b4   :  { %9266 = vmatprep.subr.bf16.mxu0 %v10939_v20  ;;  %v4996_v17 = vld [vmem:[%s16208_s5 + $0xb8] sm:$0xff]  ;;  %v10340_v20 = vcombine.low %v4983_v50, %v4987_v53  ;;  %v10381_v50 = vcombine.high %v5023_v0, %v5027_v10 }
 0x4b5   :  { %v10351_v38 = vcombine.high %v4992_v15, %v4996_v17 }
 0x4b6   :  { %9052 = vmatpush1.bf16.msra.mxu1 %v10936_v34  ;;  %v5003_v34 = vld [vmem:[%s16208_s5 + $0xf0] sm:$0xff] }
 0x4b7   :  { %9267 = vmatpush1.bf16.msra.mxu0 %v10938_v41  ;;  %9053 = vmatprep.subr.bf16.mxu1 %v10945_v21  ;;  %v5000_v41 = vld [vmem:[%s16208_s5 + $0xd8] sm:$0xff]  ;;  %v10357_v24 = vcombine.high %v4999_v31, %v5003_v34 }
 0x4b8   :  { %9268 = vmatprep.subr.bf16.mxu0 %v10947_v23  ;;  %v5004_v21 = vld [vmem:[%s16208_s5 + $0xf8] sm:$0xff]  ;;  %v10350_v23 = vcombine.low %v4992_v15, %v4996_v17  ;;  %v5039_v15 = vld [vmem:[%s16208_s5 + $0x210] sm:$0xff] }
 0x4b9   :  { %v10359_v1 = vcombine.high %v5000_v41, %v5004_v21  ;;  %v5043_v17 = vld [vmem:[%s16208_s5 + $0x230] sm:$0xff] }
 0x4ba   :  { %9054 = vmatpush1.bf16.msra.mxu1 %v10944_v27  ;;  %v5008_v27 = vld [vmem:[%s16208_s5 + $0x118] sm:$0xff] }
 0x4bb   :  { %9269 = vmatpush1.bf16.msra.mxu0 %v10946_v33  ;;  %9055 = vmatprep.subr.bf16.mxu1 %v10953_v35  ;;  %v5012_v33 = vld [vmem:[%s16208_s5 + $0x138] sm:$0xff]  ;;  %v10356_v35 = vcombine.low %v4999_v31, %v5003_v34  ;;  %v10397_v31 = vcombine.high %v5039_v15, %v5043_v17 }
 0x4bc   :  { %9270 = vmatprep.subr.bf16.mxu0 %v10955_v36  ;;  %v10358_v36 = vcombine.low %v5000_v41, %v5004_v21  ;;  %v10367_v54 = vcombine.high %v5008_v27, %v5012_v33  ;;  %v5047_v41 = vld [vmem:[%s16208_s5 + $0x250] sm:$0xff] }
 0x4bd   :  { %v5051_v21 = vld [vmem:[%s16208_s5 + $0x270] sm:$0xff] }
 0x4be   :  { %9056 = vmatpush1.bf16.msra.mxu1 %v10952_v45  ;;  %v5016_v45 = vld [vmem:[%s16208_s5 + $0x158] sm:$0xff] }
 0x4bf   :  { %9271 = vmatpush1.bf16.msra.mxu0 %v10954_v44  ;;  %9057 = vmatprep.subr.bf16.mxu1 %v10961_v25  ;;  %v5020_v44 = vld [vmem:[%s16208_s5 + $0x178] sm:$0xff]  ;;  %v10364_v25 = vcombine.low %v5007_v42, %v5011_v26  ;;  %v10405_v42 = vcombine.high %v5047_v41, %v5051_v21 }
 0x4c0   :  { %9272 = vmatprep.subr.bf16.mxu0 %v10963_v28  ;;  %v10366_v28 = vcombine.low %v5008_v27, %v5012_v33  ;;  %v10375_v49 = vcombine.high %v5016_v45, %v5020_v44  ;;  %v5055_v27 = vld [vmem:[%s16208_s5 + $0x290] sm:$0xff] }
 0x4c1   :  { %v5059_v33 = vld [vmem:[%s16208_s5 + $0x2b0] sm:$0xff] }
 0x4c2   :  { %9058 = vmatpush1.bf16.msra.mxu1 %v10960_v46  ;;  %v5024_v46 = vld [vmem:[%s16208_s5 + $0x198] sm:$0xff] }
 0x4c3   :  { %9273 = vmatpush1.bf16.msra.mxu0 %v10962_v48  ;;  %9285 = vmatprep.subr.bf16.mxu1 %v10333_v47  ;;  %v5028_v48 = vld [vmem:[%s16208_s5 + $0x1b8] sm:$0xff]  ;;  %v10372_v47 = vcombine.low %v5015_v59, %v5019_v3  ;;  %v10413_v59 = vcombine.high %v5055_v27, %v5059_v33 }
 0x4c4   :  { %9500 = vmatprep.subr.bf16.mxu0 %v10335_v51  ;;  %v10374_v51 = vcombine.low %v5016_v45, %v5020_v44  ;;  %v10383_v53 = vcombine.high %v5024_v46, %v5028_v48  ;;  %v5063_v45 = vld [vmem:[%s16208_s5 + $0x2d0] sm:$0xff] }
 0x4c5   :  { %9060 = vmatmul.mubr.bf16.vlgmr.msra.gmra.mrb[44].mxu1 %v14532_v11  ;;  %v5067_v44 = vld [vmem:[%s16208_s5 + $0x2f0] sm:$0xff] }
 0x4c6   :  { %9275 = vmatmul.mubr.bf16.vlgmr.msra.gmra.mrb[12].mxu0 %v14532_v11  ;;  %9286 = vmatpush1.bf16.msra.mxu1 %v10332_v62  ;;  %v5031_v62 = vld [vmem:[%s16208_s5 + $0x1d0] sm:$0xff] }
 0x4c7   :  { %9317 = vmatprep.mubr.bf16.mxu1 %v14283_v43  ;;  %9501 = vmatpush1.bf16.msra.mxu0 %v10334_v63  ;;  %v5036_v63 = vld [vmem:[%s16208_s5 + $0x1f8] sm:$0xff] }
 0x4c8   :  { %9532 = vmatprep.mubr.bf16.mxu0 %v14283_v43  ;;  %9287 = vmatprep.subr.bf16.mxu1 %v10341_v61  ;;  %v10348_v43 = vcombine.low %v4991_v4, %v4995_v6  ;;  %v10380_v61 = vcombine.low %v5023_v0, %v5027_v10  ;;  %v10382_v4 = vcombine.low %v5024_v46, %v5028_v48  ;;  %v5071_v46 = vld [vmem:[%s16208_s5 + $0x310] sm:$0xff] }
 0x4c9   :  { %9502 = vmatprep.subr.bf16.mxu0 %v10343_v7  ;;  %v10389_v6 = vcombine.high %v5031_v62, %v5035_v12  ;;  %v10391_v7 = vcombine.high %v5032_v14, %v5036_v63  ;;  %v10421_v0 = vcombine.high %v5063_v45, %v5067_v44  ;;  %v5075_v48 = vld [vmem:[%s16208_s5 + $0x330] sm:$0xff] }
 0x4ca   :  { %9288 = vmatpush1.bf16.msra.mxu1 %v10340_v20  ;;  %v5040_v20 = vld [vmem:[%s16208_s5 + $0x218] sm:$0xff] }
 0x4cb   :  { %9503 = vmatpush1.bf16.msra.mxu0 %v10342_v37  ;;  %9289 = vmatprep.subr.bf16.mxu1 %v10349_v39  ;;  %v5044_v37 = vld [vmem:[%s16208_s5 + $0x238] sm:$0xff]  ;;  %v10388_v39 = vcombine.low %v5031_v62, %v5035_v12  ;;  %v10429_v62 = vcombine.high %v5071_v46, %v5075_v48 }
 0x4cc   :  { %9504 = vmatprep.subr.bf16.mxu0 %v10351_v38  ;;  %v10390_v38 = vcombine.low %v5032_v14, %v5036_v63  ;;  %v10399_v34 = vcombine.high %v5040_v20, %v5044_v37  ;;  %v5079_v14 = vld [vmem:[%s16208_s5 + $0x350] sm:$0xff] }
 0x4cd   :  { %v5083_v63 = vld [vmem:[%s16208_s5 + $0x370] sm:$0xff] }
 0x4ce   :  { %9290 = vmatpush1.bf16.msra.mxu1 %v10348_v43  ;;  %v5048_v43 = vld [vmem:[%s16208_s5 + $0x258] sm:$0xff] }
 0x4cf   :  { %9505 = vmatpush1.bf16.msra.mxu0 %v10350_v23  ;;  %9291 = vmatprep.subr.bf16.mxu1 %v10357_v24  ;;  %v5052_v23 = vld [vmem:[%s16208_s5 + $0x278] sm:$0xff]  ;;  %v10396_v24 = vcombine.low %v5039_v15, %v5043_v17  ;;  %v10437_v15 = vcombine.high %v5079_v14, %v5083_v63 }
 0x4d0   :  { %9506 = vmatprep.subr.bf16.mxu0 %v10359_v1  ;;  %v10398_v1 = vcombine.low %v5040_v20, %v5044_v37  ;;  %v10407_v26 = vcombine.high %v5048_v43, %v5052_v23  ;;  %v5087_v20 = vld [vmem:[%s16208_s5 + $0x390] sm:$0xff] }
 0x4d1   :  { %v5091_v37 = vld [vmem:[%s16208_s5 + $0x3b0] sm:$0xff] }
 0x4d2   :  { %9292 = vmatpush1.bf16.msra.mxu1 %v10356_v35  ;;  %v5056_v35 = vld [vmem:[%s16208_s5 + $0x298] sm:$0xff] }
 0x4d3   :  { %9507 = vmatpush1.bf16.msra.mxu0 %v10358_v36  ;;  %9293 = vmatprep.subr.bf16.mxu1 %v10365_v52  ;;  %v5060_v36 = vld [vmem:[%s16208_s5 + $0x2b8] sm:$0xff]  ;;  %v10404_v52 = vcombine.low %v5047_v41, %v5051_v21  ;;  %v10445_v41 = vcombine.high %v5087_v20, %v5091_v37 }
 0x4d4   :  { %9508 = vmatprep.subr.bf16.mxu0 %v10367_v54  ;;  %v10406_v54 = vcombine.low %v5048_v43, %v5052_v23  ;;  %v10415_v3 = vcombine.high %v5056_v35, %v5060_v36  ;;  %v5095_v43 = vld [vmem:[%s16208_s5 + $0x3d0] sm:$0xff] }
 0x4d5   :  { %v5099_v23 = vld [vmem:[%s16208_s5 + $0x3f0] sm:$0xff] }
 0x4d6   :  { %9294 = vmatpush1.bf16.msra.mxu1 %v10364_v25  ;;  %v5064_v25 = vld [vmem:[%s16208_s5 + $0x2d8] sm:$0xff] }
 0x4d7   :  { %9509 = vmatpush1.bf16.msra.mxu0 %v10366_v28  ;;  %9295 = vmatprep.subr.bf16.mxu1 %v10373_v9  ;;  %v5068_v28 = vld [vmem:[%s16208_s5 + $0x2f8] sm:$0xff]  ;;  %v10412_v9 = vcombine.low %v5055_v27, %v5059_v33  ;;  %v10453_v27 = vcombine.high %v5095_v43, %v5099_v23 }
 0x4d8   :  { %9510 = vmatprep.subr.bf16.mxu0 %v10375_v49  ;;  %v10414_v49 = vcombine.low %v5056_v35, %v5060_v36  ;;  %v10423_v10 = vcombine.high %v5064_v25, %v5068_v28  ;;  %v5103_v35 = vld [vmem:[%s16208_s5 + $0x410] sm:$0xff] }
 0x4d9   :  { %v5107_v36 = vld [vmem:[%s16208_s5 + $0x430] sm:$0xff] }
 0x4da   :  { %9296 = vmatpush1.bf16.msra.mxu1 %v10372_v47  ;;  %v5072_v47 = vld [vmem:[%s16208_s5 + $0x318] sm:$0xff] }
 0x4db   :  { %9511 = vmatpush1.bf16.msra.mxu0 %v10374_v51  ;;  %9297 = vmatprep.subr.bf16.mxu1 %v10381_v50  ;;  %v5076_v51 = vld [vmem:[%s16208_s5 + $0x338] sm:$0xff]  ;;  %v10420_v50 = vcombine.low %v5063_v45, %v5067_v44  ;;  %v10461_v45 = vcombine.high %v5103_v35, %v5107_v36 }
 0x4dc   :  { %9512 = vmatprep.subr.bf16.mxu0 %v10383_v53  ;;  %v10422_v53 = vcombine.low %v5064_v25, %v5068_v28  ;;  %v10431_v12 = vcombine.high %v5072_v47, %v5076_v51  ;;  %v5111_v25 = vld [vmem:[%s16208_s5 + $0x450] sm:$0xff] }
 0x4dd   :  { %v5115_v28 = vld [vmem:[%s16208_s5 + $0x470] sm:$0xff] }
 0x4de   :  { %9298 = vmatpush1.bf16.msra.mxu1 %v10380_v61  ;;  %v5080_v61 = vld [vmem:[%s16208_s5 + $0x358] sm:$0xff] }
 0x4df   :  { %9513 = vmatpush1.bf16.msra.mxu0 %v10382_v4  ;;  %9299 = vmatprep.subr.bf16.mxu1 %v10389_v6  ;;  %v5084_v4 = vld [vmem:[%s16208_s5 + $0x378] sm:$0xff]  ;;  %v10428_v6 = vcombine.low %v5071_v46, %v5075_v48  ;;  %v10469_v46 = vcombine.high %v5111_v25, %v5115_v28  ;;  %v5119_v48 = vld [vmem:[%s16208_s5 + $0x490] sm:$0xff] }
 0x4e0   :  { %9514 = vmatprep.subr.bf16.mxu0 %v10391_v7  ;;  %v10430_v7 = vcombine.low %v5072_v47, %v5076_v51  ;;  %v10439_v17 = vcombine.high %v5080_v61, %v5084_v4  ;;  %v5123_v47 = vld [vmem:[%s16208_s5 + $0x4b0] sm:$0xff] }
 0x4e2   :  { %9300 = vmatpush1.bf16.msra.mxu1 %v10388_v39  ;;  %v5088_v39 = vld [vmem:[%s16208_s5 + $0x398] sm:$0xff] }
 0x4e3   :  { %9515 = vmatpush1.bf16.msra.mxu0 %v10390_v38  ;;  %9301 = vmatprep.subr.bf16.mxu1 %v10397_v31  ;;  %v5092_v38 = vld [vmem:[%s16208_s5 + $0x3b8] sm:$0xff]  ;;  %v10436_v31 = vcombine.low %v5079_v14, %v5083_v63  ;;  %v10477_v14 = vcombine.high %v5119_v48, %v5123_v47 }
 0x4e4   :  { %9516 = vmatprep.subr.bf16.mxu0 %v10399_v34  ;;  %v10438_v34 = vcombine.low %v5080_v61, %v5084_v4  ;;  %v10447_v21 = vcombine.high %v5088_v39, %v5092_v38  ;;  %v5127_v61 = vld [vmem:[%s16208_s5 + $0x4d0] sm:$0xff] }
 0x4e5   :  { %v5131_v4 = vld [vmem:[%s16208_s5 + $0x4f0] sm:$0xff] }
 0x4e6   :  { %9302 = vmatpush1.bf16.msra.mxu1 %v10396_v24  ;;  %v5096_v24 = vld [vmem:[%s16208_s5 + $0x3d8] sm:$0xff] }
 0x4e7   :  { %9517 = vmatpush1.bf16.msra.mxu0 %v10398_v1  ;;  %9303 = vmatprep.subr.bf16.mxu1 %v10405_v42  ;;  %v5100_v1 = vld [vmem:[%s16208_s5 + $0x3f8] sm:$0xff]  ;;  %v10444_v42 = vcombine.low %v5087_v20, %v5091_v37  ;;  %v5135_v20 = vld [vmem:[%s16208_s5 + $0x510] sm:$0xff] }
 0x4e8   :  { %9518 = vmatprep.subr.bf16.mxu0 %v10407_v26  ;;  %v10446_v26 = vcombine.low %v5088_v39, %v5092_v38  ;;  %v10455_v33 = vcombine.high %v5096_v24, %v5100_v1  ;;  %v5139_v37 = vld [vmem:[%s16208_s5 + $0x530] sm:$0xff]  ;;  %v5136_v39 = vld [vmem:[%s16208_s5 + $0x518] sm:$0xff] }
 0x4e9   :  { %v5140_v38 = vld [vmem:[%s16208_s5 + $0x538] sm:$0xff] }
 0x4ea   :  { %9304 = vmatpush1.bf16.msra.mxu1 %v10404_v52  ;;  %v5104_v52 = vld [vmem:[%s16208_s5 + $0x418] sm:$0xff] }
 0x4eb   :  { %9519 = vmatpush1.bf16.msra.mxu0 %v10406_v54  ;;  %9305 = vmatprep.subr.bf16.mxu1 %v10413_v59  ;;  %v5108_v54 = vld [vmem:[%s16208_s5 + $0x438] sm:$0xff]  ;;  %v10452_v59 = vcombine.low %v5095_v43, %v5099_v23  ;;  %v5143_v43 = vld [vmem:[%s16208_s5 + $0x550] sm:$0xff] }
 0x4ec   :  { %9520 = vmatprep.subr.bf16.mxu0 %v10415_v3  ;;  %v10454_v3 = vcombine.low %v5096_v24, %v5100_v1  ;;  %v10463_v44 = vcombine.high %v5104_v52, %v5108_v54  ;;  %v5147_v23 = vld [vmem:[%s16208_s5 + $0x570] sm:$0xff]  ;;  %v5144_v24 = vld [vmem:[%s16208_s5 + $0x558] sm:$0xff] }
 0x4ed   :  { %v5148_v1 = vld [vmem:[%s16208_s5 + $0x578] sm:$0xff] }
 0x4ee   :  { %9306 = vmatpush1.bf16.msra.mxu1 %v10412_v9  ;;  %v10460_v9 = vcombine.low %v5103_v35, %v5107_v36  ;;  %v5151_v35 = vld [vmem:[%s16208_s5 + $0x590] sm:$0xff] }
 0x4ef   :  { %9521 = vmatpush1.bf16.msra.mxu0 %v10414_v49  ;;  %9307 = vmatprep.subr.bf16.mxu1 %v10421_v0  ;;  %v5112_v49 = vld [vmem:[%s16208_s5 + $0x458] sm:$0xff]  ;;  %v5155_v36 = vld [vmem:[%s16208_s5 + $0x5b0] sm:$0xff] }
 0x4f0   :  { %9522 = vmatprep.subr.bf16.mxu0 %v10423_v10  ;;  %v5116_v0 = vld [vmem:[%s16208_s5 + $0x478] sm:$0xff]  ;;  %v10462_v10 = vcombine.low %v5104_v52, %v5108_v54 }
 0x4f1   :  { %v10471_v51 = vcombine.high %v5112_v49, %v5116_v0  ;;  %v5152_v52 = vld [vmem:[%s16208_s5 + $0x598] sm:$0xff] }
 0x4f2   :  { %9308 = vmatpush1.bf16.msra.mxu1 %v10420_v50  ;;  %v5120_v50 = vld [vmem:[%s16208_s5 + $0x498] sm:$0xff] }
 0x4f3   :  { %9523 = vmatpush1.bf16.msra.mxu0 %v10422_v53  ;;  %9309 = vmatprep.subr.bf16.mxu1 %v10429_v62  ;;  %v5124_v53 = vld [vmem:[%s16208_s5 + $0x4b8] sm:$0xff]  ;;  %v10468_v62 = vcombine.low %v5111_v25, %v5115_v28  ;;  %v5159_v25 = vld [vmem:[%s16208_s5 + $0x5d0] sm:$0xff] }
 0x4f4   :  { %9524 = vmatprep.subr.bf16.mxu0 %v10431_v12  ;;  %v10470_v12 = vcombine.low %v5112_v49, %v5116_v0  ;;  %v10479_v63 = vcombine.high %v5120_v50, %v5124_v53  ;;  %v5156_v54 = vld [vmem:[%s16208_s5 + $0x5b8] sm:$0xff]  ;;  %v5163_v28 = vld [vmem:[%s16208_s5 + $0x5f0] sm:$0xff]  ;;  %v10508_v0 = vcombine.low %v5151_v35, %v5155_v36 }
 0x4f5   :  { %v5164_v49 = vld [vmem:[%s16208_s5 + $0x5f8] sm:$0xff] }
 0x4f6   :  { %9310 = vmatpush1.bf16.msra.mxu1 %v10428_v6  ;;  %v5132_v6 = vld [vmem:[%s16208_s5 + $0x4f8] sm:$0xff] }
 0x4f7   :  { %9525 = vmatpush1.bf16.msra.mxu0 %v10430_v7  ;;  %9311 = vmatprep.subr.bf16.mxu1 %v10437_v15  ;;  %v10478_v7 = vcombine.low %v5120_v50, %v5124_v53  ;;  %v10485_v15 = vcombine.high %v5127_v61, %v5131_v4  ;;  %v5168_v50 = vld [vmem:[%s16208_s5 + $0x618] sm:$0xff] }
 0x4f8   :  { %9526 = vmatprep.subr.bf16.mxu0 %v10439_v17  ;;  %v5172_v53 = vld [vmem:[%s16208_s5 + $0x638] sm:$0xff] }
 0x4fa   :  { %9312 = vmatpush1.bf16.msra.mxu1 %v10436_v31  ;;  %v10484_v31 = vcombine.low %v5127_v61, %v5131_v4  ;;  %v5175_v61 = vld [vmem:[%s16208_s5 + $0x650] sm:$0xff] }
 0x4fb   :  { %9527 = vmatpush1.bf16.msra.mxu0 %v10438_v34  ;;  %9313 = vmatprep.subr.bf16.mxu1 %v10445_v41  ;;  %v10493_v41 = vcombine.high %v5135_v20, %v5139_v37  ;;  %v5179_v4 = vld [vmem:[%s16208_s5 + $0x670] sm:$0xff] }
 0x4fc   :  { %9528 = vmatprep.subr.bf16.mxu0 %v10447_v21  ;;  %v10495_v21 = vcombine.high %v5136_v39, %v5140_v38 }
 0x4fe   :  { %9314 = vmatpush1.bf16.msra.mxu1 %v10444_v42  ;;  %v10492_v42 = vcombine.low %v5135_v20, %v5139_v37  ;;  %v5183_v20 = vld [vmem:[%s16208_s5 + $0x690] sm:$0xff] }
 0x4ff   :  { %9529 = vmatpush1.bf16.msra.mxu0 %v10446_v26  ;;  %9315 = vmatprep.subr.bf16.mxu1 %v10453_v27  ;;  %v10494_v26 = vcombine.low %v5136_v39, %v5140_v38  ;;  %v10501_v27 = vcombine.high %v5143_v43, %v5147_v23  ;;  %v5187_v37 = vld [vmem:[%s16208_s5 + $0x6b0] sm:$0xff]  ;;  %v5184_v39 = vld [vmem:[%s16208_s5 + $0x698] sm:$0xff] }
 0x500   :  { %9530 = vmatprep.subr.bf16.mxu0 %v10455_v33  ;;  %v10503_v33 = vcombine.high %v5144_v24, %v5148_v1  ;;  %v5188_v38 = vld [vmem:[%s16208_s5 + $0x6b8] sm:$0xff] }
 0x502   :  { %9316 = vmatpush1.bf16.msra.mxu1 %v10452_v59  ;;  %v10500_v59 = vcombine.low %v5143_v43, %v5147_v23  ;;  %v5191_v43 = vld [vmem:[%s16208_s5 + $0x6d0] sm:$0xff] }
 0x503   :  { %9531 = vmatpush1.bf16.msra.mxu0 %v10454_v3  ;;  %9328 = vmatprep.subr.bf16.mxu1 %v10461_v45  ;;  %v10502_v3 = vcombine.low %v5144_v24, %v5148_v1  ;;  %v10509_v45 = vcombine.high %v5151_v35, %v5155_v36  ;;  %v5195_v23 = vld [vmem:[%s16208_s5 + $0x6f0] sm:$0xff]  ;;  %v5192_v24 = vld [vmem:[%s16208_s5 + $0x6d8] sm:$0xff] }
 0x504   :  { %9543 = vmatprep.subr.bf16.mxu0 %v10463_v44  ;;  %v10511_v44 = vcombine.high %v5152_v52, %v5156_v54  ;;  %v5196_v1 = vld [vmem:[%s16208_s5 + $0x6f8] sm:$0xff]  ;;  %v5199_v35 = vld [vmem:[%s16208_s5 + $0x710] sm:$0xff] }
 0x505   :  { %9318 = vmatmul.mubr.bf16.vlgmr.msra.gmra.mrb[48].mxu1 %v14266_v19  ;;  %v5203_v36 = vld [vmem:[%s16208_s5 + $0x730] sm:$0xff] }
 0x506   :  { %9533 = vmatmul.mubr.bf16.vlgmr.msra.gmra.mrb[16].mxu0 %v14266_v19  ;;  %9329 = vmatpush1.bf16.msra.mxu1 %v10460_v9  ;;  %v5128_v19 = vld [vmem:[%s16208_s5 + $0x4d8] sm:$0xff] }
 0x507   :  { %9360 = vmatprep.mubr.bf16.mxu1 %v14545_v56  ;;  %9544 = vmatpush1.bf16.msra.mxu0 %v10462_v10  ;;  %v10487_v17 = vcombine.high %v5128_v19, %v5132_v6  ;;  %v10486_v34 = vcombine.low %v5128_v19, %v5132_v6  ;;  %v5160_v9 = vld [vmem:[%s16208_s5 + $0x5d8] sm:$0xff]  ;;  %v10510_v10 = vcombine.low %v5152_v52, %v5156_v54 }
 0x508   :  { %9575 = vmatprep.mubr.bf16.mxu0 %v14545_v56  ;;  %9330 = vmatprep.subr.bf16.mxu1 %v10469_v46  ;;  %v10476_v56 = vcombine.low %v5119_v48, %v5123_v47  ;;  %v10517_v46 = vcombine.high %v5159_v25, %v5163_v28  ;;  %v10519_v48 = vcombine.high %v5160_v9, %v5164_v49  ;;  %v5167_v47 = vld [vmem:[%s16208_s5 + $0x610] sm:$0xff]  ;;  %v5176_v19 = vld [vmem:[%s16208_s5 + $0x658] sm:$0xff] }
 0x509   :  { %9545 = vmatprep.subr.bf16.mxu0 %v10471_v51  ;;  %v5171_v51 = vld [vmem:[%s16208_s5 + $0x630] sm:$0xff]  ;;  %v5180_v6 = vld [vmem:[%s16208_s5 + $0x678] sm:$0xff] }
 0x50a   :  { %9331 = vmatpush1.bf16.msra.mxu1 %v10468_v62  ;;  %v10516_v62 = vcombine.low %v5159_v25, %v5163_v28  ;;  %v5200_v52 = vld [vmem:[%s16208_s5 + $0x718] sm:$0xff]  ;;  %v5207_v25 = vld [vmem:[%s16208_s5 + $0x750] sm:$0xff] }
 0x50b   :  { %9546 = vmatpush1.bf16.msra.mxu0 %v10470_v12  ;;  %9332 = vmatprep.subr.bf16.mxu1 %v10477_v14  ;;  %v10518_v12 = vcombine.low %v5160_v9, %v5164_v49  ;;  %v10525_v14 = vcombine.high %v5167_v47, %v5171_v51  ;;  %v5204_v54 = vld [vmem:[%s16208_s5 + $0x738] sm:$0xff]  ;;  %v5211_v28 = vld [vmem:[%s16208_s5 + $0x770] sm:$0xff] }
 0x50c   :  { %9547 = vmatprep.subr.bf16.mxu0 %v10479_v63  ;;  %v10527_v63 = vcombine.high %v5168_v50, %v5172_v53  ;;  %v5208_v9 = vld [vmem:[%s16208_s5 + $0x758] sm:$0xff] }
 0x50d   :  { %v5212_v49 = vld [vmem:[%s16208_s5 + $0x778] sm:$0xff] }
 0x50e   :  { %9333 = vmatpush1.bf16.msra.mxu1 %v10476_v56  ;;  %v10524_v56 = vcombine.low %v5167_v47, %v5171_v51  ;;  %v5215_v47 = vld [vmem:[%s16208_s5 + $0x790] sm:$0xff] }
 0x50f   :  { %9548 = vmatpush1.bf16.msra.mxu0 %v10478_v7  ;;  %9334 = vmatprep.subr.bf16.mxu1 %v10485_v15  ;;  %v10526_v7 = vcombine.low %v5168_v50, %v5172_v53  ;;  %v10533_v15 = vcombine.high %v5175_v61, %v5179_v4  ;;  %v5219_v51 = vld [vmem:[%s16208_s5 + $0x7b0] sm:$0xff]  ;;  %v5216_v50 = vld [vmem:[%s16208_s5 + $0x798] sm:$0xff] }
 0x510   :  { %9549 = vmatprep.subr.bf16.mxu0 %v10487_v17  ;;  %v10535_v17 = vcombine.high %v5176_v19, %v5180_v6  ;;  %v5220_v53 = vld [vmem:[%s16208_s5 + $0x7b8] sm:$0xff] }
 0x512   :  { %9335 = vmatpush1.bf16.msra.mxu1 %v10484_v31  ;;  %v10532_v31 = vcombine.low %v5175_v61, %v5179_v4  ;;  %v5223_v61 = vld [vmem:[%s16208_s5 + $0x7d0] sm:$0xff] }
 0x513   :  { %9550 = vmatpush1.bf16.msra.mxu0 %v10486_v34  ;;  %9336 = vmatprep.subr.bf16.mxu1 %v10493_v41  ;;  %v10534_v34 = vcombine.low %v5176_v19, %v5180_v6  ;;  %v10541_v41 = vcombine.high %v5183_v20, %v5187_v37  ;;  %v5227_v4 = vld [vmem:[%s16208_s5 + $0x7f0] sm:$0xff]  ;;  %v5224_v19 = vld [vmem:[%s16208_s5 + $0x7d8] sm:$0xff] }
 0x514   :  { %9551 = vmatprep.subr.bf16.mxu0 %v10495_v21  ;;  %v10543_v21 = vcombine.high %v5184_v39, %v5188_v38  ;;  %v5228_v6 = vld [vmem:[%s16208_s5 + $0x7f8] sm:$0xff] }
 0x516   :  { %9337 = vmatpush1.bf16.msra.mxu1 %v10492_v42  ;;  %v10540_v42 = vcombine.low %v5183_v20, %v5187_v37  ;;  %v5231_v20 = vld [vmem:[%s16208_s5 + $0x810] sm:$0xff] }
 0x517   :  { %9552 = vmatpush1.bf16.msra.mxu0 %v10494_v26  ;;  %9338 = vmatprep.subr.bf16.mxu1 %v10501_v27  ;;  %v10542_v26 = vcombine.low %v5184_v39, %v5188_v38  ;;  %v10549_v27 = vcombine.high %v5191_v43, %v5195_v23  ;;  %v5235_v37 = vld [vmem:[%s16208_s5 + $0x830] sm:$0xff]  ;;  %v5232_v39 = vld [vmem:[%s16208_s5 + $0x818] sm:$0xff] }
 0x518   :  { %9553 = vmatprep.subr.bf16.mxu0 %v10503_v33  ;;  %v10551_v33 = vcombine.high %v5192_v24, %v5196_v1  ;;  %v5236_v38 = vld [vmem:[%s16208_s5 + $0x838] sm:$0xff] }
 0x51a   :  { %9339 = vmatpush1.bf16.msra.mxu1 %v10500_v59  ;;  %v10548_v59 = vcombine.low %v5191_v43, %v5195_v23  ;;  %v5239_v43 = vld [vmem:[%s16208_s5 + $0x850] sm:$0xff] }
 0x51b   :  { %9554 = vmatpush1.bf16.msra.mxu0 %v10502_v3  ;;  %9340 = vmatprep.subr.bf16.mxu1 %v10509_v45  ;;  %v10550_v3 = vcombine.low %v5192_v24, %v5196_v1  ;;  %v10557_v45 = vcombine.high %v5199_v35, %v5203_v36  ;;  %v5243_v23 = vld [vmem:[%s16208_s5 + $0x870] sm:$0xff]  ;;  %v10588_v24 = vcombine.low %v5231_v20, %v5235_v37  ;;  %v5240_v1 = vld [vmem:[%s16208_s5 + $0x858] sm:$0xff] }
 0x51c   :  { %9555 = vmatprep.subr.bf16.mxu0 %v10511_v44  ;;  %v10559_v44 = vcombine.high %v5200_v52, %v5204_v54 }
 0x51e   :  { %9341 = vmatpush1.bf16.msra.mxu1 %v10508_v0  ;;  %v10556_v0 = vcombine.low %v5199_v35, %v5203_v36  ;;  %v5251_v35 = vld [vmem:[%s16208_s5 + $0x8b0] sm:$0xff] }
 0x51f   :  { %9556 = vmatpush1.bf16.msra.mxu0 %v10510_v10  ;;  %9342 = vmatprep.subr.bf16.mxu1 %v10517_v46  ;;  %v10558_v10 = vcombine.low %v5200_v52, %v5204_v54  ;;  %v10565_v46 = vcombine.high %v5207_v25, %v5211_v28  ;;  %v5248_v52 = vld [vmem:[%s16208_s5 + $0x898] sm:$0xff] }
 0x520   :  { %9557 = vmatprep.subr.bf16.mxu0 %v10519_v48  ;;  %v10567_v48 = vcombine.high %v5208_v9, %v5212_v49  ;;  %v5252_v54 = vld [vmem:[%s16208_s5 + $0x8b8] sm:$0xff] }
 0x522   :  { %9343 = vmatpush1.bf16.msra.mxu1 %v10516_v62  ;;  %v10564_v62 = vcombine.low %v5207_v25, %v5211_v28  ;;  %v5255_v25 = vld [vmem:[%s16208_s5 + $0x8d0] sm:$0xff] }
 0x523   :  { %9558 = vmatpush1.bf16.msra.mxu0 %v10518_v12  ;;  %9344 = vmatprep.subr.bf16.mxu1 %v10525_v14  ;;  %v10566_v12 = vcombine.low %v5208_v9, %v5212_v49  ;;  %v10573_v14 = vcombine.high %v5215_v47, %v5219_v51  ;;  %v5259_v28 = vld [vmem:[%s16208_s5 + $0x8f0] sm:$0xff]  ;;  %v5260_v9 = vld [vmem:[%s16208_s5 + $0x8f8] sm:$0xff]  ;;  %v10606_v49 = vcombine.low %v5248_v52, %v5252_v54 }
 0x524   :  { %9559 = vmatprep.subr.bf16.mxu0 %v10527_v63  ;;  %v10575_v63 = vcombine.high %v5216_v50, %v5220_v53 }
 0x526   :  { %9345 = vmatpush1.bf16.msra.mxu1 %v10524_v56  ;;  %v10572_v56 = vcombine.low %v5215_v47, %v5219_v51  ;;  %v5264_v47 = vld [vmem:[%s16208_s5 + $0x918] sm:$0xff] }
 0x527   :  { %9560 = vmatpush1.bf16.msra.mxu0 %v10526_v7  ;;  %9346 = vmatprep.subr.bf16.mxu1 %v10533_v15  ;;  %v10574_v7 = vcombine.low %v5216_v50, %v5220_v53  ;;  %v10581_v15 = vcombine.high %v5223_v61, %v5227_v4  ;;  %v5268_v51 = vld [vmem:[%s16208_s5 + $0x938] sm:$0xff]  ;;  %v10612_v50 = vcombine.low %v5255_v25, %v5259_v28 }
 0x528   :  { %9561 = vmatprep.subr.bf16.mxu0 %v10535_v17  ;;  %v10583_v17 = vcombine.high %v5224_v19, %v5228_v6 }
 0x52a   :  { %9347 = vmatpush1.bf16.msra.mxu1 %v10532_v31  ;;  %v10580_v31 = vcombine.low %v5223_v61, %v5227_v4  ;;  %v5272_v61 = vld [vmem:[%s16208_s5 + $0x958] sm:$0xff] }
 0x52b   :  { %9562 = vmatpush1.bf16.msra.mxu0 %v10534_v34  ;;  %9348 = vmatprep.subr.bf16.mxu1 %v10541_v41  ;;  %v10582_v34 = vcombine.low %v5224_v19, %v5228_v6  ;;  %v10589_v41 = vcombine.high %v5231_v20, %v5235_v37  ;;  %v5276_v4 = vld [vmem:[%s16208_s5 + $0x978] sm:$0xff]  ;;  %v10622_v6 = vcombine.low %v5264_v47, %v5268_v51 }
 0x52c   :  { %9563 = vmatprep.subr.bf16.mxu0 %v10543_v21  ;;  %v10591_v21 = vcombine.high %v5232_v39, %v5236_v38  ;;  %v5280_v20 = vld [vmem:[%s16208_s5 + $0x998] sm:$0xff] }
 0x52d   :  { %v5284_v37 = vld [vmem:[%s16208_s5 + $0x9b8] sm:$0xff] }
 0x52e   :  { %9349 = vmatpush1.bf16.msra.mxu1 %v10540_v42  ;;  %v5244_v42 = vld [vmem:[%s16208_s5 + $0x878] sm:$0xff] }
 0x52f   :  { %9564 = vmatpush1.bf16.msra.mxu0 %v10542_v26  ;;  %9350 = vmatprep.subr.bf16.mxu1 %v10549_v27  ;;  %v10590_v26 = vcombine.low %v5232_v39, %v5236_v38  ;;  %v10597_v27 = vcombine.high %v5239_v43, %v5243_v23  ;;  %v10599_v36 = vcombine.high %v5240_v1, %v5244_v42 }
 0x530   :  { %9565 = vmatprep.subr.bf16.mxu0 %v10551_v33  ;;  %v5247_v33 = vld [vmem:[%s16208_s5 + $0x890] sm:$0xff]  ;;  %v10630_v38 = vcombine.low %v5272_v61, %v5276_v4 }
 0x532   :  { %9351 = vmatpush1.bf16.msra.mxu1 %v10548_v59  ;;  %v10596_v59 = vcombine.low %v5239_v43, %v5243_v23  ;;  %v5288_v43 = vld [vmem:[%s16208_s5 + $0x9d8] sm:$0xff] }
 0x533   :  { %9566 = vmatpush1.bf16.msra.mxu0 %v10550_v3  ;;  %9352 = vmatprep.subr.bf16.mxu1 %v10557_v45  ;;  %v10598_v3 = vcombine.low %v5240_v1, %v5244_v42  ;;  %v10605_v45 = vcombine.high %v5247_v33, %v5251_v35  ;;  %v5292_v23 = vld [vmem:[%s16208_s5 + $0x9f8] sm:$0xff]  ;;  %v10638_v1 = vcombine.low %v5280_v20, %v5284_v37 }
 0x534   :  { %9567 = vmatprep.subr.bf16.mxu0 %v10559_v44  ;;  %v10607_v44 = vcombine.high %v5248_v52, %v5252_v54  ;;  %v10646_v54 = vcombine.low %v5288_v43, %v5292_v23 }
 0x536   :  { %9353 = vmatpush1.bf16.msra.mxu1 %v10556_v0  ;;  %v10613_v0 = vcombine.high %v5255_v25, %v5259_v28  ;;  %v5304_v25 = vld [vmem:[%s16208_s5 + $0xa58] sm:$0xff] }
 0x537   :  { %9568 = vmatpush1.bf16.msra.mxu0 %v10558_v10  ;;  %9354 = vmatprep.subr.bf16.mxu1 %v10565_v46  ;;  %v5263_v46 = vld [vmem:[%s16208_s5 + $0x910] sm:$0xff]  ;;  %v5308_v28 = vld [vmem:[%s16208_s5 + $0xa78] sm:$0xff] }
 0x538   :  { %9569 = vmatprep.subr.bf16.mxu0 %v10567_v48  ;;  %v5267_v48 = vld [vmem:[%s16208_s5 + $0x930] sm:$0xff] }
 0x539   :  { %v10620_v19 = vcombine.low %v5263_v46, %v5267_v48 }
 0x53a   :  { %9355 = vmatpush1.bf16.msra.mxu1 %v10564_v62  ;;  %v10621_v62 = vcombine.high %v5263_v46, %v5267_v48  ;;  %v5312_v46 = vld [vmem:[%s16208_s5 + $0xa98] sm:$0xff] }
 0x53b   :  { %9570 = vmatpush1.bf16.msra.mxu0 %v10566_v12  ;;  %9356 = vmatprep.subr.bf16.mxu1 %v10573_v14  ;;  %v10623_v12 = vcombine.high %v5264_v47, %v5268_v51  ;;  %v5271_v14 = vld [vmem:[%s16208_s5 + $0x950] sm:$0xff]  ;;  %v5316_v48 = vld [vmem:[%s16208_s5 + $0xab8] sm:$0xff]  ;;  %v10662_v51 = vcombine.low %v5304_v25, %v5308_v28 }
 0x53c   :  { %9571 = vmatprep.subr.bf16.mxu0 %v10575_v63  ;;  %v5275_v63 = vld [vmem:[%s16208_s5 + $0x970] sm:$0xff] }
 0x53d   :  { %v10628_v39 = vcombine.low %v5271_v14, %v5275_v63 }
 0x53e   :  { %9357 = vmatpush1.bf16.msra.mxu1 %v10572_v56  ;;  %v10629_v56 = vcombine.high %v5271_v14, %v5275_v63  ;;  %v5320_v14 = vld [vmem:[%s16208_s5 + $0xad8] sm:$0xff] }
 0x53f   :  { %9572 = vmatpush1.bf16.msra.mxu0 %v10574_v7  ;;  %9358 = vmatprep.subr.bf16.mxu1 %v10581_v15  ;;  %v10631_v7 = vcombine.high %v5272_v61, %v5276_v4  ;;  %v5279_v15 = vld [vmem:[%s16208_s5 + $0x990] sm:$0xff]  ;;  %v5324_v63 = vld [vmem:[%s16208_s5 + $0xaf8] sm:$0xff]  ;;  %v10670_v4 = vcombine.low %v5312_v46, %v5316_v48 }
 0x540   :  { %9573 = vmatprep.subr.bf16.mxu0 %v10583_v17  ;;  %v5283_v17 = vld [vmem:[%s16208_s5 + $0x9b0] sm:$0xff] }
 0x542   :  { %9359 = vmatpush1.bf16.msra.mxu1 %v10580_v31  ;;  %v10637_v31 = vcombine.high %v5279_v15, %v5283_v17 }
 0x543   :  { %9574 = vmatpush1.bf16.msra.mxu0 %v10582_v34  ;;  %9371 = vmatprep.subr.bf16.mxu1 %v10589_v41  ;;  %v10639_v34 = vcombine.high %v5280_v20, %v5284_v37  ;;  %v5287_v41 = vld [vmem:[%s16208_s5 + $0x9d0] sm:$0xff]  ;;  %v10678_v37 = vcombine.low %v5320_v14, %v5324_v63 }
 0x544   :  { %9586 = vmatprep.subr.bf16.mxu0 %v10591_v21  ;;  %v5291_v21 = vld [vmem:[%s16208_s5 + $0x9f0] sm:$0xff] }
 0x545   :  { %9361 = vmatmul.mubr.bf16.vlgmr.msra.gmra.mrb[48].mxu1 %v14525_v55  ;;  %v10645_v42 = vcombine.high %v5287_v41, %v5291_v21  ;;  %v10644_v52 = vcombine.low %v5287_v41, %v5291_v21  ;;  %v5336_v41 = vld [vmem:[%s16208_s5 + $0xb58] sm:$0xff] }
 0x546   :  { %9576 = vmatmul.mubr.bf16.vlgmr.msra.gmra.mrb[16].mxu0 %v14525_v55  ;;  %9372 = vmatpush1.bf16.msra.mxu1 %v10588_v24  ;;  %v5256_v55 = vld [vmem:[%s16208_s5 + $0x8d8] sm:$0xff]  ;;  %v10636_v24 = vcombine.low %v5279_v15, %v5283_v17 }
 0x547   :  { %9403 = vmatprep.mubr.bf16.mxu1 %v14285_v22  ;;  %9587 = vmatpush1.bf16.msra.mxu0 %v10590_v26  ;;  %v10615_v10 = vcombine.high %v5256_v55, %v5260_v9  ;;  %v10614_v53 = vcombine.low %v5256_v55, %v5260_v9  ;;  %v10647_v26 = vcombine.high %v5288_v43, %v5292_v23  ;;  %v5328_v15 = vld [vmem:[%s16208_s5 + $0xb18] sm:$0xff] }
 0x548   :  { %9618 = vmatprep.mubr.bf16.mxu0 %v14285_v22  ;;  %9373 = vmatprep.subr.bf16.mxu1 %v10597_v27  ;;  %v10604_v22 = vcombine.low %v5247_v33, %v5251_v35  ;;  %v5295_v27 = vld [vmem:[%s16208_s5 + $0xa10] sm:$0xff]  ;;  %v5296_v35 = vld [vmem:[%s16208_s5 + $0xa18] sm:$0xff] }
 0x549   :  { %9588 = vmatprep.subr.bf16.mxu0 %v10599_v36  ;;  %v5299_v33 = vld [vmem:[%s16208_s5 + $0xa30] sm:$0xff]  ;;  %v5300_v36 = vld [vmem:[%s16208_s5 + $0xa38] sm:$0xff] }
 0x54a   :  { %9374 = vmatpush1.bf16.msra.mxu1 %v10596_v59  ;;  %v10653_v59 = vcombine.high %v5295_v27, %v5299_v33  ;;  %v10652_v55 = vcombine.low %v5295_v27, %v5299_v33  ;;  %v10654_v9 = vcombine.low %v5296_v35, %v5300_v36  ;;  %v5332_v17 = vld [vmem:[%s16208_s5 + $0xb38] sm:$0xff] }
 0x54b   :  { %9589 = vmatpush1.bf16.msra.mxu0 %v10598_v3  ;;  %9375 = vmatprep.subr.bf16.mxu1 %v10605_v45  ;;  %v10655_v3 = vcombine.high %v5296_v35, %v5300_v36  ;;  %v5303_v45 = vld [vmem:[%s16208_s5 + $0xa50] sm:$0xff]  ;;  %v5340_v21 = vld [vmem:[%s16208_s5 + $0xb78] sm:$0xff]  ;;  %v10686_v23 = vcombine.low %v5328_v15, %v5332_v17 }
 0x54c   :  { %9590 = vmatprep.subr.bf16.mxu0 %v10607_v44  ;;  %v5307_v44 = vld [vmem:[%s16208_s5 + $0xa70] sm:$0xff]  ;;  %v5344_v27 = vld [vmem:[%s16208_s5 + $0xb98] sm:$0xff]  ;;  %v10694_v36 = vcombine.low %v5336_v41, %v5340_v21 }
 0x54d   :  { %v10660_v47 = vcombine.low %v5303_v45, %v5307_v44  ;;  %v5348_v33 = vld [vmem:[%s16208_s5 + $0xbb8] sm:$0xff] }
 0x54e   :  { %9376 = vmatpush1.bf16.msra.mxu1 %v10604_v22  ;;  %v10661_v22 = vcombine.high %v5303_v45, %v5307_v44  ;;  %v5352_v45 = vld [vmem:[%s16208_s5 + $0xbd8] sm:$0xff] }
 0x54f   :  { %9591 = vmatpush1.bf16.msra.mxu0 %v10606_v49  ;;  %9377 = vmatprep.subr.bf16.mxu1 %v10613_v0  ;;  %v10663_v49 = vcombine.high %v5304_v25, %v5308_v28  ;;  %v5311_v0 = vld [vmem:[%s16208_s5 + $0xa90] sm:$0xff]  ;;  %v5356_v44 = vld [vmem:[%s16208_s5 + $0xbf8] sm:$0xff]  ;;  %v10702_v28 = vcombine.low %v5344_v27, %v5348_v33 }
 0x550   :  { %9592 = vmatprep.subr.bf16.mxu0 %v10615_v10  ;;  %v5315_v10 = vld [vmem:[%s16208_s5 + $0xab0] sm:$0xff] }
 0x551   :  { %v10668_v61 = vcombine.low %v5311_v0, %v5315_v10 }
 0x552   :  { %9378 = vmatpush1.bf16.msra.mxu1 %v10612_v50  ;;  %v10669_v50 = vcombine.high %v5311_v0, %v5315_v10  ;;  %v5360_v0 = vld [vmem:[%s16208_s5 + $0xc18] sm:$0xff] }
 0x553   :  { %9593 = vmatpush1.bf16.msra.mxu0 %v10614_v53  ;;  %9379 = vmatprep.subr.bf16.mxu1 %v10621_v62  ;;  %v10671_v53 = vcombine.high %v5312_v46, %v5316_v48  ;;  %v5319_v62 = vld [vmem:[%s16208_s5 + $0xad0] sm:$0xff]  ;;  %v5364_v10 = vld [vmem:[%s16208_s5 + $0xc38] sm:$0xff]  ;;  %v10710_v48 = vcombine.low %v5352_v45, %v5356_v44 }
 0x554   :  { %9594 = vmatprep.subr.bf16.mxu0 %v10623_v12  ;;  %v5323_v12 = vld [vmem:[%s16208_s5 + $0xaf0] sm:$0xff] }
 0x555   :  { %v10676_v20 = vcombine.low %v5319_v62, %v5323_v12 }
 0x556   :  { %9380 = vmatpush1.bf16.msra.mxu1 %v10620_v19  ;;  %v10677_v19 = vcombine.high %v5319_v62, %v5323_v12  ;;  %v5368_v12 = vld [vmem:[%s16208_s5 + $0xc58] sm:$0xff] }
 0x557   :  { %9595 = vmatpush1.bf16.msra.mxu0 %v10622_v6  ;;  %9381 = vmatprep.subr.bf16.mxu1 %v10629_v56  ;;  %v10679_v6 = vcombine.high %v5320_v14, %v5324_v63  ;;  %v5327_v56 = vld [vmem:[%s16208_s5 + $0xb10] sm:$0xff]  ;;  %v5372_v14 = vld [vmem:[%s16208_s5 + $0xc78] sm:$0xff]  ;;  %v10718_v63 = vcombine.low %v5360_v0, %v5364_v10 }
 0x558   :  { %9596 = vmatprep.subr.bf16.mxu0 %v10631_v7  ;;  %v5331_v7 = vld [vmem:[%s16208_s5 + $0xb30] sm:$0xff] }
 0x559   :  { %v10684_v43 = vcombine.low %v5327_v56, %v5331_v7 }
 0x55a   :  { %9382 = vmatpush1.bf16.msra.mxu1 %v10628_v39  ;;  %v10685_v39 = vcombine.high %v5327_v56, %v5331_v7  ;;  %v5376_v56 = vld [vmem:[%s16208_s5 + $0xc98] sm:$0xff] }
 0x55b   :  { %9597 = vmatpush1.bf16.msra.mxu0 %v10630_v38  ;;  %9383 = vmatprep.subr.bf16.mxu1 %v10637_v31  ;;  %v10687_v38 = vcombine.high %v5328_v15, %v5332_v17  ;;  %v5335_v31 = vld [vmem:[%s16208_s5 + $0xb50] sm:$0xff]  ;;  %v5380_v7 = vld [vmem:[%s16208_s5 + $0xcb8] sm:$0xff]  ;;  %v10726_v17 = vcombine.low %v5368_v12, %v5372_v14 }
 0x55c   :  { %9598 = vmatprep.subr.bf16.mxu0 %v10639_v34  ;;  %v5339_v34 = vld [vmem:[%s16208_s5 + $0xb70] sm:$0xff] }
 0x55d   :  { %v10692_v35 = vcombine.low %v5335_v31, %v5339_v34 }
 0x55e   :  { %9384 = vmatpush1.bf16.msra.mxu1 %v10636_v24  ;;  %v10693_v24 = vcombine.high %v5335_v31, %v5339_v34  ;;  %v5388_v31 = vld [vmem:[%s16208_s5 + $0xcf8] sm:$0xff]  ;;  %v10734_v34 = vcombine.low %v5376_v56, %v5380_v7 }
 0x55f   :  { %9599 = vmatpush1.bf16.msra.mxu0 %v10638_v1  ;;  %9385 = vmatprep.subr.bf16.mxu1 %v10645_v42  ;;  %v10695_v1 = vcombine.high %v5336_v41, %v5340_v21  ;;  %v5343_v42 = vld [vmem:[%s16208_s5 + $0xb90] sm:$0xff] }
 0x560   :  { %9600 = vmatprep.subr.bf16.mxu0 %v10647_v26  ;;  %v5347_v26 = vld [vmem:[%s16208_s5 + $0xbb0] sm:$0xff] }
 0x561   :  { %v10700_v25 = vcombine.low %v5343_v42, %v5347_v26 }
 0x562   :  { %9386 = vmatpush1.bf16.msra.mxu1 %v10644_v52  ;;  %v10701_v52 = vcombine.high %v5343_v42, %v5347_v26 }
 0x563   :  { %9601 = vmatpush1.bf16.msra.mxu0 %v10646_v54  ;;  %9387 = vmatprep.subr.bf16.mxu1 %v10653_v59  ;;  %v10703_v54 = vcombine.high %v5344_v27, %v5348_v33  ;;  %v5351_v59 = vld [vmem:[%s16208_s5 + $0xbd0] sm:$0xff] }
 0x564   :  { %9602 = vmatprep.subr.bf16.mxu0 %v10655_v3  ;;  %v5355_v3 = vld [vmem:[%s16208_s5 + $0xbf0] sm:$0xff] }
 0x565   :  { %v10708_v46 = vcombine.low %v5351_v59, %v5355_v3 }
 0x566   :  { %9388 = vmatpush1.bf16.msra.mxu1 %v10652_v55  ;;  %v10709_v55 = vcombine.high %v5351_v59, %v5355_v3  ;;  %v15815_v3 = vld [vmem:[%s16210_s6] sm:$0xff] }
 0x567   :  { %9603 = vmatpush1.bf16.msra.mxu0 %v10654_v9  ;;  %9389 = vmatprep.subr.bf16.mxu1 %v10661_v22  ;;  %v10711_v9 = vcombine.high %v5352_v45, %v5356_v44  ;;  %v5359_v22 = vld [vmem:[%s16208_s5 + $0xc10] sm:$0xff] }
 0x568   :  { %9604 = vmatprep.subr.bf16.mxu0 %v10663_v49  ;;  %v5363_v49 = vld [vmem:[%s16208_s5 + $0xc30] sm:$0xff] }
 0x569   :  { %v10716_v62 = vcombine.low %v5359_v22, %v5363_v49 }
 0x56a   :  { %9390 = vmatpush1.bf16.msra.mxu1 %v10660_v47  ;;  %v10717_v47 = vcombine.high %v5359_v22, %v5363_v49  ;;  %v5408_v22 = vld [vmem:[%s16208_s5 + $0xd98] sm:$0xff] }
 0x56b   :  { %9605 = vmatpush1.bf16.msra.mxu0 %v10662_v51  ;;  %9391 = vmatprep.subr.bf16.mxu1 %v10669_v50  ;;  %v10719_v51 = vcombine.high %v5360_v0, %v5364_v10  ;;  %v5367_v50 = vld [vmem:[%s16208_s5 + $0xc50] sm:$0xff]  ;;  %v5412_v49 = vld [vmem:[%s16208_s5 + $0xdb8] sm:$0xff]  ;;  %v5626_v0 = vrot.slane %v15815_v3, %v13135_v8  ;;  %v5622_v10 = vrot.slane %v15815_v3, %v13450_v58 }
 0x56c   :  { %9606 = vmatprep.subr.bf16.mxu0 %v10671_v53  ;;  %v5371_v53 = vld [vmem:[%s16208_s5 + $0xc70] sm:$0xff] }
 0x56d   :  { %v10724_v15 = vcombine.low %v5367_v50, %v5371_v53  ;;  %v5419_v8 = vld [vmem:[%s16208_s5 + $0xdf0] sm:$0xff] }
 0x56e   :  { %9392 = vmatpush1.bf16.msra.mxu1 %v10668_v61  ;;  %v10725_v61 = vcombine.high %v5367_v50, %v5371_v53  ;;  %v10767_v50 = vcombine.high %v5408_v22, %v5412_v49  ;;  %v5415_v53 = vld [vmem:[%s16208_s5 + $0xdd0] sm:$0xff] }
 0x56f   :  { %9607 = vmatpush1.bf16.msra.mxu0 %v10670_v4  ;;  %9393 = vmatprep.subr.bf16.mxu1 %v10677_v19  ;;  %v5375_v4 = vld [vmem:[%s16208_s5 + $0xc90] sm:$0xff] }
 0x570   :  { %9608 = vmatprep.subr.bf16.mxu0 %v10679_v6  ;;  %v5379_v19 = vld [vmem:[%s16208_s5 + $0xcb0] sm:$0xff]  ;;  %v10727_v6 = vcombine.high %v5368_v12, %v5372_v14  ;;  %v5420_v14 = vld [vmem:[%s16208_s5 + $0xdf8] sm:$0xff] }
 0x572   :  { %9394 = vmatpush1.bf16.msra.mxu1 %v10676_v20  ;;  %v10733_v20 = vcombine.high %v5375_v4, %v5379_v19 }
 0x573   :  { %9609 = vmatpush1.bf16.msra.mxu0 %v10678_v37  ;;  %9395 = vmatprep.subr.bf16.mxu1 %v10685_v39  ;;  %v10735_v37 = vcombine.high %v5376_v56, %v5380_v7  ;;  %v5383_v39 = vld [vmem:[%s16208_s5 + $0xcd0] sm:$0xff]  ;;  %v10766_v56 = vcombine.low %v5408_v22, %v5412_v49 }
 0x574   :  { %9610 = vmatprep.subr.bf16.mxu0 %v10687_v38  ;;  %v5387_v38 = vld [vmem:[%s16208_s5 + $0xcf0] sm:$0xff] }
 0x575   :  { %v10741_v41 = vcombine.high %v5383_v39, %v5387_v38  ;;  %v10740_v42 = vcombine.low %v5383_v39, %v5387_v38 }
 0x576   :  { %9396 = vmatpush1.bf16.msra.mxu1 %v10684_v43  ;;  %v5391_v43 = vld [vmem:[%s16208_s5 + $0xd10] sm:$0xff] }
 0x577   :  { %9611 = vmatpush1.bf16.msra.mxu0 %v10686_v23  ;;  %9397 = vmatprep.subr.bf16.mxu1 %v10693_v24  ;;  %v5395_v23 = vld [vmem:[%s16208_s5 + $0xd30] sm:$0xff]  ;;  %v5392_v24 = vld [vmem:[%s16208_s5 + $0xd18] sm:$0xff] }
 0x578   :  { %9612 = vmatprep.subr.bf16.mxu0 %v10695_v1  ;;  %v5396_v1 = vld [vmem:[%s16208_s5 + $0xd38] sm:$0xff]  ;;  %v10749_v27 = vcombine.high %v5391_v43, %v5395_v23  ;;  %v10748_v59 = vcombine.low %v5391_v43, %v5395_v23  ;;  %v10772_v23 = vcombine.low %v5415_v53, %v5419_v8 }
 0x579   :  { %v10751_v33 = vcombine.high %v5392_v24, %v5396_v1  ;;  %v10750_v45 = vcombine.low %v5392_v24, %v5396_v1  ;;  %v5428_v43 = vld [vmem:[%s16208_s5 + $0xe38] sm:$0xff] }
 0x57a   :  { %9398 = vmatpush1.bf16.msra.mxu1 %v10692_v35  ;;  %v5399_v35 = vld [vmem:[%s16208_s5 + $0xd50] sm:$0xff] }
 0x57b   :  { %9613 = vmatpush1.bf16.msra.mxu0 %v10694_v36  ;;  %9399 = vmatprep.subr.bf16.mxu1 %v10701_v52  ;;  %v5403_v36 = vld [vmem:[%s16208_s5 + $0xd70] sm:$0xff]  ;;  %v5400_v52 = vld [vmem:[%s16208_s5 + $0xd58] sm:$0xff] }
 0x57c   :  { %9614 = vmatprep.subr.bf16.mxu0 %v10703_v54  ;;  %v5404_v54 = vld [vmem:[%s16208_s5 + $0xd78] sm:$0xff]  ;;  %v10757_v44 = vcombine.high %v5399_v35, %v5403_v36 }
 0x57e   :  { %9400 = vmatpush1.bf16.msra.mxu1 %v10700_v25  ;;  %v10759_v25 = vcombine.high %v5400_v52, %v5404_v54 }
 0x57f   :  { %9615 = vmatpush1.bf16.msra.mxu0 %v10702_v28  ;;  %9401 = vmatprep.subr.bf16.mxu1 %v10709_v55  ;;  %v5407_v28 = vld [vmem:[%s16208_s5 + $0xd90] sm:$0xff] }
 0x580   :  { %9616 = vmatprep.subr.bf16.mxu0 %v10711_v9  ;;  %v5411_v55 = vld [vmem:[%s16208_s5 + $0xdb0] sm:$0xff]  ;;  %v5618_v9 = vrot.slane %v15815_v3, %v13447_v57  ;;  %v5630_v57 = vrot.slane %v15815_v3, %v3177_v18  ;;  %v5416_v18 = vld [vmem:[%s16208_s5 + $0xdd8] sm:$0xff] }
 0x581   :  { %v10774_v24 = vcombine.low %v5416_v18, %v5420_v14 }
 0x582   :  { %9402 = vmatpush1.bf16.msra.mxu1 %v10708_v46  ;;  %v10756_v46 = vcombine.low %v5399_v35, %v5403_v36  ;;  %v5436_v35 = vld [vmem:[%s16208_s5 + $0xe78] sm:$0xff] }
 0x583   :  { %9617 = vmatpush1.bf16.msra.mxu0 %v10710_v48  ;;  %9414 = vmatprep.subr.bf16.mxu1 %v10717_v47  ;;  %v10758_v48 = vcombine.low %v5400_v52, %v5404_v54  ;;  %v10765_v47 = vcombine.high %v5407_v28, %v5411_v55 }
 0x584   :  { %9629 = vmatprep.subr.bf16.mxu0 %v10719_v51 }
 0x585   :  { %9404 = vmatmul.mubr.bf16.vlgmr.msra.gmra.mrb[48].mxu1 %v14279_v60 }
 0x586   :  { %9619 = vmatmul.mubr.bf16.vlgmr.msra.gmra.mrb[16].mxu0 %v14279_v60  ;;  %9415 = vmatpush1.bf16.msra.mxu1 %v10716_v62  ;;  %v5384_v60 = vld [vmem:[%s16208_s5 + $0xcd8] sm:$0xff] }
 0x587   :  { %9446 = vmatprep.mubr.bf16.mxu1 %v14876_v29  ;;  %9630 = vmatpush1.bf16.msra.mxu0 %v10718_v63  ;;  %v10743_v21 = vcombine.high %v5384_v60, %v5388_v31  ;;  %v10742_v26 = vcombine.low %v5384_v60, %v5388_v31  ;;  %v10775_v31 = vcombine.high %v5416_v18, %v5420_v14 }
 0x588   :  { %9661 = vmatprep.mubr.bf16.mxu0 %v14876_v29  ;;  %9416 = vmatprep.subr.bf16.mxu1 %v10725_v61  ;;  %v10732_v29 = vcombine.low %v5375_v4, %v5379_v19 }
 0x589   :  { %9631 = vmatprep.subr.bf16.mxu0 %v10727_v6  ;;  %v10764_v6 = vcombine.low %v5407_v28, %v5411_v55  ;;  %v5444_v28 = vld [vmem:[%s16208_s5 + $0xeb8] sm:$0xff] }
 0x58a   :  { %9417 = vmatpush1.bf16.msra.mxu1 %v10724_v15 }
 0x58b   :  { %9632 = vmatpush1.bf16.msra.mxu0 %v10726_v17  ;;  %9418 = vmatprep.subr.bf16.mxu1 %v10733_v20 }
 0x58c   :  { %9633 = vmatprep.subr.bf16.mxu0 %v10735_v37  ;;  %v10773_v37 = vcombine.high %v5415_v53, %v5419_v8  ;;  %v5455_v53 = vld [vmem:[%s16208_s5 + $0xf10] sm:$0xff] }
 0x58d   :  { %v5459_v8 = vld [vmem:[%s16208_s5 + $0xf30] sm:$0xff] }
 0x58e   :  { %9419 = vmatpush1.bf16.msra.mxu1 %v10732_v29  ;;  %v5423_v29 = vld [vmem:[%s16208_s5 + $0xe10] sm:$0xff]  ;;  %v10813_v14 = vcombine.high %v5455_v53, %v5459_v8 }
 0x58f   :  { %9634 = vmatpush1.bf16.msra.mxu0 %v10734_v34  ;;  %9420 = vmatprep.subr.bf16.mxu1 %v10741_v41  ;;  %v5427_v34 = vld [vmem:[%s16208_s5 + $0xe30] sm:$0xff] }
 0x590   :  { %9635 = vmatprep.subr.bf16.mxu0 %v10743_v21  ;;  %v5424_v21 = vld [vmem:[%s16208_s5 + $0xe18] sm:$0xff]  ;;  %v10781_v1 = vcombine.high %v5423_v29, %v5427_v34  ;;  %v10780_v36 = vcombine.low %v5423_v29, %v5427_v34 }
 0x591   :  { %v10782_v52 = vcombine.low %v5424_v21, %v5428_v43 }
 0x592   :  { %9421 = vmatpush1.bf16.msra.mxu1 %v10740_v42  ;;  %v10783_v42 = vcombine.high %v5424_v21, %v5428_v43  ;;  %v5483_v21 = vld [vmem:[%s16208_s5 + $0xff0] sm:$0xff]  ;;  %v5480_v43 = vld [vmem:[%s16208_s5 + $0xfd8] sm:$0xff] }
 0x593   :  { %9636 = vmatpush1.bf16.msra.mxu0 %v10742_v26  ;;  %9422 = vmatprep.subr.bf16.mxu1 %v10749_v27  ;;  %v5431_v26 = vld [vmem:[%s16208_s5 + $0xe50] sm:$0xff] }
 0x594   :  { %9637 = vmatprep.subr.bf16.mxu0 %v10751_v33  ;;  %v5435_v27 = vld [vmem:[%s16208_s5 + $0xe70] sm:$0xff]  ;;  %v5432_v33 = vld [vmem:[%s16208_s5 + $0xe58] sm:$0xff] }
 0x595   :  { %v10789_v54 = vcombine.high %v5431_v26, %v5435_v27  ;;  %v10788_v55 = vcombine.low %v5431_v26, %v5435_v27  ;;  %v5487_v27 = vld [vmem:[%s16208_s5 + $0x1010] sm:$0xff] }
 0x596   :  { %9423 = vmatpush1.bf16.msra.mxu1 %v10748_v59  ;;  %v10791_v59 = vcombine.high %v5432_v33, %v5436_v35 }
 0x597   :  { %9638 = vmatpush1.bf16.msra.mxu0 %v10750_v45  ;;  %9424 = vmatprep.subr.bf16.mxu1 %v10757_v44  ;;  %v5439_v45 = vld [vmem:[%s16208_s5 + $0xe90] sm:$0xff] }
 0x598   :  { %v9061_v51 = vpop.f32.mrb[44].mxu1  ;;  %9639 = vmatprep.subr.bf16.mxu0 %v10759_v25  ;;  %v5443_v44 = vld [vmem:[%s16208_s5 + $0xeb0] sm:$0xff]  ;;  %v5440_v25 = vld [vmem:[%s16208_s5 + $0xe98] sm:$0xff] }
 0x599   :  { %v11128_v58 = vadd.f32 %v9061_v51, %v5618_v9  ;;  %v9276_v62 = vpop.f32.mrb[12].mxu0  ;;  %v9063_v12 = vpop.f32.mrb[45].mxu1  ;;  %v10797_v22 = vcombine.high %v5439_v45, %v5443_v44  ;;  %v10799_v49 = vcombine.high %v5440_v25, %v5444_v28 }
 0x59a   :  { %v11132_v63 = vadd.f32 %v9276_v62, %v5626_v0  ;;  %v11129_v61 = vadd.f32 %v9063_v12, %v5622_v10  ;;  %v9278_v4 = vpop.f32.mrb[13].mxu0  ;;  %v9065_v19 = vpop.f32.mrb[46].mxu1  ;;  %9425 = vmatpush1.bf16.msra.mxu1 %v10756_v46  ;;  %v5448_v46 = vld [vmem:[%s16208_s5 + $0xed8] sm:$0xff] }
 0x59b   :  { %9715 = vst [vmem:[%s16211_s7] sm:$0xff] %v11128_v58  ;;  %v11133_v7 = vadd.f32 %v9278_v4, %v5630_v57  ;;  %v11130_v15 = vadd.f32 %v9065_v19, %v5618_v9  ;;  %v9280_v17 = vpop.f32.mrb[14].mxu0  ;;  %9640 = vmatpush1.bf16.msra.mxu0 %v10758_v48  ;;  %v9067_v20 = vpop.f32.mrb[47].mxu1  ;;  %9426 = vmatprep.subr.bf16.mxu1 %v10765_v47  ;;  %v5456_v58 = vld [vmem:[%s16208_s5 + $0xf18] sm:$0xff]  ;;  %v5467_v4 = vld [vmem:[%s16208_s5 + $0xf70] sm:$0xff] }
 0x59c   :  { %9717 = vst [vmem:[%s16211_s7 + $0x10] sm:$0xff] %v11132_v63  ;;  %9716 = vst [vmem:[%s16211_s7 + $0x8] sm:$0xff] %v11129_v61  ;;  %v11134_v39 = vadd.f32 %v9280_v17, %v5626_v0  ;;  %v11131_v38 = vadd.f32 %v9067_v20, %v5622_v10  ;;  %v9282_v60 = vpop.f32.mrb[15].mxu0  ;;  %9641 = vmatprep.subr.bf16.mxu0 %v10767_v50  ;;  %v10790_v9 = vcombine.low %v5432_v33, %v5436_v35  ;;  %v5447_v0 = vld [vmem:[%s16208_s5 + $0xed0] sm:$0xff]  ;;  %v5460_v62 = vld [vmem:[%s16208_s5 + $0xf38] sm:$0xff] }
 0x59d   :  { %9718 = vst [vmem:[%s16211_s7 + $0x18] sm:$0xff] %v11133_v7  ;;  %9723 = vst [vmem:[%s16211_s7 + $0x40] sm:$0xff] %v11130_v15  ;;  %v11135_v41 = vadd.f32 %v9282_v60, %v5630_v57  ;;  %v5451_v10 = vld [vmem:[%s16208_s5 + $0xef0] sm:$0xff]  ;;  %v5452_v57 = vld [vmem:[%s16208_s5 + $0xef8] sm:$0xff]  ;;  %v10796_v48 = vcombine.low %v5439_v45, %v5443_v44  ;;  %v10798_v47 = vcombine.low %v5440_v25, %v5444_v28 }
 0x59e   :  { %9725 = vst [vmem:[%s16211_s7 + $0x50] sm:$0xff] %v11134_v39  ;;  %9724 = vst [vmem:[%s16211_s7 + $0x48] sm:$0xff] %v11131_v38  ;;  %9427 = vmatpush1.bf16.msra.mxu1 %v10764_v6  ;;  %v10805_v51 = vcombine.high %v5447_v0, %v5451_v10  ;;  %v10807_v50 = vcombine.high %v5448_v46, %v5452_v57  ;;  %v10804_v12 = vcombine.low %v5447_v0, %v5451_v10  ;;  %v5463_v61 = vld [vmem:[%s16208_s5 + $0xf50] sm:$0xff]  ;;  %v5464_v19 = vld [vmem:[%s16208_s5 + $0xf58] sm:$0xff] }
 0x59f   :  { %9726 = vst [vmem:[%s16211_s7 + $0x58] sm:$0xff] %v11135_v41  ;;  %9642 = vmatpush1.bf16.msra.mxu0 %v10766_v56  ;;  %9428 = vmatprep.subr.bf16.mxu1 %v10773_v37  ;;  %v10806_v18 = vcombine.low %v5448_v46, %v5452_v57  ;;  %v10815_v63 = vcombine.high %v5456_v58, %v5460_v62  ;;  %v5468_v6 = vld [vmem:[%s16208_s5 + $0xf78] sm:$0xff]  ;;  %v5471_v20 = vld [vmem:[%s16208_s5 + $0xf90] sm:$0xff] }
 0x5a0   :  { %9643 = vmatprep.subr.bf16.mxu0 %v10775_v31  ;;  %v10812_v56 = vcombine.low %v5455_v53, %v5459_v8  ;;  %v10814_v7 = vcombine.low %v5456_v58, %v5460_v62  ;;  %v10821_v15 = vcombine.high %v5463_v61, %v5467_v4  ;;  %v10823_v17 = vcombine.high %v5464_v19, %v5468_v6  ;;  %v5475_v37 = vld [vmem:[%s16208_s5 + $0xfb0] sm:$0xff]  ;;  %v5472_v39 = vld [vmem:[%s16208_s5 + $0xf98] sm:$0xff] }
 0x5a1   :  { %v5476_v38 = vld [vmem:[%s16208_s5 + $0xfb8] sm:$0xff]  ;;  %v10820_v60 = vcombine.low %v5463_v61, %v5467_v4  ;;  %v10822_v31 = vcombine.low %v5464_v19, %v5468_v6  ;;  %v10829_v29 = vcombine.high %v5471_v20, %v5475_v37  ;;  %v5479_v41 = vld [vmem:[%s16208_s5 + $0xfd0] sm:$0xff] }
 0x5a2   :  { %9429 = vmatpush1.bf16.msra.mxu1 %v10772_v23  ;;  %v10831_v34 = vcombine.high %v5472_v39, %v5476_v38  ;;  %v5484_v23 = vld [vmem:[%s16208_s5 + $0xff8] sm:$0xff]  ;;  %v5491_v33 = vld [vmem:[%s16208_s5 + $0x1030] sm:$0xff] }
 0x5a3   :  { %9644 = vmatpush1.bf16.msra.mxu0 %v10774_v24  ;;  %9430 = vmatprep.subr.bf16.mxu1 %v10781_v1  ;;  %v10828_v24 = vcombine.low %v5471_v20, %v5475_v37  ;;  %v10830_v1 = vcombine.low %v5472_v39, %v5476_v38  ;;  %v10839_v26 = vcombine.high %v5480_v43, %v5484_v23  ;;  %v5488_v35 = vld [vmem:[%s16208_s5 + $0x1018] sm:$0xff]  ;;  %v5495_v44 = vld [vmem:[%s16208_s5 + $0x1050] sm:$0xff] }
 0x5a4   :  { %9645 = vmatprep.subr.bf16.mxu0 %v10783_v42  ;;  %v10837_v42 = vcombine.high %v5479_v41, %v5483_v21  ;;  %v5499_v25 = vld [vmem:[%s16208_s5 + $0x1070] sm:$0xff]  ;;  %v10844_v28 = vcombine.low %v5487_v27, %v5491_v33  ;;  %v5504_v57 = vld [vmem:[%s16208_s5 + $0x1098] sm:$0xff] }
 0x5a5   :  { %v5503_v0 = vld [vmem:[%s16208_s5 + $0x1090] sm:$0xff]  ;;  %v5516_v62 = vld [vmem:[%s16208_s5 + $0x10f8] sm:$0xff] }
 0x5a6   :  { %9431 = vmatpush1.bf16.msra.mxu1 %v10780_v36  ;;  %v5492_v36 = vld [vmem:[%s16208_s5 + $0x1038] sm:$0xff]  ;;  %v5507_v10 = vld [vmem:[%s16208_s5 + $0x10b0] sm:$0xff] }
 0x5a7   :  { %9646 = vmatpush1.bf16.msra.mxu0 %v10782_v52  ;;  %9432 = vmatprep.subr.bf16.mxu1 %v10789_v54  ;;  %v10836_v52 = vcombine.low %v5479_v41, %v5483_v21  ;;  %v10838_v54 = vcombine.low %v5480_v43, %v5484_v23  ;;  %v10847_v45 = vcombine.high %v5488_v35, %v5492_v36  ;;  %v5511_v8 = vld [vmem:[%s16208_s5 + $0x10d0] sm:$0xff]  ;;  %v5520_v4 = vld [vmem:[%s16208_s5 + $0x1118] sm:$0xff] }
 0x5a8   :  { %9647 = vmatprep.subr.bf16.mxu0 %v10791_v59  ;;  %v10845_v59 = vcombine.high %v5487_v27, %v5491_v33  ;;  %v5515_v58 = vld [vmem:[%s16208_s5 + $0x10f0] sm:$0xff]  ;;  %v5524_v19 = vld [vmem:[%s16208_s5 + $0x1138] sm:$0xff] }
 0x5a9   :  { %v5523_v61 = vld [vmem:[%s16208_s5 + $0x1130] sm:$0xff]  ;;  %v10868_v6 = vcombine.low %v5511_v8, %v5515_v58  ;;  %v5528_v37 = vld [vmem:[%s16208_s5 + $0x1158] sm:$0xff] }
 0x5aa   :  { %9433 = vmatpush1.bf16.msra.mxu1 %v10788_v55  ;;  %v5496_v55 = vld [vmem:[%s16208_s5 + $0x1058] sm:$0xff]  ;;  %v5531_v20 = vld [vmem:[%s16208_s5 + $0x1170] sm:$0xff] }
 0x5ab   :  { %9648 = vmatpush1.bf16.msra.mxu0 %v10790_v9  ;;  %9434 = vmatprep.subr.bf16.mxu1 %v10797_v22  ;;  %v5500_v9 = vld [vmem:[%s16208_s5 + $0x1078] sm:$0xff]  ;;  %v10846_v22 = vcombine.low %v5488_v35, %v5492_v36  ;;  %v5539_v41 = vld [vmem:[%s16208_s5 + $0x11b0] sm:$0xff] }
 0x5ac   :  { %9649 = vmatprep.subr.bf16.mxu0 %v10799_v49  ;;  %v10853_v49 = vcombine.high %v5495_v44, %v5499_v25  ;;  %v10855_v46 = vcombine.high %v5496_v55, %v5500_v9  ;;  %v5532_v39 = vld [vmem:[%s16208_s5 + $0x1178] sm:$0xff]  ;;  %v5547_v27 = vld [vmem:[%s16208_s5 + $0x11f0] sm:$0xff] }
 0x5ad   :  { %v5536_v21 = vld [vmem:[%s16208_s5 + $0x1198] sm:$0xff] }
 0x5ae   :  { %9435 = vmatpush1.bf16.msra.mxu1 %v10796_v48  ;;  %v5508_v48 = vld [vmem:[%s16208_s5 + $0x10b8] sm:$0xff] }
 0x5af   :  { %9650 = vmatpush1.bf16.msra.mxu0 %v10798_v47  ;;  %9436 = vmatprep.subr.bf16.mxu1 %v10805_v51  ;;  %v10852_v47 = vcombine.low %v5495_v44, %v5499_v25  ;;  %v10854_v51 = vcombine.low %v5496_v55, %v5500_v9  ;;  %v10863_v53 = vcombine.high %v5504_v57, %v5508_v48  ;;  %v5540_v43 = vld [vmem:[%s16208_s5 + $0x11b8] sm:$0xff]  ;;  %v5555_v44 = vld [vmem:[%s16208_s5 + $0x1230] sm:$0xff] }
 0x5b0   :  { %9651 = vmatprep.subr.bf16.mxu0 %v10807_v50  ;;  %v10861_v50 = vcombine.high %v5503_v0, %v5507_v10  ;;  %v5544_v33 = vld [vmem:[%s16208_s5 + $0x11d8] sm:$0xff] }
 0x5b1   :  { %v5548_v35 = vld [vmem:[%s16208_s5 + $0x11f8] sm:$0xff] }
 0x5b2   :  { %9437 = vmatpush1.bf16.msra.mxu1 %v10804_v12  ;;  %v10862_v12 = vcombine.low %v5504_v57, %v5508_v48  ;;  %v5552_v25 = vld [vmem:[%s16208_s5 + $0x1218] sm:$0xff]  ;;  %v10902_v9 = vcombine.low %v5544_v33, %v5548_v35 }
 0x5b3   :  { %9652 = vmatpush1.bf16.msra.mxu0 %v10806_v18  ;;  %9438 = vmatprep.subr.bf16.mxu1 %v10813_v14  ;;  %v10869_v18 = vcombine.high %v5511_v8, %v5515_v58  ;;  %v5564_v57 = vld [vmem:[%s16208_s5 + $0x1278] sm:$0xff]  ;;  %v5571_v8 = vld [vmem:[%s16208_s5 + $0x12b0] sm:$0xff] }
 0x5b4   :  { %9653 = vmatprep.subr.bf16.mxu0 %v10815_v63  ;;  %v5519_v63 = vld [vmem:[%s16208_s5 + $0x1110] sm:$0xff]  ;;  %v5568_v58 = vld [vmem:[%s16208_s5 + $0x1298] sm:$0xff] }
 0x5b5   :  { %v10876_v38 = vcombine.low %v5519_v63, %v5523_v61 }
 0x5b6   :  { %9439 = vmatpush1.bf16.msra.mxu1 %v10812_v56 }
 0x5b7   :  { %9654 = vmatpush1.bf16.msra.mxu0 %v10814_v7  ;;  %9440 = vmatprep.subr.bf16.mxu1 %v10821_v15  ;;  %v10877_v7 = vcombine.high %v5519_v63, %v5523_v61  ;;  %v10879_v15 = vcombine.high %v5520_v4, %v5524_v19  ;;  %v5579_v63 = vld [vmem:[%s16208_s5 + $0x12f0] sm:$0xff]  ;;  %v5576_v61 = vld [vmem:[%s16208_s5 + $0x12d8] sm:$0xff] }
 0x5b8   :  { %9655 = vmatprep.subr.bf16.mxu0 %v10823_v17  ;;  %v5527_v17 = vld [vmem:[%s16208_s5 + $0x1150] sm:$0xff] }
 0x5b9   :  { %v10884_v23 = vcombine.low %v5527_v17, %v5531_v20 }
 0x5ba   :  { %9441 = vmatpush1.bf16.msra.mxu1 %v10820_v60  ;;  %v10878_v60 = vcombine.low %v5520_v4, %v5524_v19  ;;  %v5580_v4 = vld [vmem:[%s16208_s5 + $0x12f8] sm:$0xff] }
 0x5bb   :  { %9656 = vmatpush1.bf16.msra.mxu0 %v10822_v31  ;;  %9442 = vmatprep.subr.bf16.mxu1 %v10829_v29  ;;  %v10885_v31 = vcombine.high %v5527_v17, %v5531_v20  ;;  %v10887_v29 = vcombine.high %v5528_v37, %v5532_v39  ;;  %v5587_v17 = vld [vmem:[%s16208_s5 + $0x1330] sm:$0xff]  ;;  %v5584_v20 = vld [vmem:[%s16208_s5 + $0x1318] sm:$0xff] }
 0x5bc   :  { %9657 = vmatprep.subr.bf16.mxu0 %v10831_v34  ;;  %v5535_v34 = vld [vmem:[%s16208_s5 + $0x1190] sm:$0xff] }
 0x5bd   :  { %v10892_v36 = vcombine.low %v5535_v34, %v5539_v41 }
 0x5be   :  { %9443 = vmatpush1.bf16.msra.mxu1 %v10828_v24  ;;  %v10886_v24 = vcombine.low %v5528_v37, %v5532_v39  ;;  %v5588_v37 = vld [vmem:[%s16208_s5 + $0x1338] sm:$0xff] }
 0x5bf   :  { %9658 = vmatpush1.bf16.msra.mxu0 %v10830_v1  ;;  %9444 = vmatprep.subr.bf16.mxu1 %v10837_v42  ;;  %v10893_v1 = vcombine.high %v5535_v34, %v5539_v41  ;;  %v10895_v42 = vcombine.high %v5536_v21, %v5540_v43  ;;  %v5595_v34 = vld [vmem:[%s16208_s5 + $0x1370] sm:$0xff]  ;;  %v5592_v41 = vld [vmem:[%s16208_s5 + $0x1358] sm:$0xff] }
 0x5c0   :  { %9659 = vmatprep.subr.bf16.mxu0 %v10839_v26  ;;  %v5543_v26 = vld [vmem:[%s16208_s5 + $0x11d0] sm:$0xff] }
 0x5c1   :  { %v10900_v55 = vcombine.low %v5543_v26, %v5547_v27 }
 0x5c2   :  { %9445 = vmatpush1.bf16.msra.mxu1 %v10836_v52  ;;  %v10894_v52 = vcombine.low %v5536_v21, %v5540_v43  ;;  %v5596_v21 = vld [vmem:[%s16208_s5 + $0x1378] sm:$0xff] }
 0x5c3   :  { %9660 = vmatpush1.bf16.msra.mxu0 %v10838_v54  ;;  %9457 = vmatprep.subr.bf16.mxu1 %v10845_v59  ;;  %v10901_v54 = vcombine.high %v5543_v26, %v5547_v27  ;;  %v10903_v59 = vcombine.high %v5544_v33, %v5548_v35  ;;  %v5603_v26 = vld [vmem:[%s16208_s5 + $0x13b0] sm:$0xff]  ;;  %v5600_v27 = vld [vmem:[%s16208_s5 + $0x1398] sm:$0xff] }
 0x5c4   :  { %9672 = vmatprep.subr.bf16.mxu0 %v10847_v45  ;;  %v5551_v45 = vld [vmem:[%s16208_s5 + $0x1210] sm:$0xff]  ;;  %v5604_v33 = vld [vmem:[%s16208_s5 + $0x13b8] sm:$0xff] }
 0x5c5   :  { %9447 = vmatmul.mubr.bf16.vlgmr.msra.gmra.mrb[48].mxu1 %v14865_v40  ;;  %v10908_v48 = vcombine.low %v5551_v45, %v5555_v44 }
 0x5c6   :  { %9662 = vmatmul.mubr.bf16.vlgmr.msra.gmra.mrb[16].mxu0 %v14865_v40  ;;  %9458 = vmatpush1.bf16.msra.mxu1 %v10844_v28  ;;  %v5512_v40 = vld [vmem:[%s16208_s5 + $0x10d8] sm:$0xff] }
 0x5c7   :  { %9489 = vmatprep.mubr.bf16.mxu1 %v14551_v2  ;;  %9673 = vmatpush1.bf16.msra.mxu0 %v10846_v22  ;;  %v10871_v14 = vcombine.high %v5512_v40, %v5516_v62  ;;  %v10870_v56 = vcombine.low %v5512_v40, %v5516_v62  ;;  %v5556_v28 = vld [vmem:[%s16208_s5 + $0x1238] sm:$0xff]  ;;  %v10909_v22 = vcombine.high %v5551_v45, %v5555_v44  ;;  %v5611_v45 = vld [vmem:[%s16208_s5 + $0x13f0] sm:$0xff] }
 0x5c8   :  { %9704 = vmatprep.mubr.bf16.mxu0 %v14551_v2  ;;  %9459 = vmatprep.subr.bf16.mxu1 %v10853_v49  ;;  %v10860_v2 = vcombine.low %v5503_v0, %v5507_v10  ;;  %v10911_v49 = vcombine.high %v5552_v25, %v5556_v28  ;;  %v5559_v0 = vld [vmem:[%s16208_s5 + $0x1250] sm:$0xff]  ;;  %v5572_v40 = vld [vmem:[%s16208_s5 + $0x12b8] sm:$0xff] }
 0x5c9   :  { %9674 = vmatprep.subr.bf16.mxu0 %v10855_v46  ;;  %v5563_v10 = vld [vmem:[%s16208_s5 + $0x1270] sm:$0xff]  ;;  %v5560_v46 = vld [vmem:[%s16208_s5 + $0x1258] sm:$0xff] }
 0x5ca   :  { %9460 = vmatpush1.bf16.msra.mxu1 %v10852_v47  ;;  %v10910_v47 = vcombine.low %v5552_v25, %v5556_v28  ;;  %v10916_v62 = vcombine.low %v5559_v0, %v5563_v10  ;;  %v5608_v44 = vld [vmem:[%s16208_s5 + $0x13d8] sm:$0xff] }
 0x5cb   :  { %9675 = vmatpush1.bf16.msra.mxu0 %v10854_v51  ;;  %9461 = vmatprep.subr.bf16.mxu1 %v10861_v50  ;;  %v10917_v51 = vcombine.high %v5559_v0, %v5563_v10  ;;  %v10919_v50 = vcombine.high %v5560_v46, %v5564_v57  ;;  %v5612_v25 = vld [vmem:[%s16208_s5 + $0x13f8] sm:$0xff]  ;;  %v5634_v10 = vrot.slane %v15815_v3, %v3181_v16 }
 0x5cc   :  { %9676 = vmatprep.subr.bf16.mxu0 %v10863_v53  ;;  %v5567_v53 = vld [vmem:[%s16208_s5 + $0x1290] sm:$0xff]  ;;  %v10966_v0 = vcombine.low %v5608_v44, %v5612_v25 }
 0x5cd   :  { %v10924_v19 = vcombine.low %v5567_v53, %v5571_v8 }
 0x5ce   :  { %9462 = vmatpush1.bf16.msra.mxu1 %v10860_v2  ;;  %v10918_v2 = vcombine.low %v5560_v46, %v5564_v57  ;;  %v5642_v46 = vrot.slane %v15815_v3, %v3189_v32  ;;  %v5638_v57 = vrot.slane %v15815_v3, %v3185_v30 }
 0x5cf   :  { %9677 = vmatpush1.bf16.msra.mxu0 %v10862_v12  ;;  %9463 = vmatprep.subr.bf16.mxu1 %v10869_v18  ;;  %v10925_v12 = vcombine.high %v5567_v53, %v5571_v8  ;;  %v10927_v18 = vcombine.high %v5568_v58, %v5572_v40 }
 0x5d0   :  { %9678 = vmatprep.subr.bf16.mxu0 %v10871_v14  ;;  %v5575_v14 = vld [vmem:[%s16208_s5 + $0x12d0] sm:$0xff] }
 0x5d1   :  { %v10932_v39 = vcombine.low %v5575_v14, %v5579_v63 }
 0x5d2   :  { %9464 = vmatpush1.bf16.msra.mxu1 %v10868_v6  ;;  %v10926_v6 = vcombine.low %v5568_v58, %v5572_v40 }
 0x5d3   :  { %9679 = vmatpush1.bf16.msra.mxu0 %v10870_v56  ;;  %9465 = vmatprep.subr.bf16.mxu1 %v10877_v7  ;;  %v10933_v56 = vcombine.high %v5575_v14, %v5579_v63  ;;  %v10935_v7 = vcombine.high %v5576_v61, %v5580_v4 }
 0x5d4   :  { %9680 = vmatprep.subr.bf16.mxu0 %v10879_v15  ;;  %v5583_v15 = vld [vmem:[%s16208_s5 + $0x1310] sm:$0xff] }
 0x5d5   :  { %v10940_v43 = vcombine.low %v5583_v15, %v5587_v17 }
 0x5d6   :  { %9466 = vmatpush1.bf16.msra.mxu1 %v10876_v38  ;;  %v10934_v38 = vcombine.low %v5576_v61, %v5580_v4 }
 0x5d7   :  { %9681 = vmatpush1.bf16.msra.mxu0 %v10878_v60  ;;  %9467 = vmatprep.subr.bf16.mxu1 %v10885_v31  ;;  %v10941_v60 = vcombine.high %v5583_v15, %v5587_v17  ;;  %v10943_v31 = vcombine.high %v5584_v20, %v5588_v37 }
 0x5d8   :  { %9682 = vmatprep.subr.bf16.mxu0 %v10887_v29  ;;  %v5591_v29 = vld [vmem:[%s16208_s5 + $0x1350] sm:$0xff] }
 0x5d9   :  { %v10948_v35 = vcombine.low %v5591_v29, %v5595_v34 }
 0x5da   :  { %9468 = vmatpush1.bf16.msra.mxu1 %v10884_v23  ;;  %v10942_v23 = vcombine.low %v5584_v20, %v5588_v37 }
 0x5db   :  { %9683 = vmatpush1.bf16.msra.mxu0 %v10886_v24  ;;  %9469 = vmatprep.subr.bf16.mxu1 %v10893_v1  ;;  %v10949_v24 = vcombine.high %v5591_v29, %v5595_v34  ;;  %v10951_v1 = vcombine.high %v5592_v41, %v5596_v21 }
 0x5dc   :  { %9684 = vmatprep.subr.bf16.mxu0 %v10895_v42  ;;  %v5599_v42 = vld [vmem:[%s16208_s5 + $0x1390] sm:$0xff] }
 0x5dd   :  { %v10956_v28 = vcombine.low %v5599_v42, %v5603_v26 }
 0x5de   :  { %9470 = vmatpush1.bf16.msra.mxu1 %v10892_v36  ;;  %v10950_v36 = vcombine.low %v5592_v41, %v5596_v21 }
 0x5df   :  { %9685 = vmatpush1.bf16.msra.mxu0 %v10894_v52  ;;  %9471 = vmatprep.subr.bf16.mxu1 %v10901_v54  ;;  %v10957_v52 = vcombine.high %v5599_v42, %v5603_v26  ;;  %v10959_v54 = vcombine.high %v5600_v27, %v5604_v33 }
 0x5e0   :  { %9686 = vmatprep.subr.bf16.mxu0 %v10903_v59  ;;  %v5607_v59 = vld [vmem:[%s16208_s5 + $0x13d0] sm:$0xff] }
 0x5e2   :  { %9472 = vmatpush1.bf16.msra.mxu1 %v10900_v55  ;;  %v10958_v55 = vcombine.low %v5600_v27, %v5604_v33 }
 0x5e3   :  { %9687 = vmatpush1.bf16.msra.mxu0 %v10902_v9  ;;  %9473 = vmatprep.subr.bf16.mxu1 %v10909_v22  ;;  %v10965_v9 = vcombine.high %v5607_v59, %v5611_v45  ;;  %v10967_v22 = vcombine.high %v5608_v44, %v5612_v25 }
 0x5e4   :  { %9688 = vmatprep.subr.bf16.mxu0 %v10911_v49  ;;  %v10964_v49 = vcombine.low %v5607_v59, %v5611_v45 }
 0x5e6   :  { %9474 = vmatpush1.bf16.msra.mxu1 %v10908_v48  ;;  %v5646_v48 = vrot.slane %v15815_v3, %v3193_v13 }
 0x5e7   :  { %9689 = vmatpush1.bf16.msra.mxu0 %v10910_v47  ;;  %9475 = vmatprep.subr.bf16.mxu1 %v10917_v51 }
 0x5e8   :  { %9690 = vmatprep.subr.bf16.mxu0 %v10919_v50 }
 0x5ea   :  { %9476 = vmatpush1.bf16.msra.mxu1 %v10916_v62 }
 0x5eb   :  { %9691 = vmatpush1.bf16.msra.mxu0 %v10918_v2  ;;  %9477 = vmatprep.subr.bf16.mxu1 %v10925_v12 }
 0x5ec   :  { %9692 = vmatprep.subr.bf16.mxu0 %v10927_v18 }
 0x5ee   :  { %9478 = vmatpush1.bf16.msra.mxu1 %v10924_v19 }
 0x5ef   :  { %9693 = vmatpush1.bf16.msra.mxu0 %v10926_v6  ;;  %9479 = vmatprep.subr.bf16.mxu1 %v10933_v56 }
 0x5f0   :  { %9694 = vmatprep.subr.bf16.mxu0 %v10935_v7 }
 0x5f2   :  { %9480 = vmatpush1.bf16.msra.mxu1 %v10932_v39 }
 0x5f3   :  { %9695 = vmatpush1.bf16.msra.mxu0 %v10934_v38  ;;  %9481 = vmatprep.subr.bf16.mxu1 %v10941_v60 }
 0x5f4   :  { %9696 = vmatprep.subr.bf16.mxu0 %v10943_v31 }
 0x5f6   :  { %9482 = vmatpush1.bf16.msra.mxu1 %v10940_v43 }
 0x5f7   :  { %9697 = vmatpush1.bf16.msra.mxu0 %v10942_v23  ;;  %9483 = vmatprep.subr.bf16.mxu1 %v10949_v24 }
 0x5f8   :  { %9698 = vmatprep.subr.bf16.mxu0 %v10951_v1 }
 0x5fa   :  { %9484 = vmatpush1.bf16.msra.mxu1 %v10948_v35 }
 0x5fb   :  { %9699 = vmatpush1.bf16.msra.mxu0 %v10950_v36  ;;  %9485 = vmatprep.subr.bf16.mxu1 %v10957_v52 }
 0x5fc   :  { %9700 = vmatprep.subr.bf16.mxu0 %v10959_v54 }
 0x5fe   :  { %9486 = vmatpush1.bf16.msra.mxu1 %v10956_v28 }
 0x5ff   :  { %9701 = vmatpush1.bf16.msra.mxu0 %v10958_v55  ;;  %9487 = vmatprep.subr.bf16.mxu1 %v10965_v9 }
 0x600   :  { %9702 = vmatprep.subr.bf16.mxu0 %v10967_v22 }
 0x602   :  { %9488 = vmatpush1.bf16.msra.mxu1 %v10964_v49 }
 0x603   :  { %9703 = vmatpush1.bf16.msra.mxu0 %v10966_v0 }
 0x605   :  { %9490 = vmatmul.mubr.bf16.vlgmr.msra.gmra.mrb[48].mxu1 %v14532_v11 }
 0x606   :  { %9705 = vmatmul.mubr.bf16.vlgmr.msra.gmra.mrb[16].mxu0 %v14532_v11 }
 0x6d8   :  { %v9491_v47 = vpop.f32.mrb[48].mxu1 }
 0x6d9   :  { %v11136_v51 = vadd.f32 %v9491_v47, %v5634_v10  ;;  %v9706_v50 = vpop.f32.mrb[16].mxu0  ;;  %v9493_v11 = vpop.f32.mrb[49].mxu1 }
 0x6da   :  { %v11140_v53 = vadd.f32 %v9706_v50, %v5642_v46  ;;  %v11137_v8 = vadd.f32 %v9493_v11, %v5638_v57  ;;  %v9708_v58 = vpop.f32.mrb[17].mxu0  ;;  %v9495_v16 = vpop.f32.mrb[50].mxu1 }
 0x6db   :  { %9719 = vst [vmem:[%s16211_s7 + $0x20] sm:$0xff] %v11136_v51  ;;  %v11141_v32 = vadd.f32 %v9708_v58, %v5646_v48  ;;  %v11138_v40 = vadd.f32 %v9495_v16, %v5634_v10  ;;  %v9710_v62 = vpop.f32.mrb[18].mxu0  ;;  %v9497_v30 = vpop.f32.mrb[51].mxu1 }
 0x6dc   :  { %9721 = vst [vmem:[%s16211_s7 + $0x30] sm:$0xff] %v11140_v53  ;;  %9720 = vst [vmem:[%s16211_s7 + $0x28] sm:$0xff] %v11137_v8  ;;  %v11142_v5 = vadd.f32 %v9710_v62, %v5642_v46  ;;  %v11139_v13 = vadd.f32 %v9497_v30, %v5638_v57  ;;  %v9712_v3 = vpop.f32.mrb[19].mxu0 }
 0x6dd   :  { %9722 = vst [vmem:[%s16211_s7 + $0x38] sm:$0xff] %v11141_v32  ;;  %9727 = vst [vmem:[%s16211_s7 + $0x60] sm:$0xff] %v11138_v40  ;;  %v11143_v2 = vadd.f32 %v9712_v3, %v5646_v48 }
 0x6de   :  { %9729 = vst [vmem:[%s16211_s7 + $0x70] sm:$0xff] %v11142_v5  ;;  %9728 = vst [vmem:[%s16211_s7 + $0x68] sm:$0xff] %v11139_v13 }
 0x6df   :  { %9730 = vst [vmem:[%s16211_s7 + $0x78] sm:$0xff] %v11143_v2 }

</bundles_post_ra>
